<compile_context>
chip_gen: v6e
topology: v6e:2x2x1
jax: 0.10.0
libtpu: 0.0.40
codegen_flags: <defaults>
</compile_context>

<pallas_src>
import functools

import jax
import jax.numpy as jnp
from jax.experimental import pallas as pl
from jax.experimental.pallas import tpu as pltpu

F32 = jnp.float32


# ---------------------------------------------------------------------------
# The single fused kernel
# ---------------------------------------------------------------------------
def _fused_unet_kernel(
    x_ref,
    stem_w_ref, e1_w_ref, e2_w_ref, d1_w_ref, d0_w_ref, head_w_ref,
    se1_w1_ref, se1_w2_ref, se2_w1_ref, se2_w2_ref,
    bias_ref,
    sd0_ref, sd1_ref, su1_ref, su0_ref,
    pool1_ref, exp1_ref, pool2_ref, exp2_ref,
    o_ref,
    *, b, h0, w0, bias_offsets,
):
    h1, w1 = h0 // 2, w0 // 2
    n0 = b * h0 * w0
    n1 = b * h1 * w1

    def hw_index(n, height, width):
        idx = jax.lax.broadcasted_iota(jnp.int32, (1, n), 1)
        wp = jax.lax.rem(idx, jnp.int32(width))
        hp = jax.lax.rem(jax.lax.div(idx, jnp.int32(width)), jnp.int32(height))
        return hp, wp

    hp0, wp0 = hw_index(n0, h0, w0)
    hp1, wp1 = hw_index(n1, h1, w1)

    def conv3x3(x, w_ref, hp, wp, height, width):
        """3x3 'same' conv as ONE deep-contraction matmul on a stacked tap slab.

        x: (Cin, N) f32, columns ordered (b, h, w) row-major.
        w_ref: (Cout, 9*Cin) packed tap-major / channel-minor.
        """
        n = x.shape[1]
        taps = []
        for dy in (-1, 0, 1):
            for dx in (-1, 0, 1):
                k = dy * width + dx                 # column shift of this tap
                xs = x if k == 0 else pltpu.roll(x, shift=(-k) % n, axis=1)
                if dy != 0 or dx != 0:
                    valid = ((hp + dy >= 0) & (hp + dy < height) &
                             (wp + dx >= 0) & (wp + dx < width))
                    xs = xs * valid.astype(F32)     # zero padding + kill wraps
                taps.append(xs)
        slab = jnp.concatenate(taps, axis=0)        # (9*Cin, N)
        return jnp.dot(w_ref[...], slab, preferred_element_type=F32)

    def bias(name):
        off, size = bias_offsets[name]
        return bias_ref[off:off + size, :]          # (C, 1) column

    def se(x, w1_ref, w2_ref, b1, b2, pool_ref, exp_ref):
        """Squeeze-Excitation epilogue: pool -> FC -> ReLU -> FC -> sigmoid -> scale."""
        pooled = jnp.dot(x, pool_ref[...], preferred_element_type=F32)   # (C, B)
        hid = jnp.maximum(jnp.dot(w1_ref[...], pooled,
                                  preferred_element_type=F32) + b1, 0.0)
        g = jax.nn.sigmoid(jnp.dot(w2_ref[...], hid,
                                   preferred_element_type=F32) + b2)     # (C, B)
        gate = jnp.dot(g, exp_ref[...], preferred_element_type=F32)      # (C, N)
        return x * gate

    x0 = x_ref[...]                                                      # (8, N0)

    # ---- encoder ----
    e0 = jnp.maximum(conv3x3(x0, stem_w_ref, hp0, wp0, h0, w0) + bias("stem"), 0.0)
    c1 = jnp.maximum(conv3x3(e0, e1_w_ref, hp0, wp0, h0, w0) + bias("e1"), 0.0)
    # stride-2 == stride-1 conv + 0/1 column selection (noise at this size).
    e1 = jnp.dot(c1, sd0_ref[...], preferred_element_type=F32)           # (32, N1)
    e1 = se(e1, se1_w1_ref, se1_w2_ref, bias("se1_1"), bias("se1_2"),
            pool1_ref, exp1_ref)
    c2 = jnp.maximum(conv3x3(e1, e2_w_ref, hp1, wp1, h1, w1) + bias("e2"), 0.0)
    e2 = jnp.dot(c2, sd1_ref[...], preferred_element_type=F32)           # (64, N2)
    e2 = se(e2, se2_w1_ref, se2_w2_ref, bias("se2_1"), bias("se2_2"),
            pool2_ref, exp2_ref)

    # ---- decoder: 2x nearest upsample + skip concat -> ONE merged conv each ----
    u1 = jnp.dot(e2, su1_ref[...], preferred_element_type=F32)           # (64, N1)
    d1 = conv3x3(jnp.concatenate([u1, e1], axis=0), d1_w_ref, hp1, wp1, h1, w1)
    d1 = jnp.maximum(d1 + bias("d1"), 0.0)                               # (32, N1)
    u0 = jnp.dot(d1, su0_ref[...], preferred_element_type=F32)           # (32, N0)
    d0 = conv3x3(jnp.concatenate([u0, e0], axis=0), d0_w_ref, hp0, wp0, h0, w0)
    d0 = jnp.maximum(d0 + bias("d0"), 0.0)                               # (16, N0)

    # ---- 1x1 class head, lane-dense (num_classes, B*H*W) writeback ----
    out = jnp.dot(head_w_ref[...], d0, preferred_element_type=F32) + bias("head")
    o_ref[...] = out.astype(o_ref.dtype)


# ---------------------------------------------------------------------------
# Constant helpers (built ONCE in build_forward, not per call)
# ---------------------------------------------------------------------------
def _down_select(b, h, w):
    """(B*H*W, B*(H/2)*(W/2)) 0/1 column-selection matrix for stride-2."""
    ho, wo = h // 2, w // 2
    j = jnp.arange(b * ho * wo)
    bb = j // (ho * wo)
    r = j % (ho * wo)
    src = bb * h * w + (r // wo) * 2 * w + (r % wo) * 2
    return jax.nn.one_hot(src, b * h * w, axis=0, dtype=F32)


def _up_select(b, h, w):
    """(B*(H/2)*(W/2), B*H*W) duplication matrix for 2x nearest upsample."""
    hc, wc = h // 2, w // 2
    j = jnp.arange(b * h * w)
    bb = j // (h * w)
    r = j % (h * w)
    src = bb * hc * wc + ((r // w) // 2) * wc + ((r % w) // 2)
    return jax.nn.one_hot(src, b * hc * wc, axis=0, dtype=F32)


def _batch_pool(b, h, w):
    """Per-batch global-avg-pool (N, B) and broadcast-back (B, N) matrices."""
    n = b * h * w
    member = jax.nn.one_hot(jnp.arange(n) // (h * w), b, dtype=F32)
    return member / float(h * w), member.T


def _pack_conv(w, cin_pad=None):
    """(Cout, Cin, 3, 3) -> (Cout, 9*Cin) tap-major / channel-minor packing."""
    cout, cin, kh, kw = w.shape
    if cin_pad is not None and cin_pad > cin:
        w = jnp.concatenate(
            [w, jnp.zeros((cout, cin_pad - cin, kh, kw), w.dtype)], axis=1)
        cin = cin_pad
    return jnp.transpose(w, (0, 2, 3, 1)).reshape(cout, kh * kw * cin).astype(F32)


def _pack_biases(params):
    """Concatenate every bias into one (total, 1) column; return static offsets."""
    order = [("stem", params["stem_b"]), ("e1", params["e1_b"]),
             ("e2", params["e2_b"]), ("d1", params["d1_b"]),
             ("d0", params["d0_b"]), ("se1_1", params["se1_b1"]),
             ("se1_2", params["se1_b2"]), ("se2_1", params["se2_b1"]),
             ("se2_2", params["se2_b2"]), ("head", params["head_b"])]
    offsets, cols, off = {}, [], 0
    for name, v in order:
        size = int(v.shape[0])
        offsets[name] = (off, size)
        cols.append(v.reshape(size, 1).astype(F32))
        off += size
    return jnp.concatenate(cols, axis=0), offsets


# ---------------------------------------------------------------------------
# Parameters (deterministic synthetic weights, PyTorch layouts)
# ---------------------------------------------------------------------------
def _init_conv(key, cin, cout, k):
    wk, bk = jax.random.split(key)
    fan_in = cin * k * k
    w = jax.random.normal(wk, (cout, cin, k, k), F32) / jnp.sqrt(float(fan_in))
    b = jax.random.normal(bk, (cout,), F32) * 0.01
    return w, b


def _init_fc(key, cin, cout):
    wk, bk = jax.random.split(key)
    w = jax.random.normal(wk, (cin, cout), F32) / jnp.sqrt(float(cin))
    b = jax.random.normal(bk, (cout,), F32) * 0.01
    return w, b


def init_params(key, num_classes):
    ks = jax.random.split(key, 12)
    p = {}
    p["stem_w"], p["stem_b"] = _init_conv(ks[0], 6, 16, 3)
    p["e1_w"], p["e1_b"] = _init_conv(ks[1], 16, 32, 3)
    p["se1_w1"], p["se1_b1"] = _init_fc(ks[2], 32, 8)
    p["se1_w2"], p["se1_b2"] = _init_fc(ks[3], 8, 32)
    p["e2_w"], p["e2_b"] = _init_conv(ks[4], 32, 64, 3)
    p["se2_w1"], p["se2_b1"] = _init_fc(ks[5], 64, 16)
    p["se2_w2"], p["se2_b2"] = _init_fc(ks[6], 16, 64)
    p["d1_w"], p["d1_b"] = _init_conv(ks[7], 64 + 32, 32, 3)   # [up, skip] channel order
    p["d0_w"], p["d0_b"] = _init_conv(ks[8], 32 + 16, 16, 3)
    p["head_w"], p["head_b"] = _init_conv(ks[9], 16, num_classes, 1)
    return p


# ---------------------------------------------------------------------------
# CustomModel.forward equivalent (NCHW or NHWC in / NCHW out)
# ---------------------------------------------------------------------------
def build_forward(params, batch, height, width):
    """Pre-packs all weights & constants once; returns a jitted forward(x)."""
    num_classes = int(params["head_b"].shape[0])
    n0 = batch * height * width
    h1, w1 = height // 2, width // 2

    bias_col, bias_offsets = _pack_biases(params)

    ops = dict(
        stem_w=_pack_conv(params["stem_w"], cin_pad=8),   # pad 6->8 input chans
        e1_w=_pack_conv(params["e1_w"]),
        e2_w=_pack_conv(params["e2_w"]),
        d1_w=_pack_conv(params["d1_w"]),
        d0_w=_pack_conv(params["d0_w"]),
        head_w=params["head_w"].reshape(num_classes, -1).astype(F32),
        se1_w1=params["se1_w1"].T.astype(F32),
        se1_w2=params["se1_w2"].T.astype(F32),
        se2_w1=params["se2_w1"].T.astype(F32),
        se2_w2=params["se2_w2"].T.astype(F32),
        bias=bias_col,
        sd0=_down_select(batch, height, width),
        sd1=_down_select(batch, h1, w1),
        su1=_up_select(batch, h1, w1),
        su0=_up_select(batch, height, width),
    )
    p1, e1m = _batch_pool(batch, h1, w1)
    p2, e2m = _batch_pool(batch, h1 // 2, w1 // 2)
    ops.update(pool1=p1, exp1=e1m, pool2=p2, exp2=e2m)

    kernel = functools.partial(_fused_unet_kernel, b=batch, h0=height,
                               w0=width, bias_offsets=bias_offsets)

    call = pl.pallas_call(
        kernel,
        out_shape=jax.ShapeDtypeStruct((num_classes, n0), F32),
    )

    arg_order = ("stem_w", "e1_w", "e2_w", "d1_w", "d0_w", "head_w",
                 "se1_w1", "se1_w2", "se2_w1", "se2_w2", "bias",
                 "sd0", "sd1", "su1", "su0",
                 "pool1", "exp1", "pool2", "exp2")

    def forward(x):
        # PyTorch branch: channel dim != 6 -> NHWC input, permute(0, 3, 1, 2).
        if x.shape[1] != 6:
            x = jnp.transpose(x, (0, 3, 1, 2))
        x = x.astype(F32)
        assert x.shape == (batch, 6, height, width), x.shape
        # channels-on-sublane / pixels-on-lane layout, padded 6 -> 8 channels.
        x2d = jnp.transpose(x, (1, 0, 2, 3)).reshape(6, n0)
        x2d = jnp.pad(x2d, ((0, 2), (0, 0)))
        out2d = call(x2d, *(ops[k] for k in arg_order))
        out = out2d.reshape(num_classes, batch, height, width)
        return jnp.transpose(out, (1, 0, 2, 3))                  # NCHW

    return jax.jit(forward)


if __name__ == "__main__":
    num_classes = 4
    key = jax.random.PRNGKey(0)
    pkey, xkey = jax.random.split(key)
    params = init_params(pkey, num_classes)

    batch, height, width = 2, 16, 16
    fwd = build_forward(params, batch, height, width)

    # NCHW input with 6 channels (takes the `x.shape[1] == 6` branch)
    x = jax.random.normal(xkey, (batch, 6, height, width), F32)

    y = jax.block_until_ready(fwd(x))
    assert y.shape == (batch, num_classes, height, width), y.shape
    assert bool(jnp.all(jnp.isfinite(y)))
    print("KERNEL_OK")
</pallas_src>

<mosaic_0001>
module attributes {stable_mosaic.version = 11 : i64} {
  func.func @_fused_unet_kernel(%arg0: memref<8x512xf32, #tpu.memory_space<vmem>>, %arg1: memref<16x72xf32, #tpu.memory_space<vmem>>, %arg2: memref<32x144xf32, #tpu.memory_space<vmem>>, %arg3: memref<64x288xf32, #tpu.memory_space<vmem>>, %arg4: memref<32x864xf32, #tpu.memory_space<vmem>>, %arg5: memref<16x432xf32, #tpu.memory_space<vmem>>, %arg6: memref<4x16xf32, #tpu.memory_space<vmem>>, %arg7: memref<8x32xf32, #tpu.memory_space<vmem>>, %arg8: memref<32x8xf32, #tpu.memory_space<vmem>>, %arg9: memref<16x64xf32, #tpu.memory_space<vmem>>, %arg10: memref<64x16xf32, #tpu.memory_space<vmem>>, %arg11: memref<284x1xf32, #tpu.memory_space<vmem>>, %arg12: memref<512x128xf32, #tpu.memory_space<vmem>>, %arg13: memref<128x32xf32, #tpu.memory_space<vmem>>, %arg14: memref<32x128xf32, #tpu.memory_space<vmem>>, %arg15: memref<128x512xf32, #tpu.memory_space<vmem>>, %arg16: memref<128x2xf32, #tpu.memory_space<vmem>>, %arg17: memref<2x128xf32, #tpu.memory_space<vmem>>, %arg18: memref<32x2xf32, #tpu.memory_space<vmem>>, %arg19: memref<2x32xf32, #tpu.memory_space<vmem>>, %arg20: memref<4x512xf32, #tpu.memory_space<vmem>>) attributes {dimension_semantics = [], scalar_prefetch = 0 : i64, scratch_operands = 0 : i64, tpu.core_type = #tpu.core_type<tc>} {
    %0 = tpu.iota {dimensions = array<i32: 1>} : vector<1x512xi32>
    %c16_i32 = arith.constant 16 : i32
    %1 = vector.broadcast %c16_i32 : i32 to vector<1x512xi32>
    %2 = arith.remsi %0, %1 : vector<1x512xi32>
    %c16_i32_0 = arith.constant 16 : i32
    %3 = vector.broadcast %c16_i32_0 : i32 to vector<1x512xi32>
    %4 = arith.divsi %0, %3 : vector<1x512xi32>
    %c16_i32_1 = arith.constant 16 : i32
    %5 = vector.broadcast %c16_i32_1 : i32 to vector<1x512xi32>
    %6 = arith.remsi %4, %5 : vector<1x512xi32>
    %7 = tpu.iota {dimensions = array<i32: 1>} : vector<1x128xi32>
    %c8_i32 = arith.constant 8 : i32
    %8 = vector.broadcast %c8_i32 : i32 to vector<1x128xi32>
    %9 = arith.remsi %7, %8 : vector<1x128xi32>
    %c8_i32_2 = arith.constant 8 : i32
    %10 = vector.broadcast %c8_i32_2 : i32 to vector<1x128xi32>
    %11 = arith.divsi %7, %10 : vector<1x128xi32>
    %c8_i32_3 = arith.constant 8 : i32
    %12 = vector.broadcast %c8_i32_3 : i32 to vector<1x128xi32>
    %13 = arith.remsi %11, %12 : vector<1x128xi32>
    %c0 = arith.constant 0 : index
    %c0_4 = arith.constant 0 : index
    %14 = vector.load %arg0[%c0, %c0_4] : memref<8x512xf32, #tpu.memory_space<vmem>>, vector<8x512xf32>
    %c17_i32 = arith.constant 17 : i32
    %15 = tpu.dynamic_rotate %14 by %c17_i32 dim 1 : vector<8x512xf32>, i32 -> vector<8x512xf32>
    %c-1_i32 = arith.constant -1 : i32
    %16 = vector.broadcast %c-1_i32 : i32 to vector<1x512xi32>
    %17 = arith.addi %6, %16 : vector<1x512xi32>
    %c0_i32 = arith.constant 0 : i32
    %18 = vector.broadcast %c0_i32 : i32 to vector<1x512xi32>
    %19 = arith.cmpi sge, %17, %18 : vector<1x512xi32>
    %c-1_i32_5 = arith.constant -1 : i32
    %20 = vector.broadcast %c-1_i32_5 : i32 to vector<1x512xi32>
    %21 = arith.addi %6, %20 : vector<1x512xi32>
    %c16_i32_6 = arith.constant 16 : i32
    %22 = vector.broadcast %c16_i32_6 : i32 to vector<1x512xi32>
    %23 = arith.cmpi slt, %21, %22 : vector<1x512xi32>
    %24 = arith.andi %19, %23 : vector<1x512xi1>
    %c-1_i32_7 = arith.constant -1 : i32
    %25 = vector.broadcast %c-1_i32_7 : i32 to vector<1x512xi32>
    %26 = arith.addi %2, %25 : vector<1x512xi32>
    %c0_i32_8 = arith.constant 0 : i32
    %27 = vector.broadcast %c0_i32_8 : i32 to vector<1x512xi32>
    %28 = arith.cmpi sge, %26, %27 : vector<1x512xi32>
    %29 = arith.andi %24, %28 : vector<1x512xi1>
    %c-1_i32_9 = arith.constant -1 : i32
    %30 = vector.broadcast %c-1_i32_9 : i32 to vector<1x512xi32>
    %31 = arith.addi %2, %30 : vector<1x512xi32>
    %c16_i32_10 = arith.constant 16 : i32
    %32 = vector.broadcast %c16_i32_10 : i32 to vector<1x512xi32>
    %33 = arith.cmpi slt, %31, %32 : vector<1x512xi32>
    %34 = arith.andi %29, %33 : vector<1x512xi1>
    %35 = arith.extui %34 : vector<1x512xi1> to vector<1x512xi32>
    %36 = arith.sitofp %35 : vector<1x512xi32> to vector<1x512xf32>
    %37 = vector.broadcast %36 : vector<1x512xf32> to vector<8x512xf32>
    %38 = arith.mulf %15, %37 : vector<8x512xf32>
    %c16_i32_11 = arith.constant 16 : i32
    %39 = tpu.dynamic_rotate %14 by %c16_i32_11 dim 1 : vector<8x512xf32>, i32 -> vector<8x512xf32>
    %c-1_i32_12 = arith.constant -1 : i32
    %40 = vector.broadcast %c-1_i32_12 : i32 to vector<1x512xi32>
    %41 = arith.addi %6, %40 : vector<1x512xi32>
    %c0_i32_13 = arith.constant 0 : i32
    %42 = vector.broadcast %c0_i32_13 : i32 to vector<1x512xi32>
    %43 = arith.cmpi sge, %41, %42 : vector<1x512xi32>
    %c-1_i32_14 = arith.constant -1 : i32
    %44 = vector.broadcast %c-1_i32_14 : i32 to vector<1x512xi32>
    %45 = arith.addi %6, %44 : vector<1x512xi32>
    %c16_i32_15 = arith.constant 16 : i32
    %46 = vector.broadcast %c16_i32_15 : i32 to vector<1x512xi32>
    %47 = arith.cmpi slt, %45, %46 : vector<1x512xi32>
    %48 = arith.andi %43, %47 : vector<1x512xi1>
    %c0_i32_16 = arith.constant 0 : i32
    %49 = vector.broadcast %c0_i32_16 : i32 to vector<1x512xi32>
    %50 = arith.addi %2, %49 : vector<1x512xi32>
    %c0_i32_17 = arith.constant 0 : i32
    %51 = vector.broadcast %c0_i32_17 : i32 to vector<1x512xi32>
    %52 = arith.cmpi sge, %50, %51 : vector<1x512xi32>
    %53 = arith.andi %48, %52 : vector<1x512xi1>
    %c0_i32_18 = arith.constant 0 : i32
    %54 = vector.broadcast %c0_i32_18 : i32 to vector<1x512xi32>
    %55 = arith.addi %2, %54 : vector<1x512xi32>
    %c16_i32_19 = arith.constant 16 : i32
    %56 = vector.broadcast %c16_i32_19 : i32 to vector<1x512xi32>
    %57 = arith.cmpi slt, %55, %56 : vector<1x512xi32>
    %58 = arith.andi %53, %57 : vector<1x512xi1>
    %59 = arith.extui %58 : vector<1x512xi1> to vector<1x512xi32>
    %60 = arith.sitofp %59 : vector<1x512xi32> to vector<1x512xf32>
    %61 = vector.broadcast %60 : vector<1x512xf32> to vector<8x512xf32>
    %62 = arith.mulf %39, %61 : vector<8x512xf32>
    %c15_i32 = arith.constant 15 : i32
    %63 = tpu.dynamic_rotate %14 by %c15_i32 dim 1 : vector<8x512xf32>, i32 -> vector<8x512xf32>
    %c-1_i32_20 = arith.constant -1 : i32
    %64 = vector.broadcast %c-1_i32_20 : i32 to vector<1x512xi32>
    %65 = arith.addi %6, %64 : vector<1x512xi32>
    %c0_i32_21 = arith.constant 0 : i32
    %66 = vector.broadcast %c0_i32_21 : i32 to vector<1x512xi32>
    %67 = arith.cmpi sge, %65, %66 : vector<1x512xi32>
    %c-1_i32_22 = arith.constant -1 : i32
    %68 = vector.broadcast %c-1_i32_22 : i32 to vector<1x512xi32>
    %69 = arith.addi %6, %68 : vector<1x512xi32>
    %c16_i32_23 = arith.constant 16 : i32
    %70 = vector.broadcast %c16_i32_23 : i32 to vector<1x512xi32>
    %71 = arith.cmpi slt, %69, %70 : vector<1x512xi32>
    %72 = arith.andi %67, %71 : vector<1x512xi1>
    %c1_i32 = arith.constant 1 : i32
    %73 = vector.broadcast %c1_i32 : i32 to vector<1x512xi32>
    %74 = arith.addi %2, %73 : vector<1x512xi32>
    %c0_i32_24 = arith.constant 0 : i32
    %75 = vector.broadcast %c0_i32_24 : i32 to vector<1x512xi32>
    %76 = arith.cmpi sge, %74, %75 : vector<1x512xi32>
    %77 = arith.andi %72, %76 : vector<1x512xi1>
    %c1_i32_25 = arith.constant 1 : i32
    %78 = vector.broadcast %c1_i32_25 : i32 to vector<1x512xi32>
    %79 = arith.addi %2, %78 : vector<1x512xi32>
    %c16_i32_26 = arith.constant 16 : i32
    %80 = vector.broadcast %c16_i32_26 : i32 to vector<1x512xi32>
    %81 = arith.cmpi slt, %79, %80 : vector<1x512xi32>
    %82 = arith.andi %77, %81 : vector<1x512xi1>
    %83 = arith.extui %82 : vector<1x512xi1> to vector<1x512xi32>
    %84 = arith.sitofp %83 : vector<1x512xi32> to vector<1x512xf32>
    %85 = vector.broadcast %84 : vector<1x512xf32> to vector<8x512xf32>
    %86 = arith.mulf %63, %85 : vector<8x512xf32>
    %c1_i32_27 = arith.constant 1 : i32
    %87 = tpu.dynamic_rotate %14 by %c1_i32_27 dim 1 : vector<8x512xf32>, i32 -> vector<8x512xf32>
    %c0_i32_28 = arith.constant 0 : i32
    %88 = vector.broadcast %c0_i32_28 : i32 to vector<1x512xi32>
    %89 = arith.addi %6, %88 : vector<1x512xi32>
    %c0_i32_29 = arith.constant 0 : i32
    %90 = vector.broadcast %c0_i32_29 : i32 to vector<1x512xi32>
    %91 = arith.cmpi sge, %89, %90 : vector<1x512xi32>
    %c0_i32_30 = arith.constant 0 : i32
    %92 = vector.broadcast %c0_i32_30 : i32 to vector<1x512xi32>
    %93 = arith.addi %6, %92 : vector<1x512xi32>
    %c16_i32_31 = arith.constant 16 : i32
    %94 = vector.broadcast %c16_i32_31 : i32 to vector<1x512xi32>
    %95 = arith.cmpi slt, %93, %94 : vector<1x512xi32>
    %96 = arith.andi %91, %95 : vector<1x512xi1>
    %c-1_i32_32 = arith.constant -1 : i32
    %97 = vector.broadcast %c-1_i32_32 : i32 to vector<1x512xi32>
    %98 = arith.addi %2, %97 : vector<1x512xi32>
    %c0_i32_33 = arith.constant 0 : i32
    %99 = vector.broadcast %c0_i32_33 : i32 to vector<1x512xi32>
    %100 = arith.cmpi sge, %98, %99 : vector<1x512xi32>
    %101 = arith.andi %96, %100 : vector<1x512xi1>
    %c-1_i32_34 = arith.constant -1 : i32
    %102 = vector.broadcast %c-1_i32_34 : i32 to vector<1x512xi32>
    %103 = arith.addi %2, %102 : vector<1x512xi32>
    %c16_i32_35 = arith.constant 16 : i32
    %104 = vector.broadcast %c16_i32_35 : i32 to vector<1x512xi32>
    %105 = arith.cmpi slt, %103, %104 : vector<1x512xi32>
    %106 = arith.andi %101, %105 : vector<1x512xi1>
    %107 = arith.extui %106 : vector<1x512xi1> to vector<1x512xi32>
    %108 = arith.sitofp %107 : vector<1x512xi32> to vector<1x512xf32>
    %109 = vector.broadcast %108 : vector<1x512xf32> to vector<8x512xf32>
    %110 = arith.mulf %87, %109 : vector<8x512xf32>
    %c511_i32 = arith.constant 511 : i32
    %111 = tpu.dynamic_rotate %14 by %c511_i32 dim 1 : vector<8x512xf32>, i32 -> vector<8x512xf32>
    %c0_i32_36 = arith.constant 0 : i32
    %112 = vector.broadcast %c0_i32_36 : i32 to vector<1x512xi32>
    %113 = arith.addi %6, %112 : vector<1x512xi32>
    %c0_i32_37 = arith.constant 0 : i32
    %114 = vector.broadcast %c0_i32_37 : i32 to vector<1x512xi32>
    %115 = arith.cmpi sge, %113, %114 : vector<1x512xi32>
    %c0_i32_38 = arith.constant 0 : i32
    %116 = vector.broadcast %c0_i32_38 : i32 to vector<1x512xi32>
    %117 = arith.addi %6, %116 : vector<1x512xi32>
    %c16_i32_39 = arith.constant 16 : i32
    %118 = vector.broadcast %c16_i32_39 : i32 to vector<1x512xi32>
    %119 = arith.cmpi slt, %117, %118 : vector<1x512xi32>
    %120 = arith.andi %115, %119 : vector<1x512xi1>
    %c1_i32_40 = arith.constant 1 : i32
    %121 = vector.broadcast %c1_i32_40 : i32 to vector<1x512xi32>
    %122 = arith.addi %2, %121 : vector<1x512xi32>
    %c0_i32_41 = arith.constant 0 : i32
    %123 = vector.broadcast %c0_i32_41 : i32 to vector<1x512xi32>
    %124 = arith.cmpi sge, %122, %123 : vector<1x512xi32>
    %125 = arith.andi %120, %124 : vector<1x512xi1>
    %c1_i32_42 = arith.constant 1 : i32
    %126 = vector.broadcast %c1_i32_42 : i32 to vector<1x512xi32>
    %127 = arith.addi %2, %126 : vector<1x512xi32>
    %c16_i32_43 = arith.constant 16 : i32
    %128 = vector.broadcast %c16_i32_43 : i32 to vector<1x512xi32>
    %129 = arith.cmpi slt, %127, %128 : vector<1x512xi32>
    %130 = arith.andi %125, %129 : vector<1x512xi1>
    %131 = arith.extui %130 : vector<1x512xi1> to vector<1x512xi32>
    %132 = arith.sitofp %131 : vector<1x512xi32> to vector<1x512xf32>
    %133 = vector.broadcast %132 : vector<1x512xf32> to vector<8x512xf32>
    %134 = arith.mulf %111, %133 : vector<8x512xf32>
    %c497_i32 = arith.constant 497 : i32
    %135 = tpu.dynamic_rotate %14 by %c497_i32 dim 1 : vector<8x512xf32>, i32 -> vector<8x512xf32>
    %c1_i32_44 = arith.constant 1 : i32
    %136 = vector.broadcast %c1_i32_44 : i32 to vector<1x512xi32>
    %137 = arith.addi %6, %136 : vector<1x512xi32>
    %c0_i32_45 = arith.constant 0 : i32
    %138 = vector.broadcast %c0_i32_45 : i32 to vector<1x512xi32>
    %139 = arith.cmpi sge, %137, %138 : vector<1x512xi32>
    %c1_i32_46 = arith.constant 1 : i32
    %140 = vector.broadcast %c1_i32_46 : i32 to vector<1x512xi32>
    %141 = arith.addi %6, %140 : vector<1x512xi32>
    %c16_i32_47 = arith.constant 16 : i32
    %142 = vector.broadcast %c16_i32_47 : i32 to vector<1x512xi32>
    %143 = arith.cmpi slt, %141, %142 : vector<1x512xi32>
    %144 = arith.andi %139, %143 : vector<1x512xi1>
    %c-1_i32_48 = arith.constant -1 : i32
    %145 = vector.broadcast %c-1_i32_48 : i32 to vector<1x512xi32>
    %146 = arith.addi %2, %145 : vector<1x512xi32>
    %c0_i32_49 = arith.constant 0 : i32
    %147 = vector.broadcast %c0_i32_49 : i32 to vector<1x512xi32>
    %148 = arith.cmpi sge, %146, %147 : vector<1x512xi32>
    %149 = arith.andi %144, %148 : vector<1x512xi1>
    %c-1_i32_50 = arith.constant -1 : i32
    %150 = vector.broadcast %c-1_i32_50 : i32 to vector<1x512xi32>
    %151 = arith.addi %2, %150 : vector<1x512xi32>
    %c16_i32_51 = arith.constant 16 : i32
    %152 = vector.broadcast %c16_i32_51 : i32 to vector<1x512xi32>
    %153 = arith.cmpi slt, %151, %152 : vector<1x512xi32>
    %154 = arith.andi %149, %153 : vector<1x512xi1>
    %155 = arith.extui %154 : vector<1x512xi1> to vector<1x512xi32>
    %156 = arith.sitofp %155 : vector<1x512xi32> to vector<1x512xf32>
    %157 = vector.broadcast %156 : vector<1x512xf32> to vector<8x512xf32>
    %158 = arith.mulf %135, %157 : vector<8x512xf32>
    %c496_i32 = arith.constant 496 : i32
    %159 = tpu.dynamic_rotate %14 by %c496_i32 dim 1 : vector<8x512xf32>, i32 -> vector<8x512xf32>
    %c1_i32_52 = arith.constant 1 : i32
    %160 = vector.broadcast %c1_i32_52 : i32 to vector<1x512xi32>
    %161 = arith.addi %6, %160 : vector<1x512xi32>
    %c0_i32_53 = arith.constant 0 : i32
    %162 = vector.broadcast %c0_i32_53 : i32 to vector<1x512xi32>
    %163 = arith.cmpi sge, %161, %162 : vector<1x512xi32>
    %c1_i32_54 = arith.constant 1 : i32
    %164 = vector.broadcast %c1_i32_54 : i32 to vector<1x512xi32>
    %165 = arith.addi %6, %164 : vector<1x512xi32>
    %c16_i32_55 = arith.constant 16 : i32
    %166 = vector.broadcast %c16_i32_55 : i32 to vector<1x512xi32>
    %167 = arith.cmpi slt, %165, %166 : vector<1x512xi32>
    %168 = arith.andi %163, %167 : vector<1x512xi1>
    %c0_i32_56 = arith.constant 0 : i32
    %169 = vector.broadcast %c0_i32_56 : i32 to vector<1x512xi32>
    %170 = arith.addi %2, %169 : vector<1x512xi32>
    %c0_i32_57 = arith.constant 0 : i32
    %171 = vector.broadcast %c0_i32_57 : i32 to vector<1x512xi32>
    %172 = arith.cmpi sge, %170, %171 : vector<1x512xi32>
    %173 = arith.andi %168, %172 : vector<1x512xi1>
    %c0_i32_58 = arith.constant 0 : i32
    %174 = vector.broadcast %c0_i32_58 : i32 to vector<1x512xi32>
    %175 = arith.addi %2, %174 : vector<1x512xi32>
    %c16_i32_59 = arith.constant 16 : i32
    %176 = vector.broadcast %c16_i32_59 : i32 to vector<1x512xi32>
    %177 = arith.cmpi slt, %175, %176 : vector<1x512xi32>
    %178 = arith.andi %173, %177 : vector<1x512xi1>
    %179 = arith.extui %178 : vector<1x512xi1> to vector<1x512xi32>
    %180 = arith.sitofp %179 : vector<1x512xi32> to vector<1x512xf32>
    %181 = vector.broadcast %180 : vector<1x512xf32> to vector<8x512xf32>
    %182 = arith.mulf %159, %181 : vector<8x512xf32>
    %c495_i32 = arith.constant 495 : i32
    %183 = tpu.dynamic_rotate %14 by %c495_i32 dim 1 : vector<8x512xf32>, i32 -> vector<8x512xf32>
    %c1_i32_60 = arith.constant 1 : i32
    %184 = vector.broadcast %c1_i32_60 : i32 to vector<1x512xi32>
    %185 = arith.addi %6, %184 : vector<1x512xi32>
    %c0_i32_61 = arith.constant 0 : i32
    %186 = vector.broadcast %c0_i32_61 : i32 to vector<1x512xi32>
    %187 = arith.cmpi sge, %185, %186 : vector<1x512xi32>
    %c1_i32_62 = arith.constant 1 : i32
    %188 = vector.broadcast %c1_i32_62 : i32 to vector<1x512xi32>
    %189 = arith.addi %6, %188 : vector<1x512xi32>
    %c16_i32_63 = arith.constant 16 : i32
    %190 = vector.broadcast %c16_i32_63 : i32 to vector<1x512xi32>
    %191 = arith.cmpi slt, %189, %190 : vector<1x512xi32>
    %192 = arith.andi %187, %191 : vector<1x512xi1>
    %c1_i32_64 = arith.constant 1 : i32
    %193 = vector.broadcast %c1_i32_64 : i32 to vector<1x512xi32>
    %194 = arith.addi %2, %193 : vector<1x512xi32>
    %c0_i32_65 = arith.constant 0 : i32
    %195 = vector.broadcast %c0_i32_65 : i32 to vector<1x512xi32>
    %196 = arith.cmpi sge, %194, %195 : vector<1x512xi32>
    %197 = arith.andi %192, %196 : vector<1x512xi1>
    %c1_i32_66 = arith.constant 1 : i32
    %198 = vector.broadcast %c1_i32_66 : i32 to vector<1x512xi32>
    %199 = arith.addi %2, %198 : vector<1x512xi32>
    %c16_i32_67 = arith.constant 16 : i32
    %200 = vector.broadcast %c16_i32_67 : i32 to vector<1x512xi32>
    %201 = arith.cmpi slt, %199, %200 : vector<1x512xi32>
    %202 = arith.andi %197, %201 : vector<1x512xi1>
    %203 = arith.extui %202 : vector<1x512xi1> to vector<1x512xi32>
    %204 = arith.sitofp %203 : vector<1x512xi32> to vector<1x512xf32>
    %205 = vector.broadcast %204 : vector<1x512xf32> to vector<8x512xf32>
    %206 = arith.mulf %183, %205 : vector<8x512xf32>
    %207 = tpu.concatenate %38, %62, %86, %110, %14, %134, %158, %182, %206 in 0 : vector<8x512xf32>, vector<8x512xf32>, vector<8x512xf32>, vector<8x512xf32>, vector<8x512xf32>, vector<8x512xf32>, vector<8x512xf32>, vector<8x512xf32>, vector<8x512xf32> -> vector<72x512xf32>
    %c0_68 = arith.constant 0 : index
    %c0_69 = arith.constant 0 : index
    %208 = vector.load %arg1[%c0_68, %c0_69] : memref<16x72xf32, #tpu.memory_space<vmem>>, vector<16x72xf32>
    %cst = arith.constant dense<0.000000e+00> : vector<16x512xf32>
    %209 = tpu.matmul %208, %207, %cst {dimension_numbers = #tpu.dot_dimension_numbers<[1], [0], [0], [1], [0, 0, 1, 1], [], []>} : vector<16x72xf32>, vector<72x512xf32>, vector<16x512xf32> -> vector<16x512xf32>
    %c0_70 = arith.constant 0 : index
    %c0_71 = arith.constant 0 : index
    %210 = vector.load %arg11[%c0_70, %c0_71] : memref<284x1xf32, #tpu.memory_space<vmem>>, vector<16x1xf32>
    %211 = vector.broadcast %210 : vector<16x1xf32> to vector<16x512xf32>
    %212 = arith.addf %209, %211 : vector<16x512xf32>
    %cst_72 = arith.constant 0.000000e+00 : f32
    %213 = vector.broadcast %cst_72 : f32 to vector<16x512xf32>
    %214 = arith.maximumf %212, %213 : vector<16x512xf32>
    %c17_i32_73 = arith.constant 17 : i32
    %215 = tpu.dynamic_rotate %214 by %c17_i32_73 dim 1 : vector<16x512xf32>, i32 -> vector<16x512xf32>
    %c-1_i32_74 = arith.constant -1 : i32
    %216 = vector.broadcast %c-1_i32_74 : i32 to vector<1x512xi32>
    %217 = arith.addi %6, %216 : vector<1x512xi32>
    %c0_i32_75 = arith.constant 0 : i32
    %218 = vector.broadcast %c0_i32_75 : i32 to vector<1x512xi32>
    %219 = arith.cmpi sge, %217, %218 : vector<1x512xi32>
    %c-1_i32_76 = arith.constant -1 : i32
    %220 = vector.broadcast %c-1_i32_76 : i32 to vector<1x512xi32>
    %221 = arith.addi %6, %220 : vector<1x512xi32>
    %c16_i32_77 = arith.constant 16 : i32
    %222 = vector.broadcast %c16_i32_77 : i32 to vector<1x512xi32>
    %223 = arith.cmpi slt, %221, %222 : vector<1x512xi32>
    %224 = arith.andi %219, %223 : vector<1x512xi1>
    %c-1_i32_78 = arith.constant -1 : i32
    %225 = vector.broadcast %c-1_i32_78 : i32 to vector<1x512xi32>
    %226 = arith.addi %2, %225 : vector<1x512xi32>
    %c0_i32_79 = arith.constant 0 : i32
    %227 = vector.broadcast %c0_i32_79 : i32 to vector<1x512xi32>
    %228 = arith.cmpi sge, %226, %227 : vector<1x512xi32>
    %229 = arith.andi %224, %228 : vector<1x512xi1>
    %c-1_i32_80 = arith.constant -1 : i32
    %230 = vector.broadcast %c-1_i32_80 : i32 to vector<1x512xi32>
    %231 = arith.addi %2, %230 : vector<1x512xi32>
    %c16_i32_81 = arith.constant 16 : i32
    %232 = vector.broadcast %c16_i32_81 : i32 to vector<1x512xi32>
    %233 = arith.cmpi slt, %231, %232 : vector<1x512xi32>
    %234 = arith.andi %229, %233 : vector<1x512xi1>
    %235 = arith.extui %234 : vector<1x512xi1> to vector<1x512xi32>
    %236 = arith.sitofp %235 : vector<1x512xi32> to vector<1x512xf32>
    %237 = vector.broadcast %236 : vector<1x512xf32> to vector<16x512xf32>
    %238 = arith.mulf %215, %237 : vector<16x512xf32>
    %c16_i32_82 = arith.constant 16 : i32
    %239 = tpu.dynamic_rotate %214 by %c16_i32_82 dim 1 : vector<16x512xf32>, i32 -> vector<16x512xf32>
    %c-1_i32_83 = arith.constant -1 : i32
    %240 = vector.broadcast %c-1_i32_83 : i32 to vector<1x512xi32>
    %241 = arith.addi %6, %240 : vector<1x512xi32>
    %c0_i32_84 = arith.constant 0 : i32
    %242 = vector.broadcast %c0_i32_84 : i32 to vector<1x512xi32>
    %243 = arith.cmpi sge, %241, %242 : vector<1x512xi32>
    %c-1_i32_85 = arith.constant -1 : i32
    %244 = vector.broadcast %c-1_i32_85 : i32 to vector<1x512xi32>
    %245 = arith.addi %6, %244 : vector<1x512xi32>
    %c16_i32_86 = arith.constant 16 : i32
    %246 = vector.broadcast %c16_i32_86 : i32 to vector<1x512xi32>
    %247 = arith.cmpi slt, %245, %246 : vector<1x512xi32>
    %248 = arith.andi %243, %247 : vector<1x512xi1>
    %c0_i32_87 = arith.constant 0 : i32
    %249 = vector.broadcast %c0_i32_87 : i32 to vector<1x512xi32>
    %250 = arith.addi %2, %249 : vector<1x512xi32>
    %c0_i32_88 = arith.constant 0 : i32
    %251 = vector.broadcast %c0_i32_88 : i32 to vector<1x512xi32>
    %252 = arith.cmpi sge, %250, %251 : vector<1x512xi32>
    %253 = arith.andi %248, %252 : vector<1x512xi1>
    %c0_i32_89 = arith.constant 0 : i32
    %254 = vector.broadcast %c0_i32_89 : i32 to vector<1x512xi32>
    %255 = arith.addi %2, %254 : vector<1x512xi32>
    %c16_i32_90 = arith.constant 16 : i32
    %256 = vector.broadcast %c16_i32_90 : i32 to vector<1x512xi32>
    %257 = arith.cmpi slt, %255, %256 : vector<1x512xi32>
    %258 = arith.andi %253, %257 : vector<1x512xi1>
    %259 = arith.extui %258 : vector<1x512xi1> to vector<1x512xi32>
    %260 = arith.sitofp %259 : vector<1x512xi32> to vector<1x512xf32>
    %261 = vector.broadcast %260 : vector<1x512xf32> to vector<16x512xf32>
    %262 = arith.mulf %239, %261 : vector<16x512xf32>
    %c15_i32_91 = arith.constant 15 : i32
    %263 = tpu.dynamic_rotate %214 by %c15_i32_91 dim 1 : vector<16x512xf32>, i32 -> vector<16x512xf32>
    %c-1_i32_92 = arith.constant -1 : i32
    %264 = vector.broadcast %c-1_i32_92 : i32 to vector<1x512xi32>
    %265 = arith.addi %6, %264 : vector<1x512xi32>
    %c0_i32_93 = arith.constant 0 : i32
    %266 = vector.broadcast %c0_i32_93 : i32 to vector<1x512xi32>
    %267 = arith.cmpi sge, %265, %266 : vector<1x512xi32>
    %c-1_i32_94 = arith.constant -1 : i32
    %268 = vector.broadcast %c-1_i32_94 : i32 to vector<1x512xi32>
    %269 = arith.addi %6, %268 : vector<1x512xi32>
    %c16_i32_95 = arith.constant 16 : i32
    %270 = vector.broadcast %c16_i32_95 : i32 to vector<1x512xi32>
    %271 = arith.cmpi slt, %269, %270 : vector<1x512xi32>
    %272 = arith.andi %267, %271 : vector<1x512xi1>
    %c1_i32_96 = arith.constant 1 : i32
    %273 = vector.broadcast %c1_i32_96 : i32 to vector<1x512xi32>
    %274 = arith.addi %2, %273 : vector<1x512xi32>
    %c0_i32_97 = arith.constant 0 : i32
    %275 = vector.broadcast %c0_i32_97 : i32 to vector<1x512xi32>
    %276 = arith.cmpi sge, %274, %275 : vector<1x512xi32>
    %277 = arith.andi %272, %276 : vector<1x512xi1>
    %c1_i32_98 = arith.constant 1 : i32
    %278 = vector.broadcast %c1_i32_98 : i32 to vector<1x512xi32>
    %279 = arith.addi %2, %278 : vector<1x512xi32>
    %c16_i32_99 = arith.constant 16 : i32
    %280 = vector.broadcast %c16_i32_99 : i32 to vector<1x512xi32>
    %281 = arith.cmpi slt, %279, %280 : vector<1x512xi32>
    %282 = arith.andi %277, %281 : vector<1x512xi1>
    %283 = arith.extui %282 : vector<1x512xi1> to vector<1x512xi32>
    %284 = arith.sitofp %283 : vector<1x512xi32> to vector<1x512xf32>
    %285 = vector.broadcast %284 : vector<1x512xf32> to vector<16x512xf32>
    %286 = arith.mulf %263, %285 : vector<16x512xf32>
    %c1_i32_100 = arith.constant 1 : i32
    %287 = tpu.dynamic_rotate %214 by %c1_i32_100 dim 1 : vector<16x512xf32>, i32 -> vector<16x512xf32>
    %c0_i32_101 = arith.constant 0 : i32
    %288 = vector.broadcast %c0_i32_101 : i32 to vector<1x512xi32>
    %289 = arith.addi %6, %288 : vector<1x512xi32>
    %c0_i32_102 = arith.constant 0 : i32
    %290 = vector.broadcast %c0_i32_102 : i32 to vector<1x512xi32>
    %291 = arith.cmpi sge, %289, %290 : vector<1x512xi32>
    %c0_i32_103 = arith.constant 0 : i32
    %292 = vector.broadcast %c0_i32_103 : i32 to vector<1x512xi32>
    %293 = arith.addi %6, %292 : vector<1x512xi32>
    %c16_i32_104 = arith.constant 16 : i32
    %294 = vector.broadcast %c16_i32_104 : i32 to vector<1x512xi32>
    %295 = arith.cmpi slt, %293, %294 : vector<1x512xi32>
    %296 = arith.andi %291, %295 : vector<1x512xi1>
    %c-1_i32_105 = arith.constant -1 : i32
    %297 = vector.broadcast %c-1_i32_105 : i32 to vector<1x512xi32>
    %298 = arith.addi %2, %297 : vector<1x512xi32>
    %c0_i32_106 = arith.constant 0 : i32
    %299 = vector.broadcast %c0_i32_106 : i32 to vector<1x512xi32>
    %300 = arith.cmpi sge, %298, %299 : vector<1x512xi32>
    %301 = arith.andi %296, %300 : vector<1x512xi1>
    %c-1_i32_107 = arith.constant -1 : i32
    %302 = vector.broadcast %c-1_i32_107 : i32 to vector<1x512xi32>
    %303 = arith.addi %2, %302 : vector<1x512xi32>
    %c16_i32_108 = arith.constant 16 : i32
    %304 = vector.broadcast %c16_i32_108 : i32 to vector<1x512xi32>
    %305 = arith.cmpi slt, %303, %304 : vector<1x512xi32>
    %306 = arith.andi %301, %305 : vector<1x512xi1>
    %307 = arith.extui %306 : vector<1x512xi1> to vector<1x512xi32>
    %308 = arith.sitofp %307 : vector<1x512xi32> to vector<1x512xf32>
    %309 = vector.broadcast %308 : vector<1x512xf32> to vector<16x512xf32>
    %310 = arith.mulf %287, %309 : vector<16x512xf32>
    %c511_i32_109 = arith.constant 511 : i32
    %311 = tpu.dynamic_rotate %214 by %c511_i32_109 dim 1 : vector<16x512xf32>, i32 -> vector<16x512xf32>
    %c0_i32_110 = arith.constant 0 : i32
    %312 = vector.broadcast %c0_i32_110 : i32 to vector<1x512xi32>
    %313 = arith.addi %6, %312 : vector<1x512xi32>
    %c0_i32_111 = arith.constant 0 : i32
    %314 = vector.broadcast %c0_i32_111 : i32 to vector<1x512xi32>
    %315 = arith.cmpi sge, %313, %314 : vector<1x512xi32>
    %c0_i32_112 = arith.constant 0 : i32
    %316 = vector.broadcast %c0_i32_112 : i32 to vector<1x512xi32>
    %317 = arith.addi %6, %316 : vector<1x512xi32>
    %c16_i32_113 = arith.constant 16 : i32
    %318 = vector.broadcast %c16_i32_113 : i32 to vector<1x512xi32>
    %319 = arith.cmpi slt, %317, %318 : vector<1x512xi32>
    %320 = arith.andi %315, %319 : vector<1x512xi1>
    %c1_i32_114 = arith.constant 1 : i32
    %321 = vector.broadcast %c1_i32_114 : i32 to vector<1x512xi32>
    %322 = arith.addi %2, %321 : vector<1x512xi32>
    %c0_i32_115 = arith.constant 0 : i32
    %323 = vector.broadcast %c0_i32_115 : i32 to vector<1x512xi32>
    %324 = arith.cmpi sge, %322, %323 : vector<1x512xi32>
    %325 = arith.andi %320, %324 : vector<1x512xi1>
    %c1_i32_116 = arith.constant 1 : i32
    %326 = vector.broadcast %c1_i32_116 : i32 to vector<1x512xi32>
    %327 = arith.addi %2, %326 : vector<1x512xi32>
    %c16_i32_117 = arith.constant 16 : i32
    %328 = vector.broadcast %c16_i32_117 : i32 to vector<1x512xi32>
    %329 = arith.cmpi slt, %327, %328 : vector<1x512xi32>
    %330 = arith.andi %325, %329 : vector<1x512xi1>
    %331 = arith.extui %330 : vector<1x512xi1> to vector<1x512xi32>
    %332 = arith.sitofp %331 : vector<1x512xi32> to vector<1x512xf32>
    %333 = vector.broadcast %332 : vector<1x512xf32> to vector<16x512xf32>
    %334 = arith.mulf %311, %333 : vector<16x512xf32>
    %c497_i32_118 = arith.constant 497 : i32
    %335 = tpu.dynamic_rotate %214 by %c497_i32_118 dim 1 : vector<16x512xf32>, i32 -> vector<16x512xf32>
    %c1_i32_119 = arith.constant 1 : i32
    %336 = vector.broadcast %c1_i32_119 : i32 to vector<1x512xi32>
    %337 = arith.addi %6, %336 : vector<1x512xi32>
    %c0_i32_120 = arith.constant 0 : i32
    %338 = vector.broadcast %c0_i32_120 : i32 to vector<1x512xi32>
    %339 = arith.cmpi sge, %337, %338 : vector<1x512xi32>
    %c1_i32_121 = arith.constant 1 : i32
    %340 = vector.broadcast %c1_i32_121 : i32 to vector<1x512xi32>
    %341 = arith.addi %6, %340 : vector<1x512xi32>
    %c16_i32_122 = arith.constant 16 : i32
    %342 = vector.broadcast %c16_i32_122 : i32 to vector<1x512xi32>
    %343 = arith.cmpi slt, %341, %342 : vector<1x512xi32>
    %344 = arith.andi %339, %343 : vector<1x512xi1>
    %c-1_i32_123 = arith.constant -1 : i32
    %345 = vector.broadcast %c-1_i32_123 : i32 to vector<1x512xi32>
    %346 = arith.addi %2, %345 : vector<1x512xi32>
    %c0_i32_124 = arith.constant 0 : i32
    %347 = vector.broadcast %c0_i32_124 : i32 to vector<1x512xi32>
    %348 = arith.cmpi sge, %346, %347 : vector<1x512xi32>
    %349 = arith.andi %344, %348 : vector<1x512xi1>
    %c-1_i32_125 = arith.constant -1 : i32
    %350 = vector.broadcast %c-1_i32_125 : i32 to vector<1x512xi32>
    %351 = arith.addi %2, %350 : vector<1x512xi32>
    %c16_i32_126 = arith.constant 16 : i32
    %352 = vector.broadcast %c16_i32_126 : i32 to vector<1x512xi32>
    %353 = arith.cmpi slt, %351, %352 : vector<1x512xi32>
    %354 = arith.andi %349, %353 : vector<1x512xi1>
    %355 = arith.extui %354 : vector<1x512xi1> to vector<1x512xi32>
    %356 = arith.sitofp %355 : vector<1x512xi32> to vector<1x512xf32>
    %357 = vector.broadcast %356 : vector<1x512xf32> to vector<16x512xf32>
    %358 = arith.mulf %335, %357 : vector<16x512xf32>
    %c496_i32_127 = arith.constant 496 : i32
    %359 = tpu.dynamic_rotate %214 by %c496_i32_127 dim 1 : vector<16x512xf32>, i32 -> vector<16x512xf32>
    %c1_i32_128 = arith.constant 1 : i32
    %360 = vector.broadcast %c1_i32_128 : i32 to vector<1x512xi32>
    %361 = arith.addi %6, %360 : vector<1x512xi32>
    %c0_i32_129 = arith.constant 0 : i32
    %362 = vector.broadcast %c0_i32_129 : i32 to vector<1x512xi32>
    %363 = arith.cmpi sge, %361, %362 : vector<1x512xi32>
    %c1_i32_130 = arith.constant 1 : i32
    %364 = vector.broadcast %c1_i32_130 : i32 to vector<1x512xi32>
    %365 = arith.addi %6, %364 : vector<1x512xi32>
    %c16_i32_131 = arith.constant 16 : i32
    %366 = vector.broadcast %c16_i32_131 : i32 to vector<1x512xi32>
    %367 = arith.cmpi slt, %365, %366 : vector<1x512xi32>
    %368 = arith.andi %363, %367 : vector<1x512xi1>
    %c0_i32_132 = arith.constant 0 : i32
    %369 = vector.broadcast %c0_i32_132 : i32 to vector<1x512xi32>
    %370 = arith.addi %2, %369 : vector<1x512xi32>
    %c0_i32_133 = arith.constant 0 : i32
    %371 = vector.broadcast %c0_i32_133 : i32 to vector<1x512xi32>
    %372 = arith.cmpi sge, %370, %371 : vector<1x512xi32>
    %373 = arith.andi %368, %372 : vector<1x512xi1>
    %c0_i32_134 = arith.constant 0 : i32
    %374 = vector.broadcast %c0_i32_134 : i32 to vector<1x512xi32>
    %375 = arith.addi %2, %374 : vector<1x512xi32>
    %c16_i32_135 = arith.constant 16 : i32
    %376 = vector.broadcast %c16_i32_135 : i32 to vector<1x512xi32>
    %377 = arith.cmpi slt, %375, %376 : vector<1x512xi32>
    %378 = arith.andi %373, %377 : vector<1x512xi1>
    %379 = arith.extui %378 : vector<1x512xi1> to vector<1x512xi32>
    %380 = arith.sitofp %379 : vector<1x512xi32> to vector<1x512xf32>
    %381 = vector.broadcast %380 : vector<1x512xf32> to vector<16x512xf32>
    %382 = arith.mulf %359, %381 : vector<16x512xf32>
    %c495_i32_136 = arith.constant 495 : i32
    %383 = tpu.dynamic_rotate %214 by %c495_i32_136 dim 1 : vector<16x512xf32>, i32 -> vector<16x512xf32>
    %c1_i32_137 = arith.constant 1 : i32
    %384 = vector.broadcast %c1_i32_137 : i32 to vector<1x512xi32>
    %385 = arith.addi %6, %384 : vector<1x512xi32>
    %c0_i32_138 = arith.constant 0 : i32
    %386 = vector.broadcast %c0_i32_138 : i32 to vector<1x512xi32>
    %387 = arith.cmpi sge, %385, %386 : vector<1x512xi32>
    %c1_i32_139 = arith.constant 1 : i32
    %388 = vector.broadcast %c1_i32_139 : i32 to vector<1x512xi32>
    %389 = arith.addi %6, %388 : vector<1x512xi32>
    %c16_i32_140 = arith.constant 16 : i32
    %390 = vector.broadcast %c16_i32_140 : i32 to vector<1x512xi32>
    %391 = arith.cmpi slt, %389, %390 : vector<1x512xi32>
    %392 = arith.andi %387, %391 : vector<1x512xi1>
    %c1_i32_141 = arith.constant 1 : i32
    %393 = vector.broadcast %c1_i32_141 : i32 to vector<1x512xi32>
    %394 = arith.addi %2, %393 : vector<1x512xi32>
    %c0_i32_142 = arith.constant 0 : i32
    %395 = vector.broadcast %c0_i32_142 : i32 to vector<1x512xi32>
    %396 = arith.cmpi sge, %394, %395 : vector<1x512xi32>
    %397 = arith.andi %392, %396 : vector<1x512xi1>
    %c1_i32_143 = arith.constant 1 : i32
    %398 = vector.broadcast %c1_i32_143 : i32 to vector<1x512xi32>
    %399 = arith.addi %2, %398 : vector<1x512xi32>
    %c16_i32_144 = arith.constant 16 : i32
    %400 = vector.broadcast %c16_i32_144 : i32 to vector<1x512xi32>
    %401 = arith.cmpi slt, %399, %400 : vector<1x512xi32>
    %402 = arith.andi %397, %401 : vector<1x512xi1>
    %403 = arith.extui %402 : vector<1x512xi1> to vector<1x512xi32>
    %404 = arith.sitofp %403 : vector<1x512xi32> to vector<1x512xf32>
    %405 = vector.broadcast %404 : vector<1x512xf32> to vector<16x512xf32>
    %406 = arith.mulf %383, %405 : vector<16x512xf32>
    %407 = tpu.concatenate %238, %262, %286, %310, %214, %334, %358, %382, %406 in 0 : vector<16x512xf32>, vector<16x512xf32>, vector<16x512xf32>, vector<16x512xf32>, vector<16x512xf32>, vector<16x512xf32>, vector<16x512xf32>, vector<16x512xf32>, vector<16x512xf32> -> vector<144x512xf32>
    %c0_145 = arith.constant 0 : index
    %c0_146 = arith.constant 0 : index
    %408 = vector.load %arg2[%c0_145, %c0_146] : memref<32x144xf32, #tpu.memory_space<vmem>>, vector<32x144xf32>
    %cst_147 = arith.constant dense<0.000000e+00> : vector<32x512xf32>
    %409 = tpu.matmul %408, %407, %cst_147 {dimension_numbers = #tpu.dot_dimension_numbers<[1], [0], [0], [1], [0, 0, 1, 1], [], []>} : vector<32x144xf32>, vector<144x512xf32>, vector<32x512xf32> -> vector<32x512xf32>
    %c16 = arith.constant 16 : index
    %c0_148 = arith.constant 0 : index
    %410 = vector.load %arg11[%c16, %c0_148] : memref<284x1xf32, #tpu.memory_space<vmem>>, vector<32x1xf32>
    %411 = vector.broadcast %410 : vector<32x1xf32> to vector<32x512xf32>
    %412 = arith.addf %409, %411 : vector<32x512xf32>
    %cst_149 = arith.constant 0.000000e+00 : f32
    %413 = vector.broadcast %cst_149 : f32 to vector<32x512xf32>
    %414 = arith.maximumf %412, %413 : vector<32x512xf32>
    %c0_150 = arith.constant 0 : index
    %c0_151 = arith.constant 0 : index
    %415 = vector.load %arg12[%c0_150, %c0_151] : memref<512x128xf32, #tpu.memory_space<vmem>>, vector<512x128xf32>
    %cst_152 = arith.constant dense<0.000000e+00> : vector<32x128xf32>
    %416 = tpu.matmul %414, %415, %cst_152 {dimension_numbers = #tpu.dot_dimension_numbers<[1], [0], [0], [1], [0, 0, 1, 1], [], []>} : vector<32x512xf32>, vector<512x128xf32>, vector<32x128xf32> -> vector<32x128xf32>
    %c160 = arith.constant 160 : index
    %c0_153 = arith.constant 0 : index
    %417 = vector.load %arg11[%c160, %c0_153] : memref<284x1xf32, #tpu.memory_space<vmem>>, vector<8x1xf32>
    %c168 = arith.constant 168 : index
    %c0_154 = arith.constant 0 : index
    %418 = vector.load %arg11[%c168, %c0_154] : memref<284x1xf32, #tpu.memory_space<vmem>>, vector<32x1xf32>
    %c0_155 = arith.constant 0 : index
    %c0_156 = arith.constant 0 : index
    %419 = vector.load %arg16[%c0_155, %c0_156] : memref<128x2xf32, #tpu.memory_space<vmem>>, vector<128x2xf32>
    %cst_157 = arith.constant dense<0.000000e+00> : vector<32x2xf32>
    %420 = tpu.matmul %416, %419, %cst_157 {dimension_numbers = #tpu.dot_dimension_numbers<[1], [0], [0], [1], [0, 0, 1, 1], [], []>} : vector<32x128xf32>, vector<128x2xf32>, vector<32x2xf32> -> vector<32x2xf32>
    %c0_158 = arith.constant 0 : index
    %c0_159 = arith.constant 0 : index
    %421 = vector.load %arg7[%c0_158, %c0_159] : memref<8x32xf32, #tpu.memory_space<vmem>>, vector<8x32xf32>
    %cst_160 = arith.constant dense<0.000000e+00> : vector<8x2xf32>
    %422 = tpu.matmul %421, %420, %cst_160 {dimension_numbers = #tpu.dot_dimension_numbers<[1], [0], [0], [1], [0, 0, 1, 1], [], []>} : vector<8x32xf32>, vector<32x2xf32>, vector<8x2xf32> -> vector<8x2xf32>
    %423 = vector.broadcast %417 : vector<8x1xf32> to vector<8x2xf32>
    %424 = arith.addf %422, %423 : vector<8x2xf32>
    %cst_161 = arith.constant 0.000000e+00 : f32
    %425 = vector.broadcast %cst_161 : f32 to vector<8x2xf32>
    %426 = arith.maximumf %424, %425 : vector<8x2xf32>
    %c0_162 = arith.constant 0 : index
    %c0_163 = arith.constant 0 : index
    %427 = vector.load %arg8[%c0_162, %c0_163] : memref<32x8xf32, #tpu.memory_space<vmem>>, vector<32x8xf32>
    %cst_164 = arith.constant dense<0.000000e+00> : vector<32x2xf32>
    %428 = tpu.matmul %427, %426, %cst_164 {dimension_numbers = #tpu.dot_dimension_numbers<[1], [0], [0], [1], [0, 0, 1, 1], [], []>} : vector<32x8xf32>, vector<8x2xf32>, vector<32x2xf32> -> vector<32x2xf32>
    %429 = vector.broadcast %418 : vector<32x1xf32> to vector<32x2xf32>
    %430 = arith.addf %428, %429 : vector<32x2xf32>
    %431 = arith.negf %430 : vector<32x2xf32>
    %432 = math.exp %431 : vector<32x2xf32>
    %cst_165 = arith.constant 1.000000e+00 : f32
    %433 = vector.broadcast %cst_165 : f32 to vector<32x2xf32>
    %434 = arith.addf %433, %432 : vector<32x2xf32>
    %435 = arith.divf %433, %434 : vector<32x2xf32>
    %c0_166 = arith.constant 0 : index
    %c0_167 = arith.constant 0 : index
    %436 = vector.load %arg17[%c0_166, %c0_167] : memref<2x128xf32, #tpu.memory_space<vmem>>, vector<2x128xf32>
    %cst_168 = arith.constant dense<0.000000e+00> : vector<32x128xf32>
    %437 = tpu.matmul %435, %436, %cst_168 {dimension_numbers = #tpu.dot_dimension_numbers<[1], [0], [0], [1], [0, 0, 1, 1], [], []>} : vector<32x2xf32>, vector<2x128xf32>, vector<32x128xf32> -> vector<32x128xf32>
    %438 = arith.mulf %416, %437 : vector<32x128xf32>
    %c9_i32 = arith.constant 9 : i32
    %439 = tpu.dynamic_rotate %438 by %c9_i32 dim 1 : vector<32x128xf32>, i32 -> vector<32x128xf32>
    %c-1_i32_169 = arith.constant -1 : i32
    %440 = vector.broadcast %c-1_i32_169 : i32 to vector<1x128xi32>
    %441 = arith.addi %13, %440 : vector<1x128xi32>
    %c0_i32_170 = arith.constant 0 : i32
    %442 = vector.broadcast %c0_i32_170 : i32 to vector<1x128xi32>
    %443 = arith.cmpi sge, %441, %442 : vector<1x128xi32>
    %c-1_i32_171 = arith.constant -1 : i32
    %444 = vector.broadcast %c-1_i32_171 : i32 to vector<1x128xi32>
    %445 = arith.addi %13, %444 : vector<1x128xi32>
    %c8_i32_172 = arith.constant 8 : i32
    %446 = vector.broadcast %c8_i32_172 : i32 to vector<1x128xi32>
    %447 = arith.cmpi slt, %445, %446 : vector<1x128xi32>
    %448 = arith.andi %443, %447 : vector<1x128xi1>
    %c-1_i32_173 = arith.constant -1 : i32
    %449 = vector.broadcast %c-1_i32_173 : i32 to vector<1x128xi32>
    %450 = arith.addi %9, %449 : vector<1x128xi32>
    %c0_i32_174 = arith.constant 0 : i32
    %451 = vector.broadcast %c0_i32_174 : i32 to vector<1x128xi32>
    %452 = arith.cmpi sge, %450, %451 : vector<1x128xi32>
    %453 = arith.andi %448, %452 : vector<1x128xi1>
    %c-1_i32_175 = arith.constant -1 : i32
    %454 = vector.broadcast %c-1_i32_175 : i32 to vector<1x128xi32>
    %455 = arith.addi %9, %454 : vector<1x128xi32>
    %c8_i32_176 = arith.constant 8 : i32
    %456 = vector.broadcast %c8_i32_176 : i32 to vector<1x128xi32>
    %457 = arith.cmpi slt, %455, %456 : vector<1x128xi32>
    %458 = arith.andi %453, %457 : vector<1x128xi1>
    %459 = arith.extui %458 : vector<1x128xi1> to vector<1x128xi32>
    %460 = arith.sitofp %459 : vector<1x128xi32> to vector<1x128xf32>
    %461 = vector.broadcast %460 : vector<1x128xf32> to vector<32x128xf32>
    %462 = arith.mulf %439, %461 : vector<32x128xf32>
    %c8_i32_177 = arith.constant 8 : i32
    %463 = tpu.dynamic_rotate %438 by %c8_i32_177 dim 1 : vector<32x128xf32>, i32 -> vector<32x128xf32>
    %c-1_i32_178 = arith.constant -1 : i32
    %464 = vector.broadcast %c-1_i32_178 : i32 to vector<1x128xi32>
    %465 = arith.addi %13, %464 : vector<1x128xi32>
    %c0_i32_179 = arith.constant 0 : i32
    %466 = vector.broadcast %c0_i32_179 : i32 to vector<1x128xi32>
    %467 = arith.cmpi sge, %465, %466 : vector<1x128xi32>
    %c-1_i32_180 = arith.constant -1 : i32
    %468 = vector.broadcast %c-1_i32_180 : i32 to vector<1x128xi32>
    %469 = arith.addi %13, %468 : vector<1x128xi32>
    %c8_i32_181 = arith.constant 8 : i32
    %470 = vector.broadcast %c8_i32_181 : i32 to vector<1x128xi32>
    %471 = arith.cmpi slt, %469, %470 : vector<1x128xi32>
    %472 = arith.andi %467, %471 : vector<1x128xi1>
    %c0_i32_182 = arith.constant 0 : i32
    %473 = vector.broadcast %c0_i32_182 : i32 to vector<1x128xi32>
    %474 = arith.addi %9, %473 : vector<1x128xi32>
    %c0_i32_183 = arith.constant 0 : i32
    %475 = vector.broadcast %c0_i32_183 : i32 to vector<1x128xi32>
    %476 = arith.cmpi sge, %474, %475 : vector<1x128xi32>
    %477 = arith.andi %472, %476 : vector<1x128xi1>
    %c0_i32_184 = arith.constant 0 : i32
    %478 = vector.broadcast %c0_i32_184 : i32 to vector<1x128xi32>
    %479 = arith.addi %9, %478 : vector<1x128xi32>
    %c8_i32_185 = arith.constant 8 : i32
    %480 = vector.broadcast %c8_i32_185 : i32 to vector<1x128xi32>
    %481 = arith.cmpi slt, %479, %480 : vector<1x128xi32>
    %482 = arith.andi %477, %481 : vector<1x128xi1>
    %483 = arith.extui %482 : vector<1x128xi1> to vector<1x128xi32>
    %484 = arith.sitofp %483 : vector<1x128xi32> to vector<1x128xf32>
    %485 = vector.broadcast %484 : vector<1x128xf32> to vector<32x128xf32>
    %486 = arith.mulf %463, %485 : vector<32x128xf32>
    %c7_i32 = arith.constant 7 : i32
    %487 = tpu.dynamic_rotate %438 by %c7_i32 dim 1 : vector<32x128xf32>, i32 -> vector<32x128xf32>
    %c-1_i32_186 = arith.constant -1 : i32
    %488 = vector.broadcast %c-1_i32_186 : i32 to vector<1x128xi32>
    %489 = arith.addi %13, %488 : vector<1x128xi32>
    %c0_i32_187 = arith.constant 0 : i32
    %490 = vector.broadcast %c0_i32_187 : i32 to vector<1x128xi32>
    %491 = arith.cmpi sge, %489, %490 : vector<1x128xi32>
    %c-1_i32_188 = arith.constant -1 : i32
    %492 = vector.broadcast %c-1_i32_188 : i32 to vector<1x128xi32>
    %493 = arith.addi %13, %492 : vector<1x128xi32>
    %c8_i32_189 = arith.constant 8 : i32
    %494 = vector.broadcast %c8_i32_189 : i32 to vector<1x128xi32>
    %495 = arith.cmpi slt, %493, %494 : vector<1x128xi32>
    %496 = arith.andi %491, %495 : vector<1x128xi1>
    %c1_i32_190 = arith.constant 1 : i32
    %497 = vector.broadcast %c1_i32_190 : i32 to vector<1x128xi32>
    %498 = arith.addi %9, %497 : vector<1x128xi32>
    %c0_i32_191 = arith.constant 0 : i32
    %499 = vector.broadcast %c0_i32_191 : i32 to vector<1x128xi32>
    %500 = arith.cmpi sge, %498, %499 : vector<1x128xi32>
    %501 = arith.andi %496, %500 : vector<1x128xi1>
    %c1_i32_192 = arith.constant 1 : i32
    %502 = vector.broadcast %c1_i32_192 : i32 to vector<1x128xi32>
    %503 = arith.addi %9, %502 : vector<1x128xi32>
    %c8_i32_193 = arith.constant 8 : i32
    %504 = vector.broadcast %c8_i32_193 : i32 to vector<1x128xi32>
    %505 = arith.cmpi slt, %503, %504 : vector<1x128xi32>
    %506 = arith.andi %501, %505 : vector<1x128xi1>
    %507 = arith.extui %506 : vector<1x128xi1> to vector<1x128xi32>
    %508 = arith.sitofp %507 : vector<1x128xi32> to vector<1x128xf32>
    %509 = vector.broadcast %508 : vector<1x128xf32> to vector<32x128xf32>
    %510 = arith.mulf %487, %509 : vector<32x128xf32>
    %c1_i32_194 = arith.constant 1 : i32
    %511 = tpu.dynamic_rotate %438 by %c1_i32_194 dim 1 : vector<32x128xf32>, i32 -> vector<32x128xf32>
    %c0_i32_195 = arith.constant 0 : i32
    %512 = vector.broadcast %c0_i32_195 : i32 to vector<1x128xi32>
    %513 = arith.addi %13, %512 : vector<1x128xi32>
    %c0_i32_196 = arith.constant 0 : i32
    %514 = vector.broadcast %c0_i32_196 : i32 to vector<1x128xi32>
    %515 = arith.cmpi sge, %513, %514 : vector<1x128xi32>
    %c0_i32_197 = arith.constant 0 : i32
    %516 = vector.broadcast %c0_i32_197 : i32 to vector<1x128xi32>
    %517 = arith.addi %13, %516 : vector<1x128xi32>
    %c8_i32_198 = arith.constant 8 : i32
    %518 = vector.broadcast %c8_i32_198 : i32 to vector<1x128xi32>
    %519 = arith.cmpi slt, %517, %518 : vector<1x128xi32>
    %520 = arith.andi %515, %519 : vector<1x128xi1>
    %c-1_i32_199 = arith.constant -1 : i32
    %521 = vector.broadcast %c-1_i32_199 : i32 to vector<1x128xi32>
    %522 = arith.addi %9, %521 : vector<1x128xi32>
    %c0_i32_200 = arith.constant 0 : i32
    %523 = vector.broadcast %c0_i32_200 : i32 to vector<1x128xi32>
    %524 = arith.cmpi sge, %522, %523 : vector<1x128xi32>
    %525 = arith.andi %520, %524 : vector<1x128xi1>
    %c-1_i32_201 = arith.constant -1 : i32
    %526 = vector.broadcast %c-1_i32_201 : i32 to vector<1x128xi32>
    %527 = arith.addi %9, %526 : vector<1x128xi32>
    %c8_i32_202 = arith.constant 8 : i32
    %528 = vector.broadcast %c8_i32_202 : i32 to vector<1x128xi32>
    %529 = arith.cmpi slt, %527, %528 : vector<1x128xi32>
    %530 = arith.andi %525, %529 : vector<1x128xi1>
    %531 = arith.extui %530 : vector<1x128xi1> to vector<1x128xi32>
    %532 = arith.sitofp %531 : vector<1x128xi32> to vector<1x128xf32>
    %533 = vector.broadcast %532 : vector<1x128xf32> to vector<32x128xf32>
    %534 = arith.mulf %511, %533 : vector<32x128xf32>
    %c127_i32 = arith.constant 127 : i32
    %535 = tpu.dynamic_rotate %438 by %c127_i32 dim 1 : vector<32x128xf32>, i32 -> vector<32x128xf32>
    %c0_i32_203 = arith.constant 0 : i32
    %536 = vector.broadcast %c0_i32_203 : i32 to vector<1x128xi32>
    %537 = arith.addi %13, %536 : vector<1x128xi32>
    %c0_i32_204 = arith.constant 0 : i32
    %538 = vector.broadcast %c0_i32_204 : i32 to vector<1x128xi32>
    %539 = arith.cmpi sge, %537, %538 : vector<1x128xi32>
    %c0_i32_205 = arith.constant 0 : i32
    %540 = vector.broadcast %c0_i32_205 : i32 to vector<1x128xi32>
    %541 = arith.addi %13, %540 : vector<1x128xi32>
    %c8_i32_206 = arith.constant 8 : i32
    %542 = vector.broadcast %c8_i32_206 : i32 to vector<1x128xi32>
    %543 = arith.cmpi slt, %541, %542 : vector<1x128xi32>
    %544 = arith.andi %539, %543 : vector<1x128xi1>
    %c1_i32_207 = arith.constant 1 : i32
    %545 = vector.broadcast %c1_i32_207 : i32 to vector<1x128xi32>
    %546 = arith.addi %9, %545 : vector<1x128xi32>
    %c0_i32_208 = arith.constant 0 : i32
    %547 = vector.broadcast %c0_i32_208 : i32 to vector<1x128xi32>
    %548 = arith.cmpi sge, %546, %547 : vector<1x128xi32>
    %549 = arith.andi %544, %548 : vector<1x128xi1>
    %c1_i32_209 = arith.constant 1 : i32
    %550 = vector.broadcast %c1_i32_209 : i32 to vector<1x128xi32>
    %551 = arith.addi %9, %550 : vector<1x128xi32>
    %c8_i32_210 = arith.constant 8 : i32
    %552 = vector.broadcast %c8_i32_210 : i32 to vector<1x128xi32>
    %553 = arith.cmpi slt, %551, %552 : vector<1x128xi32>
    %554 = arith.andi %549, %553 : vector<1x128xi1>
    %555 = arith.extui %554 : vector<1x128xi1> to vector<1x128xi32>
    %556 = arith.sitofp %555 : vector<1x128xi32> to vector<1x128xf32>
    %557 = vector.broadcast %556 : vector<1x128xf32> to vector<32x128xf32>
    %558 = arith.mulf %535, %557 : vector<32x128xf32>
    %c121_i32 = arith.constant 121 : i32
    %559 = tpu.dynamic_rotate %438 by %c121_i32 dim 1 : vector<32x128xf32>, i32 -> vector<32x128xf32>
    %c1_i32_211 = arith.constant 1 : i32
    %560 = vector.broadcast %c1_i32_211 : i32 to vector<1x128xi32>
    %561 = arith.addi %13, %560 : vector<1x128xi32>
    %c0_i32_212 = arith.constant 0 : i32
    %562 = vector.broadcast %c0_i32_212 : i32 to vector<1x128xi32>
    %563 = arith.cmpi sge, %561, %562 : vector<1x128xi32>
    %c1_i32_213 = arith.constant 1 : i32
    %564 = vector.broadcast %c1_i32_213 : i32 to vector<1x128xi32>
    %565 = arith.addi %13, %564 : vector<1x128xi32>
    %c8_i32_214 = arith.constant 8 : i32
    %566 = vector.broadcast %c8_i32_214 : i32 to vector<1x128xi32>
    %567 = arith.cmpi slt, %565, %566 : vector<1x128xi32>
    %568 = arith.andi %563, %567 : vector<1x128xi1>
    %c-1_i32_215 = arith.constant -1 : i32
    %569 = vector.broadcast %c-1_i32_215 : i32 to vector<1x128xi32>
    %570 = arith.addi %9, %569 : vector<1x128xi32>
    %c0_i32_216 = arith.constant 0 : i32
    %571 = vector.broadcast %c0_i32_216 : i32 to vector<1x128xi32>
    %572 = arith.cmpi sge, %570, %571 : vector<1x128xi32>
    %573 = arith.andi %568, %572 : vector<1x128xi1>
    %c-1_i32_217 = arith.constant -1 : i32
    %574 = vector.broadcast %c-1_i32_217 : i32 to vector<1x128xi32>
    %575 = arith.addi %9, %574 : vector<1x128xi32>
    %c8_i32_218 = arith.constant 8 : i32
    %576 = vector.broadcast %c8_i32_218 : i32 to vector<1x128xi32>
    %577 = arith.cmpi slt, %575, %576 : vector<1x128xi32>
    %578 = arith.andi %573, %577 : vector<1x128xi1>
    %579 = arith.extui %578 : vector<1x128xi1> to vector<1x128xi32>
    %580 = arith.sitofp %579 : vector<1x128xi32> to vector<1x128xf32>
    %581 = vector.broadcast %580 : vector<1x128xf32> to vector<32x128xf32>
    %582 = arith.mulf %559, %581 : vector<32x128xf32>
    %c120_i32 = arith.constant 120 : i32
    %583 = tpu.dynamic_rotate %438 by %c120_i32 dim 1 : vector<32x128xf32>, i32 -> vector<32x128xf32>
    %c1_i32_219 = arith.constant 1 : i32
    %584 = vector.broadcast %c1_i32_219 : i32 to vector<1x128xi32>
    %585 = arith.addi %13, %584 : vector<1x128xi32>
    %c0_i32_220 = arith.constant 0 : i32
    %586 = vector.broadcast %c0_i32_220 : i32 to vector<1x128xi32>
    %587 = arith.cmpi sge, %585, %586 : vector<1x128xi32>
    %c1_i32_221 = arith.constant 1 : i32
    %588 = vector.broadcast %c1_i32_221 : i32 to vector<1x128xi32>
    %589 = arith.addi %13, %588 : vector<1x128xi32>
    %c8_i32_222 = arith.constant 8 : i32
    %590 = vector.broadcast %c8_i32_222 : i32 to vector<1x128xi32>
    %591 = arith.cmpi slt, %589, %590 : vector<1x128xi32>
    %592 = arith.andi %587, %591 : vector<1x128xi1>
    %c0_i32_223 = arith.constant 0 : i32
    %593 = vector.broadcast %c0_i32_223 : i32 to vector<1x128xi32>
    %594 = arith.addi %9, %593 : vector<1x128xi32>
    %c0_i32_224 = arith.constant 0 : i32
    %595 = vector.broadcast %c0_i32_224 : i32 to vector<1x128xi32>
    %596 = arith.cmpi sge, %594, %595 : vector<1x128xi32>
    %597 = arith.andi %592, %596 : vector<1x128xi1>
    %c0_i32_225 = arith.constant 0 : i32
    %598 = vector.broadcast %c0_i32_225 : i32 to vector<1x128xi32>
    %599 = arith.addi %9, %598 : vector<1x128xi32>
    %c8_i32_226 = arith.constant 8 : i32
    %600 = vector.broadcast %c8_i32_226 : i32 to vector<1x128xi32>
    %601 = arith.cmpi slt, %599, %600 : vector<1x128xi32>
    %602 = arith.andi %597, %601 : vector<1x128xi1>
    %603 = arith.extui %602 : vector<1x128xi1> to vector<1x128xi32>
    %604 = arith.sitofp %603 : vector<1x128xi32> to vector<1x128xf32>
    %605 = vector.broadcast %604 : vector<1x128xf32> to vector<32x128xf32>
    %606 = arith.mulf %583, %605 : vector<32x128xf32>
    %c119_i32 = arith.constant 119 : i32
    %607 = tpu.dynamic_rotate %438 by %c119_i32 dim 1 : vector<32x128xf32>, i32 -> vector<32x128xf32>
    %c1_i32_227 = arith.constant 1 : i32
    %608 = vector.broadcast %c1_i32_227 : i32 to vector<1x128xi32>
    %609 = arith.addi %13, %608 : vector<1x128xi32>
    %c0_i32_228 = arith.constant 0 : i32
    %610 = vector.broadcast %c0_i32_228 : i32 to vector<1x128xi32>
    %611 = arith.cmpi sge, %609, %610 : vector<1x128xi32>
    %c1_i32_229 = arith.constant 1 : i32
    %612 = vector.broadcast %c1_i32_229 : i32 to vector<1x128xi32>
    %613 = arith.addi %13, %612 : vector<1x128xi32>
    %c8_i32_230 = arith.constant 8 : i32
    %614 = vector.broadcast %c8_i32_230 : i32 to vector<1x128xi32>
    %615 = arith.cmpi slt, %613, %614 : vector<1x128xi32>
    %616 = arith.andi %611, %615 : vector<1x128xi1>
    %c1_i32_231 = arith.constant 1 : i32
    %617 = vector.broadcast %c1_i32_231 : i32 to vector<1x128xi32>
    %618 = arith.addi %9, %617 : vector<1x128xi32>
    %c0_i32_232 = arith.constant 0 : i32
    %619 = vector.broadcast %c0_i32_232 : i32 to vector<1x128xi32>
    %620 = arith.cmpi sge, %618, %619 : vector<1x128xi32>
    %621 = arith.andi %616, %620 : vector<1x128xi1>
    %c1_i32_233 = arith.constant 1 : i32
    %622 = vector.broadcast %c1_i32_233 : i32 to vector<1x128xi32>
    %623 = arith.addi %9, %622 : vector<1x128xi32>
    %c8_i32_234 = arith.constant 8 : i32
    %624 = vector.broadcast %c8_i32_234 : i32 to vector<1x128xi32>
    %625 = arith.cmpi slt, %623, %624 : vector<1x128xi32>
    %626 = arith.andi %621, %625 : vector<1x128xi1>
    %627 = arith.extui %626 : vector<1x128xi1> to vector<1x128xi32>
    %628 = arith.sitofp %627 : vector<1x128xi32> to vector<1x128xf32>
    %629 = vector.broadcast %628 : vector<1x128xf32> to vector<32x128xf32>
    %630 = arith.mulf %607, %629 : vector<32x128xf32>
    %631 = tpu.concatenate %462, %486, %510, %534, %438, %558, %582, %606, %630 in 0 : vector<32x128xf32>, vector<32x128xf32>, vector<32x128xf32>, vector<32x128xf32>, vector<32x128xf32>, vector<32x128xf32>, vector<32x128xf32>, vector<32x128xf32>, vector<32x128xf32> -> vector<288x128xf32>
    %c0_235 = arith.constant 0 : index
    %c0_236 = arith.constant 0 : index
    %632 = vector.load %arg3[%c0_235, %c0_236] : memref<64x288xf32, #tpu.memory_space<vmem>>, vector<64x288xf32>
    %cst_237 = arith.constant dense<0.000000e+00> : vector<64x128xf32>
    %633 = tpu.matmul %632, %631, %cst_237 {dimension_numbers = #tpu.dot_dimension_numbers<[1], [0], [0], [1], [0, 0, 1, 1], [], []>} : vector<64x288xf32>, vector<288x128xf32>, vector<64x128xf32> -> vector<64x128xf32>
    %c48 = arith.constant 48 : index
    %c0_238 = arith.constant 0 : index
    %634 = vector.load %arg11[%c48, %c0_238] : memref<284x1xf32, #tpu.memory_space<vmem>>, vector<64x1xf32>
    %635 = vector.broadcast %634 : vector<64x1xf32> to vector<64x128xf32>
    %636 = arith.addf %633, %635 : vector<64x128xf32>
    %cst_239 = arith.constant 0.000000e+00 : f32
    %637 = vector.broadcast %cst_239 : f32 to vector<64x128xf32>
    %638 = arith.maximumf %636, %637 : vector<64x128xf32>
    %c0_240 = arith.constant 0 : index
    %c0_241 = arith.constant 0 : index
    %639 = vector.load %arg13[%c0_240, %c0_241] : memref<128x32xf32, #tpu.memory_space<vmem>>, vector<128x32xf32>
    %cst_242 = arith.constant dense<0.000000e+00> : vector<64x32xf32>
    %640 = tpu.matmul %638, %639, %cst_242 {dimension_numbers = #tpu.dot_dimension_numbers<[1], [0], [0], [1], [0, 0, 1, 1], [], []>} : vector<64x128xf32>, vector<128x32xf32>, vector<64x32xf32> -> vector<64x32xf32>
    %c200 = arith.constant 200 : index
    %c0_243 = arith.constant 0 : index
    %641 = vector.load %arg11[%c200, %c0_243] : memref<284x1xf32, #tpu.memory_space<vmem>>, vector<16x1xf32>
    %c216 = arith.constant 216 : index
    %c0_244 = arith.constant 0 : index
    %642 = vector.load %arg11[%c216, %c0_244] : memref<284x1xf32, #tpu.memory_space<vmem>>, vector<64x1xf32>
    %c0_245 = arith.constant 0 : index
    %c0_246 = arith.constant 0 : index
    %643 = vector.load %arg18[%c0_245, %c0_246] : memref<32x2xf32, #tpu.memory_space<vmem>>, vector<32x2xf32>
    %cst_247 = arith.constant dense<0.000000e+00> : vector<64x2xf32>
    %644 = tpu.matmul %640, %643, %cst_247 {dimension_numbers = #tpu.dot_dimension_numbers<[1], [0], [0], [1], [0, 0, 1, 1], [], []>} : vector<64x32xf32>, vector<32x2xf32>, vector<64x2xf32> -> vector<64x2xf32>
    %c0_248 = arith.constant 0 : index
    %c0_249 = arith.constant 0 : index
    %645 = vector.load %arg9[%c0_248, %c0_249] : memref<16x64xf32, #tpu.memory_space<vmem>>, vector<16x64xf32>
    %cst_250 = arith.constant dense<0.000000e+00> : vector<16x2xf32>
    %646 = tpu.matmul %645, %644, %cst_250 {dimension_numbers = #tpu.dot_dimension_numbers<[1], [0], [0], [1], [0, 0, 1, 1], [], []>} : vector<16x64xf32>, vector<64x2xf32>, vector<16x2xf32> -> vector<16x2xf32>
    %647 = vector.broadcast %641 : vector<16x1xf32> to vector<16x2xf32>
    %648 = arith.addf %646, %647 : vector<16x2xf32>
    %cst_251 = arith.constant 0.000000e+00 : f32
    %649 = vector.broadcast %cst_251 : f32 to vector<16x2xf32>
    %650 = arith.maximumf %648, %649 : vector<16x2xf32>
    %c0_252 = arith.constant 0 : index
    %c0_253 = arith.constant 0 : index
    %651 = vector.load %arg10[%c0_252, %c0_253] : memref<64x16xf32, #tpu.memory_space<vmem>>, vector<64x16xf32>
    %cst_254 = arith.constant dense<0.000000e+00> : vector<64x2xf32>
    %652 = tpu.matmul %651, %650, %cst_254 {dimension_numbers = #tpu.dot_dimension_numbers<[1], [0], [0], [1], [0, 0, 1, 1], [], []>} : vector<64x16xf32>, vector<16x2xf32>, vector<64x2xf32> -> vector<64x2xf32>
    %653 = vector.broadcast %642 : vector<64x1xf32> to vector<64x2xf32>
    %654 = arith.addf %652, %653 : vector<64x2xf32>
    %655 = arith.negf %654 : vector<64x2xf32>
    %656 = math.exp %655 : vector<64x2xf32>
    %cst_255 = arith.constant 1.000000e+00 : f32
    %657 = vector.broadcast %cst_255 : f32 to vector<64x2xf32>
    %658 = arith.addf %657, %656 : vector<64x2xf32>
    %659 = arith.divf %657, %658 : vector<64x2xf32>
    %c0_256 = arith.constant 0 : index
    %c0_257 = arith.constant 0 : index
    %660 = vector.load %arg19[%c0_256, %c0_257] : memref<2x32xf32, #tpu.memory_space<vmem>>, vector<2x32xf32>
    %cst_258 = arith.constant dense<0.000000e+00> : vector<64x32xf32>
    %661 = tpu.matmul %659, %660, %cst_258 {dimension_numbers = #tpu.dot_dimension_numbers<[1], [0], [0], [1], [0, 0, 1, 1], [], []>} : vector<64x2xf32>, vector<2x32xf32>, vector<64x32xf32> -> vector<64x32xf32>
    %662 = arith.mulf %640, %661 : vector<64x32xf32>
    %c0_259 = arith.constant 0 : index
    %c0_260 = arith.constant 0 : index
    %663 = vector.load %arg14[%c0_259, %c0_260] : memref<32x128xf32, #tpu.memory_space<vmem>>, vector<32x128xf32>
    %cst_261 = arith.constant dense<0.000000e+00> : vector<64x128xf32>
    %664 = tpu.matmul %662, %663, %cst_261 {dimension_numbers = #tpu.dot_dimension_numbers<[1], [0], [0], [1], [0, 0, 1, 1], [], []>} : vector<64x32xf32>, vector<32x128xf32>, vector<64x128xf32> -> vector<64x128xf32>
    %665 = tpu.concatenate %664, %438 in 0 : vector<64x128xf32>, vector<32x128xf32> -> vector<96x128xf32>
    %c9_i32_262 = arith.constant 9 : i32
    %666 = tpu.dynamic_rotate %665 by %c9_i32_262 dim 1 : vector<96x128xf32>, i32 -> vector<96x128xf32>
    %c-1_i32_263 = arith.constant -1 : i32
    %667 = vector.broadcast %c-1_i32_263 : i32 to vector<1x128xi32>
    %668 = arith.addi %13, %667 : vector<1x128xi32>
    %c0_i32_264 = arith.constant 0 : i32
    %669 = vector.broadcast %c0_i32_264 : i32 to vector<1x128xi32>
    %670 = arith.cmpi sge, %668, %669 : vector<1x128xi32>
    %c-1_i32_265 = arith.constant -1 : i32
    %671 = vector.broadcast %c-1_i32_265 : i32 to vector<1x128xi32>
    %672 = arith.addi %13, %671 : vector<1x128xi32>
    %c8_i32_266 = arith.constant 8 : i32
    %673 = vector.broadcast %c8_i32_266 : i32 to vector<1x128xi32>
    %674 = arith.cmpi slt, %672, %673 : vector<1x128xi32>
    %675 = arith.andi %670, %674 : vector<1x128xi1>
    %c-1_i32_267 = arith.constant -1 : i32
    %676 = vector.broadcast %c-1_i32_267 : i32 to vector<1x128xi32>
    %677 = arith.addi %9, %676 : vector<1x128xi32>
    %c0_i32_268 = arith.constant 0 : i32
    %678 = vector.broadcast %c0_i32_268 : i32 to vector<1x128xi32>
    %679 = arith.cmpi sge, %677, %678 : vector<1x128xi32>
    %680 = arith.andi %675, %679 : vector<1x128xi1>
    %c-1_i32_269 = arith.constant -1 : i32
    %681 = vector.broadcast %c-1_i32_269 : i32 to vector<1x128xi32>
    %682 = arith.addi %9, %681 : vector<1x128xi32>
    %c8_i32_270 = arith.constant 8 : i32
    %683 = vector.broadcast %c8_i32_270 : i32 to vector<1x128xi32>
    %684 = arith.cmpi slt, %682, %683 : vector<1x128xi32>
    %685 = arith.andi %680, %684 : vector<1x128xi1>
    %686 = arith.extui %685 : vector<1x128xi1> to vector<1x128xi32>
    %687 = arith.sitofp %686 : vector<1x128xi32> to vector<1x128xf32>
    %688 = vector.broadcast %687 : vector<1x128xf32> to vector<96x128xf32>
    %689 = arith.mulf %666, %688 : vector<96x128xf32>
    %c8_i32_271 = arith.constant 8 : i32
    %690 = tpu.dynamic_rotate %665 by %c8_i32_271 dim 1 : vector<96x128xf32>, i32 -> vector<96x128xf32>
    %c-1_i32_272 = arith.constant -1 : i32
    %691 = vector.broadcast %c-1_i32_272 : i32 to vector<1x128xi32>
    %692 = arith.addi %13, %691 : vector<1x128xi32>
    %c0_i32_273 = arith.constant 0 : i32
    %693 = vector.broadcast %c0_i32_273 : i32 to vector<1x128xi32>
    %694 = arith.cmpi sge, %692, %693 : vector<1x128xi32>
    %c-1_i32_274 = arith.constant -1 : i32
    %695 = vector.broadcast %c-1_i32_274 : i32 to vector<1x128xi32>
    %696 = arith.addi %13, %695 : vector<1x128xi32>
    %c8_i32_275 = arith.constant 8 : i32
    %697 = vector.broadcast %c8_i32_275 : i32 to vector<1x128xi32>
    %698 = arith.cmpi slt, %696, %697 : vector<1x128xi32>
    %699 = arith.andi %694, %698 : vector<1x128xi1>
    %c0_i32_276 = arith.constant 0 : i32
    %700 = vector.broadcast %c0_i32_276 : i32 to vector<1x128xi32>
    %701 = arith.addi %9, %700 : vector<1x128xi32>
    %c0_i32_277 = arith.constant 0 : i32
    %702 = vector.broadcast %c0_i32_277 : i32 to vector<1x128xi32>
    %703 = arith.cmpi sge, %701, %702 : vector<1x128xi32>
    %704 = arith.andi %699, %703 : vector<1x128xi1>
    %c0_i32_278 = arith.constant 0 : i32
    %705 = vector.broadcast %c0_i32_278 : i32 to vector<1x128xi32>
    %706 = arith.addi %9, %705 : vector<1x128xi32>
    %c8_i32_279 = arith.constant 8 : i32
    %707 = vector.broadcast %c8_i32_279 : i32 to vector<1x128xi32>
    %708 = arith.cmpi slt, %706, %707 : vector<1x128xi32>
    %709 = arith.andi %704, %708 : vector<1x128xi1>
    %710 = arith.extui %709 : vector<1x128xi1> to vector<1x128xi32>
    %711 = arith.sitofp %710 : vector<1x128xi32> to vector<1x128xf32>
    %712 = vector.broadcast %711 : vector<1x128xf32> to vector<96x128xf32>
    %713 = arith.mulf %690, %712 : vector<96x128xf32>
    %c7_i32_280 = arith.constant 7 : i32
    %714 = tpu.dynamic_rotate %665 by %c7_i32_280 dim 1 : vector<96x128xf32>, i32 -> vector<96x128xf32>
    %c-1_i32_281 = arith.constant -1 : i32
    %715 = vector.broadcast %c-1_i32_281 : i32 to vector<1x128xi32>
    %716 = arith.addi %13, %715 : vector<1x128xi32>
    %c0_i32_282 = arith.constant 0 : i32
    %717 = vector.broadcast %c0_i32_282 : i32 to vector<1x128xi32>
    %718 = arith.cmpi sge, %716, %717 : vector<1x128xi32>
    %c-1_i32_283 = arith.constant -1 : i32
    %719 = vector.broadcast %c-1_i32_283 : i32 to vector<1x128xi32>
    %720 = arith.addi %13, %719 : vector<1x128xi32>
    %c8_i32_284 = arith.constant 8 : i32
    %721 = vector.broadcast %c8_i32_284 : i32 to vector<1x128xi32>
    %722 = arith.cmpi slt, %720, %721 : vector<1x128xi32>
    %723 = arith.andi %718, %722 : vector<1x128xi1>
    %c1_i32_285 = arith.constant 1 : i32
    %724 = vector.broadcast %c1_i32_285 : i32 to vector<1x128xi32>
    %725 = arith.addi %9, %724 : vector<1x128xi32>
    %c0_i32_286 = arith.constant 0 : i32
    %726 = vector.broadcast %c0_i32_286 : i32 to vector<1x128xi32>
    %727 = arith.cmpi sge, %725, %726 : vector<1x128xi32>
    %728 = arith.andi %723, %727 : vector<1x128xi1>
    %c1_i32_287 = arith.constant 1 : i32
    %729 = vector.broadcast %c1_i32_287 : i32 to vector<1x128xi32>
    %730 = arith.addi %9, %729 : vector<1x128xi32>
    %c8_i32_288 = arith.constant 8 : i32
    %731 = vector.broadcast %c8_i32_288 : i32 to vector<1x128xi32>
    %732 = arith.cmpi slt, %730, %731 : vector<1x128xi32>
    %733 = arith.andi %728, %732 : vector<1x128xi1>
    %734 = arith.extui %733 : vector<1x128xi1> to vector<1x128xi32>
    %735 = arith.sitofp %734 : vector<1x128xi32> to vector<1x128xf32>
    %736 = vector.broadcast %735 : vector<1x128xf32> to vector<96x128xf32>
    %737 = arith.mulf %714, %736 : vector<96x128xf32>
    %c1_i32_289 = arith.constant 1 : i32
    %738 = tpu.dynamic_rotate %665 by %c1_i32_289 dim 1 : vector<96x128xf32>, i32 -> vector<96x128xf32>
    %c0_i32_290 = arith.constant 0 : i32
    %739 = vector.broadcast %c0_i32_290 : i32 to vector<1x128xi32>
    %740 = arith.addi %13, %739 : vector<1x128xi32>
    %c0_i32_291 = arith.constant 0 : i32
    %741 = vector.broadcast %c0_i32_291 : i32 to vector<1x128xi32>
    %742 = arith.cmpi sge, %740, %741 : vector<1x128xi32>
    %c0_i32_292 = arith.constant 0 : i32
    %743 = vector.broadcast %c0_i32_292 : i32 to vector<1x128xi32>
    %744 = arith.addi %13, %743 : vector<1x128xi32>
    %c8_i32_293 = arith.constant 8 : i32
    %745 = vector.broadcast %c8_i32_293 : i32 to vector<1x128xi32>
    %746 = arith.cmpi slt, %744, %745 : vector<1x128xi32>
    %747 = arith.andi %742, %746 : vector<1x128xi1>
    %c-1_i32_294 = arith.constant -1 : i32
    %748 = vector.broadcast %c-1_i32_294 : i32 to vector<1x128xi32>
    %749 = arith.addi %9, %748 : vector<1x128xi32>
    %c0_i32_295 = arith.constant 0 : i32
    %750 = vector.broadcast %c0_i32_295 : i32 to vector<1x128xi32>
    %751 = arith.cmpi sge, %749, %750 : vector<1x128xi32>
    %752 = arith.andi %747, %751 : vector<1x128xi1>
    %c-1_i32_296 = arith.constant -1 : i32
    %753 = vector.broadcast %c-1_i32_296 : i32 to vector<1x128xi32>
    %754 = arith.addi %9, %753 : vector<1x128xi32>
    %c8_i32_297 = arith.constant 8 : i32
    %755 = vector.broadcast %c8_i32_297 : i32 to vector<1x128xi32>
    %756 = arith.cmpi slt, %754, %755 : vector<1x128xi32>
    %757 = arith.andi %752, %756 : vector<1x128xi1>
    %758 = arith.extui %757 : vector<1x128xi1> to vector<1x128xi32>
    %759 = arith.sitofp %758 : vector<1x128xi32> to vector<1x128xf32>
    %760 = vector.broadcast %759 : vector<1x128xf32> to vector<96x128xf32>
    %761 = arith.mulf %738, %760 : vector<96x128xf32>
    %c127_i32_298 = arith.constant 127 : i32
    %762 = tpu.dynamic_rotate %665 by %c127_i32_298 dim 1 : vector<96x128xf32>, i32 -> vector<96x128xf32>
    %c0_i32_299 = arith.constant 0 : i32
    %763 = vector.broadcast %c0_i32_299 : i32 to vector<1x128xi32>
    %764 = arith.addi %13, %763 : vector<1x128xi32>
    %c0_i32_300 = arith.constant 0 : i32
    %765 = vector.broadcast %c0_i32_300 : i32 to vector<1x128xi32>
    %766 = arith.cmpi sge, %764, %765 : vector<1x128xi32>
    %c0_i32_301 = arith.constant 0 : i32
    %767 = vector.broadcast %c0_i32_301 : i32 to vector<1x128xi32>
    %768 = arith.addi %13, %767 : vector<1x128xi32>
    %c8_i32_302 = arith.constant 8 : i32
    %769 = vector.broadcast %c8_i32_302 : i32 to vector<1x128xi32>
    %770 = arith.cmpi slt, %768, %769 : vector<1x128xi32>
    %771 = arith.andi %766, %770 : vector<1x128xi1>
    %c1_i32_303 = arith.constant 1 : i32
    %772 = vector.broadcast %c1_i32_303 : i32 to vector<1x128xi32>
    %773 = arith.addi %9, %772 : vector<1x128xi32>
    %c0_i32_304 = arith.constant 0 : i32
    %774 = vector.broadcast %c0_i32_304 : i32 to vector<1x128xi32>
    %775 = arith.cmpi sge, %773, %774 : vector<1x128xi32>
    %776 = arith.andi %771, %775 : vector<1x128xi1>
    %c1_i32_305 = arith.constant 1 : i32
    %777 = vector.broadcast %c1_i32_305 : i32 to vector<1x128xi32>
    %778 = arith.addi %9, %777 : vector<1x128xi32>
    %c8_i32_306 = arith.constant 8 : i32
    %779 = vector.broadcast %c8_i32_306 : i32 to vector<1x128xi32>
    %780 = arith.cmpi slt, %778, %779 : vector<1x128xi32>
    %781 = arith.andi %776, %780 : vector<1x128xi1>
    %782 = arith.extui %781 : vector<1x128xi1> to vector<1x128xi32>
    %783 = arith.sitofp %782 : vector<1x128xi32> to vector<1x128xf32>
    %784 = vector.broadcast %783 : vector<1x128xf32> to vector<96x128xf32>
    %785 = arith.mulf %762, %784 : vector<96x128xf32>
    %c121_i32_307 = arith.constant 121 : i32
    %786 = tpu.dynamic_rotate %665 by %c121_i32_307 dim 1 : vector<96x128xf32>, i32 -> vector<96x128xf32>
    %c1_i32_308 = arith.constant 1 : i32
    %787 = vector.broadcast %c1_i32_308 : i32 to vector<1x128xi32>
    %788 = arith.addi %13, %787 : vector<1x128xi32>
    %c0_i32_309 = arith.constant 0 : i32
    %789 = vector.broadcast %c0_i32_309 : i32 to vector<1x128xi32>
    %790 = arith.cmpi sge, %788, %789 : vector<1x128xi32>
    %c1_i32_310 = arith.constant 1 : i32
    %791 = vector.broadcast %c1_i32_310 : i32 to vector<1x128xi32>
    %792 = arith.addi %13, %791 : vector<1x128xi32>
    %c8_i32_311 = arith.constant 8 : i32
    %793 = vector.broadcast %c8_i32_311 : i32 to vector<1x128xi32>
    %794 = arith.cmpi slt, %792, %793 : vector<1x128xi32>
    %795 = arith.andi %790, %794 : vector<1x128xi1>
    %c-1_i32_312 = arith.constant -1 : i32
    %796 = vector.broadcast %c-1_i32_312 : i32 to vector<1x128xi32>
    %797 = arith.addi %9, %796 : vector<1x128xi32>
    %c0_i32_313 = arith.constant 0 : i32
    %798 = vector.broadcast %c0_i32_313 : i32 to vector<1x128xi32>
    %799 = arith.cmpi sge, %797, %798 : vector<1x128xi32>
    %800 = arith.andi %795, %799 : vector<1x128xi1>
    %c-1_i32_314 = arith.constant -1 : i32
    %801 = vector.broadcast %c-1_i32_314 : i32 to vector<1x128xi32>
    %802 = arith.addi %9, %801 : vector<1x128xi32>
    %c8_i32_315 = arith.constant 8 : i32
    %803 = vector.broadcast %c8_i32_315 : i32 to vector<1x128xi32>
    %804 = arith.cmpi slt, %802, %803 : vector<1x128xi32>
    %805 = arith.andi %800, %804 : vector<1x128xi1>
    %806 = arith.extui %805 : vector<1x128xi1> to vector<1x128xi32>
    %807 = arith.sitofp %806 : vector<1x128xi32> to vector<1x128xf32>
    %808 = vector.broadcast %807 : vector<1x128xf32> to vector<96x128xf32>
    %809 = arith.mulf %786, %808 : vector<96x128xf32>
    %c120_i32_316 = arith.constant 120 : i32
    %810 = tpu.dynamic_rotate %665 by %c120_i32_316 dim 1 : vector<96x128xf32>, i32 -> vector<96x128xf32>
    %c1_i32_317 = arith.constant 1 : i32
    %811 = vector.broadcast %c1_i32_317 : i32 to vector<1x128xi32>
    %812 = arith.addi %13, %811 : vector<1x128xi32>
    %c0_i32_318 = arith.constant 0 : i32
    %813 = vector.broadcast %c0_i32_318 : i32 to vector<1x128xi32>
    %814 = arith.cmpi sge, %812, %813 : vector<1x128xi32>
    %c1_i32_319 = arith.constant 1 : i32
    %815 = vector.broadcast %c1_i32_319 : i32 to vector<1x128xi32>
    %816 = arith.addi %13, %815 : vector<1x128xi32>
    %c8_i32_320 = arith.constant 8 : i32
    %817 = vector.broadcast %c8_i32_320 : i32 to vector<1x128xi32>
    %818 = arith.cmpi slt, %816, %817 : vector<1x128xi32>
    %819 = arith.andi %814, %818 : vector<1x128xi1>
    %c0_i32_321 = arith.constant 0 : i32
    %820 = vector.broadcast %c0_i32_321 : i32 to vector<1x128xi32>
    %821 = arith.addi %9, %820 : vector<1x128xi32>
    %c0_i32_322 = arith.constant 0 : i32
    %822 = vector.broadcast %c0_i32_322 : i32 to vector<1x128xi32>
    %823 = arith.cmpi sge, %821, %822 : vector<1x128xi32>
    %824 = arith.andi %819, %823 : vector<1x128xi1>
    %c0_i32_323 = arith.constant 0 : i32
    %825 = vector.broadcast %c0_i32_323 : i32 to vector<1x128xi32>
    %826 = arith.addi %9, %825 : vector<1x128xi32>
    %c8_i32_324 = arith.constant 8 : i32
    %827 = vector.broadcast %c8_i32_324 : i32 to vector<1x128xi32>
    %828 = arith.cmpi slt, %826, %827 : vector<1x128xi32>
    %829 = arith.andi %824, %828 : vector<1x128xi1>
    %830 = arith.extui %829 : vector<1x128xi1> to vector<1x128xi32>
    %831 = arith.sitofp %830 : vector<1x128xi32> to vector<1x128xf32>
    %832 = vector.broadcast %831 : vector<1x128xf32> to vector<96x128xf32>
    %833 = arith.mulf %810, %832 : vector<96x128xf32>
    %c119_i32_325 = arith.constant 119 : i32
    %834 = tpu.dynamic_rotate %665 by %c119_i32_325 dim 1 : vector<96x128xf32>, i32 -> vector<96x128xf32>
    %c1_i32_326 = arith.constant 1 : i32
    %835 = vector.broadcast %c1_i32_326 : i32 to vector<1x128xi32>
    %836 = arith.addi %13, %835 : vector<1x128xi32>
    %c0_i32_327 = arith.constant 0 : i32
    %837 = vector.broadcast %c0_i32_327 : i32 to vector<1x128xi32>
    %838 = arith.cmpi sge, %836, %837 : vector<1x128xi32>
    %c1_i32_328 = arith.constant 1 : i32
    %839 = vector.broadcast %c1_i32_328 : i32 to vector<1x128xi32>
    %840 = arith.addi %13, %839 : vector<1x128xi32>
    %c8_i32_329 = arith.constant 8 : i32
    %841 = vector.broadcast %c8_i32_329 : i32 to vector<1x128xi32>
    %842 = arith.cmpi slt, %840, %841 : vector<1x128xi32>
    %843 = arith.andi %838, %842 : vector<1x128xi1>
    %c1_i32_330 = arith.constant 1 : i32
    %844 = vector.broadcast %c1_i32_330 : i32 to vector<1x128xi32>
    %845 = arith.addi %9, %844 : vector<1x128xi32>
    %c0_i32_331 = arith.constant 0 : i32
    %846 = vector.broadcast %c0_i32_331 : i32 to vector<1x128xi32>
    %847 = arith.cmpi sge, %845, %846 : vector<1x128xi32>
    %848 = arith.andi %843, %847 : vector<1x128xi1>
    %c1_i32_332 = arith.constant 1 : i32
    %849 = vector.broadcast %c1_i32_332 : i32 to vector<1x128xi32>
    %850 = arith.addi %9, %849 : vector<1x128xi32>
    %c8_i32_333 = arith.constant 8 : i32
    %851 = vector.broadcast %c8_i32_333 : i32 to vector<1x128xi32>
    %852 = arith.cmpi slt, %850, %851 : vector<1x128xi32>
    %853 = arith.andi %848, %852 : vector<1x128xi1>
    %854 = arith.extui %853 : vector<1x128xi1> to vector<1x128xi32>
    %855 = arith.sitofp %854 : vector<1x128xi32> to vector<1x128xf32>
    %856 = vector.broadcast %855 : vector<1x128xf32> to vector<96x128xf32>
    %857 = arith.mulf %834, %856 : vector<96x128xf32>
    %858 = tpu.concatenate %689, %713, %737, %761, %665, %785, %809, %833, %857 in 0 : vector<96x128xf32>, vector<96x128xf32>, vector<96x128xf32>, vector<96x128xf32>, vector<96x128xf32>, vector<96x128xf32>, vector<96x128xf32>, vector<96x128xf32>, vector<96x128xf32> -> vector<864x128xf32>
    %c0_334 = arith.constant 0 : index
    %c0_335 = arith.constant 0 : index
    %859 = vector.load %arg4[%c0_334, %c0_335] : memref<32x864xf32, #tpu.memory_space<vmem>>, vector<32x864xf32>
    %cst_336 = arith.constant dense<0.000000e+00> : vector<32x128xf32>
    %860 = tpu.matmul %859, %858, %cst_336 {dimension_numbers = #tpu.dot_dimension_numbers<[1], [0], [0], [1], [0, 0, 1, 1], [], []>} : vector<32x864xf32>, vector<864x128xf32>, vector<32x128xf32> -> vector<32x128xf32>
    %c112 = arith.constant 112 : index
    %c0_337 = arith.constant 0 : index
    %861 = vector.load %arg11[%c112, %c0_337] : memref<284x1xf32, #tpu.memory_space<vmem>>, vector<32x1xf32>
    %862 = vector.broadcast %861 : vector<32x1xf32> to vector<32x128xf32>
    %863 = arith.addf %860, %862 : vector<32x128xf32>
    %cst_338 = arith.constant 0.000000e+00 : f32
    %864 = vector.broadcast %cst_338 : f32 to vector<32x128xf32>
    %865 = arith.maximumf %863, %864 : vector<32x128xf32>
    %c0_339 = arith.constant 0 : index
    %c0_340 = arith.constant 0 : index
    %866 = vector.load %arg15[%c0_339, %c0_340] : memref<128x512xf32, #tpu.memory_space<vmem>>, vector<128x512xf32>
    %cst_341 = arith.constant dense<0.000000e+00> : vector<32x512xf32>
    %867 = tpu.matmul %865, %866, %cst_341 {dimension_numbers = #tpu.dot_dimension_numbers<[1], [0], [0], [1], [0, 0, 1, 1], [], []>} : vector<32x128xf32>, vector<128x512xf32>, vector<32x512xf32> -> vector<32x512xf32>
    %868 = tpu.concatenate %867, %214 in 0 : vector<32x512xf32>, vector<16x512xf32> -> vector<48x512xf32>
    %c17_i32_342 = arith.constant 17 : i32
    %869 = tpu.dynamic_rotate %868 by %c17_i32_342 dim 1 : vector<48x512xf32>, i32 -> vector<48x512xf32>
    %c-1_i32_343 = arith.constant -1 : i32
    %870 = vector.broadcast %c-1_i32_343 : i32 to vector<1x512xi32>
    %871 = arith.addi %6, %870 : vector<1x512xi32>
    %c0_i32_344 = arith.constant 0 : i32
    %872 = vector.broadcast %c0_i32_344 : i32 to vector<1x512xi32>
    %873 = arith.cmpi sge, %871, %872 : vector<1x512xi32>
    %c-1_i32_345 = arith.constant -1 : i32
    %874 = vector.broadcast %c-1_i32_345 : i32 to vector<1x512xi32>
    %875 = arith.addi %6, %874 : vector<1x512xi32>
    %c16_i32_346 = arith.constant 16 : i32
    %876 = vector.broadcast %c16_i32_346 : i32 to vector<1x512xi32>
    %877 = arith.cmpi slt, %875, %876 : vector<1x512xi32>
    %878 = arith.andi %873, %877 : vector<1x512xi1>
    %c-1_i32_347 = arith.constant -1 : i32
    %879 = vector.broadcast %c-1_i32_347 : i32 to vector<1x512xi32>
    %880 = arith.addi %2, %879 : vector<1x512xi32>
    %c0_i32_348 = arith.constant 0 : i32
    %881 = vector.broadcast %c0_i32_348 : i32 to vector<1x512xi32>
    %882 = arith.cmpi sge, %880, %881 : vector<1x512xi32>
    %883 = arith.andi %878, %882 : vector<1x512xi1>
    %c-1_i32_349 = arith.constant -1 : i32
    %884 = vector.broadcast %c-1_i32_349 : i32 to vector<1x512xi32>
    %885 = arith.addi %2, %884 : vector<1x512xi32>
    %c16_i32_350 = arith.constant 16 : i32
    %886 = vector.broadcast %c16_i32_350 : i32 to vector<1x512xi32>
    %887 = arith.cmpi slt, %885, %886 : vector<1x512xi32>
    %888 = arith.andi %883, %887 : vector<1x512xi1>
    %889 = arith.extui %888 : vector<1x512xi1> to vector<1x512xi32>
    %890 = arith.sitofp %889 : vector<1x512xi32> to vector<1x512xf32>
    %891 = vector.broadcast %890 : vector<1x512xf32> to vector<48x512xf32>
    %892 = arith.mulf %869, %891 : vector<48x512xf32>
    %c16_i32_351 = arith.constant 16 : i32
    %893 = tpu.dynamic_rotate %868 by %c16_i32_351 dim 1 : vector<48x512xf32>, i32 -> vector<48x512xf32>
    %c-1_i32_352 = arith.constant -1 : i32
    %894 = vector.broadcast %c-1_i32_352 : i32 to vector<1x512xi32>
    %895 = arith.addi %6, %894 : vector<1x512xi32>
    %c0_i32_353 = arith.constant 0 : i32
    %896 = vector.broadcast %c0_i32_353 : i32 to vector<1x512xi32>
    %897 = arith.cmpi sge, %895, %896 : vector<1x512xi32>
    %c-1_i32_354 = arith.constant -1 : i32
    %898 = vector.broadcast %c-1_i32_354 : i32 to vector<1x512xi32>
    %899 = arith.addi %6, %898 : vector<1x512xi32>
    %c16_i32_355 = arith.constant 16 : i32
    %900 = vector.broadcast %c16_i32_355 : i32 to vector<1x512xi32>
    %901 = arith.cmpi slt, %899, %900 : vector<1x512xi32>
    %902 = arith.andi %897, %901 : vector<1x512xi1>
    %c0_i32_356 = arith.constant 0 : i32
    %903 = vector.broadcast %c0_i32_356 : i32 to vector<1x512xi32>
    %904 = arith.addi %2, %903 : vector<1x512xi32>
    %c0_i32_357 = arith.constant 0 : i32
    %905 = vector.broadcast %c0_i32_357 : i32 to vector<1x512xi32>
    %906 = arith.cmpi sge, %904, %905 : vector<1x512xi32>
    %907 = arith.andi %902, %906 : vector<1x512xi1>
    %c0_i32_358 = arith.constant 0 : i32
    %908 = vector.broadcast %c0_i32_358 : i32 to vector<1x512xi32>
    %909 = arith.addi %2, %908 : vector<1x512xi32>
    %c16_i32_359 = arith.constant 16 : i32
    %910 = vector.broadcast %c16_i32_359 : i32 to vector<1x512xi32>
    %911 = arith.cmpi slt, %909, %910 : vector<1x512xi32>
    %912 = arith.andi %907, %911 : vector<1x512xi1>
    %913 = arith.extui %912 : vector<1x512xi1> to vector<1x512xi32>
    %914 = arith.sitofp %913 : vector<1x512xi32> to vector<1x512xf32>
    %915 = vector.broadcast %914 : vector<1x512xf32> to vector<48x512xf32>
    %916 = arith.mulf %893, %915 : vector<48x512xf32>
    %c15_i32_360 = arith.constant 15 : i32
    %917 = tpu.dynamic_rotate %868 by %c15_i32_360 dim 1 : vector<48x512xf32>, i32 -> vector<48x512xf32>
    %c-1_i32_361 = arith.constant -1 : i32
    %918 = vector.broadcast %c-1_i32_361 : i32 to vector<1x512xi32>
    %919 = arith.addi %6, %918 : vector<1x512xi32>
    %c0_i32_362 = arith.constant 0 : i32
    %920 = vector.broadcast %c0_i32_362 : i32 to vector<1x512xi32>
    %921 = arith.cmpi sge, %919, %920 : vector<1x512xi32>
    %c-1_i32_363 = arith.constant -1 : i32
    %922 = vector.broadcast %c-1_i32_363 : i32 to vector<1x512xi32>
    %923 = arith.addi %6, %922 : vector<1x512xi32>
    %c16_i32_364 = arith.constant 16 : i32
    %924 = vector.broadcast %c16_i32_364 : i32 to vector<1x512xi32>
    %925 = arith.cmpi slt, %923, %924 : vector<1x512xi32>
    %926 = arith.andi %921, %925 : vector<1x512xi1>
    %c1_i32_365 = arith.constant 1 : i32
    %927 = vector.broadcast %c1_i32_365 : i32 to vector<1x512xi32>
    %928 = arith.addi %2, %927 : vector<1x512xi32>
    %c0_i32_366 = arith.constant 0 : i32
    %929 = vector.broadcast %c0_i32_366 : i32 to vector<1x512xi32>
    %930 = arith.cmpi sge, %928, %929 : vector<1x512xi32>
    %931 = arith.andi %926, %930 : vector<1x512xi1>
    %c1_i32_367 = arith.constant 1 : i32
    %932 = vector.broadcast %c1_i32_367 : i32 to vector<1x512xi32>
    %933 = arith.addi %2, %932 : vector<1x512xi32>
    %c16_i32_368 = arith.constant 16 : i32
    %934 = vector.broadcast %c16_i32_368 : i32 to vector<1x512xi32>
    %935 = arith.cmpi slt, %933, %934 : vector<1x512xi32>
    %936 = arith.andi %931, %935 : vector<1x512xi1>
    %937 = arith.extui %936 : vector<1x512xi1> to vector<1x512xi32>
    %938 = arith.sitofp %937 : vector<1x512xi32> to vector<1x512xf32>
    %939 = vector.broadcast %938 : vector<1x512xf32> to vector<48x512xf32>
    %940 = arith.mulf %917, %939 : vector<48x512xf32>
    %c1_i32_369 = arith.constant 1 : i32
    %941 = tpu.dynamic_rotate %868 by %c1_i32_369 dim 1 : vector<48x512xf32>, i32 -> vector<48x512xf32>
    %c0_i32_370 = arith.constant 0 : i32
    %942 = vector.broadcast %c0_i32_370 : i32 to vector<1x512xi32>
    %943 = arith.addi %6, %942 : vector<1x512xi32>
    %c0_i32_371 = arith.constant 0 : i32
    %944 = vector.broadcast %c0_i32_371 : i32 to vector<1x512xi32>
    %945 = arith.cmpi sge, %943, %944 : vector<1x512xi32>
    %c0_i32_372 = arith.constant 0 : i32
    %946 = vector.broadcast %c0_i32_372 : i32 to vector<1x512xi32>
    %947 = arith.addi %6, %946 : vector<1x512xi32>
    %c16_i32_373 = arith.constant 16 : i32
    %948 = vector.broadcast %c16_i32_373 : i32 to vector<1x512xi32>
    %949 = arith.cmpi slt, %947, %948 : vector<1x512xi32>
    %950 = arith.andi %945, %949 : vector<1x512xi1>
    %c-1_i32_374 = arith.constant -1 : i32
    %951 = vector.broadcast %c-1_i32_374 : i32 to vector<1x512xi32>
    %952 = arith.addi %2, %951 : vector<1x512xi32>
    %c0_i32_375 = arith.constant 0 : i32
    %953 = vector.broadcast %c0_i32_375 : i32 to vector<1x512xi32>
    %954 = arith.cmpi sge, %952, %953 : vector<1x512xi32>
    %955 = arith.andi %950, %954 : vector<1x512xi1>
    %c-1_i32_376 = arith.constant -1 : i32
    %956 = vector.broadcast %c-1_i32_376 : i32 to vector<1x512xi32>
    %957 = arith.addi %2, %956 : vector<1x512xi32>
    %c16_i32_377 = arith.constant 16 : i32
    %958 = vector.broadcast %c16_i32_377 : i32 to vector<1x512xi32>
    %959 = arith.cmpi slt, %957, %958 : vector<1x512xi32>
    %960 = arith.andi %955, %959 : vector<1x512xi1>
    %961 = arith.extui %960 : vector<1x512xi1> to vector<1x512xi32>
    %962 = arith.sitofp %961 : vector<1x512xi32> to vector<1x512xf32>
    %963 = vector.broadcast %962 : vector<1x512xf32> to vector<48x512xf32>
    %964 = arith.mulf %941, %963 : vector<48x512xf32>
    %c511_i32_378 = arith.constant 511 : i32
    %965 = tpu.dynamic_rotate %868 by %c511_i32_378 dim 1 : vector<48x512xf32>, i32 -> vector<48x512xf32>
    %c0_i32_379 = arith.constant 0 : i32
    %966 = vector.broadcast %c0_i32_379 : i32 to vector<1x512xi32>
    %967 = arith.addi %6, %966 : vector<1x512xi32>
    %c0_i32_380 = arith.constant 0 : i32
    %968 = vector.broadcast %c0_i32_380 : i32 to vector<1x512xi32>
    %969 = arith.cmpi sge, %967, %968 : vector<1x512xi32>
    %c0_i32_381 = arith.constant 0 : i32
    %970 = vector.broadcast %c0_i32_381 : i32 to vector<1x512xi32>
    %971 = arith.addi %6, %970 : vector<1x512xi32>
    %c16_i32_382 = arith.constant 16 : i32
    %972 = vector.broadcast %c16_i32_382 : i32 to vector<1x512xi32>
    %973 = arith.cmpi slt, %971, %972 : vector<1x512xi32>
    %974 = arith.andi %969, %973 : vector<1x512xi1>
    %c1_i32_383 = arith.constant 1 : i32
    %975 = vector.broadcast %c1_i32_383 : i32 to vector<1x512xi32>
    %976 = arith.addi %2, %975 : vector<1x512xi32>
    %c0_i32_384 = arith.constant 0 : i32
    %977 = vector.broadcast %c0_i32_384 : i32 to vector<1x512xi32>
    %978 = arith.cmpi sge, %976, %977 : vector<1x512xi32>
    %979 = arith.andi %974, %978 : vector<1x512xi1>
    %c1_i32_385 = arith.constant 1 : i32
    %980 = vector.broadcast %c1_i32_385 : i32 to vector<1x512xi32>
    %981 = arith.addi %2, %980 : vector<1x512xi32>
    %c16_i32_386 = arith.constant 16 : i32
    %982 = vector.broadcast %c16_i32_386 : i32 to vector<1x512xi32>
    %983 = arith.cmpi slt, %981, %982 : vector<1x512xi32>
    %984 = arith.andi %979, %983 : vector<1x512xi1>
    %985 = arith.extui %984 : vector<1x512xi1> to vector<1x512xi32>
    %986 = arith.sitofp %985 : vector<1x512xi32> to vector<1x512xf32>
    %987 = vector.broadcast %986 : vector<1x512xf32> to vector<48x512xf32>
    %988 = arith.mulf %965, %987 : vector<48x512xf32>
    %c497_i32_387 = arith.constant 497 : i32
    %989 = tpu.dynamic_rotate %868 by %c497_i32_387 dim 1 : vector<48x512xf32>, i32 -> vector<48x512xf32>
    %c1_i32_388 = arith.constant 1 : i32
    %990 = vector.broadcast %c1_i32_388 : i32 to vector<1x512xi32>
    %991 = arith.addi %6, %990 : vector<1x512xi32>
    %c0_i32_389 = arith.constant 0 : i32
    %992 = vector.broadcast %c0_i32_389 : i32 to vector<1x512xi32>
    %993 = arith.cmpi sge, %991, %992 : vector<1x512xi32>
    %c1_i32_390 = arith.constant 1 : i32
    %994 = vector.broadcast %c1_i32_390 : i32 to vector<1x512xi32>
    %995 = arith.addi %6, %994 : vector<1x512xi32>
    %c16_i32_391 = arith.constant 16 : i32
    %996 = vector.broadcast %c16_i32_391 : i32 to vector<1x512xi32>
    %997 = arith.cmpi slt, %995, %996 : vector<1x512xi32>
    %998 = arith.andi %993, %997 : vector<1x512xi1>
    %c-1_i32_392 = arith.constant -1 : i32
    %999 = vector.broadcast %c-1_i32_392 : i32 to vector<1x512xi32>
    %1000 = arith.addi %2, %999 : vector<1x512xi32>
    %c0_i32_393 = arith.constant 0 : i32
    %1001 = vector.broadcast %c0_i32_393 : i32 to vector<1x512xi32>
    %1002 = arith.cmpi sge, %1000, %1001 : vector<1x512xi32>
    %1003 = arith.andi %998, %1002 : vector<1x512xi1>
    %c-1_i32_394 = arith.constant -1 : i32
    %1004 = vector.broadcast %c-1_i32_394 : i32 to vector<1x512xi32>
    %1005 = arith.addi %2, %1004 : vector<1x512xi32>
    %c16_i32_395 = arith.constant 16 : i32
    %1006 = vector.broadcast %c16_i32_395 : i32 to vector<1x512xi32>
    %1007 = arith.cmpi slt, %1005, %1006 : vector<1x512xi32>
    %1008 = arith.andi %1003, %1007 : vector<1x512xi1>
    %1009 = arith.extui %1008 : vector<1x512xi1> to vector<1x512xi32>
    %1010 = arith.sitofp %1009 : vector<1x512xi32> to vector<1x512xf32>
    %1011 = vector.broadcast %1010 : vector<1x512xf32> to vector<48x512xf32>
    %1012 = arith.mulf %989, %1011 : vector<48x512xf32>
    %c496_i32_396 = arith.constant 496 : i32
    %1013 = tpu.dynamic_rotate %868 by %c496_i32_396 dim 1 : vector<48x512xf32>, i32 -> vector<48x512xf32>
    %c1_i32_397 = arith.constant 1 : i32
    %1014 = vector.broadcast %c1_i32_397 : i32 to vector<1x512xi32>
    %1015 = arith.addi %6, %1014 : vector<1x512xi32>
    %c0_i32_398 = arith.constant 0 : i32
    %1016 = vector.broadcast %c0_i32_398 : i32 to vector<1x512xi32>
    %1017 = arith.cmpi sge, %1015, %1016 : vector<1x512xi32>
    %c1_i32_399 = arith.constant 1 : i32
    %1018 = vector.broadcast %c1_i32_399 : i32 to vector<1x512xi32>
    %1019 = arith.addi %6, %1018 : vector<1x512xi32>
    %c16_i32_400 = arith.constant 16 : i32
    %1020 = vector.broadcast %c16_i32_400 : i32 to vector<1x512xi32>
    %1021 = arith.cmpi slt, %1019, %1020 : vector<1x512xi32>
    %1022 = arith.andi %1017, %1021 : vector<1x512xi1>
    %c0_i32_401 = arith.constant 0 : i32
    %1023 = vector.broadcast %c0_i32_401 : i32 to vector<1x512xi32>
    %1024 = arith.addi %2, %1023 : vector<1x512xi32>
    %c0_i32_402 = arith.constant 0 : i32
    %1025 = vector.broadcast %c0_i32_402 : i32 to vector<1x512xi32>
    %1026 = arith.cmpi sge, %1024, %1025 : vector<1x512xi32>
    %1027 = arith.andi %1022, %1026 : vector<1x512xi1>
    %c0_i32_403 = arith.constant 0 : i32
    %1028 = vector.broadcast %c0_i32_403 : i32 to vector<1x512xi32>
    %1029 = arith.addi %2, %1028 : vector<1x512xi32>
    %c16_i32_404 = arith.constant 16 : i32
    %1030 = vector.broadcast %c16_i32_404 : i32 to vector<1x512xi32>
    %1031 = arith.cmpi slt, %1029, %1030 : vector<1x512xi32>
    %1032 = arith.andi %1027, %1031 : vector<1x512xi1>
    %1033 = arith.extui %1032 : vector<1x512xi1> to vector<1x512xi32>
    %1034 = arith.sitofp %1033 : vector<1x512xi32> to vector<1x512xf32>
    %1035 = vector.broadcast %1034 : vector<1x512xf32> to vector<48x512xf32>
    %1036 = arith.mulf %1013, %1035 : vector<48x512xf32>
    %c495_i32_405 = arith.constant 495 : i32
    %1037 = tpu.dynamic_rotate %868 by %c495_i32_405 dim 1 : vector<48x512xf32>, i32 -> vector<48x512xf32>
    %c1_i32_406 = arith.constant 1 : i32
    %1038 = vector.broadcast %c1_i32_406 : i32 to vector<1x512xi32>
    %1039 = arith.addi %6, %1038 : vector<1x512xi32>
    %c0_i32_407 = arith.constant 0 : i32
    %1040 = vector.broadcast %c0_i32_407 : i32 to vector<1x512xi32>
    %1041 = arith.cmpi sge, %1039, %1040 : vector<1x512xi32>
    %c1_i32_408 = arith.constant 1 : i32
    %1042 = vector.broadcast %c1_i32_408 : i32 to vector<1x512xi32>
    %1043 = arith.addi %6, %1042 : vector<1x512xi32>
    %c16_i32_409 = arith.constant 16 : i32
    %1044 = vector.broadcast %c16_i32_409 : i32 to vector<1x512xi32>
    %1045 = arith.cmpi slt, %1043, %1044 : vector<1x512xi32>
    %1046 = arith.andi %1041, %1045 : vector<1x512xi1>
    %c1_i32_410 = arith.constant 1 : i32
    %1047 = vector.broadcast %c1_i32_410 : i32 to vector<1x512xi32>
    %1048 = arith.addi %2, %1047 : vector<1x512xi32>
    %c0_i32_411 = arith.constant 0 : i32
    %1049 = vector.broadcast %c0_i32_411 : i32 to vector<1x512xi32>
    %1050 = arith.cmpi sge, %1048, %1049 : vector<1x512xi32>
    %1051 = arith.andi %1046, %1050 : vector<1x512xi1>
    %c1_i32_412 = arith.constant 1 : i32
    %1052 = vector.broadcast %c1_i32_412 : i32 to vector<1x512xi32>
    %1053 = arith.addi %2, %1052 : vector<1x512xi32>
    %c16_i32_413 = arith.constant 16 : i32
    %1054 = vector.broadcast %c16_i32_413 : i32 to vector<1x512xi32>
    %1055 = arith.cmpi slt, %1053, %1054 : vector<1x512xi32>
    %1056 = arith.andi %1051, %1055 : vector<1x512xi1>
    %1057 = arith.extui %1056 : vector<1x512xi1> to vector<1x512xi32>
    %1058 = arith.sitofp %1057 : vector<1x512xi32> to vector<1x512xf32>
    %1059 = vector.broadcast %1058 : vector<1x512xf32> to vector<48x512xf32>
    %1060 = arith.mulf %1037, %1059 : vector<48x512xf32>
    %1061 = tpu.concatenate %892, %916, %940, %964, %868, %988, %1012, %1036, %1060 in 0 : vector<48x512xf32>, vector<48x512xf32>, vector<48x512xf32>, vector<48x512xf32>, vector<48x512xf32>, vector<48x512xf32>, vector<48x512xf32>, vector<48x512xf32>, vector<48x512xf32> -> vector<432x512xf32>
    %c0_414 = arith.constant 0 : index
    %c0_415 = arith.constant 0 : index
    %1062 = vector.load %arg5[%c0_414, %c0_415] : memref<16x432xf32, #tpu.memory_space<vmem>>, vector<16x432xf32>
    %cst_416 = arith.constant dense<0.000000e+00> : vector<16x512xf32>
    %1063 = tpu.matmul %1062, %1061, %cst_416 {dimension_numbers = #tpu.dot_dimension_numbers<[1], [0], [0], [1], [0, 0, 1, 1], [], []>} : vector<16x432xf32>, vector<432x512xf32>, vector<16x512xf32> -> vector<16x512xf32>
    %c144 = arith.constant 144 : index
    %c0_417 = arith.constant 0 : index
    %1064 = vector.load %arg11[%c144, %c0_417] : memref<284x1xf32, #tpu.memory_space<vmem>>, vector<16x1xf32>
    %1065 = vector.broadcast %1064 : vector<16x1xf32> to vector<16x512xf32>
    %1066 = arith.addf %1063, %1065 : vector<16x512xf32>
    %cst_418 = arith.constant 0.000000e+00 : f32
    %1067 = vector.broadcast %cst_418 : f32 to vector<16x512xf32>
    %1068 = arith.maximumf %1066, %1067 : vector<16x512xf32>
    %c0_419 = arith.constant 0 : index
    %c0_420 = arith.constant 0 : index
    %1069 = vector.load %arg6[%c0_419, %c0_420] : memref<4x16xf32, #tpu.memory_space<vmem>>, vector<4x16xf32>
    %cst_421 = arith.constant dense<0.000000e+00> : vector<4x512xf32>
    %1070 = tpu.matmul %1069, %1068, %cst_421 {dimension_numbers = #tpu.dot_dimension_numbers<[1], [0], [0], [1], [0, 0, 1, 1], [], []>} : vector<4x16xf32>, vector<16x512xf32>, vector<4x512xf32> -> vector<4x512xf32>
    %c280 = arith.constant 280 : index
    %c0_422 = arith.constant 0 : index
    %1071 = vector.load %arg11[%c280, %c0_422] : memref<284x1xf32, #tpu.memory_space<vmem>>, vector<4x1xf32>
    %1072 = vector.broadcast %1071 : vector<4x1xf32> to vector<4x512xf32>
    %1073 = arith.addf %1070, %1072 : vector<4x512xf32>
    %c0_423 = arith.constant 0 : index
    %c0_424 = arith.constant 0 : index
    %1074 = vector.load %arg20[%c0_423, %c0_424] : memref<4x512xf32, #tpu.memory_space<vmem>>, vector<4x512xf32>
    tpu.vector_store %arg20[%c0_423, %c0_424], %1073 {strides = array<i32>} : memref<4x512xf32, #tpu.memory_space<vmem>>, vector<4x512xf32>,
    return
  }
}

</mosaic_0001>

<bundles_post_ra>
// kernel: forward.1
= control target key start
LH: loop header
LB: loop body
LE: loop exit
PB: predicated region body
PF: predicated region fallthrough
CT: control target
= control target key end

     0   :  { %s9832_s0 = inlined_call_operand.vmem [shape: f32[8,512], index: 0, kind: input, shape index: {}]   ;;  %s9833_s1 = inlined_call_operand.hbm [shape: f32[16,72], index: 1, kind: input, shape index: {}]   ;;  %s9834_s2 = inlined_call_operand.hbm [shape: f32[32,144], index: 2, kind: input, shape index: {}]   ;;  %s9835_s3 = inlined_call_operand.hbm [shape: f32[64,288], index: 3, kind: input, shape index: {}]   ;;  %s9836_s4 = inlined_call_operand.hbm [shape: f32[32,864], index: 4, kind: input, shape index: {}]   ;;  %s9837_s5 = inlined_call_operand.hbm [shape: f32[16,432], index: 5, kind: input, shape index: {}]   ;;  %s9838_s6 = inlined_call_operand.vmem [shape: f32[4,16], index: 6, kind: input, shape index: {}]   ;;  %s9839_s7 = inlined_call_operand.vmem [shape: f32[8,32], index: 7, kind: input, shape index: {}]   ;;  %s9840_s8 = inlined_call_operand.hbm [shape: f32[32,8], index: 8, kind: input, shape index: {}]   ;;  %s9841_s9 = inlined_call_operand.vmem [shape: f32[16,64], index: 9, kind: input, shape index: {}]   ;;  %s9842_s10 = inlined_call_operand.hbm [shape: f32[64,16], index: 10, kind: input, shape index: {}]   ;;  %s9843_s11 = inlined_call_operand.hbm [shape: f32[284,1], index: 11, kind: input, shape index: {}]   ;;  %s9844_s12 = inlined_call_operand.hbm [shape: f32[512,128], index: 12, kind: input, shape index: {}]   ;;  %s9845_s13 = inlined_call_operand.hbm [shape: f32[128,32], index: 13, kind: input, shape index: {}]   ;;  %s9846_s14 = inlined_call_operand.hbm [shape: f32[32,128], index: 14, kind: input, shape index: {}]   ;;  %s9847_s15 = inlined_call_operand.vmem [shape: f32[128,512], index: 15, kind: input, shape index: {}]   ;;  %s9848_s16 = inlined_call_operand.vmem [shape: f32[128,2], index: 16, kind: input, shape index: {}]   ;;  %s9849_s17 = inlined_call_operand.hbm [shape: f32[2,128], index: 17, kind: input, shape index: {}]   ;;  %s9850_s18 = inlined_call_operand.vmem [shape: f32[32,2], index: 18, kind: input, shape index: {}]   ;;  %s9851_s19 = inlined_call_operand.vmem [shape: f32[2,32], index: 19, kind: input, shape index: {}]   ;;  %s9852_s20 = inlined_call_operand.vmem [shape: f32[4,512], index: 20, kind: output, shape index: {}]  }
   0x1   :  { %10090 = sst [smem:[#allocation179_spill]] %s9832_s0 }
   0x2   :  { %10091 = sst [smem:[#allocation180_spill]] %s9833_s1 }
   0x3   :  { %10092 = sst [smem:[#allocation181_spill]] %s9834_s2 }
   0x4   :  { %10093 = sst [smem:[#allocation182_spill]] %s9835_s3 }
   0x5   :  { %10094 = sst [smem:[#allocation183_spill]] %s9836_s4 }
   0x6   :  { %10095 = sst [smem:[#allocation184_spill]] %s9852_s20 }
   0x7   :  { %25 = vsyncpa [#allocation3], 0 }
   0x8   :  { %26 = vsyncpa [#allocation5], 0 }
   0x9   :  { %27 = vsyncpa [#allocation8], 0 }
   0xa   :  { %28 = vsyncpa [#allocation11], 0 }
   0xb   :  { %29 = vsyncpa [#allocation14], 0 }
   0xc   :  { %30 = vsyncpa [#allocation17], 0 }
   0xd   :  { %31 = vsyncpa [#allocation20], 0  ;;  %s6356_s1 = smov [#allocation4]  }
   0xe   :  { %s51_s22 = sshll.u32 %s6356_s1, 4  ;;  %s52_s22 = int_to_ptr.vmem [resolvable:$true] %s51_s22 }
   0xf   :  { %s6110_s23 = scalar_lea.vmem %s52_s22, 1024  ;;  %p6115_p1 = scmp.lt.s32.totalorder %s52_s22, %s52_s22 }
  0x10   :  { %p6111_p0 = scmp.ne.s32.totalorder %s52_s22, %s6110_s23  ;;  %p6116_p2 = scmp.lt.s32.totalorder %s6110_s23, %s6110_s23 }
  0x12   :  { %p6117_p3 = por %p6116_p2, %p6115_p1 }
  0x14   :  { %p6118_p4 = pnand %p6117_p3, %p6111_p0 }
  0x16   :  { %6121 = shalt.err (!%p6118_p4)
}
  0x17   :  { %s6357_s24 = smov 256   ;;  %s6358_s2 = smov 16  }
  0x18   :  { %s10096_s26 = sld [smem:[#allocation181_spill]]  ;;  %s6359_s27 = smov [#allocation7]  }
  0x19   :  { %s75_s28 = sshll.u32 %s6359_s27, 4  ;;  %s76_s28 = int_to_ptr.vmem [resolvable:$true] %s75_s28 }
  0x1a   :  { %s6130_s4 = scalar_lea.vmem %s76_s28, 3584  ;;  %p6135_p6 = scmp.lt.s32.totalorder %s76_s28, %s76_s28 }
  0x1b   :  { %p6131_p5 = scmp.ne.s32.totalorder %s76_s28, %s6130_s4  ;;  %p6136_p7 = scmp.lt.s32.totalorder %s6130_s4, %s6130_s4 }
  0x1d   :  { %p6137_p8 = por %p6136_p7, %p6135_p6 }
  0x1e   :  { %57 = dma.hbm_to_vmem [thread:$0]  %s10096_s26, 1024, %s52_s22, [#allocation5], %s6357_s24, %s6357_s24, %s6358_s2  }
  0x1f   :  { %p6138_p9 = pnand %p6137_p8, %p6131_p5 }
  0x21   :  { %6141 = shalt.err (!%p6138_p9)
}
  0x22   :  { %s6360_s29 = smov 896   ;;  %s6361_s30 = smov 56  }
  0x23   :  { %s10097_s1 = sld [smem:[#allocation183_spill]]  ;;  %s6362_s23 = smov [#allocation10]  }
  0x24   :  { %s103_s20 = sshll.u32 %s6362_s23, 4  ;;  %s6363_s25 = smov [#allocation13]   ;;  %s104_s20 = int_to_ptr.vmem [resolvable:$true] %s103_s20 }
  0x25   :  { %s129_s22 = sshll.u32 %s6363_s25, 4  ;;  %s6150_s24 = scalar_lea.vmem %s104_s20, 512  ;;  %s130_s22 = int_to_ptr.vmem [resolvable:$true] %s129_s22 }
  0x26   :  { %p6151_p10 = scmp.ne.s32.totalorder %s104_s20, %s6150_s24  ;;  %p6155_p11 = scmp.lt.s32.totalorder %s104_s20, %s104_s20 }
  0x27   :  { %p6156_p12 = scmp.lt.s32.totalorder %s6150_s24, %s6150_s24 }
  0x29   :  { %81 = dma.hbm_to_vmem [thread:$0]  %s10097_s1, 3584, %s76_s28, [#allocation8], %s6360_s29, %s6360_s29, %s6361_s30  }
  0x2a   :  { %p6157_p13 = por %p6156_p12, %p6155_p11 }
  0x2c   :  { %p6158_p0 = pnand %p6157_p13, %p6151_p10 }
  0x2e   :  { %6161 = shalt.err (!%p6158_p0)
}
  0x2f   :  { %s6364_s3 = smov 128   ;;  %s6365_s26 = smov 8  }
  0x30   :  { %109 = dma.hbm_to_vmem [thread:$0]  %s9840_s8, 512, %s104_s20, [#allocation11], %s6364_s3, %s6364_s3, %s6365_s26  }
  0x31   :  { %s6170_s4 = scalar_lea.vmem %s130_s22, 4608  ;;  %p6175_p2 = scmp.lt.s32.totalorder %s130_s22, %s130_s22 }
  0x32   :  { %p6171_p1 = scmp.ne.s32.totalorder %s130_s22, %s6170_s4  ;;  %p6176_p3 = scmp.lt.s32.totalorder %s6170_s4, %s6170_s4 }
  0x34   :  { %p6177_p4 = por %p6176_p3, %p6175_p2 }
  0x36   :  { %p6178_p5 = pnand %p6177_p4, %p6171_p1 }
  0x38   :  { %6181 = shalt.err (!%p6178_p5)
}
  0x39   :  { %135 = dma.hbm_to_vmem [thread:$0]  %s9843_s11, 4608, %s130_s22, [#allocation14], %s6364_s3, %s6364_s3, %s6365_s26  }
  0x3a   :  { %s6366_s0 = smov [#allocation16]   ;;  %s6367_s1 = smov [#allocation2]  }
  0x3b   :  { %s153_s21 = sshll.u32 %s6366_s0, 4  ;;  %s39_s23 = sshll.u32 %s6367_s1, 4  ;;  %s154_s21 = int_to_ptr.vmem [resolvable:$true] %s153_s21  ;;  %s40_s23 = int_to_ptr.vmem [resolvable:$true] %s39_s23 }
  0x3c   :  { %s6190_s8 = scalar_lea.vmem %s154_s21, 2048  ;;  %p6195_p7 = scmp.lt.s32.totalorder %s154_s21, %s154_s21 }
  0x3d   :  { %p6191_p6 = scmp.ne.s32.totalorder %s154_s21, %s6190_s8  ;;  %p6196_p8 = scmp.lt.s32.totalorder %s6190_s8, %s6190_s8 }
  0x3f   :  { %p6197_p9 = por %p6196_p8, %p6195_p7 }
  0x41   :  { %p6198_p10 = pnand %p6197_p9, %p6191_p6 }
  0x43   :  { %6201 = shalt.err (!%p6198_p10)
}
  0x44   :  { %159 = dma.hbm_to_vmem [thread:$0]  %s9845_s13, 2048, %s154_s21, [#allocation17], %s6364_s3, %s6364_s3, %s6365_s26  }
  0x45   :  { %s6210_s11 = scalar_lea.vmem %s40_s23, 256  ;;  %p6215_p12 = scmp.lt.s32.totalorder %s40_s23, %s40_s23 }
  0x46   :  { %p6211_p11 = scmp.ne.s32.totalorder %s40_s23, %s6210_s11  ;;  %p6216_p13 = scmp.lt.s32.totalorder %s6210_s11, %s6210_s11 }
  0x48   :  { %p6217_p0 = por %p6216_p13, %p6215_p12 }
  0x4a   :  { %p6218_p1 = pnand %p6217_p0, %p6211_p11 }
  0x4c   :  { %6221 = shalt.err (!%p6218_p1)
}
  0x4d   :  { %s10098_s27 = sld [smem:[#allocation180_spill]]  ;;  %s6368_s28 = smov [#allocation6]  }
  0x4e   :  { %s63_s4 = sshll.u32 %s6368_s28, 4  ;;  %s64_s4 = int_to_ptr.vmem [resolvable:$true] %s63_s4 }
  0x4f   :  { %s6230_s29 = scalar_lea.vmem %s64_s4, 3072  ;;  %p6235_p3 = scmp.lt.s32.totalorder %s64_s4, %s64_s4 }
  0x50   :  { %p6231_p2 = scmp.ne.s32.totalorder %s64_s4, %s6230_s29  ;;  %p6236_p4 = scmp.lt.s32.totalorder %s6230_s29, %s6230_s29 }
  0x52   :  { %p6237_p5 = por %p6236_p4, %p6235_p3 }
  0x53   :  { %45 = dma.hbm_to_vmem [thread:$0]  %s10098_s27, 256, %s40_s23, [#allocation3], %s6364_s3, %s6364_s3, %s6365_s26  }
  0x54   :  { %p6238_p6 = pnand %p6237_p5, %p6231_p2 }
  0x56   :  { %6241 = shalt.err (!%p6238_p6)
}
  0x57   :  { %s6369_s13 = smov 384   ;;  %s6370_s30 = smov 24  }
  0x58   :  { %s10099_s1 = sld [smem:[#allocation182_spill]]  ;;  %s6371_s8 = smov [#allocation9]  }
  0x59   :  { %s87_s20 = sshll.u32 %s6371_s8, 4  ;;  %s88_s20 = int_to_ptr.vmem [resolvable:$true] %s87_s20 }
  0x5a   :  { %s6250_s23 = scalar_lea.vmem %s88_s20, 1024  ;;  %p6255_p8 = scmp.lt.s32.totalorder %s88_s20, %s88_s20 }
  0x5b   :  { %p6251_p7 = scmp.ne.s32.totalorder %s88_s20, %s6250_s23  ;;  %p6256_p9 = scmp.lt.s32.totalorder %s6250_s23, %s6250_s23 }
  0x5d   :  { %p6257_p10 = por %p6256_p9, %p6255_p8 }
  0x5e   :  { %69 = dma.hbm_to_vmem [thread:$0]  %s10099_s1, 3072, %s64_s4, [#allocation5], %s6369_s13, %s6369_s13, %s6370_s30  }
  0x5f   :  { %p6258_p11 = pnand %p6257_p10, %p6251_p7 }
  0x61   :  { %6261 = shalt.err (!%p6258_p11)
}
  0x62   :  { %s6372_s25 = smov 512   ;;  %s6373_s11 = smov 32  }
  0x63   :  { %93 = dma.hbm_to_vmem [thread:$0]  %s9837_s5, 1024, %s88_s20, [#allocation8], %s6372_s25, %s6372_s25, %s6373_s11  }
  0x64   :  { %s6374_s27 = smov [#allocation12]   ;;  %s6375_s29 = smov [#allocation15]  }
  0x65   :  { %s117_s28 = sshll.u32 %s6374_s27, 4  ;;  %s141_s4 = sshll.u32 %s6375_s29, 4  ;;  %s118_s28 = int_to_ptr.vmem [resolvable:$true] %s117_s28  ;;  %s142_s4 = int_to_ptr.vmem [resolvable:$true] %s141_s4 }
  0x66   :  { %s6270_s13 = scalar_lea.vmem %s118_s28, 1024  ;;  %p6275_p13 = scmp.lt.s32.totalorder %s118_s28, %s118_s28 }
  0x67   :  { %p6271_p12 = scmp.ne.s32.totalorder %s118_s28, %s6270_s13  ;;  %p6276_p0 = scmp.lt.s32.totalorder %s6270_s13, %s6270_s13 }
  0x69   :  { %p6277_p1 = por %p6276_p0, %p6275_p13 }
  0x6b   :  { %p6278_p2 = pnand %p6277_p1, %p6271_p12 }
  0x6d   :  { %6281 = shalt.err (!%p6278_p2)
}
  0x6e   :  { %123 = dma.hbm_to_vmem [thread:$0]  %s9842_s10, 1024, %s118_s28, [#allocation11], %s6364_s3, %s6364_s3, %s6365_s26  }
  0x6f   :  { %s6290_s5 = scalar_lea.vmem %s142_s4, 8192  ;;  %p6295_p4 = scmp.lt.s32.totalorder %s142_s4, %s142_s4 }
  0x70   :  { %p6291_p3 = scmp.ne.s32.totalorder %s142_s4, %s6290_s5  ;;  %p6296_p5 = scmp.lt.s32.totalorder %s6290_s5, %s6290_s5 }
  0x72   :  { %p6297_p6 = por %p6296_p5, %p6295_p4 }
  0x74   :  { %p6298_p7 = pnand %p6297_p6, %p6291_p3 }
  0x76   :  { %6301 = shalt.err (!%p6298_p7)
}
  0x77   :  { %147 = dma.hbm_to_vmem [thread:$0]  %s9844_s12, 8192, %s142_s4, [#allocation14], %s6364_s3, %s6364_s3, %s6365_s26  }
  0x78   :  { %s6376_s8 = smov [#allocation18]   ;;  %s6377_s23 = smov [#allocation19]  }
  0x79   :  { %s165_s20 = sshll.u32 %s6376_s8, 4  ;;  %s182_s25 = sshll.u32 %s6377_s23, 4  ;;  %s166_s20 = int_to_ptr.vmem [resolvable:$true] %s165_s20  ;;  %s183_s25 = int_to_ptr.vmem [resolvable:$true] %s182_s25 }
  0x7a   :  { %s6310_s10 = scalar_lea.vmem %s166_s20, 512  ;;  %p6315_p9 = scmp.lt.s32.totalorder %s166_s20, %s166_s20 }
  0x7b   :  { %p6311_p8 = scmp.ne.s32.totalorder %s166_s20, %s6310_s10  ;;  %p6316_p10 = scmp.lt.s32.totalorder %s6310_s10, %s6310_s10 }
  0x7d   :  { %p6317_p11 = por %p6316_p10, %p6315_p9 }
  0x7f   :  { %p6318_p12 = pnand %p6317_p11, %p6311_p8 }
  0x81   :  { %6321 = shalt.err (!%p6318_p12)
}
  0x82   :  { %171 = dma.hbm_to_vmem [thread:$0]  %s9846_s14, 512, %s166_s20, [#allocation17], %s6364_s3, %s6364_s3, %s6365_s26  }
  0x83   :  { %s6330_s12 = scalar_lea.vmem %s183_s25, 32  ;;  %p6335_p0 = scmp.lt.s32.totalorder %s183_s25, %s183_s25 }
  0x84   :  { %p6331_p13 = scmp.ne.s32.totalorder %s183_s25, %s6330_s12  ;;  %p6336_p1 = scmp.lt.s32.totalorder %s6330_s12, %s6330_s12 }
  0x86   :  { %p6337_p2 = por %p6336_p1, %p6335_p0 }
  0x88   :  { %p6338_p3 = pnand %p6337_p2, %p6331_p13 }
  0x8a   :  { %6341 = shalt.err (!%p6338_p3)
}
  0x8b   :  { %185 = dma.hbm_to_vmem [thread:$0]  %s9849_s17, 32, %s183_s25, [#allocation20]  }
  0x8c   :  { %6342 = dma.done.wait [#allocation3], 256  }
  0x8d   :  { %6343 = vsyncadd [#allocation3], 4294967040 }
  0x8e   :  { %6344 = dma.done.wait [#allocation5], 4096  }
  0x8f   :  { %6345 = vsyncadd [#allocation5], 4294963200 }
  0x90   :  { %6346 = dma.done.wait [#allocation8], 4608  }
  0x91   :  { %6347 = vsyncadd [#allocation8], 4294962688 }
  0x92   :  { %6348 = dma.done.wait [#allocation11], 1536  }
  0x93   :  { %6349 = vsyncadd [#allocation11], 4294965760 }
  0x94   :  { %6350 = dma.done.wait [#allocation14], 12800  }
  0x95   :  { %6351 = vsyncadd [#allocation14], 4294954496 }
  0x96   :  { %6352 = dma.done.wait [#allocation17], 2560  }
  0x97   :  { %6353 = vsyncadd [#allocation17], 4294964736 }
  0x98   :  { %6354 = dma.done.wait [#allocation20], 32  }
  0x99   :  { %6355 = vsyncadd [#allocation20], 4294967264  ;;  %v9860_v0 = vmov 0.0   ;;  %s10100_s3 = sld [smem:[#allocation179_spill]]  ;;  %s6379_s4 = smov 111   ;;  %v6386_v5 = vmov 0   ;;  %v226_v8 = vlaneseq }
  0x9a   :  { %765 = vmatprep.mubr.f32.mxu0 %v9860_v0  ;;  %842 = vmatprep.mubr.f32.mxu1 %v9860_v0  ;;  %s6380_s21 = smov 112   ;;  %s6381_s1 = smov 113   ;;  %v682_v6 = vld [vmem:[#allocation13] sm:$0xff]  ;;  %v683_v7 = vld [vmem:[#allocation13 + $0x8] sm:$0xff] }
  0x9b   :  { %s6382_s8 = smov 127   ;;  %s6383_s20 = smov 1   ;;  %6051 = vset.pattern.permute.xlu1 %v6386_v5  ;;  %6050 = vset.pattern.permute.xlu0 %v6386_v5  ;;  %v6642_v9 = vand.u32 127, %v226_v8 }
  0x9c   :  { %s6384_s23 = smov 15   ;;  %s6385_s25 = smov 17  }
  0x9d   :  { %10101 = vst [vmem:[#allocation28_spill] sm:$0xff] %v6642_v9  ;;  %v228_v10 = vadd.s32 128, %v6642_v9  ;;  %v230_v11 = vadd.s32 384, %v6642_v9  ;;  %v229_v12 = vadd.s32 256, %v6642_v9  ;;  %v235_v27 = vand.u32 15, %v6642_v9  ;;  %s6389_s12 = smov 7  }
  0x9e   :  { %v262_v32 = vshrl.u32 %v6642_v9, 4  ;;  %s6390_s24 = smov 121   ;;  %s6391_s27 = smov 9  }
  0x9f   :  { %v6561_v1 = vld [vmem:[%s10100_s3 + $0x10] sm:$0xff]  ;;  %v6566_v2 = vld [vmem:[%s10100_s3] sm:$0xff]  ;;  %v6575_v3 = vld [vmem:[%s10100_s3 + $0x18] sm:$0xff]  ;;  %v269_v13 = vshrl.u32 %v228_v10, 4  ;;  %v283_v14 = vshrl.u32 %v230_v11, 4  ;;  %v276_v15 = vshrl.u32 %v229_v12, 4 }
  0xa0   :  { %651 = vrot.lane.b32.xlu1 %v6561_v1, %s6379_s4  ;;  %647 = vrot.lane.b32.xlu0 %v6566_v2, %s6379_s4  ;;  %v6580_v4 = vld [vmem:[%s10100_s3 + $0x8] sm:$0xff]  ;;  %v242_v19 = vand.u32 15, %v228_v10  ;;  %v256_v21 = vand.u32 15, %v230_v11  ;;  %v249_v23 = vand.u32 15, %v229_v12  ;;  %v6673_v31 = vadd.s32 1, %v235_v27  ;;  %s6392_s14 = smov 119  }
  0xa1   :  { %v6647_v16 = vand.u32 15, %v269_v13  ;;  %v6649_v17 = vand.u32 15, %v283_v14  ;;  %v6651_v18 = vand.u32 15, %v276_v15  ;;  %v6744_v59 = vadd.s32 4294967295, %v235_v27 }
  0xa2   :  { %v6656_v25 = vadd.s32 1, %v242_v19  ;;  %v6658_v26 = vadd.s32 1, %v256_v21  ;;  %v6661_v28 = vadd.s32 1, %v249_v23  ;;  %vm467_vm14 = vcmp.lt.s32.totalorder %v6673_v31, 16 }
  0xa3   :  { %v579_v20 = vadd.s32 1, %v6647_v16  ;;  %v581_v22 = vadd.s32 1, %v6649_v17  ;;  %v580_v24 = vadd.s32 1, %v6651_v18  ;;  %v6703_v37 = vsel %vm467_vm14, 1.0, %v9860_v0 }
  0xa4   :  { %653 = vrot.lane.b32.xlu1 %v6575_v3, %s6379_s4  ;;  %649 = vrot.lane.b32.xlu0 %v6580_v4, %s6379_s4  ;;  %vm468_vm6 = vcmp.lt.s32.totalorder %v6656_v25, 16  ;;  %vm470_vm8 = vcmp.lt.s32.totalorder %v6658_v26, 16  ;;  %vm469_vm10 = vcmp.lt.s32.totalorder %v6661_v28, 16  ;;  %10110 = vst [vmem:[#allocation31_spill] sm:$0xff] %v6703_v37  ;;  %v6720_v49 = vadd.s32 4294967295, %v242_v19 }
  0xa5   :  { %vm583_vm0 = vcmp.ge.s32.totalorder %v579_v20, 0  ;;  %vm587_vm1 = vcmp.lt.s32.totalorder %v579_v20, 16  ;;  %vm585_vm2 = vcmp.ge.s32.totalorder %v581_v22, 0  ;;  %vm589_vm3 = vcmp.lt.s32.totalorder %v581_v22, 16 }
  0xa6   :  { %vm584_vm4 = vcmp.ge.s32.totalorder %v580_v24, 0  ;;  %vm588_vm5 = vcmp.lt.s32.totalorder %v580_v24, 16  ;;  %vm6664_vm7 = vmand %vm583_vm0, %vm587_vm1  ;;  %vm9855_vm0 = vcmp.lt.s32.totalorder %v6642_v9, 111  ;;  %v6722_v52 = vadd.s32 4294967295, %v256_v21 }
  0xa7   :  { %vm6669_vm9 = vmand %vm585_vm2, %vm589_vm3  ;;  %v6724_v53 = vadd.s32 4294967295, %v249_v23  ;;  %v6729_v54 = vsel %vm6664_vm7, 1.0, %v9860_v0  ;;  %vm374_vm1 = vcmp.ge.s32.totalorder %v6720_v49, 0  ;;  %vm9858_vm2 = vcmp.lt.s32.totalorder %v6642_v9, 112 }
  0xa8   :  { %616 = vrot.lane.b32.xlu1 %v6580_v4, %s6380_s21  ;;  %614 = vrot.lane.b32.xlu0 %v6566_v2, %s6380_s21  ;;  %vm6676_vm11 = vmand %vm584_vm4, %vm588_vm5  ;;  %10112 = vst [vmem:[#allocation33_spill] sm:$0xff] %v6729_v54  ;;  %v6734_v55 = vsel %vm6669_vm9, 1.0, %v9860_v0  ;;  %vm9859_vm3 = vcmp.ge.s32.totalorder %v6722_v52, 0 }
  0xa9   :  { %vm665_vm12 = vmand %vm6664_vm7, %vm468_vm6  ;;  %10113 = vst [vmem:[#allocation34_spill] sm:$0xff] %v6734_v55  ;;  %v6739_v56 = vsel %vm6676_vm11, 1.0, %v9860_v0  ;;  %vm375_vm4 = vcmp.ge.s32.totalorder %v6724_v53, 0 }
  0xaa   :  { %vm667_vm13 = vmand %vm6669_vm9, %vm470_vm8  ;;  %v6695_v35 = vsel %vm665_vm12, 1.0, %v9860_v0  ;;  %10114 = vst [vmem:[#allocation35_spill] sm:$0xff] %v6739_v56 }
  0xab   :  { %vm666_vm15 = vmand %vm6676_vm11, %vm469_vm10  ;;  %10108 = vst [vmem:[#allocation29_spill] sm:$0xff] %v6695_v35  ;;  %v6698_v36 = vsel %vm667_vm13, 1.0, %v9860_v0 }
  0xac   :  { %620 = vrot.lane.b32.xlu1 %v6575_v3, %s6380_s21  ;;  %618 = vrot.lane.b32.xlu0 %v6561_v1, %s6380_s21  ;;  %10109 = vst [vmem:[#allocation30_spill] sm:$0xff] %v6698_v36  ;;  %v6706_v38 = vsel %vm666_vm15, 1.0, %v9860_v0  ;;  %vm595_vm5 = vmand %vm6664_vm7, %vm374_vm1  ;;  %vm9857_vm15 = vcmp.lt.s32.totalorder %v6642_v9, 113  ;;  %vm373_vm7 = vcmp.ge.s32.totalorder %v6744_v59, 0 }
  0xad   :  { %10111 = vst [vmem:[#allocation32_spill] sm:$0xff] %v6706_v38  ;;  %vm597_vm12 = vmand %vm6669_vm9, %vm9859_vm3  ;;  %v6773_v11 = vsel %vm595_vm5, 1.0, %v9860_v0  ;;  %v6786_v20 = vsel %vm373_vm7, 1.0, %v9860_v0  ;;  %vm9856_vm9 = vcmp.lt.s32.totalorder %v6642_v9, 127 }
  0xae   :  { %vm596_vm13 = vmand %vm6676_vm11, %vm375_vm4  ;;  %10115 = vst [vmem:[#allocation36_spill] sm:$0xff] %v6773_v11  ;;  %v6776_v12 = vsel %vm597_vm12, 1.0, %v9860_v0  ;;  %vm495_vm11 = vcmp.lt.s32.totalorder %v6642_v9, 1 }
  0xaf   :  { %10116 = vst [vmem:[#allocation37_spill] sm:$0xff] %v6776_v12  ;;  %v6779_v13 = vsel %vm596_vm13, 1.0, %v9860_v0  ;;  %10118 = vst [vmem:[#allocation39_spill] sm:$0xff] %v6786_v20 }
  0xb0   :  { %567 = vrot.lane.b32.xlu1 %v6580_v4, %s6381_s1  ;;  %565 = vrot.lane.b32.xlu0 %v6566_v2, %s6381_s1  ;;  %10117 = vst [vmem:[#allocation38_spill] sm:$0xff] %v6779_v13 }
  0xb4   :  { %571 = vrot.lane.b32.xlu1 %v6575_v3, %s6381_s1  ;;  %569 = vrot.lane.b32.xlu0 %v6561_v1, %s6381_s1 }
  0xb8   :  { %534 = vrot.lane.b32.xlu1 %v6580_v4, %s6382_s8  ;;  %532 = vrot.lane.b32.xlu0 %v6566_v2, %s6382_s8 }
  0xbc   :  { %538 = vrot.lane.b32.xlu1 %v6575_v3, %s6382_s8  ;;  %536 = vrot.lane.b32.xlu0 %v6561_v1, %s6382_s8 }
  0xc0   :  { %489 = vrot.lane.b32.xlu1 %v6580_v4, %s6383_s20  ;;  %487 = vrot.lane.b32.xlu0 %v6566_v2, %s6383_s20 }
  0xc4   :  { %493 = vrot.lane.b32.xlu1 %v6575_v3, %s6383_s20  ;;  %491 = vrot.lane.b32.xlu0 %v6561_v1, %s6383_s20 }
  0xc8   :  { %444 = vrot.lane.b32.xlu1 %v6580_v4, %s6384_s23  ;;  %442 = vrot.lane.b32.xlu0 %v6566_v2, %s6384_s23 }
  0xcc   :  { %448 = vrot.lane.b32.xlu1 %v6575_v3, %s6384_s23  ;;  %446 = vrot.lane.b32.xlu0 %v6561_v1, %s6384_s23 }
  0xd0   :  { %403 = vrot.lane.b32.xlu1 %v6580_v4, %s6358_s2  ;;  %401 = vrot.lane.b32.xlu0 %v6566_v2, %s6358_s2 }
  0xd4   :  { %407 = vrot.lane.b32.xlu1 %v6575_v3, %s6358_s2  ;;  %405 = vrot.lane.b32.xlu0 %v6561_v1, %s6358_s2 }
  0xd8   :  { %342 = vrot.lane.b32.xlu1 %v6580_v4, %s6385_s25  ;;  %340 = vrot.lane.b32.xlu0 %v6566_v2, %s6385_s25 }
  0xdc   :  { %346 = vrot.lane.b32.xlu1 %v6575_v3, %s6385_s25  ;;  %344 = vrot.lane.b32.xlu0 %v6561_v1, %s6385_s25 }
  0xe0   :  { %686 = vperm.xlu1 %6051, %v682_v6   ;;  %691 = vperm.xlu0 %6050, %v683_v7  }
 0x112   :  { %v652_v33 = vpop.permute.xlu1 %651  ;;  %v648_v34 = vpop.permute.xlu0 %647 }
 0x116   :  { %v654_v39 = vpop.permute.xlu1 %653  ;;  %v650_v40 = vpop.permute.xlu0 %649 }
 0x117   :  { %v657_v41 = vsel %vm9855_vm0, %v650_v40, %v652_v33  ;;  %v659_v42 = vsel %vm9855_vm0, %v654_v39, %v648_v34  ;;  %v658_v43 = vsel %vm9855_vm0, %v648_v34, %v650_v40  ;;  %v656_v44 = vsel %vm9855_vm0, %v652_v33, %v654_v39 }
 0x118   :  { %v677_v45 = vmul.f32 %v6695_v35, %v657_v41  ;;  %v679_v46 = vmul.f32 %v6698_v36, %v659_v42  ;;  %v676_v47 = vmul.f32 %v6703_v37, %v658_v43  ;;  %v678_v48 = vmul.f32 %v6706_v38, %v656_v44 }
 0x119   :  { %v354_v39 = vadd.s32 4294967295, %v6647_v16  ;;  %v6804_v40 = vsel %vm468_vm6, 1.0, %v9860_v0  ;;  %v6809_v41 = vsel %vm470_vm8, 1.0, %v9860_v0  ;;  %v6814_v42 = vsel %vm469_vm10, 1.0, %v9860_v0 }
 0x11a   :  { %v617_v50 = vpop.permute.xlu1 %616  ;;  %715 = vmatprep.subr.mxu0 %v677_v45  ;;  %792 = vmatprep.subr.mxu1 %v679_v46  ;;  %v615_v51 = vpop.permute.xlu0 %614  ;;  %10119 = vst [vmem:[#allocation40_spill] sm:$0xff] %v6804_v40  ;;  %10120 = vst [vmem:[#allocation41_spill] sm:$0xff] %v6809_v41  ;;  %v291_v16 = vand.u32 15, %v262_v32 }
 0x11b   :  { %716 = vmatpush1.msra.mxu0 %v676_v47  ;;  %793 = vmatpush1.msra.mxu1 %v678_v48  ;;  %v625_v10 = vsel %vm9858_vm2, %v615_v51, %v617_v50  ;;  %10121 = vst [vmem:[#allocation42_spill] sm:$0xff] %v6814_v42  ;;  %vm358_vm5 = vcmp.ge.s32.totalorder %v354_v39, 0  ;;  %vm362_vm12 = vcmp.lt.s32.totalorder %v354_v39, 16 }
 0x11c   :  { %vm6840_vm13 = vmand %vm358_vm5, %vm362_vm12 }
 0x11d   :  { %vm6865_vm5 = vmand %vm6840_vm13, %vm468_vm6 }
 0x11e   :  { %v621_v57 = vpop.permute.xlu1 %620  ;;  %v619_v58 = vpop.permute.xlu0 %618 }
 0x11f   :  { %v626_v60 = vsel %vm9858_vm2, %v621_v57, %v615_v51  ;;  %v623_v61 = vsel %vm9858_vm2, %v619_v58, %v621_v57  ;;  %v624_v62 = vsel %vm9858_vm2, %v617_v50, %v619_v58  ;;  %v356_v50 = vadd.s32 4294967295, %v6649_v17 }
 0x120   :  { %v644_v63 = vmul.f32 %v6729_v54, %v624_v62  ;;  %v646_v5 = vmul.f32 %v6734_v55, %v626_v60  ;;  %v645_v6 = vmul.f32 %v6739_v56, %v623_v61  ;;  %v355_v60 = vadd.s32 4294967295, %v6651_v18 }
 0x121   :  { %v6834_v62 = vsel %vm374_vm1, 1.0, %v9860_v0  ;;  %vm360_vm0 = vcmp.ge.s32.totalorder %v356_v50, 0 }
 0x122   :  { %v568_v7 = vpop.permute.xlu1 %567  ;;  %717 = vmatprep.subr.mxu0 %v644_v63  ;;  %794 = vmatprep.subr.mxu1 %v646_v5  ;;  %v566_v8 = vpop.permute.xlu0 %565  ;;  %10122 = vst [vmem:[#allocation43_spill] sm:$0xff] %v6834_v62  ;;  %v6836_v63 = vadd.s32 4294967295, %v291_v16  ;;  %vm363_vm2 = vcmp.lt.s32.totalorder %v355_v60, 16 }
 0x123   :  { %718 = vmatpush1.msra.mxu0 %v625_v10  ;;  %795 = vmatpush1.msra.mxu1 %v645_v6  ;;  %v576_v14 = vsel %vm9857_vm15, %v566_v8, %v568_v7  ;;  %v6859_v10 = vsel %vm375_vm4, 1.0, %v9860_v0 }
 0x124   :  { %v610_v30 = vmul.f32 %v6786_v20, %v576_v14  ;;  %10126 = vst [vmem:[#allocation45_spill] sm:$0xff] %v6859_v10  ;;  %vm357_vm12 = vcmp.ge.s32.totalorder %v6836_v63, 0 }
 0x126   :  { %v572_v15 = vpop.permute.xlu1 %571  ;;  %v570_v19 = vpop.permute.xlu0 %569 }
 0x127   :  { %v577_v21 = vsel %vm9857_vm15, %v572_v15, %v566_v8  ;;  %v574_v22 = vsel %vm9857_vm15, %v570_v19, %v572_v15  ;;  %v575_v23 = vsel %vm9857_vm15, %v568_v7, %v570_v19  ;;  %vm359_vm15 = vcmp.ge.s32.totalorder %v355_v60, 0 }
 0x128   :  { %v611_v24 = vmul.f32 %v6773_v11, %v575_v23  ;;  %v613_v27 = vmul.f32 %v6776_v12, %v577_v21  ;;  %v612_v29 = vmul.f32 %v6779_v13, %v574_v22  ;;  %v6854_v8 = vsel %vm9859_vm3, 1.0, %v9860_v0  ;;  %vm6883_vm6 = vmand %vm359_vm15, %vm363_vm2 }
 0x129   :  { %10125 = vst [vmem:[#allocation44_spill] sm:$0xff] %v6854_v8  ;;  %vm473_vm15 = vmand %vm6883_vm6, %vm469_vm10 }
 0x12a   :  { %v535_v33 = vpop.permute.xlu1 %534  ;;  %719 = vmatprep.subr.mxu0 %v611_v24  ;;  %796 = vmatprep.subr.mxu1 %v613_v27  ;;  %v533_v34 = vpop.permute.xlu0 %532  ;;  %v6898_v24 = vsel %vm6865_vm5, 1.0, %v9860_v0  ;;  %vm378_vm10 = vmand %vm6840_vm13, %vm374_vm1 }
 0x12b   :  { %720 = vmatpush1.msra.mxu0 %v610_v30  ;;  %797 = vmatpush1.msra.mxu1 %v612_v29  ;;  %v543_v43 = vsel %vm9856_vm9, %v533_v34, %v535_v33  ;;  %10133 = vst [vmem:[#allocation46_spill] sm:$0xff] %v6898_v24  ;;  %vm377_vm1 = vmand %vm357_vm12, %vm373_vm7  ;;  %v6972_v6 = vsel %vm378_vm10, 1.0, %v9860_v0  ;;  %vm10162_vm7 = vcmp.lt.s32.totalorder %v6642_v9, 112 }
 0x12c   :  { %v561_v61 = vmul.f32 %v6703_v37, %v543_v43  ;;  %10141 = vst [vmem:[#allocation54_spill] sm:$0xff] %v6972_v6 }
 0x12e   :  { %v539_v44 = vpop.permute.xlu1 %538  ;;  %v537_v45 = vpop.permute.xlu0 %536 }
 0x12f   :  { %v544_v46 = vsel %vm9856_vm9, %v539_v44, %v533_v34  ;;  %v541_v47 = vsel %vm9856_vm9, %v537_v45, %v539_v44  ;;  %v542_v48 = vsel %vm9856_vm9, %v535_v33, %v537_v45  ;;  %vm364_vm9 = vcmp.lt.s32.totalorder %v356_v50, 16 }
 0x130   :  { %v562_v51 = vmul.f32 %v6804_v40, %v542_v48  ;;  %v564_v57 = vmul.f32 %v6809_v41, %v544_v46  ;;  %v563_v58 = vmul.f32 %v6814_v42, %v541_v47  ;;  %vm6872_vm3 = vmand %vm360_vm0, %vm364_vm9  ;;  %vm450_vm0 = vcmp.lt.s32.totalorder %v6642_v9, 15 }
 0x131   :  { %vm471_vm9 = vmand %vm357_vm12, %vm467_vm14  ;;  %v6918_v33 = vsel %vm473_vm15, 1.0, %v9860_v0  ;;  %v6933_v47 = vsel %vm6840_vm13, 1.0, %v9860_v0  ;;  %v6946_v60 = vsel %vm6872_vm3, 1.0, %v9860_v0  ;;  %vm348_vm14 = vcmp.lt.s32.totalorder %v6642_v9, 17 }
 0x132   :  { %v490_v5 = vpop.permute.xlu1 %489  ;;  %721 = vmatprep.subr.mxu0 %v562_v51  ;;  %798 = vmatprep.subr.mxu1 %v564_v57  ;;  %v488_v17 = vpop.permute.xlu0 %487  ;;  %vm474_vm2 = vmand %vm6872_vm3, %vm470_vm8  ;;  %v6912_v26 = vsel %vm471_vm9, 1.0, %v9860_v0  ;;  %10136 = vst [vmem:[#allocation49_spill] sm:$0xff] %v6918_v33  ;;  %vm409_vm8 = vcmp.lt.s32.totalorder %v6642_v9, 16  ;;  %vm10142_vm13 = vcmp.ge.s32.totalorder %v6722_v52, 0  ;;  %v6986_v52 = vsel %vm377_vm1, 1.0, %v9860_v0 }
 0x133   :  { %v498_v18 = vsel %vm495_vm11, %v488_v17, %v490_v5  ;;  %722 = vmatpush1.msra.mxu0 %v561_v61  ;;  %799 = vmatpush1.msra.mxu1 %v563_v58  ;;  %10134 = vst [vmem:[#allocation47_spill] sm:$0xff] %v6912_v26  ;;  %v6915_v32 = vsel %vm474_vm2, 1.0, %v9860_v0  ;;  %10137 = vst [vmem:[#allocation50_spill] sm:$0xff] %v6933_v47  ;;  %v6941_v58 = vsel %vm357_vm12, 1.0, %v9860_v0  ;;  %v6951_v61 = vsel %vm6883_vm6, 1.0, %v9860_v0 }
 0x134   :  { %723 = vmatprep.subr.mxu0 %v6580_v4  ;;  %v529_v7 = vmul.f32 %v6834_v62, %v498_v18  ;;  %800 = vmatprep.subr.mxu1 %v6575_v3  ;;  %10135 = vst [vmem:[#allocation48_spill] sm:$0xff] %v6915_v32  ;;  %10138 = vst [vmem:[#allocation51_spill] sm:$0xff] %v6941_v58 }
 0x135   :  { %724 = vmatpush1.msra.mxu0 %v6566_v2  ;;  %801 = vmatpush1.msra.mxu1 %v6561_v1  ;;  %10139 = vst [vmem:[#allocation52_spill] sm:$0xff] %v6946_v60  ;;  %10140 = vst [vmem:[#allocation53_spill] sm:$0xff] %v6951_v61 }
 0x136   :  { %v494_v1 = vpop.permute.xlu1 %493  ;;  %725 = vmatprep.subr.mxu0 %v529_v7  ;;  %v492_v2 = vpop.permute.xlu0 %491  ;;  %vm380_vm5 = vmand %vm6872_vm3, %vm10142_vm13  ;;  %10143 = vst [vmem:[#allocation55_spill] sm:$0xff] %v6986_v52  ;;  %vm694_vm3 = vcmask 588800  }
 0x137   :  { %v499_v25 = vsel %vm495_vm11, %v494_v1, %v488_v17  ;;  %v496_v14 = vsel %vm495_vm11, %v492_v2, %v494_v1  ;;  %v497_v15 = vsel %vm495_vm11, %v490_v5, %v492_v2  ;;  %vm379_vm9 = vmand %vm6883_vm6, %vm375_vm4  ;;  %v6989_v4 = vsel %vm380_vm5, 1.0, %v9860_v0 }
 0x138   :  { %v528_v21 = vmul.f32 %v6786_v20, %v499_v25  ;;  %v531_v22 = vmul.f32 %v6854_v8, %v496_v14  ;;  %v530_v23 = vmul.f32 %v6859_v10, %v497_v15  ;;  %10144 = vst [vmem:[#allocation56_spill] sm:$0xff] %v6989_v4  ;;  %v6992_v15 = vsel %vm379_vm9, 1.0, %v9860_v0  ;;  %vm10163_vm12 = vmmov %vm10162_vm7 }
 0x139   :  { %10145 = vst [vmem:[#allocation57_spill] sm:$0xff] %v6992_v15  ;;  %vm1151_vm4 = vcmask 130048   ;;  %vm10165_vm6 = vmmov %vm10162_vm7  ;;  %vm10178_vm5 = vcmp.lt.s32.totalorder %v6642_v9, 113 }
 0x13a   :  { %v445_v27 = vpop.permute.xlu1 %444  ;;  %726 = vmatpush1.msra.mxu0 %v528_v21  ;;  %802 = vmatprep.subr.mxu1 %v531_v22  ;;  %v443_v29 = vpop.permute.xlu0 %442  ;;  %vm10166_vm2 = vmmov %vm10165_vm6 }
 0x13b   :  { %v453_v31 = vsel %vm450_vm0, %v443_v29, %v445_v27  ;;  %803 = vmatpush1.msra.mxu1 %v530_v23  ;;  %vm10167_vm15 = vmmov %vm10166_vm2 }
 0x13c   :  { %v484_v30 = vmul.f32 %v6898_v24, %v453_v31  ;;  %v680_v31 = vld [vmem:[#allocation2] sm:$0xff]  ;;  %vm10169_vm10 = vmmov %vm10166_vm2 }
 0x13d   :  { %vm10171_vm1 = vmmov %vm10166_vm2 }
 0x13e   :  { %v449_v34 = vpop.permute.xlu1 %448  ;;  %727 = vmatprep.subr.mxu0 %v484_v30  ;;  %v447_v28 = vpop.permute.xlu0 %446  ;;  %vm10174_vm13 = vmmov %vm10171_vm1 }
 0x13f   :  { %v454_v39 = vsel %vm450_vm0, %v449_v34, %v443_v29  ;;  %v451_v16 = vsel %vm450_vm0, %v447_v28, %v449_v34  ;;  %v452_v43 = vsel %vm450_vm0, %v445_v27, %v447_v28  ;;  %v681_v34 = vld [vmem:[#allocation2 + $0x8] sm:$0xff]  ;;  %vm10179_vm9 = vmmov %vm10178_vm5 }
 0x140   :  { %v483_v44 = vmul.f32 %v6912_v26, %v454_v39  ;;  %v486_v45 = vmul.f32 %v6915_v32, %v451_v16  ;;  %v485_v46 = vmul.f32 %v6918_v33, %v452_v43 }
 0x142   :  { %v404_v48 = vpop.permute.xlu1 %403  ;;  %728 = vmatpush1.msra.mxu0 %v483_v44  ;;  %804 = vmatprep.subr.mxu1 %v486_v45  ;;  %v402_v50 = vpop.permute.xlu0 %401 }
 0x143   :  { %v412_v51 = vsel %vm409_vm8, %v402_v50, %v404_v48  ;;  %805 = vmatpush1.msra.mxu1 %v485_v46 }
 0x144   :  { %v439_v57 = vmul.f32 %v6933_v47, %v412_v51 }
 0x146   :  { %v408_v5 = vpop.permute.xlu1 %407  ;;  %729 = vmatprep.subr.mxu0 %v439_v57  ;;  %v406_v17 = vpop.permute.xlu0 %405 }
 0x147   :  { %v413_v18 = vsel %vm409_vm8, %v408_v5, %v402_v50  ;;  %v410_v7 = vsel %vm409_vm8, %v406_v17, %v408_v5  ;;  %v411_v3 = vsel %vm409_vm8, %v404_v48, %v406_v17 }
 0x148   :  { %v438_v1 = vmul.f32 %v6941_v58, %v413_v18  ;;  %v441_v2 = vmul.f32 %v6946_v60, %v410_v7  ;;  %v440_v49 = vmul.f32 %v6951_v61, %v411_v3 }
 0x14a   :  { %v343_v25 = vpop.permute.xlu1 %342  ;;  %730 = vmatpush1.msra.mxu0 %v438_v1  ;;  %806 = vmatprep.subr.mxu1 %v441_v2  ;;  %v341_v14 = vpop.permute.xlu0 %340 }
 0x14b   :  { %v351_v59 = vsel %vm348_vm14, %v341_v14, %v343_v25  ;;  %807 = vmatpush1.msra.mxu1 %v440_v49 }
 0x14c   :  { %v398_v63 = vmul.f32 %v6972_v6, %v351_v59 }
 0x14e   :  { %v347_v21 = vpop.permute.xlu1 %346  ;;  %731 = vmatprep.subr.mxu0 %v398_v63  ;;  %v345_v53 = vpop.permute.xlu0 %344 }
 0x14f   :  { %v352_v19 = vsel %vm348_vm14, %v347_v21, %v341_v14  ;;  %v349_v22 = vsel %vm348_vm14, %v345_v53, %v347_v21  ;;  %v350_v23 = vsel %vm348_vm14, %v343_v25, %v345_v53 }
 0x150   :  { %v397_v27 = vmul.f32 %v6986_v52, %v352_v19  ;;  %v400_v29 = vmul.f32 %v6989_v4, %v349_v22  ;;  %v399_v30 = vmul.f32 %v6992_v15, %v350_v23  ;;  %v1120_v23 = vld [vmem:[#allocation4 + $0x8] sm:$0xff] }
 0x152   :  { %732 = vmatpush1.msra.mxu0 %v397_v27  ;;  %808 = vmatprep.subr.mxu1 %v400_v29 }
 0x153   :  { %5254 = vmatmul.mubr.msk.f32.vlgmr.msra.gmra.mxu0 %vm694_vm3, %v680_v31  ;;  %809 = vmatpush1.msra.mxu1 %v399_v30 }
 0x154   :  { %5256 = vmatmul.mubr.msk.f32.vlgmr.msra.gmra.mxu1 %vm694_vm3, %v680_v31  ;;  %771 = vmatprep.mubr.f32.mxu0 %v9860_v0 }
 0x155   :  { %848 = vmatprep.mubr.f32.mxu1 %v9860_v0 }
 0x157   :  { %5255 = vmatmul.mubr.msk.f32.gmra.mxu0 %vm694_vm3, %v681_v34 }
 0x158   :  { %5257 = vmatmul.mubr.msk.f32.gmra.mxu1 %vm694_vm3, %v681_v34  ;;  %5258 = vmatprep.mubr.msk.f32.mxu0 %vm1151_vm4, %v1120_v23  ;;  %vm10180_vm3 = vmmov %vm10178_vm5 }
 0x159   :  { %5262 = vmatprep.mubr.msk.f32.mxu1 %vm1151_vm4, %v1120_v23 }
 0x15b   :  { %v687_v28 = vpop.permute.xlu1 %686  ;;  %v692_v7 = vpop.permute.xlu0 %691 }
 0x213   :  { %v767_v39 = vpop.f32.mrf.mxu0 }
 0x214   :  { %v768_v16 = vadd.f32 %v767_v39, %v687_v28  ;;  %v844_v43 = vpop.f32.mrf.mxu1 }
 0x215   :  { %v769_v44 = vpop.f32.mrf.mxu0  ;;  %v845_v46 = vadd.f32 %v844_v43, %v687_v28 }
 0x216   :  { %v7005_v45 = vmax.f32 %v768_v16, 0.0  ;;  %v770_v48 = vadd.f32 %v769_v44, %v687_v28  ;;  %v846_v50 = vpop.f32.mrf.mxu1  ;;  %v1128_v16 = vld [vmem:[#allocation13 + $0x18] sm:$0xff]  ;;  %v1129_v44 = vld [vmem:[#allocation13 + $0x20] sm:$0xff] }
 0x217   :  { %v847_v57 = vadd.f32 %v846_v50, %v687_v28  ;;  %v7011_v5 = vmax.f32 %v845_v46, 0.0  ;;  %v773_v18 = vpop.f32.mrf.mxu0  ;;  %v1127_v28 = vld [vmem:[#allocation13 + $0x10] sm:$0xff] }
 0x218   :  { %10146 = vst [vmem:[#allocation58_spill] sm:$0xff] %v7005_v45  ;;  %v7007_v51 = vmax.f32 %v770_v48, 0.0  ;;  %1055 = vrot.lane.b32.xlu1 %v7005_v45, %s6380_s21  ;;  %v774_v3 = vadd.f32 %v773_v18, %v692_v7  ;;  %v850_v2 = vpop.f32.mrf.mxu1  ;;  %v1130_v48 = vld [vmem:[#allocation13 + $0x28] sm:$0xff] }
 0x219   :  { %10148 = vst [vmem:[#allocation60_spill] sm:$0xff] %v7011_v5  ;;  %v7015_v17 = vmax.f32 %v847_v57, 0.0  ;;  %v775_v1 = vpop.f32.mrf.mxu0  ;;  %v851_v59 = vadd.f32 %v850_v2, %v692_v7  ;;  %v1592_v57 = vld [vmem:[#allocation13 + $0xa0] sm:$0xff] }
 0x21a   :  { %10147 = vst [vmem:[#allocation59_spill] sm:$0xff] %v7007_v51  ;;  %1059 = vrot.lane.b32.xlu0 %v7007_v51, %s6380_s21  ;;  %v776_v49 = vadd.f32 %v775_v1, %v692_v7  ;;  %v7069_v25 = vmax.f32 %v774_v3, 0.0  ;;  %v852_v14 = vpop.f32.mrf.mxu1  ;;  %v1594_v1 = vld [vmem:[#allocation13 + $0xb0] sm:$0xff] }
 0x21b   :  { %10149 = vst [vmem:[#allocation61_spill] sm:$0xff] %v7015_v17  ;;  %v853_v21 = vadd.f32 %v852_v14, %v692_v7  ;;  %v7079_v53 = vmax.f32 %v851_v59, 0.0  ;;  %v1593_v7 = vld [vmem:[#allocation13 + $0xa8] sm:$0xff]  ;;  %v1596_v59 = vld [vmem:[#allocation13 + $0xc0] sm:$0xff] }
 0x21c   :  { %1063 = vrot.lane.b32.xlu1 %v7011_v5, %s6380_s21  ;;  %10150 = vst [vmem:[#allocation62_spill] sm:$0xff] %v7069_v25  ;;  %v7075_v63 = vmax.f32 %v776_v49, 0.0  ;;  %v1595_v49 = vld [vmem:[#allocation13 + $0xb8] sm:$0xff] }
 0x21d   :  { %10152 = vst [vmem:[#allocation64_spill] sm:$0xff] %v7079_v53  ;;  %v7083_v19 = vmax.f32 %v853_v21, 0.0 }
 0x21e   :  { %1067 = vrot.lane.b32.xlu0 %v7015_v17, %s6380_s21  ;;  %10151 = vst [vmem:[#allocation63_spill] sm:$0xff] %v7075_v63 }
 0x21f   :  { %10153 = vst [vmem:[#allocation65_spill] sm:$0xff] %v7083_v19 }
 0x220   :  { %1023 = vrot.lane.b32.xlu1 %v7005_v45, %s6381_s1 }
 0x222   :  { %1027 = vrot.lane.b32.xlu0 %v7007_v51, %s6381_s1 }
 0x224   :  { %1031 = vrot.lane.b32.xlu1 %v7011_v5, %s6381_s1 }
 0x226   :  { %1035 = vrot.lane.b32.xlu0 %v7015_v17, %s6381_s1 }
 0x228   :  { %991 = vrot.lane.b32.xlu1 %v7005_v45, %s6382_s8 }
 0x22a   :  { %995 = vrot.lane.b32.xlu0 %v7007_v51, %s6382_s8 }
 0x22c   :  { %999 = vrot.lane.b32.xlu1 %v7011_v5, %s6382_s8 }
 0x22e   :  { %1003 = vrot.lane.b32.xlu0 %v7015_v17, %s6382_s8 }
 0x230   :  { %959 = vrot.lane.b32.xlu1 %v7005_v45, %s6383_s20 }
 0x232   :  { %963 = vrot.lane.b32.xlu0 %v7007_v51, %s6383_s20 }
 0x234   :  { %967 = vrot.lane.b32.xlu1 %v7011_v5, %s6383_s20 }
 0x236   :  { %971 = vrot.lane.b32.xlu0 %v7015_v17, %s6383_s20 }
 0x238   :  { %927 = vrot.lane.b32.xlu1 %v7005_v45, %s6384_s23 }
 0x23a   :  { %931 = vrot.lane.b32.xlu0 %v7007_v51, %s6384_s23 }
 0x23c   :  { %935 = vrot.lane.b32.xlu1 %v7011_v5, %s6384_s23 }
 0x23e   :  { %939 = vrot.lane.b32.xlu0 %v7015_v17, %s6384_s23 }
 0x240   :  { %895 = vrot.lane.b32.xlu1 %v7005_v45, %s6358_s2 }
 0x242   :  { %899 = vrot.lane.b32.xlu0 %v7007_v51, %s6358_s2 }
 0x244   :  { %903 = vrot.lane.b32.xlu1 %v7011_v5, %s6358_s2 }
 0x246   :  { %907 = vrot.lane.b32.xlu0 %v7015_v17, %s6358_s2 }
 0x248   :  { %863 = vrot.lane.b32.xlu1 %v7005_v45, %s6385_s25 }
 0x24a   :  { %867 = vrot.lane.b32.xlu0 %v7007_v51, %s6385_s25 }
 0x24c   :  { %871 = vrot.lane.b32.xlu1 %v7011_v5, %s6385_s25 }
 0x24e   :  { %875 = vrot.lane.b32.xlu0 %v7015_v17, %s6385_s25 }
 0x250   :  { %1087 = vrot.lane.b32.xlu1 %v7005_v45, %s6379_s4 }
 0x252   :  { %1091 = vrot.lane.b32.xlu0 %v7007_v51, %s6379_s4 }
 0x254   :  { %1057 = vrot.lane.b32.xlu1 %v7069_v25, %s6380_s21 }
 0x256   :  { %1061 = vrot.lane.b32.xlu0 %v7075_v63, %s6380_s21 }
 0x258   :  { %1065 = vrot.lane.b32.xlu1 %v7079_v53, %s6380_s21 }
 0x25a   :  { %1069 = vrot.lane.b32.xlu0 %v7083_v19, %s6380_s21 }
 0x25c   :  { %1025 = vrot.lane.b32.xlu1 %v7069_v25, %s6381_s1 }
 0x25e   :  { %1029 = vrot.lane.b32.xlu0 %v7075_v63, %s6381_s1 }
 0x260   :  { %1033 = vrot.lane.b32.xlu1 %v7079_v53, %s6381_s1 }
 0x262   :  { %1037 = vrot.lane.b32.xlu0 %v7083_v19, %s6381_s1 }
 0x264   :  { %993 = vrot.lane.b32.xlu1 %v7069_v25, %s6382_s8 }
 0x266   :  { %997 = vrot.lane.b32.xlu0 %v7075_v63, %s6382_s8 }
 0x268   :  { %1001 = vrot.lane.b32.xlu1 %v7079_v53, %s6382_s8 }
 0x26a   :  { %1005 = vrot.lane.b32.xlu0 %v7083_v19, %s6382_s8 }
 0x26c   :  { %961 = vrot.lane.b32.xlu1 %v7069_v25, %s6383_s20 }
 0x26e   :  { %965 = vrot.lane.b32.xlu0 %v7075_v63, %s6383_s20 }
 0x270   :  { %969 = vrot.lane.b32.xlu1 %v7079_v53, %s6383_s20 }
 0x272   :  { %973 = vrot.lane.b32.xlu0 %v7083_v19, %s6383_s20 }
 0x274   :  { %929 = vrot.lane.b32.xlu1 %v7069_v25, %s6384_s23 }
 0x276   :  { %933 = vrot.lane.b32.xlu0 %v7075_v63, %s6384_s23 }
 0x278   :  { %937 = vrot.lane.b32.xlu1 %v7079_v53, %s6384_s23 }
 0x27a   :  { %941 = vrot.lane.b32.xlu0 %v7083_v19, %s6384_s23 }
 0x27c   :  { %897 = vrot.lane.b32.xlu1 %v7069_v25, %s6358_s2 }
 0x27e   :  { %901 = vrot.lane.b32.xlu0 %v7075_v63, %s6358_s2 }
 0x280   :  { %905 = vrot.lane.b32.xlu1 %v7079_v53, %s6358_s2 }
 0x282   :  { %909 = vrot.lane.b32.xlu0 %v7083_v19, %s6358_s2 }
 0x284   :  { %865 = vrot.lane.b32.xlu1 %v7069_v25, %s6385_s25 }
 0x286   :  { %869 = vrot.lane.b32.xlu0 %v7075_v63, %s6385_s25 }
 0x288   :  { %873 = vrot.lane.b32.xlu1 %v7079_v53, %s6385_s25 }
 0x28a   :  { %v7135_v22 = vpop.permute.xlu1 %1055  ;;  %877 = vrot.lane.b32.xlu0 %v7083_v19, %s6385_s25 }
 0x28c   :  { %1089 = vrot.lane.b32.xlu1 %v7069_v25, %s6379_s4  ;;  %v7143_v27 = vpop.permute.xlu0 %1059 }
 0x28e   :  { %v7145_v29 = vpop.permute.xlu1 %1063  ;;  %1093 = vrot.lane.b32.xlu0 %v7075_v63, %s6379_s4 }
 0x28f   :  { %v1073_v6 = vsel %vm10162_vm7, %v7143_v27, %v7145_v29  ;;  %vm10181_vm7 = vmmov %vm10180_vm3 }
 0x290   :  { %1097 = vrot.lane.b32.xlu1 %v7079_v53, %s6379_s4  ;;  %v1068_v31 = vpop.permute.xlu0 %1067  ;;  %v7226_v60 = vmul.f32 %v6729_v54, %v1073_v6 }
 0x291   :  { %v1071_v58 = vsel %vm10169_vm10, %v7145_v29, %v1068_v31  ;;  %vm10194_vm10 = vcmp.lt.s32.totalorder %v6642_v9, 127 }
 0x292   :  { %v7151_v30 = vpop.permute.xlu1 %1023  ;;  %1101 = vrot.lane.b32.xlu0 %v7083_v19, %s6379_s4  ;;  %10168 = vst [vmem:[#allocation75_spill] sm:$0xff] %v7226_v60 }
 0x294   :  { %1095 = vrot.lane.b32.xlu1 %v7011_v5, %s6379_s4  ;;  %v7157_v34 = vpop.permute.xlu0 %1027 }
 0x296   :  { %v7159_v39 = vpop.permute.xlu1 %1031  ;;  %1099 = vrot.lane.b32.xlu0 %v7015_v17, %s6379_s4 }
 0x298   :  { %1133 = vperm.xlu1 %6051, %v1127_v28   ;;  %v7163_v43 = vpop.permute.xlu0 %1035 }
 0x29a   :  { %v7165_v46 = vpop.permute.xlu1 %991  ;;  %1138 = vperm.xlu0 %6050, %v1128_v16  }
 0x29c   :  { %1143 = vperm.xlu1 %6051, %v1129_v44   ;;  %v7167_v50 = vpop.permute.xlu0 %995 }
 0x29e   :  { %v7169_v18 = vpop.permute.xlu1 %999  ;;  %1148 = vperm.xlu0 %6050, %v1130_v48  }
 0x2a0   :  { %1701 = vperm.xlu1 %6051, %v1592_v57   ;;  %v7171_v3 = vpop.permute.xlu0 %1003 }
 0x2a2   :  { %v7173_v2 = vpop.permute.xlu1 %959  ;;  %1785 = vperm.xlu0 %6050, %v1593_v7  }
 0x2a4   :  { %1790 = vperm.xlu1 %6051, %v1594_v1   ;;  %v7175_v14 = vpop.permute.xlu0 %963 }
 0x2a6   :  { %v7177_v21 = vpop.permute.xlu1 %967  ;;  %1795 = vperm.xlu0 %6050, %v1595_v49  }
 0x2a8   :  { %1800 = vperm.xlu1 %6051, %v1596_v59   ;;  %v7179_v23 = vpop.permute.xlu0 %971 }
 0x2aa   :  { %v7181_v28 = vpop.permute.xlu1 %927 }
 0x2ac   :  { %v7183_v16 = vpop.permute.xlu0 %931 }
 0x2ae   :  { %v7185_v44 = vpop.permute.xlu1 %935 }
 0x2b0   :  { %v7187_v48 = vpop.permute.xlu0 %939 }
 0x2b2   :  { %v7189_v57 = vpop.permute.xlu1 %895 }
 0x2b4   :  { %v7191_v7 = vpop.permute.xlu0 %899 }
 0x2b6   :  { %v7193_v1 = vpop.permute.xlu1 %903 }
 0x2b7   :  { %10154 = vst [vmem:[#allocation66_spill] sm:$0xff] %v7193_v1 }
 0x2b8   :  { %v7195_v0 = vpop.permute.xlu0 %907 }
 0x2b9   :  { %10155 = vst [vmem:[#allocation67_spill] sm:$0xff] %v7195_v0 }
 0x2ba   :  { %v7197_v49 = vpop.permute.xlu1 %863 }
 0x2bb   :  { %10156 = vst [vmem:[#allocation68_spill] sm:$0xff] %v7197_v49 }
 0x2bc   :  { %v7199_v59 = vpop.permute.xlu0 %867 }
 0x2bd   :  { %10157 = vst [vmem:[#allocation69_spill] sm:$0xff] %v7199_v59 }
 0x2be   :  { %v7201_v36 = vpop.permute.xlu1 %871 }
 0x2bf   :  { %10158 = vst [vmem:[#allocation70_spill] sm:$0xff] %v7201_v36 }
 0x2c0   :  { %v7203_v38 = vpop.permute.xlu0 %875 }
 0x2c1   :  { %10159 = vst [vmem:[#allocation71_spill] sm:$0xff] %v7203_v38 }
 0x2c2   :  { %v7205_v35 = vpop.permute.xlu1 %1087 }
 0x2c3   :  { %10160 = vst [vmem:[#allocation72_spill] sm:$0xff] %v7205_v35  ;;  %v1077_v35 = vsel %vm10165_vm6, %v1068_v31, %v7135_v22  ;;  %vm10185_vm6 = vmmov %vm10180_vm3 }
 0x2c4   :  { %v7207_v15 = vpop.permute.xlu0 %1091  ;;  %v7252_v29 = vmul.f32 %v6734_v55, %v1077_v35 }
 0x2c5   :  { %10161 = vst [vmem:[#allocation73_spill] sm:$0xff] %v7207_v15 }
 0x2c6   :  { %v1058_v4 = vpop.permute.xlu1 %1057  ;;  %10176 = vst [vmem:[#allocation80_spill] sm:$0xff] %v7252_v29 }
 0x2c8   :  { %v1062_v52 = vpop.permute.xlu0 %1061 }
 0x2c9   :  { %v7237_v0 = vsel %vm10171_vm1, %v1058_v4, %v1062_v52  ;;  %vm10195_vm1 = vmmov %vm10194_vm10 }
 0x2ca   :  { %v1066_v61 = vpop.permute.xlu1 %1065  ;;  %10172 = vst [vmem:[#allocation77_spill] sm:$0xff] %v7237_v0 }
 0x2cb   :  { %v1074_v49 = vsel %vm10163_vm12, %v1062_v52, %v1066_v61  ;;  %v7255_v52 = vmul.f32 %v6739_v56, %v1071_v58  ;;  %v1043_v58 = vsel %vm10181_vm7, %v7151_v30, %v7157_v34  ;;  %vm10183_vm12 = vmmov %vm10180_vm3 }
 0x2cc   :  { %v1070_v59 = vpop.permute.xlu0 %1069  ;;  %v7216_v36 = vmul.f32 %v6729_v54, %v1074_v49  ;;  %vm10202_vm7 = vmmov %vm10195_vm1  ;;  %v2194_v54 = vld [vmem:[#allocation6 + $0x78] sm:$0xff] }
 0x2cd   :  { %v1072_v15 = vsel %vm10166_vm2, %v1066_v61, %v1070_v59  ;;  %v1078_v38 = vsel %vm10167_vm15, %v1070_v59, %v1058_v4  ;;  %10177 = vst [vmem:[#allocation81_spill] sm:$0xff] %v7255_v52  ;;  %v1045_v59 = vsel %vm10183_vm12, %v7163_v43, %v7151_v30  ;;  %vm10186_vm2 = vmmov %vm10180_vm3 }
 0x2ce   :  { %10164 = vst [vmem:[#allocation74_spill] sm:$0xff] %v7216_v36  ;;  %v7232_v49 = vmul.f32 %v6739_v56, %v1072_v15  ;;  %v1026_v1 = vpop.permute.xlu1 %1025  ;;  %1164 = vmatprep.subr.mxu0 %v7216_v36  ;;  %v7240_v61 = vmul.f32 %v6734_v55, %v1078_v38  ;;  %v7249_v15 = vsel %vm10174_vm13, %v7135_v22, %v7143_v27  ;;  %vm10187_vm15 = vmmov %vm10186_vm2 }
 0x2cf   :  { %1165 = vmatpush1.msra.mxu0 %v7237_v0  ;;  %10175 = vst [vmem:[#allocation79_spill] sm:$0xff] %v7249_v15  ;;  %v1041_v22 = vsel %vm10179_vm9, %v7157_v34, %v7159_v39  ;;  %v1039_v34 = vsel %vm10187_vm15, %v7159_v39, %v7163_v43  ;;  %v7308_v43 = vmul.f32 %v6776_v12, %v1045_v59  ;;  %vm10196_vm13 = vmmov %vm10195_vm1 }
 0x2d0   :  { %10170 = vst [vmem:[#allocation76_spill] sm:$0xff] %v7232_v49  ;;  %10173 = vst [vmem:[#allocation78_spill] sm:$0xff] %v7240_v61  ;;  %1166 = vmatprep.subr.mxu0 %v7226_v60  ;;  %1253 = vmatprep.subr.mxu1 %v7240_v61  ;;  %v1030_v6 = vpop.permute.xlu0 %1029  ;;  %v7296_v30 = vmul.f32 %v6773_v11, %v1041_v22  ;;  %v10245_v61 = vld [vmem:[#allocation55_spill] sm:$0xff] }
 0x2d1   :  { %1167 = vmatpush1.msra.mxu0 %v7249_v15  ;;  %1254 = vmatpush1.msra.mxu1 %v7232_v49  ;;  %v1044_v38 = vsel %vm10178_vm5, %v1026_v1, %v1030_v6  ;;  %10192 = vst [vmem:[#allocation88_spill] sm:$0xff] %v7308_v43  ;;  %vm10197_vm5 = vmmov %vm10195_vm1 }
 0x2d2   :  { %v1034_v4 = vpop.permute.xlu1 %1033  ;;  %1255 = vmatprep.subr.mxu1 %v7252_v29  ;;  %v7281_v29 = vmul.f32 %v6786_v20, %v1044_v38  ;;  %10189 = vst [vmem:[#allocation85_spill] sm:$0xff] %v7296_v30  ;;  %v1011_v59 = vsel %vm10197_vm5, %v7165_v46, %v7167_v50  ;;  %vm10199_vm9 = vmmov %vm10195_vm1 }
 0x2d3   :  { %v1042_v35 = vsel %vm10180_vm3, %v1030_v6, %v1034_v4  ;;  %1256 = vmatpush1.msra.mxu1 %v7255_v52  ;;  %vm10201_vm3 = vmmov %vm10195_vm1 }
 0x2d4   :  { %v1038_v27 = vpop.permute.xlu0 %1037  ;;  %v7274_v31 = vmul.f32 %v6773_v11, %v1042_v35  ;;  %10184 = vst [vmem:[#allocation83_spill] sm:$0xff] %v7281_v29  ;;  %vm10203_vm12 = vmmov %vm10195_vm1  ;;  %v2183_v11 = vld [vmem:[#allocation6 + $0x20] sm:$0xff] }
 0x2d5   :  { %v1040_v6 = vsel %vm10185_vm6, %v1034_v4, %v1038_v27  ;;  %v1046_v52 = vsel %vm10186_vm2, %v1038_v27, %v1026_v1  ;;  %v7302_v4 = vmul.f32 %v6786_v20, %v1043_v58  ;;  %v7311_v1 = vmul.f32 %v6779_v13, %v1039_v34 }
 0x2d6   :  { %10182 = vst [vmem:[#allocation82_spill] sm:$0xff] %v7274_v31  ;;  %v7292_v35 = vmul.f32 %v6779_v13, %v1040_v6  ;;  %v994_v56 = vpop.permute.xlu1 %993  ;;  %1168 = vmatprep.subr.mxu0 %v7274_v31  ;;  %v7299_v38 = vmul.f32 %v6776_v12, %v1046_v52  ;;  %v1009_v58 = vsel %vm10195_vm1, %v7167_v50, %v7169_v18  ;;  %vm10255_vm6 = vcmp.lt.s32.totalorder %v6642_v9, 111  ;;  %v2506_v31 = vld [vmem:[#allocation16 + $0x68] sm:$0xff] }
 0x2d7   :  { %10191 = vst [vmem:[#allocation87_spill] sm:$0xff] %v7302_v4  ;;  %1169 = vmatpush1.msra.mxu0 %v7281_v29  ;;  %10193 = vst [vmem:[#allocation89_spill] sm:$0xff] %v7311_v1  ;;  %v1013_v13 = vsel %vm10199_vm9, %v7171_v3, %v7165_v46  ;;  %v1007_v50 = vsel %vm10203_vm12, %v7169_v18, %v7171_v3  ;;  %v7352_v46 = vmul.f32 %v6804_v40, %v1009_v58  ;;  %vm1803_vm12 = vcmask 64512   ;;  %v2193_v29 = vld [vmem:[#allocation6 + $0x70] sm:$0xff] }
 0x2d8   :  { %10188 = vst [vmem:[#allocation84_spill] sm:$0xff] %v7292_v35  ;;  %10190 = vst [vmem:[#allocation86_spill] sm:$0xff] %v7299_v38  ;;  %1170 = vmatprep.subr.mxu0 %v7296_v30  ;;  %1257 = vmatprep.subr.mxu1 %v7299_v38  ;;  %v998_v39 = vpop.permute.xlu0 %997  ;;  %v7364_v18 = vmul.f32 %v6809_v41, %v1013_v13  ;;  %v7367_v3 = vmul.f32 %v6814_v42, %v1007_v50  ;;  %v2192_v30 = vld [vmem:[#allocation6 + $0x68] sm:$0xff] }
 0x2d9   :  { %1171 = vmatpush1.msra.mxu0 %v7302_v4  ;;  %1258 = vmatpush1.msra.mxu1 %v7292_v35  ;;  %v1012_v52 = vsel %vm10194_vm10, %v994_v56, %v998_v39  ;;  %10205 = vst [vmem:[#allocation93_spill] sm:$0xff] %v7352_v46  ;;  %v979_v13 = vsel %vm495_vm11, %v7173_v2, %v7175_v14  ;;  %vm10256_vm2 = vmmov %vm10255_vm6 }
 0x2da   :  { %v1002_v22 = vpop.permute.xlu1 %1001  ;;  %1259 = vmatprep.subr.mxu1 %v7308_v43  ;;  %v7337_v43 = vmul.f32 %v6703_v37, %v1012_v52  ;;  %10208 = vst [vmem:[#allocation96_spill] sm:$0xff] %v7364_v18  ;;  %10209 = vst [vmem:[#allocation97_spill] sm:$0xff] %v7367_v3 }
 0x2db   :  { %v1010_v27 = vsel %vm10196_vm13, %v998_v39, %v1002_v22  ;;  %1260 = vmatpush1.msra.mxu1 %v7311_v1  ;;  %vm10260_vm15 = vmmov %vm10256_vm2 }
 0x2dc   :  { %v1006_v6 = vpop.permute.xlu0 %1005  ;;  %v7330_v34 = vmul.f32 %v6804_v40, %v1010_v27  ;;  %10200 = vst [vmem:[#allocation91_spill] sm:$0xff] %v7337_v43  ;;  %vm10261_vm10 = vmmov %vm10256_vm2 }
 0x2dd   :  { %v1008_v39 = vsel %vm10201_vm3, %v1002_v22, %v1006_v6  ;;  %v1014_v1 = vsel %vm10202_vm7, %v1006_v6, %v994_v56  ;;  %v7358_v22 = vmul.f32 %v6703_v37, %v1011_v59  ;;  %v975_v59 = vsel %vm495_vm11, %v7177_v21, %v7179_v23  ;;  %vm10264_vm1 = vmmov %vm10256_vm2 }
 0x2de   :  { %10198 = vst [vmem:[#allocation90_spill] sm:$0xff] %v7330_v34  ;;  %v7348_v27 = vmul.f32 %v6814_v42, %v1008_v39  ;;  %v962_v12 = vpop.permute.xlu1 %961  ;;  %1172 = vmatprep.subr.mxu0 %v7330_v34  ;;  %v7355_v52 = vmul.f32 %v6809_v41, %v1014_v1  ;;  %v10244_v41 = vld [vmem:[#allocation70_spill] sm:$0xff]  ;;  %vm10269_vm13 = vmmov %vm10264_vm1  ;;  %vm6387_vm3 = vmmov 0   ;;  %vm1704_vm7 = vcmask 261120  }
 0x2df   :  { %10207 = vst [vmem:[#allocation95_spill] sm:$0xff] %v7358_v22  ;;  %1173 = vmatpush1.msra.mxu0 %v7337_v43  ;;  %vm10272_vm5 = vmmov %vm10264_vm1 }
 0x2e0   :  { %10204 = vst [vmem:[#allocation92_spill] sm:$0xff] %v7348_v27  ;;  %10206 = vst [vmem:[#allocation94_spill] sm:$0xff] %v7355_v52  ;;  %1174 = vmatprep.subr.mxu0 %v7352_v46  ;;  %1261 = vmatprep.subr.mxu1 %v7355_v52  ;;  %v966_v56 = vpop.permute.xlu0 %965 }
 0x2e1   :  { %v980_v1 = vsel %vm495_vm11, %v962_v12, %v966_v56  ;;  %1175 = vmatpush1.msra.mxu0 %v7358_v22  ;;  %1262 = vmatpush1.msra.mxu1 %v7348_v27  ;;  %vm10273_vm9 = vmmov %vm10264_vm1 }
 0x2e2   :  { %v970_v58 = vpop.permute.xlu1 %969  ;;  %1176 = vmatprep.subr.mxu0 %v7075_v63  ;;  %1263 = vmatprep.subr.mxu1 %v7364_v18  ;;  %v7390_v50 = vmul.f32 %v6834_v62, %v980_v1 }
 0x2e3   :  { %1177 = vmatpush1.msra.mxu0 %v7069_v25  ;;  %1264 = vmatpush1.msra.mxu1 %v7367_v3  ;;  %v978_v6 = vsel %vm495_vm11, %v966_v56, %v970_v58  ;;  %v981_v3 = vsel %vm495_vm11, %v7179_v23, %v7173_v2  ;;  %v977_v56 = vsel %vm495_vm11, %v7175_v14, %v7177_v21 }
 0x2e4   :  { %1178 = vmatprep.subr.mxu0 %v7007_v51  ;;  %1265 = vmatprep.subr.mxu1 %v7083_v19  ;;  %v974_v39 = vpop.permute.xlu0 %973  ;;  %10210 = vst [vmem:[#allocation98_spill] sm:$0xff] %v7390_v50  ;;  %v7419_v23 = vmul.f32 %v6834_v62, %v979_v13  ;;  %v7422_v14 = vmul.f32 %v6786_v20, %v981_v3  ;;  %v10243_v19 = vld [vmem:[#allocation71_spill] sm:$0xff] }
 0x2e5   :  { %v976_v18 = vsel %vm495_vm11, %v970_v58, %v974_v39  ;;  %v982_v27 = vsel %vm495_vm11, %v974_v39, %v962_v12  ;;  %1179 = vmatpush1.msra.mxu0 %v7005_v45  ;;  %1266 = vmatpush1.msra.mxu1 %v7079_v53  ;;  %v7415_v12 = vmul.f32 %v6859_v10, %v978_v6  ;;  %v10233_v53 = vld [vmem:[#allocation53_spill] sm:$0xff] }
 0x2e6   :  { %v7407_v1 = vmul.f32 %v6786_v20, %v982_v27  ;;  %v930_v52 = vpop.permute.xlu1 %929  ;;  %1180 = vmatprep.subr.mxu0 %v7390_v50  ;;  %1267 = vmatprep.subr.mxu1 %v7015_v17  ;;  %v7412_v2 = vmul.f32 %v6854_v8, %v976_v18  ;;  %10214 = vst [vmem:[#allocation102_spill] sm:$0xff] %v7419_v23  ;;  %10215 = vst [vmem:[#allocation103_spill] sm:$0xff] %v7422_v14  ;;  %v10231_v17 = vld [vmem:[#allocation52_spill] sm:$0xff] }
 0x2e7   :  { %10213 = vst [vmem:[#allocation101_spill] sm:$0xff] %v7415_v12  ;;  %1268 = vmatpush1.msra.mxu1 %v7011_v5  ;;  %v7427_v27 = vmul.f32 %v6854_v8, %v975_v59  ;;  %v7430_v18 = vmul.f32 %v6859_v10, %v977_v56  ;;  %v947_v59 = vsel %vm450_vm0, %v7181_v28, %v7183_v16 }
 0x2e8   :  { %10211 = vst [vmem:[#allocation99_spill] sm:$0xff] %v7407_v1  ;;  %10212 = vst [vmem:[#allocation100_spill] sm:$0xff] %v7412_v2  ;;  %1181 = vmatpush1.msra.mxu0 %v7407_v1  ;;  %1269 = vmatprep.subr.mxu1 %v7412_v2  ;;  %v934_v21 = vpop.permute.xlu0 %933  ;;  %v943_v56 = vsel %vm450_vm0, %v7185_v44, %v7187_v48  ;;  %v879_v42 = vsel %vm348_vm14, %v10244_v41, %v10243_v19 }
 0x2e9   :  { %10216 = vst [vmem:[#allocation104_spill] sm:$0xff] %v7427_v27  ;;  %10217 = vst [vmem:[#allocation105_spill] sm:$0xff] %v7430_v18  ;;  %v948_v58 = vsel %vm450_vm0, %v930_v52, %v934_v21  ;;  %1182 = vmatprep.subr.mxu0 %v7419_v23  ;;  %1270 = vmatpush1.msra.mxu1 %v7415_v12 }
 0x2ea   :  { %v938_v3 = vpop.permute.xlu1 %937  ;;  %1183 = vmatpush1.msra.mxu0 %v7422_v14  ;;  %1271 = vmatprep.subr.mxu1 %v7427_v27  ;;  %v7439_v13 = vmul.f32 %v6898_v24, %v948_v58  ;;  %v949_v58 = vsel %vm450_vm0, %v7187_v48, %v7181_v28  ;;  %v7475_v48 = vmul.f32 %v6898_v24, %v947_v59  ;;  %v1420_v14 = vld [vmem:[#allocation15 + $0x1f0] sm:$0xff] }
 0x2eb   :  { %1272 = vmatpush1.msra.mxu1 %v7430_v18  ;;  %v946_v6 = vsel %vm450_vm0, %v934_v21, %v938_v3  ;;  %v945_v21 = vsel %vm450_vm0, %v7183_v16, %v7185_v44 }
 0x2ec   :  { %10218 = vst [vmem:[#allocation106_spill] sm:$0xff] %v7439_v13  ;;  %1184 = vmatprep.subr.mxu0 %v7439_v13  ;;  %v942_v39 = vpop.permute.xlu0 %941  ;;  %v7472_v28 = vmul.f32 %v6918_v33, %v946_v6  ;;  %10222 = vst [vmem:[#allocation110_spill] sm:$0xff] %v7475_v48  ;;  %v7486_v44 = vmul.f32 %v6918_v33, %v945_v21  ;;  %v915_v6 = vsel %vm409_vm8, %v7189_v57, %v7191_v7  ;;  %v10228_v21 = vld [vmem:[#allocation66_spill] sm:$0xff] }
 0x2ed   :  { %v944_v18 = vsel %vm450_vm0, %v938_v3, %v942_v39  ;;  %v950_v10 = vsel %vm450_vm0, %v942_v39, %v930_v52  ;;  %v7478_v52 = vmul.f32 %v6912_v26, %v949_v58  ;;  %v10227_v58 = vld [vmem:[#allocation67_spill] sm:$0xff] }
 0x2ee   :  { %v7466_v27 = vmul.f32 %v6912_v26, %v950_v10  ;;  %v898_v8 = vpop.permute.xlu1 %897  ;;  %v7469_v12 = vmul.f32 %v6915_v32, %v944_v18  ;;  %10221 = vst [vmem:[#allocation109_spill] sm:$0xff] %v7472_v28  ;;  %v7483_v10 = vmul.f32 %v6915_v32, %v943_v56  ;;  %10225 = vst [vmem:[#allocation113_spill] sm:$0xff] %v7486_v44  ;;  %v2195_v26 = vld [vmem:[#allocation6 + $0x80] sm:$0xff] }
 0x2ef   :  { %10223 = vst [vmem:[#allocation111_spill] sm:$0xff] %v7478_v52 }
 0x2f0   :  { %10219 = vst [vmem:[#allocation107_spill] sm:$0xff] %v7466_v27  ;;  %10220 = vst [vmem:[#allocation108_spill] sm:$0xff] %v7469_v12  ;;  %1185 = vmatpush1.msra.mxu0 %v7466_v27  ;;  %1273 = vmatprep.subr.mxu1 %v7469_v12  ;;  %v902_v16 = vpop.permute.xlu0 %901  ;;  %v10229_v12 = vld [vmem:[#allocation51_spill] sm:$0xff]  ;;  %v10247_v27 = vld [vmem:[#allocation56_spill] sm:$0xff] }
 0x2f1   :  { %10224 = vst [vmem:[#allocation112_spill] sm:$0xff] %v7483_v10  ;;  %v916_v18 = vsel %vm409_vm8, %v898_v8, %v902_v16  ;;  %1186 = vmatprep.subr.mxu0 %v7475_v48  ;;  %1274 = vmatpush1.msra.mxu1 %v7472_v28 }
 0x2f2   :  { %v906_v3 = vpop.permute.xlu1 %905  ;;  %1187 = vmatpush1.msra.mxu0 %v7478_v52  ;;  %1275 = vmatprep.subr.mxu1 %v7483_v10  ;;  %v7495_v59 = vmul.f32 %v6933_v47, %v916_v18  ;;  %v911_v10 = vsel %vm409_vm8, %v10228_v21, %v10227_v58  ;;  %v917_v18 = vsel %vm409_vm8, %v10227_v58, %v7189_v57 }
 0x2f3   :  { %1276 = vmatpush1.msra.mxu1 %v7486_v44  ;;  %v914_v39 = vsel %vm409_vm8, %v902_v16, %v906_v3  ;;  %v913_v16 = vsel %vm409_vm8, %v7191_v7, %v10228_v21  ;;  %v10242_v21 = vld [vmem:[#allocation68_spill] sm:$0xff] }
 0x2f4   :  { %10226 = vst [vmem:[#allocation114_spill] sm:$0xff] %v7495_v59  ;;  %1188 = vmatprep.subr.mxu0 %v7495_v59  ;;  %v910_v56 = vpop.permute.xlu0 %909  ;;  %v7528_v57 = vmul.f32 %v10233_v53, %v914_v39  ;;  %v2508_v59 = vld [vmem:[#allocation16 + $0x78] sm:$0xff] }
 0x2f5   :  { %v912_v44 = vsel %vm409_vm8, %v906_v3, %v910_v56  ;;  %v918_v28 = vsel %vm409_vm8, %v910_v56, %v898_v8  ;;  %v7531_v3 = vmul.f32 %v6933_v47, %v915_v6  ;;  %v7534_v8 = vmul.f32 %v10229_v12, %v917_v18  ;;  %v10239_v56 = vld [vmem:[#allocation54_spill] sm:$0xff] }
 0x2f6   :  { %v7522_v2 = vmul.f32 %v10229_v12, %v918_v28  ;;  %v866_v5 = vpop.permute.xlu1 %865  ;;  %v7525_v35 = vmul.f32 %v10231_v17, %v912_v44  ;;  %10234 = vst [vmem:[#allocation115_spill] sm:$0xff] %v7528_v57  ;;  %v7539_v28 = vmul.f32 %v10231_v17, %v911_v10  ;;  %v7542_v44 = vmul.f32 %v10233_v53, %v913_v16  ;;  %v10241_v10 = vld [vmem:[#allocation69_spill] sm:$0xff]  ;;  %v1382_v53 = vld [vmem:[#allocation15 + $0xc0] sm:$0xff] }
 0x2f7   :  { %10235 = vst [vmem:[#allocation116_spill] sm:$0xff] %v7531_v3  ;;  %10236 = vst [vmem:[#allocation117_spill] sm:$0xff] %v7534_v8  ;;  %v883_v18 = vsel %vm348_vm14, %v10242_v21, %v10241_v10 }
 0x2f8   :  { %10230 = vst [vmem:[#allocation67_spill] sm:$0xff] %v7522_v2  ;;  %10232 = vst [vmem:[#allocation66_spill] sm:$0xff] %v7525_v35  ;;  %1189 = vmatpush1.msra.mxu0 %v7522_v2  ;;  %1277 = vmatprep.subr.mxu1 %v7525_v35  ;;  %v870_v7 = vpop.permute.xlu0 %869  ;;  %v2186_v2 = vld [vmem:[#allocation6 + $0x38] sm:$0xff] }
 0x2f9   :  { %10237 = vst [vmem:[#allocation118_spill] sm:$0xff] %v7539_v28  ;;  %10238 = vst [vmem:[#allocation119_spill] sm:$0xff] %v7542_v44  ;;  %v884_v39 = vsel %vm348_vm14, %v866_v5, %v870_v7  ;;  %1190 = vmatprep.subr.mxu0 %v7531_v3  ;;  %1278 = vmatpush1.msra.mxu1 %v7528_v57  ;;  %v1368_v57 = vld [vmem:[#allocation15 + $0x50] sm:$0xff] }
 0x2fa   :  { %v874_v6 = vpop.permute.xlu1 %873  ;;  %1191 = vmatpush1.msra.mxu0 %v7534_v8  ;;  %1279 = vmatprep.subr.mxu1 %v7539_v28  ;;  %v7551_v58 = vmul.f32 %v10239_v56, %v884_v39  ;;  %v885_v39 = vsel %vm348_vm14, %v10243_v19, %v10242_v21 }
 0x2fb   :  { %1280 = vmatpush1.msra.mxu1 %v7542_v44  ;;  %v882_v16 = vsel %vm348_vm14, %v870_v7, %v874_v6  ;;  %v881_v7 = vsel %vm348_vm14, %v10241_v10, %v10244_v41  ;;  %v10249_v44 = vld [vmem:[#allocation57_spill] sm:$0xff] }
 0x2fc   :  { %10240 = vst [vmem:[#allocation120_spill] sm:$0xff] %v7551_v58  ;;  %1192 = vmatprep.subr.mxu0 %v7551_v58  ;;  %v878_v38 = vpop.permute.xlu0 %877  ;;  %v7584_v19 = vmul.f32 %v10249_v44, %v882_v16 }
 0x2fd   :  { %v880_v49 = vsel %vm348_vm14, %v874_v6, %v878_v38  ;;  %v886_v55 = vsel %vm348_vm14, %v878_v38, %v866_v5  ;;  %v7587_v6 = vmul.f32 %v10239_v56, %v883_v18  ;;  %v7590_v5 = vmul.f32 %v10245_v61, %v885_v39  ;;  %v10257_v18 = vld [vmem:[#allocation29_spill] sm:$0xff] }
 0x2fe   :  { %v7578_v52 = vmul.f32 %v10245_v61, %v886_v55  ;;  %v1090_v48 = vpop.permute.xlu1 %1089  ;;  %v7581_v13 = vmul.f32 %v10247_v27, %v880_v49  ;;  %10250 = vst [vmem:[#allocation71_spill] sm:$0xff] %v7584_v19  ;;  %v7595_v55 = vmul.f32 %v10247_v27, %v879_v42  ;;  %v7598_v49 = vmul.f32 %v10249_v44, %v881_v7  ;;  %v10262_v27 = vld [vmem:[#allocation73_spill] sm:$0xff] }
 0x2ff   :  { %10251 = vst [vmem:[#allocation70_spill] sm:$0xff] %v7587_v6  ;;  %10252 = vst [vmem:[#allocation121_spill] sm:$0xff] %v7590_v5 }
 0x300   :  { %10246 = vst [vmem:[#allocation69_spill] sm:$0xff] %v7578_v52  ;;  %10248 = vst [vmem:[#allocation68_spill] sm:$0xff] %v7581_v13  ;;  %1193 = vmatpush1.msra.mxu0 %v7578_v52  ;;  %1281 = vmatprep.subr.mxu1 %v7581_v13  ;;  %v1094_v41 = vpop.permute.xlu0 %1093 }
 0x301   :  { %10253 = vst [vmem:[#allocation122_spill] sm:$0xff] %v7595_v55  ;;  %10254 = vst [vmem:[#allocation123_spill] sm:$0xff] %v7598_v49  ;;  %1194 = vmatprep.subr.mxu0 %v7587_v6  ;;  %1282 = vmatpush1.msra.mxu1 %v7584_v19  ;;  %v1108_v38 = vsel %vm10255_vm6, %v1090_v48, %v1094_v41  ;;  %v10265_v19 = vld [vmem:[#allocation32_spill] sm:$0xff]  ;;  %vm1939_vm6 = vcmask 1041408  }
 0x302   :  { %v1098_v10 = vpop.permute.xlu1 %1097  ;;  %1195 = vmatpush1.msra.mxu0 %v7590_v5  ;;  %1283 = vmatprep.subr.mxu1 %v7595_v55  ;;  %v7613_v39 = vmul.f32 %v6703_v37, %v1108_v38  ;;  %v10263_v55 = vld [vmem:[#allocation72_spill] sm:$0xff] }
 0x303   :  { %v1106_v21 = vsel %vm10256_vm2, %v1094_v41, %v1098_v10  ;;  %1284 = vmatpush1.msra.mxu1 %v7598_v49  ;;  %v1107_v41 = vsel %vm10264_vm1, %v10263_v55, %v10262_v27  ;;  %vm1926_vm2 = vcmask 15360  }
 0x304   :  { %v1102_v42 = vpop.permute.xlu0 %1101  ;;  %v7610_v16 = vmul.f32 %v10257_v18, %v1106_v21  ;;  %10259 = vst [vmem:[#allocation125_spill] sm:$0xff] %v7613_v39  ;;  %v10267_v21 = vld [vmem:[#allocation30_spill] sm:$0xff] }
 0x305   :  { %v1104_v7 = vsel %vm10260_vm15, %v1098_v10, %v1102_v42  ;;  %v1110_v44 = vsel %vm10261_vm10, %v1102_v42, %v1090_v48 }
 0x306   :  { %10258 = vst [vmem:[#allocation124_spill] sm:$0xff] %v7610_v16  ;;  %v7624_v49 = vmul.f32 %v10265_v19, %v1104_v7  ;;  %v1096_v13 = vpop.permute.xlu1 %1095  ;;  %1224 = vmatprep.subr.mxu0 %v7610_v16  ;;  %v7628_v38 = vmul.f32 %v10267_v21, %v1110_v44  ;;  %v7639_v7 = vmul.f32 %v6703_v37, %v1107_v41  ;;  %v1122_v41 = vld [vmem:[#allocation4 + $0x18] sm:$0xff] }
 0x307   :  { %v1105_v10 = vsel %vm10269_vm13, %v10262_v27, %v1096_v13  ;;  %1225 = vmatpush2.msra.mxu0 %v7613_v39  ;;  %v1119_v27 = vld [vmem:[#allocation4] sm:$0xff] }
 0x308   :  { %10266 = vst [vmem:[#allocation73_spill] sm:$0xff] %v7624_v49  ;;  %10268 = vst [vmem:[#allocation72_spill] sm:$0xff] %v7628_v38  ;;  %1313 = vmatprep.subr.mxu1 %v7628_v38  ;;  %v1100_v48 = vpop.permute.xlu0 %1099  ;;  %v7636_v42 = vmul.f32 %v10257_v18, %v1105_v10  ;;  %v1389_v38 = vld [vmem:[#allocation15 + $0xf8] sm:$0xff] }
 0x309   :  { %10271 = vst [vmem:[#allocation127_spill] sm:$0xff] %v7639_v7  ;;  %v1103_v28 = vsel %vm10272_vm5, %v1096_v13, %v1100_v48  ;;  %v1109_v44 = vsel %vm10273_vm9, %v1100_v48, %v10263_v55  ;;  %1314 = vmatpush2.msra.mxu1 %v7624_v49  ;;  %v1373_v13 = vld [vmem:[#allocation15 + $0x78] sm:$0xff]  ;;  %v1121_v55 = vld [vmem:[#allocation4 + $0x10] sm:$0xff]  ;;  %v1124_v48 = vld [vmem:[#allocation4 + $0x28] sm:$0xff] }
 0x30a   :  { %10270 = vst [vmem:[#allocation126_spill] sm:$0xff] %v7636_v42  ;;  %v7648_v17 = vmul.f32 %v10265_v19, %v1103_v28  ;;  %1226 = vmatprep.subr.mxu0 %v7636_v42  ;;  %v7652_v10 = vmul.f32 %v10267_v21, %v1109_v44  ;;  %v1388_v28 = vld [vmem:[#allocation15 + $0xf0] sm:$0xff]  ;;  %v1421_v19 = vld [vmem:[#allocation15 + $0x1f8] sm:$0xff] }
 0x30b   :  { %1227 = vmatpush2.msra.mxu0 %v7639_v7  ;;  %v1372_v44 = vld [vmem:[#allocation15 + $0x70] sm:$0xff]  ;;  %v1405_v21 = vld [vmem:[#allocation15 + $0x178] sm:$0xff] }
 0x30c   :  { %10274 = vst [vmem:[#allocation128_spill] sm:$0xff] %v7648_v17  ;;  %10275 = vst [vmem:[#allocation129_spill] sm:$0xff] %v7652_v10  ;;  %1229 = vmatmul.mubr.f32.vlgmr.msra.gmra.mxu0 %v1119_v27  ;;  %1315 = vmatprep.subr.mxu1 %v7652_v10  ;;  %v1123_v10 = vld [vmem:[#allocation4 + $0x20] sm:$0xff]  ;;  %v1126_v49 = vld [vmem:[#allocation4 + $0x38] sm:$0xff] }
 0x30d   :  { %1316 = vmatpush2.msra.mxu1 %v7648_v17  ;;  %5259 = vmatprep.mubr.msk.f32.mxu0 %vm1151_vm4, %v1122_v41  ;;  %v1387_v17 = vld [vmem:[#allocation15 + $0xe8] sm:$0xff] }
 0x30e   :  { %1318 = vmatmul.mubr.f32.vlgmr.msra.gmra.mxu1 %v1119_v27  ;;  %5349 = vmatprep.subr.mxu0 %v1389_v38  ;;  %v1371_v38 = vld [vmem:[#allocation15 + $0x68] sm:$0xff]  ;;  %v1404_v27 = vld [vmem:[#allocation15 + $0x170] sm:$0xff] }
 0x30f   :  { %5263 = vmatprep.mubr.msk.f32.mxu1 %vm1151_vm4, %v1122_v41  ;;  %5350 = vmatpush3.msra.mxu0 %v1373_v13  ;;  %v1125_v41 = vld [vmem:[#allocation4 + $0x30] sm:$0xff]  ;;  %v1386_v13 = vld [vmem:[#allocation15 + $0xe0] sm:$0xff] }
 0x310   :  { %1235 = vmatmul.mubr.f32.gmra.mxu0 %v1121_v55  ;;  %5351 = vmatprep.subr.mxu0 %v1388_v28  ;;  %v1370_v28 = vld [vmem:[#allocation15 + $0x60] sm:$0xff] }
 0x311   :  { %5260 = vmatprep.mubr.msk.f32.mxu0 %vm1151_vm4, %v1124_v48  ;;  %5393 = vmatprep.subr.mxu1 %v1421_v19  ;;  %v1419_v19 = vld [vmem:[#allocation15 + $0x1e8] sm:$0xff] }
 0x312   :  { %1324 = vmatmul.mubr.f32.gmra.mxu1 %v1121_v55  ;;  %5352 = vmatpush3.msra.mxu0 %v1372_v44  ;;  %v1385_v55 = vld [vmem:[#allocation15 + $0xd8] sm:$0xff]  ;;  %v1384_v44 = vld [vmem:[#allocation15 + $0xd0] sm:$0xff] }
 0x313   :  { %5264 = vmatprep.mubr.msk.f32.mxu1 %vm1151_vm4, %v1124_v48  ;;  %5394 = vmatpush3.msra.mxu1 %v1405_v21  ;;  %v1403_v21 = vld [vmem:[#allocation15 + $0x168] sm:$0xff]  ;;  %v1369_v48 = vld [vmem:[#allocation15 + $0x58] sm:$0xff] }
 0x314   :  { %1241 = vmatmul.mubr.f32.gmra.mxu0 %v1123_v10  ;;  %5353 = vmatprep.subr.mxu0 %v1387_v17  ;;  %v1418_v17 = vld [vmem:[#allocation15 + $0x1e0] sm:$0xff] }
 0x315   :  { %5261 = vmatprep.mubr.msk.f32.mxu0 %vm1151_vm4, %v1126_v49  ;;  %5395 = vmatprep.subr.mxu1 %v1420_v14  ;;  %v1402_v14 = vld [vmem:[#allocation15 + $0x160] sm:$0xff] }
 0x316   :  { %1330 = vmatmul.mubr.f32.gmra.mxu1 %v1123_v10  ;;  %5354 = vmatpush3.msra.mxu0 %v1371_v38  ;;  %v1417_v10 = vld [vmem:[#allocation15 + $0x1d8] sm:$0xff]  ;;  %v1383_v38 = vld [vmem:[#allocation15 + $0xc8] sm:$0xff] }
 0x317   :  { %5265 = vmatprep.mubr.msk.f32.mxu1 %vm1151_vm4, %v1126_v49  ;;  %5396 = vmatpush3.msra.mxu1 %v1404_v27  ;;  %v1401_v49 = vld [vmem:[#allocation15 + $0x158] sm:$0xff]  ;;  %v1367_v27 = vld [vmem:[#allocation15 + $0x48] sm:$0xff] }
 0x318   :  { %1247 = vmatmul.mubr.f32.gmra.mxu0 %v1125_v41  ;;  %5355 = vmatprep.subr.mxu0 %v1386_v13  ;;  %v1416_v13 = vld [vmem:[#allocation15 + $0x1d0] sm:$0xff] }
 0x319   :  { %5397 = vmatprep.subr.mxu1 %v1419_v19  ;;  %5356 = vmatpush3.msra.mxu0 %v1370_v28  ;;  %v1400_v19 = vld [vmem:[#allocation15 + $0x150] sm:$0xff]  ;;  %v1366_v28 = vld [vmem:[#allocation15 + $0x40] sm:$0xff] }
 0x31a   :  { %1336 = vmatmul.mubr.f32.gmra.mxu1 %v1125_v41  ;;  %5357 = vmatprep.subr.mxu0 %v1385_v55  ;;  %v1415_v41 = vld [vmem:[#allocation15 + $0x1c8] sm:$0xff]  ;;  %v1381_v55 = vld [vmem:[#allocation15 + $0xb8] sm:$0xff] }
 0x31b   :  { %5398 = vmatpush3.msra.mxu1 %v1403_v21  ;;  %5358 = vmatpush3.msra.mxu0 %v1369_v48  ;;  %v1399_v21 = vld [vmem:[#allocation15 + $0x148] sm:$0xff]  ;;  %v1365_v48 = vld [vmem:[#allocation15 + $0x38] sm:$0xff] }
 0x31c   :  { %5399 = vmatprep.subr.mxu1 %v1418_v17  ;;  %5359 = vmatprep.subr.mxu0 %v1384_v44  ;;  %v1414_v17 = vld [vmem:[#allocation15 + $0x1c0] sm:$0xff]  ;;  %v1380_v44 = vld [vmem:[#allocation15 + $0xb0] sm:$0xff] }
 0x31d   :  { %5400 = vmatpush3.msra.mxu1 %v1402_v14  ;;  %5360 = vmatpush3.msra.mxu0 %v1368_v57  ;;  %v1398_v57 = vld [vmem:[#allocation15 + $0x140] sm:$0xff]  ;;  %v1364_v14 = vld [vmem:[#allocation15 + $0x30] sm:$0xff] }
 0x31e   :  { %5401 = vmatprep.subr.mxu1 %v1417_v10  ;;  %5361 = vmatprep.subr.mxu0 %v1383_v38  ;;  %v1413_v10 = vld [vmem:[#allocation15 + $0x1b8] sm:$0xff]  ;;  %v1379_v38 = vld [vmem:[#allocation15 + $0xa8] sm:$0xff] }
 0x31f   :  { %5402 = vmatpush3.msra.mxu1 %v1401_v49  ;;  %5362 = vmatpush3.msra.mxu0 %v1367_v27  ;;  %v1397_v49 = vld [vmem:[#allocation15 + $0x138] sm:$0xff]  ;;  %v1363_v27 = vld [vmem:[#allocation15 + $0x28] sm:$0xff] }
 0x320   :  { %5403 = vmatprep.subr.mxu1 %v1416_v13  ;;  %5363 = vmatprep.subr.mxu0 %v1382_v53  ;;  %v1412_v53 = vld [vmem:[#allocation15 + $0x1b0] sm:$0xff]  ;;  %v1378_v13 = vld [vmem:[#allocation15 + $0xa0] sm:$0xff] }
 0x321   :  { %5404 = vmatpush3.msra.mxu1 %v1400_v19  ;;  %5364 = vmatpush3.msra.mxu0 %v1366_v28  ;;  %v1396_v19 = vld [vmem:[#allocation15 + $0x130] sm:$0xff]  ;;  %v1362_v28 = vld [vmem:[#allocation15 + $0x20] sm:$0xff] }
 0x322   :  { %5405 = vmatprep.subr.mxu1 %v1415_v41  ;;  %5365 = vmatprep.subr.mxu0 %v1381_v55  ;;  %v1411_v41 = vld [vmem:[#allocation15 + $0x1a8] sm:$0xff] }
 0x323   :  { %5406 = vmatpush3.msra.mxu1 %v1399_v21  ;;  %5366 = vmatpush3.msra.mxu0 %v1365_v48  ;;  %v1395_v55 = vld [vmem:[#allocation15 + $0x128] sm:$0xff]  ;;  %v1377_v21 = vld [vmem:[#allocation15 + $0x98] sm:$0xff]  ;;  %v1410_v48 = vld [vmem:[#allocation15 + $0x1a0] sm:$0xff] }
 0x324   :  { %5407 = vmatprep.subr.mxu1 %v1414_v17  ;;  %5367 = vmatprep.subr.mxu0 %v1380_v44  ;;  %v1361_v17 = vld [vmem:[#allocation15 + $0x18] sm:$0xff]  ;;  %v1394_v44 = vld [vmem:[#allocation15 + $0x120] sm:$0xff] }
 0x325   :  { %5408 = vmatpush3.msra.mxu1 %v1398_v57  ;;  %5368 = vmatpush3.msra.mxu0 %v1364_v14  ;;  %v1376_v57 = vld [vmem:[#allocation15 + $0x90] sm:$0xff]  ;;  %v1409_v14 = vld [vmem:[#allocation15 + $0x198] sm:$0xff] }
 0x326   :  { %5409 = vmatprep.subr.mxu1 %v1413_v10  ;;  %5369 = vmatprep.subr.mxu0 %v1379_v38  ;;  %v1360_v10 = vld [vmem:[#allocation15 + $0x10] sm:$0xff]  ;;  %v1393_v38 = vld [vmem:[#allocation15 + $0x118] sm:$0xff] }
 0x327   :  { %5410 = vmatpush3.msra.mxu1 %v1397_v49  ;;  %5370 = vmatpush3.msra.mxu0 %v1363_v27  ;;  %v1375_v49 = vld [vmem:[#allocation15 + $0x88] sm:$0xff]  ;;  %v1408_v27 = vld [vmem:[#allocation15 + $0x190] sm:$0xff] }
 0x328   :  { %5411 = vmatprep.subr.mxu1 %v1412_v53  ;;  %5371 = vmatprep.subr.mxu0 %v1378_v13  ;;  %v1359_v53 = vld [vmem:[#allocation15 + $0x8] sm:$0xff]  ;;  %v1392_v13 = vld [vmem:[#allocation15 + $0x110] sm:$0xff] }
 0x329   :  { %5412 = vmatpush3.msra.mxu1 %v1396_v19  ;;  %5372 = vmatpush3.msra.mxu0 %v1362_v28  ;;  %v1374_v19 = vld [vmem:[#allocation15 + $0x80] sm:$0xff]  ;;  %v1407_v28 = vld [vmem:[#allocation15 + $0x188] sm:$0xff] }
 0x32a   :  { %5413 = vmatprep.subr.mxu1 %v1411_v41  ;;  %5373 = vmatprep.subr.mxu0 %v1377_v21  ;;  %v1358_v41 = vld [vmem:[#allocation15] sm:$0xff] }
 0x32b   :  { %5414 = vmatpush3.msra.mxu1 %v1395_v55  ;;  %5374 = vmatpush3.msra.mxu0 %v1361_v17  ;;  %v1391_v55 = vld [vmem:[#allocation15 + $0x108] sm:$0xff]  ;;  %v1406_v21 = vld [vmem:[#allocation15 + $0x180] sm:$0xff]  ;;  %v10276_v17 = vmov 0.0  }
 0x32c   :  { %5415 = vmatprep.subr.mxu1 %v1410_v48  ;;  %5375 = vmatprep.subr.mxu0 %v1376_v57  ;;  %v1390_v48 = vld [vmem:[#allocation15 + $0x100] sm:$0xff] }
 0x32d   :  { %5416 = vmatpush3.msra.mxu1 %v1394_v44  ;;  %5376 = vmatpush3.msra.mxu0 %v1360_v10  ;;  %v1612_v44 = vld [vmem:[%s9848_s16 + $0x78] sm:$0xff] }
 0x32e   :  { %5417 = vmatprep.subr.mxu1 %v1409_v14  ;;  %5377 = vmatprep.subr.mxu0 %v1375_v49  ;;  %v1134_v14 = vpop.permute.xlu1 %1133 }
 0x32f   :  { %5418 = vmatpush3.msra.mxu1 %v1393_v38  ;;  %5378 = vmatpush3.msra.mxu0 %v1359_v53 }
 0x330   :  { %5419 = vmatprep.subr.mxu1 %v1408_v27  ;;  %5379 = vmatprep.subr.mxu0 %v1374_v19 }
 0x331   :  { %5420 = vmatpush3.msra.mxu1 %v1392_v13  ;;  %5380 = vmatpush3.msra.mxu0 %v1358_v41 }
 0x332   :  { %5421 = vmatprep.subr.mxu1 %v1407_v28  ;;  %5765 = vmatprep.subr.mxu0 %v1612_v44  ;;  %v1139_v28 = vpop.permute.xlu0 %1138  ;;  %v1144_v45 = vpop.permute.xlu1 %1143 }
 0x333   :  { %5422 = vmatpush3.msra.mxu1 %v1391_v55 }
 0x334   :  { %5423 = vmatprep.subr.mxu1 %v1406_v21 }
 0x335   :  { %5424 = vmatpush3.msra.mxu1 %v1390_v48 }
 0x336   :  { %5803 = vmatprep.subr.mxu1 %v10276_v17 }
 0x3cc   :  { %v1230_v57 = vpop.f32.mrf.mxu0 }
 0x3cd   :  { %v1231_v10 = vadd.f32 %v1230_v57, %v1134_v14  ;;  %v1611_v57 = vld [vmem:[%s9848_s16 + $0x70] sm:$0xff] }
 0x3ce   :  { %v1232_v38 = vpop.f32.mrf.mxu0  ;;  %v1319_v49 = vpop.f32.mrf.mxu1 }
 0x3cf   :  { %v1233_v27 = vadd.f32 %v1232_v38, %v1134_v14  ;;  %v1320_v53 = vadd.f32 %v1319_v49, %v1134_v14  ;;  %v1342_v21 = vmax.f32 %v1231_v10, 0.0 }
 0x3d0   :  { %v1236_v13 = vpop.f32.mrf.mxu0  ;;  %v1321_v19 = vpop.f32.mrf.mxu1 }
 0x3d1   :  { %v1343_v41 = vmax.f32 %v1233_v27, 0.0  ;;  %v1322_v55 = vadd.f32 %v1321_v19, %v1134_v14  ;;  %v1237_v48 = vadd.f32 %v1236_v13, %v1139_v28  ;;  %v1344_v50 = vmax.f32 %v1320_v53, 0.0  ;;  %v1610_v14 = vld [vmem:[%s9848_s16 + $0x68] sm:$0xff] }
 0x3d2   :  { %v1238_v23 = vpop.f32.mrf.mxu0  ;;  %v1325_v35 = vpop.f32.mrf.mxu1 }
 0x3d3   :  { %v1345_v62 = vmax.f32 %v1322_v55, 0.0  ;;  %v1239_v1 = vadd.f32 %v1238_v23, %v1139_v28  ;;  %1486 = vmatprep.mubr.f32.mxu0 %v1343_v41  ;;  %v1326_v33 = vadd.f32 %v1325_v35, %v1139_v28  ;;  %v1346_v23 = vmax.f32 %v1237_v48, 0.0  ;;  %v1149_v55 = vpop.permute.xlu0 %1148 }
 0x3d4   :  { %v1242_v38 = vpop.f32.mrf.mxu0  ;;  %v1327_v49 = vpop.f32.mrf.mxu1  ;;  %1487 = vmatmul.mubr.f32.vlgmr.msra.gmra.mxu0 %v1342_v21 }
 0x3d5   :  { %v1347_v32 = vmax.f32 %v1239_v1, 0.0  ;;  %v1328_v27 = vadd.f32 %v1327_v49, %v1139_v28  ;;  %1571 = vmatprep.mubr.f32.mxu1 %v1345_v62  ;;  %5766 = vmatpush3.msra.mxu0 %v1612_v44  ;;  %v1243_v10 = vadd.f32 %v1242_v38, %v1144_v45  ;;  %v1609_v1 = vld [vmem:[%s9848_s16 + $0x60] sm:$0xff]  ;;  %v1348_v62 = vmax.f32 %v1326_v33, 0.0 }
 0x3d6   :  { %v1244_v13 = vpop.f32.mrf.mxu0  ;;  %v1331_v19 = vpop.f32.mrf.mxu1  ;;  %1572 = vmatmul.mubr.f32.vlgmr.msra.gmra.mxu1 %v1344_v50  ;;  %5767 = vmatprep.subr.mxu0 %v1611_v57 }
 0x3d7   :  { %v1349_v53 = vmax.f32 %v1328_v27, 0.0  ;;  %v1245_v35 = vadd.f32 %v1244_v13, %v1144_v45  ;;  %1491 = vmatprep.mubr.f32.mxu0 %v1347_v32  ;;  %5768 = vmatpush3.msra.mxu0 %v1611_v57  ;;  %v1332_v44 = vadd.f32 %v1331_v19, %v1144_v45  ;;  %v1608_v32 = vld [vmem:[%s9848_s16 + $0x58] sm:$0xff]  ;;  %v1350_v50 = vmax.f32 %v1243_v10, 0.0 }
 0x3d8   :  { %v1248_v28 = vpop.f32.mrf.mxu0  ;;  %v1333_v41 = vpop.f32.mrf.mxu1  ;;  %1492 = vmatmul.mubr.f32.gmra.mxu0 %v1346_v23  ;;  %5769 = vmatprep.subr.mxu0 %v1610_v14 }
 0x3d9   :  { %v1351_v21 = vmax.f32 %v1245_v35, 0.0  ;;  %v1334_v48 = vadd.f32 %v1333_v41, %v1144_v45  ;;  %1576 = vmatprep.mubr.f32.mxu1 %v1349_v53  ;;  %5770 = vmatpush3.msra.mxu0 %v1610_v14  ;;  %v1249_v57 = vadd.f32 %v1248_v28, %v1149_v55  ;;  %v1607_v45 = vld [vmem:[%s9848_s16 + $0x50] sm:$0xff]  ;;  %v1352_v23 = vmax.f32 %v1332_v44, 0.0  ;;  %v1606_v53 = vld [vmem:[%s9848_s16 + $0x48] sm:$0xff]  ;;  %v1604_v28 = vld [vmem:[%s9848_s16 + $0x38] sm:$0xff] }
 0x3da   :  { %v1250_v38 = vpop.f32.mrf.mxu0  ;;  %v1337_v49 = vpop.f32.mrf.mxu1  ;;  %1577 = vmatmul.mubr.f32.gmra.mxu1 %v1348_v62  ;;  %5771 = vmatprep.subr.mxu0 %v1609_v1  ;;  %v1605_v62 = vld [vmem:[%s9848_s16 + $0x40] sm:$0xff]  ;;  %v1603_v41 = vld [vmem:[%s9848_s16 + $0x30] sm:$0xff] }
 0x3db   :  { %v1353_v33 = vmax.f32 %v1334_v48, 0.0  ;;  %v1251_v27 = vadd.f32 %v1250_v38, %v1149_v55  ;;  %1496 = vmatprep.mubr.f32.mxu0 %v1351_v21  ;;  %5772 = vmatpush3.msra.mxu0 %v1609_v1  ;;  %v1338_v14 = vadd.f32 %v1337_v49, %v1149_v55  ;;  %v1354_v35 = vmax.f32 %v1249_v57, 0.0  ;;  %v1601_v21 = vld [vmem:[%s9848_s16 + $0x20] sm:$0xff]  ;;  %v1600_v48 = vld [vmem:[%s9848_s16 + $0x18] sm:$0xff] }
 0x3dc   :  { %v1339_v13 = vpop.f32.mrf.mxu1  ;;  %1497 = vmatmul.mubr.f32.gmra.mxu0 %v1350_v50  ;;  %5773 = vmatprep.subr.mxu0 %v1608_v32  ;;  %v1598_v50 = vld [vmem:[%s9848_s16 + $0x8] sm:$0xff]  ;;  %v1597_v57 = vld [vmem:[%s9848_s16] sm:$0xff] }
 0x3dd   :  { %v1355_v19 = vmax.f32 %v1251_v27, 0.0  ;;  %v1340_v10 = vadd.f32 %v1339_v13, %v1149_v55  ;;  %1581 = vmatprep.mubr.f32.mxu1 %v1353_v33  ;;  %5774 = vmatpush3.msra.mxu0 %v1608_v32  ;;  %v1356_v44 = vmax.f32 %v1338_v14, 0.0  ;;  %v1602_v55 = vld [vmem:[%s9848_s16 + $0x28] sm:$0xff]  ;;  %v1599_v32 = vld [vmem:[%s9848_s16 + $0x10] sm:$0xff] }
 0x3de   :  { %1582 = vmatmul.mubr.f32.gmra.mxu1 %v1352_v23  ;;  %5775 = vmatprep.subr.mxu0 %v1607_v45 }
 0x3df   :  { %v1357_v1 = vmax.f32 %v1340_v10, 0.0  ;;  %1501 = vmatprep.mubr.f32.mxu0 %v1355_v19  ;;  %5776 = vmatpush3.msra.mxu0 %v1607_v45 }
 0x3e0   :  { %1502 = vmatmul.mubr.f32.gmra.mxu0 %v1354_v35  ;;  %5777 = vmatprep.subr.mxu0 %v1606_v53 }
 0x3e1   :  { %1586 = vmatprep.mubr.f32.mxu1 %v1357_v1  ;;  %5778 = vmatpush3.msra.mxu0 %v1606_v53 }
 0x3e2   :  { %1587 = vmatmul.mubr.f32.gmra.mxu1 %v1356_v44  ;;  %5779 = vmatprep.subr.mxu0 %v1605_v62 }
 0x3e3   :  { %5780 = vmatpush3.msra.mxu0 %v1605_v62  ;;  %5811 = vmatprep.mubr.msk.f32.mxu1 %vm6387_vm3, %v10276_v17 }
 0x3e4   :  { %5781 = vmatprep.subr.mxu0 %v1604_v28 }
 0x3e5   :  { %5782 = vmatpush3.msra.mxu0 %v1604_v28 }
 0x3e6   :  { %5783 = vmatprep.subr.mxu0 %v1603_v41 }
 0x3e7   :  { %5784 = vmatpush3.msra.mxu0 %v1603_v41 }
 0x3e8   :  { %5785 = vmatprep.subr.mxu0 %v1602_v55 }
 0x3e9   :  { %5786 = vmatpush3.msra.mxu0 %v1602_v55 }
 0x3ea   :  { %5787 = vmatprep.subr.mxu0 %v1601_v21 }
 0x3eb   :  { %5788 = vmatpush3.msra.mxu0 %v1601_v21 }
 0x3ec   :  { %5789 = vmatprep.subr.mxu0 %v1600_v48 }
 0x3ed   :  { %5790 = vmatpush3.msra.mxu0 %v1600_v48 }
 0x3ee   :  { %5791 = vmatprep.subr.mxu0 %v1599_v32 }
 0x3ef   :  { %5792 = vmatpush3.msra.mxu0 %v1599_v32 }
 0x3f0   :  { %5793 = vmatprep.subr.mxu0 %v1598_v50 }
 0x3f1   :  { %5794 = vmatpush3.msra.mxu0 %v1598_v50 }
 0x3f2   :  { %5795 = vmatprep.subr.mxu0 %v1597_v57 }
 0x3f3   :  { %5796 = vmatpush3.msra.mxu0 %v1597_v57 }
 0x494   :  { %v5381_v38 = vpop.f32.mrf.mxu0 }
 0x496   :  { %v5382_v49 = vpop.f32.mrf.mxu0  ;;  %v5425_v33 = vpop.f32.mrf.mxu1 }
 0x497   :  { %v5383_v23 = vadd.f32 %v5382_v49, %v5381_v38 }
 0x498   :  { %v5384_v27 = vpop.f32.mrf.mxu0  ;;  %v5426_v45 = vpop.f32.mrf.mxu1 }
 0x499   :  { %v5427_v14 = vadd.f32 %v5426_v45, %v5425_v33 }
 0x49a   :  { %v5385_v13 = vpop.f32.mrf.mxu0  ;;  %v5428_v19 = vpop.f32.mrf.mxu1 }
 0x49b   :  { %v7712_v10 = vadd.f32 %v5427_v14, %v5383_v23  ;;  %v5386_v1 = vadd.f32 %v5385_v13, %v5384_v27 }
 0x49c   :  { %v5387_v53 = vpop.f32.mrf.mxu0  ;;  %v5429_v35 = vpop.f32.mrf.mxu1 }
 0x49d   :  { %v5430_v62 = vadd.f32 %v5429_v35, %v5428_v19  ;;  %5797 = vmatprep.mubr.f32.mxu0 %v7712_v10  ;;  %v1779_v35 = vld [vmem:[#allocation10] sm:$0xff] }
 0x49e   :  { %v5388_v44 = vpop.f32.mrf.mxu0  ;;  %v5431_v28 = vpop.f32.mrf.mxu1 }
 0x49f   :  { %v7715_v41 = vadd.f32 %v5430_v62, %v5386_v1  ;;  %v5389_v48 = vadd.f32 %v5388_v44, %v5387_v53  ;;  %v1698_v53 = vld [vmem:[%s9839_s7] sm:$0xff]  ;;  %v1702_v1 = vpop.permute.xlu1 %1701  ;;  %s6388_s7 = smov 120  }
 0x4a0   :  { %v5390_v55 = vpop.f32.mrf.mxu0  ;;  %v5432_v21 = vpop.f32.mrf.mxu1 }
 0x4a1   :  { %v5433_v32 = vadd.f32 %v5432_v21, %v5431_v28  ;;  %5798 = vmatmul.mubr.f32.vlgmr.msra.gmra.mxu0 %v7715_v41  ;;  %v1780_v21 = vld [vmem:[#allocation10 + $0x8] sm:$0xff] }
 0x4a2   :  { %v5391_v50 = vpop.f32.mrf.mxu0  ;;  %v5434_v57 = vpop.f32.mrf.mxu1 }
 0x4a3   :  { %v7718_v38 = vadd.f32 %v5433_v32, %v5389_v48  ;;  %v5392_v33 = vadd.f32 %v5391_v50, %v5390_v55  ;;  %v1781_v48 = vld [vmem:[#allocation10 + $0x10] sm:$0xff]  ;;  %v1782_v32 = vld [vmem:[#allocation10 + $0x18] sm:$0xff]  ;;  %v1925_v50 = vld [vmem:[#allocation19] sm:$0x3] }
 0x4a4   :  { %v5435_v49 = vpop.f32.mrf.mxu1 }
 0x4a5   :  { %v5436_v27 = vadd.f32 %v5435_v49, %v5434_v57  ;;  %5800 = vmatprep.mubr.f32.mxu0 %v7718_v38  ;;  %v1791_v57 = vpop.permute.xlu1 %1790  ;;  %v1786_v49 = vpop.permute.xlu0 %1785 }
 0x4a7   :  { %v7721_v45 = vadd.f32 %v5436_v27, %v5392_v33 }
 0x4a9   :  { %5801 = vmatmul.mubr.f32.gmra.mxu0 %v7721_v45 }
 0x561   :  { %v5799_v23 = vpop.f32.mrf.mxu0 }
 0x563   :  { %v1679_v14 = vpop.f32.mrf.mxu0 }
 0x569   :  { %v5802_v13 = vpop.f32.mrf.mxu0 }
 0x56a   :  { %5804 = vmatpush3.msra.mxu1 %v5802_v13 }
 0x56b   :  { %v1689_v19 = vpop.f32.mrf.mxu0  ;;  %5805 = vmatprep.subr.mxu1 %v10276_v17 }
 0x56c   :  { %5806 = vmatpush3.msra.mxu1 %v1689_v19  ;;  %v1801_v19 = vpop.permute.xlu1 %1800 }
 0x56d   :  { %5807 = vmatprep.subr.mxu1 %v10276_v17 }
 0x56e   :  { %5808 = vmatpush3.msra.mxu1 %v5799_v23 }
 0x56f   :  { %5809 = vmatprep.subr.mxu1 %v10276_v17 }
 0x570   :  { %5810 = vmatpush3.msra.mxu1 %v1679_v14 }
 0x571   :  { %5812 = vmatmul.mubr.msk.f32.vlgmr.msra.gmra.mxu1 %vm1704_vm7, %v1698_v53 }
 0x572   :  { %5816 = vmatprep.mubr.msk.f32.mxu1 %vm1803_vm12, %v1779_v35 }
 0x631   :  { %v1774_v62 = vpop.f32.mrf.mxu1 }
 0x632   :  { %v1775_v44 = vadd.f32 %v1774_v62, %v1702_v1  ;;  %v1796_v62 = vpop.permute.xlu0 %1795 }
 0x633   :  { %v5813_v28 = vpop.f32.mrf.mxu1 }
 0x634   :  { %v1778_v55 = vmax.f32 %v1775_v44, 0.0 }
 0x636   :  { %5814 = vmatprep.subr.mxu1 %v1778_v55 }
 0x637   :  { %5815 = vmatpush3.msra.mxu1 %v1778_v55 }
 0x638   :  { %5817 = vmatmul.mubr.msk.f32.vlgmr.msra.gmra.mxu1 %vm1803_vm12, %v1780_v21  ;;  %5822 = vmatprep.subr.msk.mxu1 %vm1939_vm6, %v1925_v50 }
 0x639   :  { %5819 = vmatprep.mubr.msk.f32.mxu1 %vm1803_vm12, %v1781_v48  ;;  %5823 = vmatpush3.msk.msra.mxu1 %vm1939_vm6, %v1925_v50 }
 0x63c   :  { %5820 = vmatmul.mubr.msk.f32.gmra.mxu1 %vm1803_vm12, %v1782_v32 }
 0x6f8   :  { %v5818_v33 = vpop.f32.mrf.mxu1 }
 0x6f9   :  { %v1888_v27 = vadd.f32 %v5818_v33, %v1791_v57 }
 0x6fa   :  { %v1882_v23 = vpop.f32.mrf.mxu1 }
 0x6fb   :  { %v5272_v14 = vmul.f32 -1.442695, %v1888_v27  ;;  %v1883_v13 = vadd.f32 %v1882_v23, %v1786_v49 }
 0x6fc   :  { %v5821_v53 = vpop.f32.mrf.mxu1 }
 0x6fd   :  { %6052 = vpow2.f32 %v5272_v14  ;;  %v5271_v35 = vmul.f32 -1.442695, %v1883_v13  ;;  %v1898_v1 = vadd.f32 %v5821_v53, %v1801_v19 }
 0x6fe   :  { %v1892_v44 = vpop.f32.mrf.mxu1 }
 0x6ff   :  { %6054 = vpow2.f32 %v5271_v35  ;;  %v5274_v28 = vmul.f32 -1.442695, %v1898_v1  ;;  %v1893_v55 = vadd.f32 %v1892_v44, %v1796_v62 }
 0x701   :  { %6056 = vpow2.f32 %v5274_v28  ;;  %v5273_v21 = vmul.f32 -1.442695, %v1893_v55 }
 0x703   :  { %6058 = vpow2.f32 %v5273_v21  ;;  %v2204_v21 = vld [vmem:[#allocation13 + $0x38] sm:$0xff] }
 0x70a   :  { %v6053_v48 = vpop.eup %6052 }
 0x70b   :  { %v1914_v50 = vadd.f32 1.0, %v6053_v48  ;;  %v2203_v48 = vld [vmem:[#allocation13 + $0x30] sm:$0xff] }
 0x70c   :  { %v6055_v32 = vpop.eup %6054 }
 0x70d   :  { %v1913_v57 = vadd.f32 1.0, %v6055_v32  ;;  %v2206_v32 = vld [vmem:[#allocation13 + $0x48] sm:$0xff] }
 0x70e   :  { %v6057_v33 = vpop.eup %6056 }
 0x70f   :  { %6060 = vrcp.f32 %v1913_v57  ;;  %v1916_v27 = vadd.f32 1.0, %v6057_v33  ;;  %v2208_v57 = vld [vmem:[#allocation13 + $0x58] sm:$0xff]  ;;  %v2207_v33 = vld [vmem:[#allocation13 + $0x50] sm:$0xff] }
 0x710   :  { %v6059_v49 = vpop.eup %6058  ;;  %6062 = vrcp.f32 %v1914_v50  ;;  %v2205_v50 = vld [vmem:[#allocation13 + $0x40] sm:$0xff] }
 0x711   :  { %v1915_v23 = vadd.f32 1.0, %v6059_v49  ;;  %v2210_v49 = vld [vmem:[#allocation13 + $0x68] sm:$0xff] }
 0x713   :  { %6064 = vrcp.f32 %v1915_v23  ;;  %v2614_v23 = vld [vmem:[#allocation13 + $0xc8] sm:$0xff] }
 0x714   :  { %6066 = vrcp.f32 %v1916_v27  ;;  %v2209_v27 = vld [vmem:[#allocation13 + $0x60] sm:$0xff] }
 0x71c   :  { %v6061_v14 = vpop.eup %6060 }
 0x71d   :  { %v6063_v13 = vpop.eup %6062  ;;  %5824 = vmatprep.mubr.msk.f32.mxu1 %vm1926_vm2, %v6061_v14  ;;  %v2615_v14 = vld [vmem:[#allocation13 + $0xd0] sm:$0xff] }
 0x71e   :  { %5825 = vmatmul.mubr.msk.f32.vlgmr.msra.gmra.mxu1 %vm1926_vm2, %v6063_v13  ;;  %v2617_v13 = vld [vmem:[#allocation13 + $0xe0] sm:$0xff] }
 0x720   :  { %v6065_v19 = vpop.eup %6064 }
 0x721   :  { %v6067_v53 = vpop.eup %6066  ;;  %5827 = vmatprep.mubr.msk.f32.mxu1 %vm1926_vm2, %v6065_v19  ;;  %v2616_v19 = vld [vmem:[#allocation13 + $0xd8] sm:$0xff] }
 0x722   :  { %5828 = vmatmul.mubr.msk.f32.gmra.mxu1 %vm1926_vm2, %v6067_v53  ;;  %v2619_v53 = vld [vmem:[#allocation13 + $0xf0] sm:$0xff] }
 0x7de   :  { %v5826_v35 = vpop.f32.mrf.mxu1 }
 0x7df   :  { %v7739_v1 = vmul.f32 %v5826_v35, %v7715_v41  ;;  %v2618_v35 = vld [vmem:[#allocation13 + $0xe8] sm:$0xff] }
 0x7e0   :  { %v2009_v62 = vpop.f32.mrf.mxu1 }
 0x7e1   :  { %2094 = vrot.lane.b32.xlu1 %v7739_v1, %s6383_s20  ;;  %2149 = vrot.lane.b32.xlu0 %v7739_v1, %s6388_s7  ;;  %v7750_v44 = vmul.f32 %v2009_v62, %v7712_v10  ;;  %v2621_v62 = vld [vmem:[#allocation13 + $0x100] sm:$0xff] }
 0x7e2   :  { %v5829_v41 = vpop.f32.mrf.mxu1 }
 0x7e3   :  { %v7761_v28 = vmul.f32 %v5829_v41, %v7721_v45  ;;  %v2181_v45 = vld [vmem:[#allocation6 + $0x10] sm:$0xff]  ;;  %v2620_v41 = vld [vmem:[#allocation13 + $0xf8] sm:$0xff] }
 0x7e4   :  { %v2019_v10 = vpop.f32.mrf.mxu1  ;;  %5838 = vmatprep.mubr.msk.f32.mxu0 %vm1704_vm7, %v2181_v45 }
 0x7e5   :  { %2075 = vrot.lane.b32.xlu1 %v7739_v1, %s6389_s12  ;;  %2129 = vrot.lane.b32.xlu0 %v7739_v1, %s6390_s24  ;;  %v7772_v55 = vmul.f32 %v2019_v10, %v7718_v38  ;;  %v2180_v38 = vld [vmem:[#allocation6 + $0x8] sm:$0xff]  ;;  %v2623_v10 = vld [vmem:[#allocation13 + $0x110] sm:$0xff] }
 0x7e6   :  { %2339 = vmatprep.mubr.f32.mxu1 %v2180_v38  ;;  %v2622_v38 = vld [vmem:[#allocation13 + $0x108] sm:$0xff] }
 0x7e9   :  { %2092 = vrot.lane.b32.xlu1 %v7750_v44, %s6383_s20  ;;  %2147 = vrot.lane.b32.xlu0 %v7750_v44, %s6388_s7 }
 0x7ed   :  { %2073 = vrot.lane.b32.xlu1 %v7750_v44, %s6389_s12  ;;  %2127 = vrot.lane.b32.xlu0 %v7750_v44, %s6390_s24 }
 0x7f1   :  { %2098 = vrot.lane.b32.xlu1 %v7761_v28, %s6383_s20  ;;  %2153 = vrot.lane.b32.xlu0 %v7761_v28, %s6388_s7 }
 0x7f5   :  { %2079 = vrot.lane.b32.xlu1 %v7761_v28, %s6389_s12  ;;  %2133 = vrot.lane.b32.xlu0 %v7761_v28, %s6390_s24 }
 0x7f9   :  { %2096 = vrot.lane.b32.xlu1 %v7772_v55, %s6383_s20  ;;  %2151 = vrot.lane.b32.xlu0 %v7772_v55, %s6388_s7 }
 0x7fd   :  { %2061 = vrot.lane.b32.xlu1 %v7761_v28, %s6365_s26  ;;  %2117 = vrot.lane.b32.xlu0 %v7761_v28, %s6382_s8 }
 0x801   :  { %2077 = vrot.lane.b32.xlu1 %v7772_v55, %s6389_s12  ;;  %2131 = vrot.lane.b32.xlu0 %v7772_v55, %s6390_s24 }
 0x805   :  { %2057 = vrot.lane.b32.xlu1 %v7739_v1, %s6365_s26  ;;  %2113 = vrot.lane.b32.xlu0 %v7739_v1, %s6382_s8 }
 0x809   :  { %2059 = vrot.lane.b32.xlu1 %v7772_v55, %s6365_s26  ;;  %2115 = vrot.lane.b32.xlu0 %v7772_v55, %s6382_s8 }
 0x80d   :  { %2055 = vrot.lane.b32.xlu1 %v7750_v44, %s6365_s26  ;;  %2111 = vrot.lane.b32.xlu0 %v7750_v44, %s6382_s8 }
 0x811   :  { %2036 = vrot.lane.b32.xlu1 %v7772_v55, %s6391_s27  ;;  %2038 = vrot.lane.b32.xlu0 %v7761_v28, %s6391_s27 }
 0x815   :  { %2032 = vrot.lane.b32.xlu1 %v7750_v44, %s6391_s27  ;;  %2034 = vrot.lane.b32.xlu0 %v7739_v1, %s6391_s27 }
 0x819   :  { %2167 = vrot.lane.b32.xlu1 %v7772_v55, %s6392_s14  ;;  %2169 = vrot.lane.b32.xlu0 %v7761_v28, %s6392_s14 }
 0x81d   :  { %2163 = vrot.lane.b32.xlu1 %v7750_v44, %s6392_s14  ;;  %2165 = vrot.lane.b32.xlu0 %v7739_v1, %s6392_s14 }
 0x821   :  { %2218 = vperm.xlu1 %6051, %v2204_v21   ;;  %2213 = vperm.xlu0 %6050, %v2203_v48   ;;  %v325_v48 = vshrl.u32 %v6642_v9, 3 }
 0x825   :  { %2228 = vperm.xlu1 %6051, %v2206_v32   ;;  %2223 = vperm.xlu0 %6050, %v2205_v50  }
 0x829   :  { %2238 = vperm.xlu1 %6051, %v2208_v57   ;;  %2233 = vperm.xlu0 %6050, %v2207_v33   ;;  %v319_v57 = vand.u32 7, %v6642_v9  ;;  %v333_v33 = vand.u32 7, %v325_v48 }
 0x82b   :  { %v2040_v25 = vadd.s32 4294967295, %v333_v33  ;;  %v7841_v63 = vadd.s32 1, %v319_v57 }
 0x82d   :  { %2248 = vperm.xlu1 %6051, %v2210_v49   ;;  %2243 = vperm.xlu0 %6050, %v2209_v27   ;;  %vm2041_vm1 = vcmp.ge.s32.totalorder %v2040_v25, 0  ;;  %vm2084_vm13 = vcmp.lt.s32.totalorder %v7841_v63, 8  ;;  %v2179_v63 = vld [vmem:[#allocation6] sm:$0xff] }
 0x82e   :  { %vm2085_vm9 = vmand %vm2041_vm1, %vm2084_vm13 }
 0x831   :  { %2761 = vperm.xlu1 %6051, %v2614_v23   ;;  %2766 = vperm.xlu0 %6050, %v2615_v14   ;;  %v7817_v23 = vadd.s32 4294967295, %v319_v57  ;;  %v7819_v14 = vadd.s32 1, %v333_v33 }
 0x833   :  { %vm2045_vm15 = vcmp.ge.s32.totalorder %v7817_v23, 0  ;;  %vm2137_vm10 = vcmp.lt.s32.totalorder %v7819_v14, 8 }
 0x834   :  { %vm2139_vm5 = vmand %vm2137_vm10, %vm2045_vm15 }
 0x835   :  { %2868 = vperm.xlu1 %6051, %v2617_v13   ;;  %2863 = vperm.xlu0 %6050, %v2616_v19   ;;  %v7870_v33 = vsel %vm2139_vm5, 1.0, %v10276_v17  ;;  %vm2046_vm3 = vmand %vm2041_vm1, %vm2045_vm15 }
 0x836   :  { %v7956_v25 = vsel %vm2046_vm3, 1.0, %v10276_v17  ;;  %vm2172_vm12 = vmand %vm2137_vm10, %vm2084_vm13 }
 0x839   :  { %2878 = vperm.xlu1 %6051, %v2619_v53   ;;  %2873 = vperm.xlu0 %6050, %v2618_v35   ;;  %v7826_v53 = vsel %vm2045_vm15, 1.0, %v10276_v17  ;;  %v7831_v35 = vsel %vm2137_vm10, 1.0, %v10276_v17  ;;  %vm2769_vm15 = vcmask 523264  }
 0x83d   :  { %2888 = vperm.xlu1 %6051, %v2621_v62   ;;  %2883 = vperm.xlu0 %6050, %v2620_v41  }
 0x841   :  { %2898 = vperm.xlu1 %6051, %v2623_v10   ;;  %2893 = vperm.xlu0 %6050, %v2622_v38  }
 0x853   :  { %v2095_v45 = vpop.permute.xlu1 %2094  ;;  %v2150_v21 = vpop.permute.xlu0 %2149 }
 0x854   :  { %v7851_v39 = vmul.f32 %v7831_v35, %v2150_v21  ;;  %v7859_v57 = vmul.f32 %v7826_v53, %v2095_v45  ;;  %v7877_v45 = vsel %vm2085_vm9, 1.0, %v10276_v17 }
 0x857   :  { %v2076_v32 = vpop.permute.xlu1 %2075  ;;  %v2130_v50 = vpop.permute.xlu0 %2129 }
 0x85b   :  { %v2093_v49 = vpop.permute.xlu1 %2092  ;;  %v2148_v27 = vpop.permute.xlu0 %2147 }
 0x85c   :  { %v7866_v21 = vmul.f32 %v7831_v35, %v2148_v27  ;;  %v7873_v18 = vmul.f32 %v7826_v53, %v2093_v49 }
 0x85f   :  { %v2074_v13 = vpop.permute.xlu1 %2073  ;;  %v2128_v19 = vpop.permute.xlu0 %2127 }
 0x860   :  { %v7909_v6 = vmul.f32 %v7870_v33, %v2128_v19 }
 0x862   :  { %10281 = vst [vmem:[#allocation134_spill] sm:$0xff] %v7909_v6 }
 0x863   :  { %v2099_v62 = vpop.permute.xlu1 %2098  ;;  %v2154_v41 = vpop.permute.xlu0 %2153 }
 0x864   :  { %v7834_v10 = vmul.f32 %v7826_v53, %v2099_v62  ;;  %v7837_v38 = vmul.f32 %v7831_v35, %v2154_v41 }
 0x866   :  { %5472 = vmatprep.subr.mxu1 %v7837_v38 }
 0x867   :  { %v2080_v48 = vpop.permute.xlu1 %2079  ;;  %5473 = vmatpush3.msra.mxu1 %v7834_v10  ;;  %v2134_v51 = vpop.permute.xlu0 %2133 }
 0x868   :  { %v7880_v16 = vmul.f32 %v7870_v33, %v2134_v51  ;;  %v7884_v27 = vmul.f32 %v7877_v45, %v2080_v48  ;;  %v7896_v51 = vmul.f32 %v7870_v33, %v2130_v50  ;;  %v7900_v48 = vmul.f32 %v7877_v45, %v2076_v32 }
 0x869   :  { %v7913_v50 = vsel %vm2041_vm1, 1.0, %v10276_v17  ;;  %v7917_v32 = vmul.f32 %v7877_v45, %v2074_v13 }
 0x86a   :  { %10277 = vst [vmem:[#allocation130_spill] sm:$0xff] %v7880_v16  ;;  %10279 = vst [vmem:[#allocation132_spill] sm:$0xff] %v7896_v51 }
 0x86b   :  { %v2097_v7 = vpop.permute.xlu1 %2096  ;;  %v2152_v42 = vpop.permute.xlu0 %2151  ;;  %10282 = vst [vmem:[#allocation135_spill] sm:$0xff] %v7917_v32 }
 0x86c   :  { %v7845_v62 = vmul.f32 %v7826_v53, %v2097_v7  ;;  %v7848_v41 = vmul.f32 %v7831_v35, %v2152_v42 }
 0x86e   :  { %5474 = vmatprep.subr.mxu1 %v7848_v41 }
 0x86f   :  { %v2062_v7 = vpop.permute.xlu1 %2061  ;;  %5475 = vmatpush3.msra.mxu1 %v7845_v62  ;;  %v2118_v42 = vpop.permute.xlu0 %2117 }
 0x870   :  { %5476 = vmatprep.subr.mxu1 %v7851_v39  ;;  %v7925_v40 = vmul.f32 %v7913_v50, %v2062_v7 }
 0x871   :  { %5477 = vmatpush3.msra.mxu1 %v7859_v57 }
 0x872   :  { %5478 = vmatprep.subr.mxu1 %v7866_v21 }
 0x873   :  { %v2078_v22 = vpop.permute.xlu1 %2077  ;;  %5479 = vmatpush3.msra.mxu1 %v7873_v18  ;;  %v2132_v46 = vpop.permute.xlu0 %2131 }
 0x874   :  { %v7888_v49 = vmul.f32 %v7877_v45, %v2078_v22  ;;  %v7891_v5 = vmul.f32 %v7870_v33, %v2132_v46  ;;  %5480 = vmatprep.subr.mxu1 %v7880_v16  ;;  %v7905_v22 = vsel %vm2084_vm13, 1.0, %v10276_v17 }
 0x875   :  { %5481 = vmatpush3.msra.mxu1 %v7884_v27  ;;  %10280 = vst [vmem:[#allocation133_spill] sm:$0xff] %v7905_v22  ;;  %v7921_v61 = vmul.f32 %v7905_v22, %v2118_v42 }
 0x876   :  { %10278 = vst [vmem:[#allocation131_spill] sm:$0xff] %v7891_v5  ;;  %5482 = vmatprep.subr.mxu1 %v7891_v5 }
 0x877   :  { %v2058_v43 = vpop.permute.xlu1 %2057  ;;  %5483 = vmatpush3.msra.mxu1 %v7888_v49  ;;  %v2114_v46 = vpop.permute.xlu0 %2113  ;;  %10283 = vst [vmem:[#allocation136_spill] sm:$0xff] %v7921_v61 }
 0x878   :  { %5484 = vmatprep.subr.mxu1 %v7896_v51  ;;  %v7937_v42 = vmul.f32 %v7905_v22, %v2114_v46  ;;  %v7944_v7 = vmul.f32 %v7913_v50, %v2058_v43 }
 0x879   :  { %5485 = vmatpush3.msra.mxu1 %v7900_v48 }
 0x87a   :  { %5486 = vmatprep.subr.mxu1 %v7909_v6  ;;  %10285 = vst [vmem:[#allocation138_spill] sm:$0xff] %v7937_v42 }
 0x87b   :  { %v2060_v19 = vpop.permute.xlu1 %2059  ;;  %5487 = vmatpush3.msra.mxu1 %v7917_v32  ;;  %v2116_v37 = vpop.permute.xlu0 %2115 }
 0x87c   :  { %v7929_v34 = vmul.f32 %v7913_v50, %v2060_v19  ;;  %v7932_v13 = vmul.f32 %v7905_v22, %v2116_v37  ;;  %5488 = vmatprep.subr.mxu1 %v7921_v61 }
 0x87d   :  { %5489 = vmatpush3.msra.mxu1 %v7925_v40 }
 0x87e   :  { %10284 = vst [vmem:[#allocation137_spill] sm:$0xff] %v7932_v13  ;;  %5490 = vmatprep.subr.mxu1 %v7932_v13 }
 0x87f   :  { %v2056_v19 = vpop.permute.xlu1 %2055  ;;  %5491 = vmatpush3.msra.mxu1 %v7929_v34  ;;  %v2112_v37 = vpop.permute.xlu0 %2111 }
 0x880   :  { %v7948_v52 = vmul.f32 %v7913_v50, %v2056_v19  ;;  %v7951_v58 = vmul.f32 %v7905_v22, %v2112_v37  ;;  %5492 = vmatprep.subr.mxu1 %v7937_v42 }
 0x881   :  { %5493 = vmatpush3.msra.mxu1 %v7944_v7 }
 0x882   :  { %10286 = vst [vmem:[#allocation139_spill] sm:$0xff] %v7951_v58  ;;  %5494 = vmatprep.subr.mxu1 %v7951_v58 }
 0x883   :  { %v2037_v43 = vpop.permute.xlu1 %2036  ;;  %5495 = vmatpush3.msra.mxu1 %v7948_v52  ;;  %v2039_v23 = vpop.permute.xlu0 %2038 }
 0x884   :  { %v7961_v46 = vmul.f32 %v7956_v25, %v2039_v23  ;;  %5496 = vmatprep.subr.mxu1 %v7761_v28  ;;  %v7965_v19 = vmul.f32 %v7956_v25, %v2037_v43  ;;  %v7979_v43 = vsel %vm2172_vm12, 1.0, %v10276_v17 }
 0x885   :  { %10287 = vst [vmem:[#allocation140_spill] sm:$0xff] %v7979_v43 }
 0x886   :  { %5497 = vmatpush3.msra.mxu1 %v7961_v46 }
 0x887   :  { %v2033_v37 = vpop.permute.xlu1 %2032  ;;  %5498 = vmatprep.subr.mxu1 %v7772_v55  ;;  %v2035_v56 = vpop.permute.xlu0 %2034 }
 0x888   :  { %v7974_v8 = vmul.f32 %v7956_v25, %v2035_v56  ;;  %5499 = vmatpush3.msra.mxu1 %v7965_v19  ;;  %v7982_v23 = vmul.f32 %v7956_v25, %v2033_v37  ;;  %v2182_v37 = vld [vmem:[#allocation6 + $0x18] sm:$0xff] }
 0x889   :  { %5500 = vmatprep.subr.mxu1 %v7739_v1 }
 0x88a   :  { %5501 = vmatpush3.msra.mxu1 %v7974_v8 }
 0x88b   :  { %v2168_v14 = vpop.permute.xlu1 %2167  ;;  %5502 = vmatprep.subr.mxu1 %v7750_v44  ;;  %v2170_v12 = vpop.permute.xlu0 %2169 }
 0x88c   :  { %v7987_v56 = vmul.f32 %v7979_v43, %v2170_v12  ;;  %5503 = vmatpush3.msra.mxu1 %v7982_v23  ;;  %v7991_v20 = vmul.f32 %v7979_v43, %v2168_v14  ;;  %v2189_v14 = vld [vmem:[#allocation6 + $0x50] sm:$0xff] }
 0x88d   :  { %2340 = vmatmul.mubr.f32.vlgmr.msra.gmra.mxu1 %v2179_v63  ;;  %v2184_v63 = vld [vmem:[#allocation6 + $0x28] sm:$0xff] }
 0x88e   :  { %10288 = vst [vmem:[#allocation141_spill] sm:$0xff] %v7987_v56  ;;  %10289 = vst [vmem:[#allocation142_spill] sm:$0xff] %v7991_v20  ;;  %5830 = vmatprep.subr.mxu0 %v7987_v56  ;;  %2344 = vmatprep.mubr.f32.mxu1 %v2183_v11  ;;  %v2185_v11 = vld [vmem:[#allocation6 + $0x30] sm:$0xff] }
 0x88f   :  { %v2164_v3 = vpop.permute.xlu1 %2163  ;;  %5831 = vmatpush3.msra.mxu0 %v7987_v56  ;;  %v2166_v47 = vpop.permute.xlu0 %2165 }
 0x890   :  { %v7996_v4 = vmul.f32 %v7979_v43, %v2166_v47  ;;  %5832 = vmatprep.subr.mxu0 %v7991_v20  ;;  %v8001_v12 = vmul.f32 %v7979_v43, %v2164_v3  ;;  %v2187_v47 = vld [vmem:[#allocation6 + $0x40] sm:$0xff]  ;;  %v2188_v3 = vld [vmem:[#allocation6 + $0x48] sm:$0xff] }
 0x891   :  { %2345 = vmatmul.mubr.f32.gmra.mxu1 %v2182_v37  ;;  %5833 = vmatpush3.msra.mxu0 %v7991_v20  ;;  %v2507_v37 = vld [vmem:[#allocation16 + $0x70] sm:$0xff] }
 0x892   :  { %10290 = vst [vmem:[#allocation143_spill] sm:$0xff] %v7996_v4  ;;  %10291 = vst [vmem:[#allocation144_spill] sm:$0xff] %v8001_v12  ;;  %5834 = vmatprep.subr.mxu0 %v7996_v4  ;;  %2349 = vmatprep.mubr.f32.mxu1 %v2186_v2  ;;  %v2190_v2 = vld [vmem:[#allocation6 + $0x58] sm:$0xff] }
 0x893   :  { %5835 = vmatpush3.msra.mxu0 %v7996_v4 }
 0x894   :  { %5836 = vmatprep.subr.mxu0 %v8001_v12 }
 0x895   :  { %2350 = vmatmul.mubr.f32.gmra.mxu1 %v2185_v11  ;;  %5837 = vmatpush3.msra.mxu0 %v8001_v12  ;;  %v2191_v11 = vld [vmem:[#allocation6 + $0x60] sm:$0xff] }
 0x896   :  { %5839 = vmatmul.mubr.msk.f32.vlgmr.msra.gmra.mxu0 %vm1704_vm7, %v2184_v63  ;;  %2354 = vmatprep.mubr.f32.mxu1 %v2189_v14  ;;  %v2196_v63 = vld [vmem:[#allocation6 + $0x88] sm:$0xff]  ;;  %v2199_v14 = vld [vmem:[#allocation6 + $0xa0] sm:$0xff] }
 0x897   :  { %5841 = vmatprep.mubr.msk.f32.mxu0 %vm1704_vm7, %v2187_v47  ;;  %5850 = vmatprep.subr.mxu0 %v2508_v59  ;;  %v2505_v47 = vld [vmem:[#allocation16 + $0x60] sm:$0xff] }
 0x898   :  { %5851 = vmatpush3.msra.mxu0 %v2508_v59  ;;  %v2504_v59 = vld [vmem:[#allocation16 + $0x58] sm:$0xff] }
 0x899   :  { %2355 = vmatmul.mubr.f32.gmra.mxu1 %v2188_v3  ;;  %5852 = vmatprep.subr.mxu0 %v2507_v37  ;;  %v2198_v3 = vld [vmem:[#allocation6 + $0x98] sm:$0xff] }
 0x89a   :  { %5842 = vmatmul.mubr.msk.f32.gmra.mxu0 %vm1704_vm7, %v2190_v2  ;;  %2359 = vmatprep.mubr.f32.mxu1 %v2192_v30  ;;  %v2202_v30 = vld [vmem:[#allocation6 + $0xb8] sm:$0xff]  ;;  %v2201_v2 = vld [vmem:[#allocation6 + $0xb0] sm:$0xff] }
 0x89b   :  { %5844 = vmatprep.mubr.msk.f32.mxu0 %vm1704_vm7, %v2193_v29  ;;  %5853 = vmatpush3.msra.mxu0 %v2507_v37  ;;  %v2503_v29 = vld [vmem:[#allocation16 + $0x50] sm:$0xff] }
 0x89c   :  { %5854 = vmatprep.subr.mxu0 %v2506_v31  ;;  %v2197_v37 = vld [vmem:[#allocation6 + $0x90] sm:$0xff] }
 0x89d   :  { %2360 = vmatmul.mubr.f32.gmra.mxu1 %v2191_v11  ;;  %5855 = vmatpush3.msra.mxu0 %v2506_v31  ;;  %v2501_v31 = vld [vmem:[#allocation16 + $0x40] sm:$0xff]  ;;  %v2200_v11 = vld [vmem:[#allocation6 + $0xa8] sm:$0xff] }
 0x89e   :  { %2364 = vmatprep.mubr.f32.mxu1 %v2195_v26  ;;  %5845 = vmatmul.mubr.msk.f32.gmra.mxu0 %vm1704_vm7, %v2196_v63  ;;  %v2502_v26 = vld [vmem:[#allocation16 + $0x48] sm:$0xff]  ;;  %v2499_v63 = vld [vmem:[#allocation16 + $0x30] sm:$0xff] }
 0x89f   :  { %5847 = vmatprep.mubr.msk.f32.mxu0 %vm1704_vm7, %v2199_v14  ;;  %5856 = vmatprep.subr.mxu0 %v2505_v47  ;;  %v2498_v14 = vld [vmem:[#allocation16 + $0x28] sm:$0xff] }
 0x8a0   :  { %5857 = vmatpush3.msra.mxu0 %v2505_v47  ;;  %v2497_v47 = vld [vmem:[#allocation16 + $0x20] sm:$0xff] }
 0x8a1   :  { %2365 = vmatmul.mubr.f32.gmra.mxu1 %v2194_v54  ;;  %5858 = vmatprep.subr.mxu0 %v2504_v59  ;;  %v2500_v54 = vld [vmem:[#allocation16 + $0x38] sm:$0xff] }
 0x8a2   :  { %2369 = vmatprep.mubr.f32.mxu1 %v2198_v3  ;;  %5848 = vmatmul.mubr.msk.f32.gmra.mxu0 %vm1704_vm7, %v2202_v30  ;;  %v2495_v3 = vld [vmem:[#allocation16 + $0x10] sm:$0xff]  ;;  %v2494_v30 = vld [vmem:[#allocation16 + $0x8] sm:$0xff] }
 0x8a3   :  { %5859 = vmatpush3.msra.mxu0 %v2504_v59  ;;  %v2496_v59 = vld [vmem:[#allocation16 + $0x18] sm:$0xff] }
 0x8a4   :  { %5860 = vmatprep.subr.mxu0 %v2503_v29 }
 0x8a5   :  { %2370 = vmatmul.mubr.f32.gmra.mxu1 %v2197_v37  ;;  %5861 = vmatpush3.msra.mxu0 %v2503_v29  ;;  %v2493_v29 = vld [vmem:[#allocation16] sm:$0xff]  ;;  %v2627_v37 = vld [vmem:[%s9850_s18 + $0x18] sm:$0xff] }
 0x8a6   :  { %2374 = vmatprep.mubr.f32.mxu1 %v2201_v2  ;;  %5862 = vmatprep.subr.mxu0 %v2502_v26 }
 0x8a7   :  { %5863 = vmatpush3.msra.mxu0 %v2502_v26 }
 0x8a8   :  { %5864 = vmatprep.subr.mxu0 %v2501_v31 }
 0x8a9   :  { %2375 = vmatmul.mubr.f32.gmra.mxu1 %v2200_v11  ;;  %5865 = vmatpush3.msra.mxu0 %v2501_v31  ;;  %v2214_v11 = vpop.permute.xlu0 %2213 }
 0x8aa   :  { %5866 = vmatprep.subr.mxu0 %v2500_v54 }
 0x8ab   :  { %5867 = vmatpush3.msra.mxu0 %v2500_v54 }
 0x8ac   :  { %5868 = vmatprep.subr.mxu0 %v2499_v63 }
 0x8ad   :  { %5869 = vmatpush3.msra.mxu0 %v2499_v63  ;;  %v2224_v0 = vpop.permute.xlu0 %2223 }
 0x8ae   :  { %5870 = vmatprep.subr.mxu0 %v2498_v14 }
 0x8af   :  { %5871 = vmatpush3.msra.mxu0 %v2498_v14 }
 0x8b0   :  { %5872 = vmatprep.subr.mxu0 %v2497_v47 }
 0x8b1   :  { %5873 = vmatpush3.msra.mxu0 %v2497_v47  ;;  %v2219_v47 = vpop.permute.xlu1 %2218 }
 0x8b2   :  { %5874 = vmatprep.subr.mxu0 %v2496_v59 }
 0x8b3   :  { %5875 = vmatpush3.msra.mxu0 %v2496_v59 }
 0x8b4   :  { %5876 = vmatprep.subr.mxu0 %v2495_v3 }
 0x8b5   :  { %5877 = vmatpush3.msra.mxu0 %v2495_v3 }
 0x8b6   :  { %5878 = vmatprep.subr.mxu0 %v2494_v30 }
 0x8b7   :  { %5879 = vmatpush3.msra.mxu0 %v2494_v30 }
 0x8b8   :  { %5880 = vmatprep.subr.mxu0 %v2493_v29 }
 0x8b9   :  { %5881 = vmatpush3.msra.mxu0 %v2493_v29 }
 0x8ba   :  { %5894 = vmatprep.subr.mxu0 %v2627_v37 }
 0x94d   :  { %v5504_v2 = vpop.f32.mrf.mxu1 }
 0x94f   :  { %v5505_v26 = vpop.f32.mrf.mxu1 }
 0x950   :  { %v5506_v54 = vadd.f32 %v5505_v26, %v5504_v2 }
 0x951   :  { %v5507_v31 = vpop.f32.mrf.mxu1 }
 0x952   :  { %v2342_v9 = vadd.f32 %v5506_v54, %v2214_v11 }
 0x953   :  { %v5508_v63 = vpop.f32.mrf.mxu1 }
 0x954   :  { %v5509_v14 = vadd.f32 %v5508_v63, %v5507_v31  ;;  %v2229_v31 = vpop.permute.xlu1 %2228 }
 0x955   :  { %v5510_v59 = vpop.f32.mrf.mxu1 }
 0x956   :  { %v2347_v3 = vadd.f32 %v5509_v14, %v2219_v47  ;;  %v5840_v24 = vpop.f32.mrf.mxu0 }
 0x957   :  { %v5511_v30 = vpop.f32.mrf.mxu1 }
 0x958   :  { %v2452_v15 = vadd.f32 %v5840_v24, %v2347_v3  ;;  %v5512_v29 = vadd.f32 %v5511_v30, %v5510_v59  ;;  %v2446_v60 = vpop.f32.mrf.mxu0  ;;  %v2626_v24 = vld [vmem:[%s9850_s18 + $0x10] sm:$0xff]  ;;  %v2239_v47 = vpop.permute.xlu1 %2238 }
 0x959   :  { %v2447_v36 = vadd.f32 %v2446_v60, %v2342_v9  ;;  %v5513_v17 = vpop.f32.mrf.mxu1 }
 0x95a   :  { %v5843_v6 = vpop.f32.mrf.mxu0  ;;  %v2352_v51 = vadd.f32 %v5512_v29, %v2224_v0  ;;  %v2486_v58 = vmax.f32 %v2452_v15, 0.0  ;;  %v2234_v0 = vpop.permute.xlu0 %2233 }
 0x95b   :  { %v2485_v5 = vmax.f32 %v2447_v36, 0.0  ;;  %v5514_v16 = vpop.f32.mrf.mxu1 }
 0x95c   :  { %v5515_v2 = vadd.f32 %v5514_v16, %v5513_v17  ;;  %v2456_v26 = vpop.f32.mrf.mxu0 }
 0x95d   :  { %v2457_v63 = vadd.f32 %v2456_v26, %v2352_v51  ;;  %v5516_v42 = vpop.f32.mrf.mxu1  ;;  %5882 = vmatprep.mubr.f32.mxu0 %v2485_v5 }
 0x95e   :  { %v2357_v11 = vadd.f32 %v5515_v2, %v2229_v31  ;;  %5883 = vmatmul.mubr.f32.vlgmr.msra.gmra.mxu0 %v2486_v58  ;;  %v5846_v54 = vpop.f32.mrf.mxu0  ;;  %v2244_v26 = vpop.permute.xlu0 %2243 }
 0x95f   :  { %v2487_v9 = vmax.f32 %v2457_v63, 0.0  ;;  %v5517_v60 = vpop.f32.mrf.mxu1  ;;  %5895 = vmatpush3.msra.mxu0 %v2627_v37 }
 0x960   :  { %v5518_v36 = vadd.f32 %v5517_v60, %v5516_v42  ;;  %v2462_v14 = vadd.f32 %v5843_v6, %v2357_v11  ;;  %5896 = vmatprep.subr.mxu0 %v2626_v24  ;;  %v2466_v16 = vpop.f32.mrf.mxu0 }
 0x961   :  { %v5519_v15 = vpop.f32.mrf.mxu1  ;;  %5885 = vmatprep.mubr.f32.mxu0 %v2487_v9  ;;  %5897 = vmatpush3.msra.mxu0 %v2626_v24 }
 0x962   :  { %v2362_v17 = vadd.f32 %v5518_v36, %v2234_v0  ;;  %v2488_v5 = vmax.f32 %v2462_v14, 0.0  ;;  %v5849_v30 = vpop.f32.mrf.mxu0  ;;  %v2249_v36 = vpop.permute.xlu1 %2248 }
 0x963   :  { %v5520_v51 = vpop.f32.mrf.mxu1 }
 0x964   :  { %v5521_v59 = vadd.f32 %v5520_v51, %v5519_v15  ;;  %v2467_v3 = vadd.f32 %v2466_v16, %v2362_v17  ;;  %5886 = vmatmul.mubr.f32.gmra.mxu0 %v2488_v5  ;;  %v2476_v63 = vpop.f32.mrf.mxu0  ;;  %v2625_v5 = vld [vmem:[%s9850_s18 + $0x8] sm:$0xff] }
 0x965   :  { %v5522_v58 = vpop.f32.mrf.mxu1  ;;  %5898 = vmatprep.subr.mxu0 %v2625_v5 }
 0x966   :  { %v2367_v29 = vadd.f32 %v5521_v59, %v2239_v47  ;;  %v2489_v2 = vmax.f32 %v2467_v3, 0.0  ;;  %5899 = vmatpush3.msra.mxu0 %v2625_v5 }
 0x967   :  { %v5523_v37 = vpop.f32.mrf.mxu1 }
 0x968   :  { %v5524_v42 = vadd.f32 %v5523_v37, %v5522_v58  ;;  %5888 = vmatprep.mubr.f32.mxu0 %v2489_v2  ;;  %v2472_v6 = vadd.f32 %v5846_v54, %v2367_v29  ;;  %v2624_v54 = vld [vmem:[%s9850_s18] sm:$0xff] }
 0x969   :  { %v5525_v31 = vpop.f32.mrf.mxu1  ;;  %5900 = vmatprep.subr.mxu0 %v2624_v54  ;;  %v2757_v37 = vld [vmem:[%s9841_s9] sm:$0xff] }
 0x96a   :  { %v2372_v11 = vadd.f32 %v5524_v42, %v2244_v26  ;;  %v2490_v24 = vmax.f32 %v2472_v6, 0.0  ;;  %5901 = vmatpush3.msra.mxu0 %v2624_v54  ;;  %5930 = vmatprep.mubr.msk.f32.mxu1 %vm2769_vm15, %v2757_v37 }
 0x96b   :  { %v5526_v9 = vpop.f32.mrf.mxu1 }
 0x96c   :  { %v5527_v60 = vadd.f32 %v5526_v9, %v5525_v31  ;;  %v2477_v0 = vadd.f32 %v2476_v63, %v2372_v11  ;;  %5889 = vmatmul.mubr.f32.gmra.mxu0 %v2490_v24 }
 0x96e   :  { %v2377_v14 = vadd.f32 %v5527_v60, %v2249_v36  ;;  %v2491_v15 = vmax.f32 %v2477_v0, 0.0  ;;  %v2758_v60 = vld [vmem:[%s9841_s9 + $0x8] sm:$0xff]  ;;  %v2853_v0 = vld [vmem:[#allocation12] sm:$0xff]  ;;  %v2767_v36 = vpop.permute.xlu0 %2766 }
 0x970   :  { %5891 = vmatprep.mubr.f32.mxu0 %v2491_v15  ;;  %v2482_v16 = vadd.f32 %v5849_v30, %v2377_v14 }
 0x972   :  { %v2492_v17 = vmax.f32 %v2482_v16, 0.0  ;;  %v2762_v16 = vpop.permute.xlu1 %2761 }
 0x974   :  { %5892 = vmatmul.mubr.f32.gmra.mxu0 %v2492_v17 }
 0xa1e   :  { %v8026_v51 = vpop.f32.mrf.mxu0 }
 0xa20   :  { %v8028_v47 = vpop.f32.mrf.mxu0 }
 0xa21   :  { %5902 = vmatprep.mubr.msk.f32.mxu0 %vm1704_vm7, %v8028_v47 }
 0xa22   :  { %5903 = vmatmul.mubr.msk.f32.vlgmr.msra.gmra.mxu0 %vm1704_vm7, %v8026_v51 }
 0xa24   :  { %v8034_v59 = vpop.f32.mrf.mxu0 }
 0xa26   :  { %v8036_v3 = vpop.f32.mrf.mxu0 }
 0xa27   :  { %5905 = vmatprep.mubr.msk.f32.mxu0 %vm1704_vm7, %v8036_v3 }
 0xa28   :  { %5906 = vmatmul.mubr.msk.f32.gmra.mxu0 %vm1704_vm7, %v8034_v59 }
 0xa2c   :  { %v8042_v58 = vpop.f32.mrf.mxu0 }
 0xa2e   :  { %v8044_v30 = vpop.f32.mrf.mxu0 }
 0xa2f   :  { %5908 = vmatprep.mubr.msk.f32.mxu0 %vm1704_vm7, %v8044_v30 }
 0xa30   :  { %5909 = vmatmul.mubr.msk.f32.gmra.mxu0 %vm1704_vm7, %v8042_v58 }
 0xa34   :  { %v8050_v29 = vpop.f32.mrf.mxu0 }
 0xa36   :  { %v8052_v2 = vpop.f32.mrf.mxu0 }
 0xa37   :  { %5911 = vmatprep.mubr.msk.f32.mxu0 %vm1704_vm7, %v8052_v2 }
 0xa38   :  { %5912 = vmatmul.mubr.msk.f32.gmra.mxu0 %vm1704_vm7, %v8050_v29 }
 0xae2   :  { %v5904_v26 = vpop.f32.mrf.mxu0 }
 0xae4   :  { %v2718_v42 = vpop.f32.mrf.mxu0 }
 0xae8   :  { %v5907_v6 = vpop.f32.mrf.mxu0 }
 0xaea   :  { %v2728_v31 = vpop.f32.mrf.mxu0 }
 0xaf0   :  { %v5910_v63 = vpop.f32.mrf.mxu0 }
 0xaf2   :  { %v2738_v11 = vpop.f32.mrf.mxu0 }
 0xaf8   :  { %v5913_v24 = vpop.f32.mrf.mxu0 }
 0xaf9   :  { %5914 = vmatprep.subr.mxu1 %v5913_v24 }
 0xafa   :  { %v2748_v9 = vpop.f32.mrf.mxu0  ;;  %5915 = vmatpush3.msra.mxu1 %v5913_v24  ;;  %v2860_v24 = vld [vmem:[#allocation12 + $0x38] sm:$0xff] }
 0xafb   :  { %5916 = vmatprep.subr.mxu1 %v2748_v9 }
 0xafc   :  { %5917 = vmatpush3.msra.mxu1 %v2748_v9  ;;  %v3078_v9 = vld [vmem:[%s9851_s19] sm:$0x3] }
 0xafd   :  { %5918 = vmatprep.subr.mxu1 %v5910_v63  ;;  %5949 = vmatprep.subr.msk.mxu0 %vm1939_vm6, %v3078_v9 }
 0xafe   :  { %5919 = vmatpush3.msra.mxu1 %v5910_v63  ;;  %v2858_v63 = vld [vmem:[#allocation12 + $0x28] sm:$0xff]  ;;  %5950 = vmatpush3.msk.msra.mxu0 %vm1939_vm6, %v3078_v9  ;;  %vm4727_vm6 = vcmask 392192  }
 0xaff   :  { %5920 = vmatprep.subr.mxu1 %v2738_v11 }
 0xb00   :  { %5921 = vmatpush3.msra.mxu1 %v2738_v11  ;;  %v2859_v11 = vld [vmem:[#allocation12 + $0x30] sm:$0xff] }
 0xb01   :  { %5922 = vmatprep.subr.mxu1 %v5907_v6 }
 0xb02   :  { %5923 = vmatpush3.msra.mxu1 %v5907_v6  ;;  %v2855_v6 = vld [vmem:[#allocation12 + $0x10] sm:$0xff] }
 0xb03   :  { %5924 = vmatprep.subr.mxu1 %v2728_v31 }
 0xb04   :  { %5925 = vmatpush3.msra.mxu1 %v2728_v31  ;;  %v2857_v31 = vld [vmem:[#allocation12 + $0x20] sm:$0xff] }
 0xb05   :  { %5926 = vmatprep.subr.mxu1 %v5904_v26 }
 0xb06   :  { %5927 = vmatpush3.msra.mxu1 %v5904_v26  ;;  %v2854_v26 = vld [vmem:[#allocation12 + $0x8] sm:$0xff] }
 0xb07   :  { %5928 = vmatprep.subr.mxu1 %v2718_v42 }
 0xb08   :  { %5929 = vmatpush3.msra.mxu1 %v2718_v42  ;;  %v2856_v42 = vld [vmem:[#allocation12 + $0x18] sm:$0xff] }
 0xb09   :  { %5931 = vmatmul.mubr.msk.f32.vlgmr.msra.gmra.mxu1 %vm2769_vm15, %v2758_v60  ;;  %v3222_v60 = vld [vmem:[#allocation18 + $0x18] sm:$0xff] }
 0xb0a   :  { %5937 = vmatprep.mubr.msk.f32.mxu1 %vm1151_vm4, %v2853_v0  ;;  %v2869_v0 = vpop.permute.xlu1 %2868 }
 0xbc9   :  { %v5932_v14 = vpop.f32.mrf.mxu1 }
 0xbca   :  { %v2848_v15 = vadd.f32 %v5932_v14, %v2767_v36  ;;  %v2864_v36 = vpop.permute.xlu0 %2863  ;;  %v2879_v14 = vpop.permute.xlu1 %2878 }
 0xbcb   :  { %v2842_v17 = vpop.f32.mrf.mxu1 }
 0xbcc   :  { %v2852_v5 = vmax.f32 %v2848_v15, 0.0  ;;  %v2843_v54 = vadd.f32 %v2842_v17, %v2762_v16 }
 0xbce   :  { %v2851_v37 = vmax.f32 %v2843_v54, 0.0  ;;  %5933 = vmatprep.subr.mxu1 %v2852_v5  ;;  %v2874_v17 = vpop.permute.xlu0 %2873 }
 0xbcf   :  { %5934 = vmatpush3.msra.mxu1 %v2852_v5 }
 0xbd0   :  { %5935 = vmatprep.subr.mxu1 %v2851_v37 }
 0xbd1   :  { %5936 = vmatpush3.msra.mxu1 %v2851_v37 }
 0xbd2   :  { %5938 = vmatmul.mubr.msk.f32.vlgmr.msra.gmra.mxu1 %vm1151_vm4, %v2854_v26  ;;  %5963 = vmatprep.subr.mxu1 %v3222_v60  ;;  %v2884_v9 = vpop.permute.xlu0 %2883 }
 0xbd3   :  { %5940 = vmatprep.mubr.msk.f32.mxu1 %vm1151_vm4, %v2855_v6  ;;  %5964 = vmatpush3.msra.mxu1 %v3222_v60 }
 0xbd6   :  { %5941 = vmatmul.mubr.msk.f32.gmra.mxu1 %vm1151_vm4, %v2856_v42 }
 0xbd7   :  { %5943 = vmatprep.mubr.msk.f32.mxu1 %vm1151_vm4, %v2857_v31  ;;  %v2889_v31 = vpop.permute.xlu1 %2888 }
 0xbda   :  { %5944 = vmatmul.mubr.msk.f32.gmra.mxu1 %vm1151_vm4, %v2858_v63 }
 0xbdb   :  { %5946 = vmatprep.mubr.msk.f32.mxu1 %vm1151_vm4, %v2859_v11 }
 0xbde   :  { %5947 = vmatmul.mubr.msk.f32.gmra.mxu1 %vm1151_vm4, %v2860_v24 }
 0xc92   :  { %v5939_v15 = vpop.f32.mrf.mxu1 }
 0xc93   :  { %v2997_v16 = vadd.f32 %v5939_v15, %v2869_v0 }
 0xc94   :  { %v2991_v5 = vpop.f32.mrf.mxu1 }
 0xc95   :  { %v5315_v54 = vmul.f32 -1.442695, %v2997_v16  ;;  %v2992_v37 = vadd.f32 %v2991_v5, %v2864_v36  ;;  %v2899_v16 = vpop.permute.xlu1 %2898 }
 0xc96   :  { %v5942_v26 = vpop.f32.mrf.mxu1 }
 0xc97   :  { %6068 = vpow2.f32 %v5315_v54  ;;  %v5314_v6 = vmul.f32 -1.442695, %v2992_v37  ;;  %v3007_v42 = vadd.f32 %v5942_v26, %v2879_v14  ;;  %v2894_v14 = vpop.permute.xlu0 %2893 }
 0xc98   :  { %v3001_v63 = vpop.f32.mrf.mxu1 }
 0xc99   :  { %6070 = vpow2.f32 %v5314_v6  ;;  %v5317_v11 = vmul.f32 -1.442695, %v3007_v42  ;;  %v3002_v24 = vadd.f32 %v3001_v63, %v2874_v17 }
 0xc9a   :  { %v5945_v60 = vpop.f32.mrf.mxu1 }
 0xc9b   :  { %6072 = vpow2.f32 %v5317_v11  ;;  %v5316_v13 = vmul.f32 -1.442695, %v3002_v24  ;;  %v3017_v43 = vadd.f32 %v5945_v60, %v2889_v31 }
 0xc9c   :  { %v3011_v12 = vpop.f32.mrf.mxu1 }
 0xc9d   :  { %6074 = vpow2.f32 %v5316_v13  ;;  %v5319_v0 = vmul.f32 -1.442695, %v3017_v43  ;;  %v3012_v15 = vadd.f32 %v3011_v12, %v2884_v9 }
 0xc9e   :  { %v5948_v36 = vpop.f32.mrf.mxu1 }
 0xc9f   :  { %6076 = vpow2.f32 %v5319_v0  ;;  %v5318_v5 = vmul.f32 -1.442695, %v3012_v15  ;;  %v3027_v54 = vadd.f32 %v5948_v36, %v2899_v16 }
 0xca0   :  { %v3021_v37 = vpop.f32.mrf.mxu1 }
 0xca1   :  { %6078 = vpow2.f32 %v5318_v5  ;;  %v5321_v26 = vmul.f32 -1.442695, %v3027_v54  ;;  %v3022_v6 = vadd.f32 %v3021_v37, %v2894_v14 }
 0xca3   :  { %6080 = vpow2.f32 %v5321_v26  ;;  %v5320_v17 = vmul.f32 -1.442695, %v3022_v6 }
 0xca4   :  { %v6069_v42 = vpop.eup %6068 }
 0xca5   :  { %6082 = vpow2.f32 %v5320_v17  ;;  %v3055_v31 = vadd.f32 1.0, %v6069_v42 }
 0xca6   :  { %v6071_v63 = vpop.eup %6070 }
 0xca7   :  { %v3054_v11 = vadd.f32 1.0, %v6071_v63 }
 0xca8   :  { %v6073_v13 = vpop.eup %6072 }
 0xca9   :  { %6084 = vrcp.f32 %v3054_v11  ;;  %v3057_v12 = vadd.f32 1.0, %v6073_v13  ;;  %v3221_v11 = vld [vmem:[#allocation18 + $0x10] sm:$0xff]  ;;  %v3220_v13 = vld [vmem:[#allocation18 + $0x8] sm:$0xff] }
 0xcaa   :  { %v6075_v43 = vpop.eup %6074  ;;  %6086 = vrcp.f32 %v3055_v31  ;;  %5965 = vmatprep.subr.mxu1 %v3221_v11 }
 0xcab   :  { %v3056_v24 = vadd.f32 1.0, %v6075_v43  ;;  %5966 = vmatpush3.msra.mxu1 %v3221_v11  ;;  %v3219_v43 = vld [vmem:[#allocation18] sm:$0xff] }
 0xcac   :  { %v6077_v9 = vpop.eup %6076  ;;  %5967 = vmatprep.subr.mxu1 %v3220_v13 }
 0xcad   :  { %6088 = vrcp.f32 %v3056_v24  ;;  %v3059_v0 = vadd.f32 1.0, %v6077_v9  ;;  %5968 = vmatpush3.msra.mxu1 %v3220_v13 }
 0xcae   :  { %v6079_v60 = vpop.eup %6078  ;;  %6090 = vrcp.f32 %v3057_v12  ;;  %5969 = vmatprep.subr.mxu1 %v3219_v43 }
 0xcaf   :  { %v3058_v15 = vadd.f32 1.0, %v6079_v60  ;;  %5970 = vmatpush3.msra.mxu1 %v3219_v43 }
 0xcb0   :  { %v6081_v16 = vpop.eup %6080 }
 0xcb1   :  { %6092 = vrcp.f32 %v3058_v15  ;;  %v3061_v5 = vadd.f32 1.0, %v6081_v16 }
 0xcb2   :  { %v6083_v36 = vpop.eup %6082  ;;  %6094 = vrcp.f32 %v3059_v0 }
 0xcb3   :  { %v3060_v54 = vadd.f32 1.0, %v6083_v36 }
 0xcb5   :  { %6096 = vrcp.f32 %v3060_v54 }
 0xcb6   :  { %v6085_v14 = vpop.eup %6084  ;;  %6098 = vrcp.f32 %v3061_v5 }
 0xcb7   :  { %v6087_v37 = vpop.eup %6086  ;;  %5951 = vmatprep.mubr.msk.f32.mxu0 %vm1926_vm2, %v6085_v14 }
 0xcb8   :  { %5952 = vmatmul.mubr.msk.f32.vlgmr.msra.gmra.mxu0 %vm1926_vm2, %v6087_v37 }
 0xcba   :  { %v6089_v26 = vpop.eup %6088 }
 0xcbb   :  { %v6091_v6 = vpop.eup %6090  ;;  %5954 = vmatprep.mubr.msk.f32.mxu0 %vm1926_vm2, %v6089_v26 }
 0xcbc   :  { %5955 = vmatmul.mubr.msk.f32.gmra.mxu0 %vm1926_vm2, %v6091_v6 }
 0xcbe   :  { %v6093_v17 = vpop.eup %6092 }
 0xcbf   :  { %v6095_v42 = vpop.eup %6094  ;;  %5957 = vmatprep.mubr.msk.f32.mxu0 %vm1926_vm2, %v6093_v17 }
 0xcc0   :  { %5958 = vmatmul.mubr.msk.f32.gmra.mxu0 %vm1926_vm2, %v6095_v42 }
 0xcc2   :  { %v6097_v63 = vpop.eup %6096 }
 0xcc3   :  { %v6099_v31 = vpop.eup %6098  ;;  %5960 = vmatprep.mubr.msk.f32.mxu0 %vm1926_vm2, %v6097_v63  ;;  %v3545_v63 = vld [vmem:[#allocation7 + $0x8] sm:$0xff] }
 0xcc4   :  { %5961 = vmatmul.mubr.msk.f32.gmra.mxu0 %vm1926_vm2, %v6099_v31  ;;  %v3547_v31 = vld [vmem:[#allocation7 + $0x18] sm:$0xff] }
 0xcc5   :  { %3673 = vmatprep.mubr.f32.mxu0 %v3545_v63 }
 0xd78   :  { %v5953_v12 = vpop.f32.mrf.mxu0 }
 0xd79   :  { %v3212_v60 = vmul.f32 %v5953_v12, %v8026_v51 }
 0xd7a   :  { %v3172_v24 = vpop.f32.mrf.mxu0 }
 0xd7b   :  { %v3211_v9 = vmul.f32 %v3172_v24, %v8028_v47 }
 0xd7c   :  { %v5956_v0 = vpop.f32.mrf.mxu0 }
 0xd7d   :  { %5971 = vmatprep.mubr.msk.f32.mxu1 %vm1704_vm7, %v3211_v9  ;;  %v3214_v36 = vmul.f32 %v5956_v0, %v8034_v59  ;;  %v3572_v0 = vld [vmem:[#allocation13 + $0x70] sm:$0xff] }
 0xd7e   :  { %v3182_v15 = vpop.f32.mrf.mxu0  ;;  %5972 = vmatmul.mubr.msk.f32.vlgmr.msra.gmra.mxu1 %vm1704_vm7, %v3212_v60  ;;  %v3573_v60 = vld [vmem:[#allocation13 + $0x78] sm:$0xff] }
 0xd7f   :  { %v3213_v16 = vmul.f32 %v3182_v15, %v8036_v3 }
 0xd80   :  { %v5959_v5 = vpop.f32.mrf.mxu0 }
 0xd81   :  { %5974 = vmatprep.mubr.msk.f32.mxu1 %vm1704_vm7, %v3213_v16  ;;  %v3216_v51 = vmul.f32 %v5959_v5, %v8042_v58  ;;  %v3574_v5 = vld [vmem:[#allocation13 + $0x80] sm:$0xff] }
 0xd82   :  { %v3192_v54 = vpop.f32.mrf.mxu0  ;;  %5975 = vmatmul.mubr.msk.f32.gmra.mxu1 %vm1704_vm7, %v3214_v36  ;;  %v3575_v36 = vld [vmem:[#allocation13 + $0x88] sm:$0xff] }
 0xd83   :  { %v3215_v47 = vmul.f32 %v3192_v54, %v8044_v30 }
 0xd84   :  { %v5962_v14 = vpop.f32.mrf.mxu0 }
 0xd85   :  { %5977 = vmatprep.mubr.msk.f32.mxu1 %vm1704_vm7, %v3215_v47  ;;  %v3218_v59 = vmul.f32 %v5962_v14, %v8050_v29 }
 0xd86   :  { %v3202_v37 = vpop.f32.mrf.mxu0  ;;  %5978 = vmatmul.mubr.msk.f32.gmra.mxu1 %vm1704_vm7, %v3216_v51 }
 0xd87   :  { %v3217_v3 = vmul.f32 %v3202_v37, %v8052_v2 }
 0xd89   :  { %5980 = vmatprep.mubr.msk.f32.mxu1 %vm1704_vm7, %v3217_v3 }
 0xd8a   :  { %5981 = vmatmul.mubr.msk.f32.gmra.mxu1 %vm1704_vm7, %v3218_v59  ;;  %vm3596_vm7 = vcmask 785408  }
 0xd8b   :  { %3758 = vmatprep.mubr.f32.mxu1 %v3547_v31 }
 0xe3e   :  { %v8103_v26 = vpop.f32.mrf.mxu1 }
 0xe3f   :  { %3402 = vrot.lane.b32.xlu0 %v8103_v26, %s6389_s12  ;;  %3378 = vrot.lane.b32.xlu1 %v8103_v26, %s6365_s26 }
 0xe40   :  { %v8113_v58 = vpop.f32.mrf.mxu1 }
 0xe42   :  { %v8119_v30 = vpop.f32.mrf.mxu1 }
 0xe43   :  { %3450 = vrot.lane.b32.xlu0 %v8103_v26, %s6382_s8  ;;  %3354 = vrot.lane.b32.xlu1 %v8103_v26, %s6391_s27 }
 0xe44   :  { %v8133_v29 = vpop.f32.mrf.mxu1 }
 0xe46   :  { %v8139_v2 = vpop.f32.mrf.mxu1 }
 0xe47   :  { %3400 = vrot.lane.b32.xlu0 %v8113_v58, %s6389_s12  ;;  %3376 = vrot.lane.b32.xlu1 %v8113_v58, %s6365_s26 }
 0xe48   :  { %v8149_v6 = vpop.f32.mrf.mxu1 }
 0xe4a   :  { %v8159_v17 = vpop.f32.mrf.mxu1 }
 0xe4b   :  { %3448 = vrot.lane.b32.xlu0 %v8113_v58, %s6382_s8  ;;  %3382 = vrot.lane.b32.xlu1 %v8119_v30, %s6365_s26 }
 0xe4c   :  { %v8177_v42 = vpop.f32.mrf.mxu1 }
 0xe4f   :  { %3406 = vrot.lane.b32.xlu0 %v8119_v30, %s6389_s12  ;;  %3454 = vrot.lane.b32.xlu1 %v8119_v30, %s6382_s8 }
 0xe53   :  { %3430 = vrot.lane.b32.xlu0 %v8119_v30, %s6383_s20  ;;  %3358 = vrot.lane.b32.xlu1 %v8119_v30, %s6391_s27 }
 0xe57   :  { %3356 = vrot.lane.b32.xlu0 %v8133_v29, %s6391_s27  ;;  %3380 = vrot.lane.b32.xlu1 %v8133_v29, %s6365_s26 }
 0xe5b   :  { %3404 = vrot.lane.b32.xlu1 %v8133_v29, %s6389_s12  ;;  %3410 = vrot.lane.b32.xlu0 %v8139_v2, %s6389_s12 }
 0xe5f   :  { %3452 = vrot.lane.b32.xlu1 %v8133_v29, %s6382_s8  ;;  %3362 = vrot.lane.b32.xlu0 %v8139_v2, %s6391_s27 }
 0xe63   :  { %3434 = vrot.lane.b32.xlu0 %v8139_v2, %s6383_s20  ;;  %3432 = vrot.lane.b32.xlu1 %v8149_v6, %s6383_s20 }
 0xe67   :  { %3386 = vrot.lane.b32.xlu0 %v8139_v2, %s6365_s26  ;;  %3384 = vrot.lane.b32.xlu1 %v8149_v6, %s6365_s26 }
 0xe6b   :  { %3408 = vrot.lane.b32.xlu0 %v8149_v6, %s6389_s12  ;;  %3366 = vrot.lane.b32.xlu1 %v8159_v17, %s6391_s27 }
 0xe6f   :  { %3360 = vrot.lane.b32.xlu0 %v8149_v6, %s6391_s27  ;;  %3438 = vrot.lane.b32.xlu1 %v8159_v17, %s6383_s20 }
 0xe73   :  { %3428 = vrot.lane.b32.xlu1 %v8133_v29, %s6383_s20  ;;  %3414 = vrot.lane.b32.xlu0 %v8159_v17, %s6389_s12 }
 0xe77   :  { %3486 = vrot.lane.b32.xlu1 %v8159_v17, %s6390_s24  ;;  %3390 = vrot.lane.b32.xlu0 %v8159_v17, %s6365_s26 }
 0xe7b   :  { %3480 = vrot.lane.b32.xlu1 %v8149_v6, %s6390_s24  ;;  %3412 = vrot.lane.b32.xlu0 %v8177_v42, %s6389_s12 }
 0xe7f   :  { %3478 = vrot.lane.b32.xlu1 %v8119_v30, %s6390_s24  ;;  %3352 = vrot.lane.b32.xlu0 %v8113_v58, %s6391_s27 }
 0xe83   :  { %3476 = vrot.lane.b32.xlu1 %v8133_v29, %s6390_s24  ;;  %3426 = vrot.lane.b32.xlu0 %v8103_v26, %s6383_s20 }
 0xe87   :  { %3474 = vrot.lane.b32.xlu1 %v8103_v26, %s6390_s24  ;;  %3424 = vrot.lane.b32.xlu0 %v8113_v58, %s6383_s20 }
 0xe8b   :  { %3364 = vrot.lane.b32.xlu1 %v8177_v42, %s6391_s27  ;;  %3482 = vrot.lane.b32.xlu0 %v8139_v2, %s6390_s24 }
 0xe8f   :  { %3436 = vrot.lane.b32.xlu1 %v8177_v42, %s6383_s20  ;;  %3510 = vrot.lane.b32.xlu0 %v8159_v17, %s6388_s7 }
 0xe93   :  { %3388 = vrot.lane.b32.xlu1 %v8177_v42, %s6365_s26  ;;  %3506 = vrot.lane.b32.xlu0 %v8139_v2, %s6388_s7 }
 0xe97   :  { %3472 = vrot.lane.b32.xlu1 %v8113_v58, %s6390_s24  ;;  %3504 = vrot.lane.b32.xlu0 %v8149_v6, %s6388_s7 }
 0xe9b   :  { %3484 = vrot.lane.b32.xlu1 %v8177_v42, %s6390_s24  ;;  %3502 = vrot.lane.b32.xlu0 %v8119_v30, %s6388_s7 }
 0xe9f   :  { %3500 = vrot.lane.b32.xlu1 %v8133_v29, %s6388_s7  ;;  %3498 = vrot.lane.b32.xlu0 %v8103_v26, %s6388_s7 }
 0xea3   :  { %3534 = vrot.lane.b32.xlu1 %v8159_v17, %s6392_s14  ;;  %3508 = vrot.lane.b32.xlu0 %v8177_v42, %s6388_s7 }
 0xea7   :  { %3462 = vrot.lane.b32.xlu1 %v8159_v17, %s6382_s8  ;;  %3496 = vrot.lane.b32.xlu0 %v8113_v58, %s6388_s7 }
 0xeab   :  { %3458 = vrot.lane.b32.xlu1 %v8139_v2, %s6382_s8  ;;  %3530 = vrot.lane.b32.xlu0 %v8139_v2, %s6392_s14 }
 0xeaf   :  { %3532 = vrot.lane.b32.xlu1 %v8177_v42, %s6392_s14  ;;  %3528 = vrot.lane.b32.xlu0 %v8149_v6, %s6392_s14 }
 0xeb1   :  { %v8235_v11 = vpop.permute.xlu1 %3378  ;;  %v8237_v13 = vpop.permute.xlu0 %3402 }
 0xeb3   :  { %3460 = vrot.lane.b32.xlu1 %v8177_v42, %s6382_s8  ;;  %3526 = vrot.lane.b32.xlu0 %v8119_v30, %s6392_s14 }
 0xeb5   :  { %v8243_v43 = vpop.permute.xlu1 %3354  ;;  %v3451_v12 = vpop.permute.xlu0 %3450 }
 0xeb7   :  { %3456 = vrot.lane.b32.xlu1 %v8149_v6, %s6382_s8  ;;  %3524 = vrot.lane.b32.xlu0 %v8133_v29, %s6392_s14 }
 0xeb9   :  { %v8249_v24 = vpop.permute.xlu1 %3376  ;;  %v8251_v9 = vpop.permute.xlu0 %3400 }
 0xebb   :  { %3520 = vrot.lane.b32.xlu1 %v8113_v58, %s6392_s14  ;;  %3522 = vrot.lane.b32.xlu0 %v8103_v26, %s6392_s14 }
 0xebd   :  { %v3383_v15 = vpop.permute.xlu1 %3382  ;;  %v3449_v16 = vpop.permute.xlu0 %3448 }
 0xebf   :  { %3583 = vperm.xlu1 %6051, %v3573_v60   ;;  %3578 = vperm.xlu0 %6050, %v3572_v0  }
 0xec1   :  { %v3455_v54 = vpop.permute.xlu1 %3454  ;;  %v3407_v47 = vpop.permute.xlu0 %3406 }
 0xec2   :  { %v3467_v51 = vmul.f32 %v7905_v22, %v3455_v54  ;;  %v3464_v54 = vmul.f32 %v7905_v22, %v3449_v16 }
 0xec3   :  { %3593 = vperm.xlu1 %6051, %v3575_v36   ;;  %3588 = vperm.xlu0 %6050, %v3574_v5   ;;  %v3465_v36 = vmul.f32 %v7905_v22, %v3451_v12 }
 0xec4   :  { %5661 = vmatprep.subr.mxu1 %v3467_v51 }
 0xec5   :  { %5662 = vmatpush3.msra.mxu1 %v7834_v10  ;;  %v8259_v14 = vpop.permute.xlu1 %3358  ;;  %v8261_v37 = vpop.permute.xlu0 %3430 }
 0xec9   :  { %v3381_v3 = vpop.permute.xlu1 %3380  ;;  %v8263_v59 = vpop.permute.xlu0 %3356 }
 0xecd   :  { %v3405_v63 = vpop.permute.xlu1 %3404  ;;  %v3411_v31 = vpop.permute.xlu0 %3410 }
 0xece   :  { %v3421_v32 = vmul.f32 %v7877_v45, %v3411_v31 }
 0xed1   :  { %v3453_v60 = vpop.permute.xlu1 %3452  ;;  %v8265_v0 = vpop.permute.xlu0 %3362 }
 0xed2   :  { %v3466_v61 = vmul.f32 %v7905_v22, %v3453_v60 }
 0xed4   :  { %5663 = vmatprep.subr.mxu1 %v3466_v61 }
 0xed5   :  { %5664 = vmatpush3.msra.mxu1 %v7845_v62  ;;  %v8270_v10 = vpop.permute.xlu1 %3432  ;;  %v8272_v5 = vpop.permute.xlu0 %3434 }
 0xed6   :  { %5665 = vmatprep.subr.mxu1 %v3465_v36 }
 0xed7   :  { %5666 = vmatpush3.msra.mxu1 %v7859_v57 }
 0xed8   :  { %5667 = vmatprep.subr.mxu1 %v3464_v54 }
 0xed9   :  { %v8276_v51 = vpop.permute.xlu1 %3384  ;;  %5668 = vmatpush3.msra.mxu1 %v7873_v18  ;;  %v8279_v60 = vpop.permute.xlu0 %3386  ;;  %v3395_v18 = vmul.f32 %v7913_v50, %v3383_v15 }
 0xeda   :  { %5669 = vmatprep.subr.mxu1 %v7761_v28 }
 0xedd   :  { %v3367_v61 = vpop.permute.xlu1 %3366  ;;  %v3409_v62 = vpop.permute.xlu0 %3408 }
 0xee1   :  { %v3439_v12 = vpop.permute.xlu1 %3438  ;;  %v3361_v4 = vpop.permute.xlu0 %3360 }
 0xee2   :  { %v3447_v20 = vmul.f32 %v7826_v53, %v3439_v12 }
 0xee4   :  { %5670 = vmatpush3.msra.mxu1 %v3447_v20  ;;  %v3394_v20 = vmul.f32 %v7913_v50, %v3381_v3 }
 0xee5   :  { %v8283_v16 = vpop.permute.xlu1 %3428  ;;  %5671 = vmatprep.subr.mxu1 %v7772_v55  ;;  %v3415_v57 = vpop.permute.xlu0 %3414  ;;  %v3393_v55 = vmul.f32 %v7913_v50, %v8235_v11  ;;  %v3418_v11 = vmul.f32 %v7877_v45, %v3405_v63  ;;  %v3375_v63 = vmul.f32 %v7956_v25, %v3367_v61 }
 0xee6   :  { %v3423_v36 = vmul.f32 %v7877_v45, %v3415_v57 }
 0xee8   :  { %5617 = vmatprep.subr.mxu0 %v3423_v36  ;;  %v3420_v36 = vmul.f32 %v7877_v45, %v3409_v62  ;;  %v3417_v62 = vmul.f32 %v7877_v45, %v8237_v13 }
 0xee9   :  { %v8288_v54 = vpop.permute.xlu1 %3486  ;;  %5618 = vmatpush3.msra.mxu0 %v3395_v18  ;;  %v3391_v28 = vpop.permute.xlu0 %3390  ;;  %v3392_v18 = vmul.f32 %v7913_v50, %v8249_v24 }
 0xeea   :  { %v3399_v61 = vmul.f32 %v7913_v50, %v3391_v28 }
 0xeed   :  { %v8290_v22 = vpop.permute.xlu1 %3480  ;;  %v3413_v56 = vpop.permute.xlu0 %3412 }
 0xeee   :  { %v3422_v12 = vmul.f32 %v7877_v45, %v3413_v56  ;;  %v3419_v56 = vmul.f32 %v7877_v45, %v3407_v47  ;;  %v3416_v47 = vmul.f32 %v7877_v45, %v8251_v9  ;;  %v3373_v45 = vmul.f32 %v7956_v25, %v8265_v0 }
 0xef0   :  { %5619 = vmatprep.subr.mxu0 %v3422_v12 }
 0xef1   :  { %v8297_v57 = vpop.permute.xlu1 %3478  ;;  %5620 = vmatpush3.msra.mxu0 %v3394_v20  ;;  %v8299_v15 = vpop.permute.xlu0 %3352 }
 0xef2   :  { %5621 = vmatprep.subr.mxu0 %v3421_v32 }
 0xef3   :  { %5622 = vmatpush3.msra.mxu0 %v3393_v55  ;;  %v3551_v55 = vld [vmem:[#allocation7 + $0x38] sm:$0xff] }
 0xef4   :  { %5623 = vmatprep.subr.mxu0 %v3420_v36 }
 0xef5   :  { %v8305_v3 = vpop.permute.xlu1 %3476  ;;  %5624 = vmatpush3.msra.mxu0 %v3392_v18  ;;  %v3427_v31 = vpop.permute.xlu0 %3426 }
 0xef6   :  { %5625 = vmatprep.subr.mxu0 %v3419_v56  ;;  %v3441_v28 = vmul.f32 %v7826_v53, %v3427_v31  ;;  %v3490_v18 = vmul.f32 %v7870_v33, %v8305_v3  ;;  %v3565_v56 = vld [vmem:[#allocation7 + $0xa8] sm:$0xff]  ;;  %v3554_v31 = vld [vmem:[#allocation7 + $0x50] sm:$0xff] }
 0xef7   :  { %5626 = vmatpush3.msra.mxu0 %v7961_v46 }
 0xef8   :  { %5627 = vmatprep.subr.mxu0 %v3418_v11 }
 0xef9   :  { %v8311_v32 = vpop.permute.xlu1 %3474  ;;  %5628 = vmatpush3.msra.mxu0 %v7965_v19  ;;  %v3425_v24 = vpop.permute.xlu0 %3424 }
 0xefa   :  { %5629 = vmatprep.subr.mxu0 %v3417_v62 }
 0xefb   :  { %5630 = vmatpush3.msra.mxu0 %v7974_v8 }
 0xefc   :  { %5631 = vmatprep.subr.mxu0 %v3416_v47  ;;  %v10294_v47 = vld [vmem:[#allocation142_spill] sm:$0xff] }
 0xefd   :  { %v3365_v12 = vpop.permute.xlu1 %3364  ;;  %5632 = vmatpush3.msra.mxu0 %v7982_v23  ;;  %v8319_v46 = vpop.permute.xlu0 %3482  ;;  %v3372_v23 = vmul.f32 %v7956_v25, %v3361_v4  ;;  %v3444_v4 = vmul.f32 %v7826_v53, %v8270_v10  ;;  %v3369_v10 = vmul.f32 %v7956_v25, %v8243_v43  ;;  %v3544_v43 = vld [vmem:[#allocation7] sm:$0xff] }
 0xefe   :  { %v3374_v13 = vmul.f32 %v7956_v25, %v3365_v12  ;;  %5633 = vmatprep.subr.mxu0 %v7925_v40  ;;  %v3445_v40 = vmul.f32 %v7826_v53, %v8272_v5 }
 0xeff   :  { %5634 = vmatpush3.msra.mxu0 %v3375_v63  ;;  %v3553_v63 = vld [vmem:[#allocation7 + $0x48] sm:$0xff] }
 0xf00   :  { %5635 = vmatprep.subr.mxu0 %v7929_v34  ;;  %v3371_v34 = vmul.f32 %v7956_v25, %v8259_v14  ;;  %v3443_v14 = vmul.f32 %v7826_v53, %v8261_v37  ;;  %v3442_v37 = vmul.f32 %v7826_v53, %v8283_v16  ;;  %v3440_v16 = vmul.f32 %v7826_v53, %v3425_v24 }
 0xf01   :  { %v3437_v19 = vpop.permute.xlu1 %3436  ;;  %5636 = vmatpush3.msra.mxu0 %v3374_v13  ;;  %v8326_v8 = vpop.permute.xlu0 %3510  ;;  %v10295_v13 = vld [vmem:[#allocation143_spill] sm:$0xff] }
 0xf02   :  { %v3446_v9 = vmul.f32 %v7826_v53, %v3437_v19  ;;  %5637 = vmatprep.subr.mxu0 %v7944_v7  ;;  %v3493_v53 = vmul.f32 %v7870_v33, %v8319_v46  ;;  %v10296_v19 = vld [vmem:[#allocation136_spill] sm:$0xff] }
 0xf03   :  { %5638 = vmatpush3.msra.mxu0 %v3373_v45  ;;  %v3561_v45 = vld [vmem:[#allocation7 + $0x88] sm:$0xff] }
 0xf04   :  { %5639 = vmatprep.subr.mxu0 %v7948_v52  ;;  %5672 = vmatpush3.msra.mxu1 %v3446_v9  ;;  %v3370_v52 = vmul.f32 %v7956_v25, %v8263_v59  ;;  %v3560_v9 = vld [vmem:[#allocation7 + $0x80] sm:$0xff] }
 0xf05   :  { %v3389_v0 = vpop.permute.xlu1 %3388  ;;  %5640 = vmatpush3.msra.mxu0 %v3372_v23  ;;  %5673 = vmatprep.subr.mxu1 %v7739_v1  ;;  %v8338_v20 = vpop.permute.xlu0 %3506  ;;  %v3397_v1 = vmul.f32 %v7913_v50, %v8279_v60  ;;  %v3368_v60 = vmul.f32 %v7956_v25, %v8299_v15  ;;  %v3558_v15 = vld [vmem:[#allocation7 + $0x70] sm:$0xff]  ;;  %v10298_v23 = vld [vmem:[#allocation140_spill] sm:$0xff] }
 0xf06   :  { %v3398_v7 = vmul.f32 %v7913_v50, %v3389_v0  ;;  %5641 = vmatprep.subr.mxu0 %v3399_v61  ;;  %5674 = vmatpush3.msra.mxu1 %v3445_v40 }
 0xf07   :  { %5642 = vmatpush3.msra.mxu0 %v3371_v34  ;;  %5675 = vmatprep.subr.mxu1 %v7750_v44  ;;  %v3396_v44 = vmul.f32 %v7913_v50, %v8276_v51  ;;  %v3495_v51 = vmul.f32 %v7870_v33, %v8288_v54 }
 0xf08   :  { %5643 = vmatprep.subr.mxu0 %v3398_v7  ;;  %5676 = vmatpush3.msra.mxu1 %v3444_v4  ;;  %v3568_v4 = vld [vmem:[#allocation7 + $0xc0] sm:$0xff] }
 0xf09   :  { %v8352_v5 = vpop.permute.xlu1 %3472  ;;  %5644 = vmatpush3.msra.mxu0 %v3370_v52  ;;  %5677 = vmatprep.subr.mxu1 %v8159_v17  ;;  %v8355_v59 = vpop.permute.xlu0 %3504 }
 0xf0a   :  { %5645 = vmatprep.subr.mxu0 %v3397_v1  ;;  %5678 = vmatpush3.msra.mxu1 %v3443_v14  ;;  %v3516_v62 = vmul.f32 %v7831_v35, %v8355_v59  ;;  %v3488_v24 = vmul.f32 %v7870_v33, %v8352_v5  ;;  %v3567_v14 = vld [vmem:[#allocation7 + $0xb8] sm:$0xff]  ;;  %v10301_v5 = vld [vmem:[#allocation133_spill] sm:$0xff] }
 0xf0b   :  { %5646 = vmatpush3.msra.mxu0 %v3369_v10  ;;  %5679 = vmatprep.subr.mxu1 %v8177_v42  ;;  %v3552_v42 = vld [vmem:[#allocation7 + $0x40] sm:$0xff]  ;;  %v10300_v1 = vld [vmem:[#allocation138_spill] sm:$0xff] }
 0xf0c   :  { %5647 = vmatprep.subr.mxu0 %v3396_v44  ;;  %5680 = vmatpush3.msra.mxu1 %v3442_v37 }
 0xf0d   :  { %v3485_v17 = vpop.permute.xlu1 %3484  ;;  %5648 = vmatpush3.msra.mxu0 %v3368_v60  ;;  %5681 = vmatprep.subr.mxu1 %v8139_v2  ;;  %v8366_v50 = vpop.permute.xlu0 %3502  ;;  %v10302_v60 = vld [vmem:[#allocation139_spill] sm:$0xff] }
 0xf0e   :  { %v3494_v25 = vmul.f32 %v7870_v33, %v3485_v17  ;;  %3674 = vmatmul.mubr.f32.vlgmr.msra.gmra.mxu0 %v3544_v43  ;;  %5682 = vmatpush3.msra.mxu1 %v3441_v28 }
 0xf0f   :  { %5705 = vmatprep.subr.mxu0 %v7837_v38  ;;  %5683 = vmatprep.subr.mxu1 %v8149_v6  ;;  %v3559_v38 = vld [vmem:[#allocation7 + $0x78] sm:$0xff] }
 0xf10   :  { %5706 = vmatpush3.msra.mxu0 %v3495_v51  ;;  %5684 = vmatpush3.msra.mxu1 %v3440_v16 }
 0xf11   :  { %5707 = vmatprep.subr.mxu0 %v7848_v41  ;;  %v8375_v2 = vpop.permute.xlu1 %3500  ;;  %3678 = vmatprep.mubr.f32.mxu0 %v3552_v42  ;;  %v8377_v54 = vpop.permute.xlu0 %3498  ;;  %v3492_v41 = vmul.f32 %v7870_v33, %v8290_v22  ;;  %v3491_v22 = vmul.f32 %v7870_v33, %v8297_v57  ;;  %v3517_v57 = vmul.f32 %v7831_v35, %v8338_v20  ;;  %v10299_v20 = vld [vmem:[#allocation137_spill] sm:$0xff] }
 0xf12   :  { %5685 = vmatprep.subr.mxu1 %v8119_v30  ;;  %5708 = vmatpush3.msra.mxu0 %v3494_v25  ;;  %v3513_v34 = vmul.f32 %v7831_v35, %v8377_v54 }
 0xf13   :  { %3679 = vmatmul.mubr.f32.gmra.mxu0 %v3551_v55  ;;  %5686 = vmatpush3.msra.mxu1 %v7884_v27  ;;  %v3519_v27 = vmul.f32 %v7831_v35, %v8326_v8  ;;  %v10297_v8 = vld [vmem:[#allocation144_spill] sm:$0xff] }
 0xf14   :  { %5709 = vmatprep.subr.mxu0 %v7851_v39  ;;  %5687 = vmatprep.subr.mxu1 %v8133_v29  ;;  %v3546_v29 = vld [vmem:[#allocation7 + $0x10] sm:$0xff]  ;;  %v10305_v55 = vld [vmem:[#allocation132_spill] sm:$0xff] }
 0xf15   :  { %5710 = vmatpush3.msra.mxu0 %v3493_v53  ;;  %5688 = vmatpush3.msra.mxu1 %v7888_v49  ;;  %v3535_v6 = vpop.permute.xlu1 %3534  ;;  %v3509_v30 = vpop.permute.xlu0 %3508  ;;  %v3566_v49 = vld [vmem:[#allocation7 + $0xb0] sm:$0xff] }
 0xf16   :  { %5711 = vmatprep.subr.mxu0 %v7866_v21  ;;  %3683 = vmatprep.mubr.f32.mxu0 %v3559_v38  ;;  %v3518_v39 = vmul.f32 %v7831_v35, %v3509_v30  ;;  %v3543_v40 = vmul.f32 %v10298_v23, %v3535_v6  ;;  %v10306_v53 = vld [vmem:[#allocation134_spill] sm:$0xff]  ;;  %v3556_v6 = vld [vmem:[#allocation7 + $0x60] sm:$0xff] }
 0xf17   :  { %5689 = vmatprep.subr.mxu1 %v8103_v26  ;;  %5712 = vmatpush3.msra.mxu0 %v3492_v41  ;;  %v10292_v26 = vld [vmem:[#allocation135_spill] sm:$0xff]  ;;  %v3550_v30 = vld [vmem:[#allocation7 + $0x30] sm:$0xff] }
 0xf18   :  { %3684 = vmatmul.mubr.f32.gmra.mxu0 %v3558_v15  ;;  %5690 = vmatpush3.msra.mxu1 %v7900_v48  ;;  %v3489_v48 = vmul.f32 %v7870_v33, %v8311_v32  ;;  %v3515_v32 = vmul.f32 %v7831_v35, %v8366_v50  ;;  %v3514_v33 = vmul.f32 %v7831_v35, %v8375_v2  ;;  %v10304_v50 = vld [vmem:[#allocation131_spill] sm:$0xff]  ;;  %v3549_v2 = vld [vmem:[#allocation7 + $0x28] sm:$0xff] }
 0xf19   :  { %5713 = vmatprep.subr.mxu0 %v3519_v27  ;;  %5691 = vmatprep.subr.mxu1 %v8113_v58  ;;  %v3463_v21 = vpop.permute.xlu1 %3462  ;;  %v3497_v36 = vpop.permute.xlu0 %3496  ;;  %v10293_v58 = vld [vmem:[#allocation141_spill] sm:$0xff]  ;;  %v3548_v41 = vld [vmem:[#allocation7 + $0x20] sm:$0xff]  ;;  %v3555_v27 = vld [vmem:[#allocation7 + $0x58] sm:$0xff] }
 0xf1a   :  { %5714 = vmatpush3.msra.mxu0 %v3491_v22  ;;  %5692 = vmatpush3.msra.mxu1 %v10292_v26  ;;  %v3512_v52 = vmul.f32 %v7831_v35, %v3497_v36  ;;  %v3471_v59 = vmul.f32 %v10301_v5, %v3463_v21  ;;  %v10303_v35 = vld [vmem:[#allocation130_spill] sm:$0xff]  ;;  %v4016_v22 = vld [vmem:[%s9847_s15 + $0x1f8] sm:$0xff]  ;;  %v4015_v21 = vld [vmem:[%s9847_s15 + $0x1f0] sm:$0xff] }
 0xf1b   :  { %5715 = vmatprep.subr.mxu0 %v3518_v39  ;;  %3688 = vmatprep.mubr.f32.mxu0 %v3566_v49  ;;  %v3557_v39 = vld [vmem:[#allocation7 + $0x68] sm:$0xff]  ;;  %v3563_v49 = vld [vmem:[#allocation7 + $0x98] sm:$0xff]  ;;  %v4011_v26 = vld [vmem:[%s9847_s15 + $0x1d0] sm:$0xff] }
 0xf1c   :  { %3759 = vmatmul.mubr.f32.vlgmr.msra.gmra.mxu1 %v3546_v29  ;;  %5716 = vmatpush3.msra.mxu0 %v3490_v18  ;;  %v3564_v29 = vld [vmem:[#allocation7 + $0xa0] sm:$0xff]  ;;  %v4012_v36 = vld [vmem:[%s9847_s15 + $0x1d8] sm:$0xff]  ;;  %v3562_v18 = vld [vmem:[#allocation7 + $0x90] sm:$0xff] }
 0xf1d   :  { %5983 = vmatprep.subr.mxu1 %v10293_v58  ;;  %3689 = vmatmul.mubr.f32.gmra.mxu0 %v3565_v56  ;;  %v3459_v11 = vpop.permute.xlu1 %3458  ;;  %v3531_v3 = vpop.permute.xlu0 %3530  ;;  %v4008_v56 = vld [vmem:[%s9847_s15 + $0x1b8] sm:$0xff] }
 0xf1e   :  { %5717 = vmatprep.subr.mxu0 %v3517_v57  ;;  %5984 = vmatpush3.msra.mxu1 %v10293_v58  ;;  %v3541_v44 = vmul.f32 %v10298_v23, %v3531_v3  ;;  %v3469_v17 = vmul.f32 %v10301_v5, %v3459_v11  ;;  %v3570_v57 = vld [vmem:[#allocation7 + $0xd0] sm:$0xff]  ;;  %v3571_v58 = vld [vmem:[#allocation7 + $0xd8] sm:$0xff]  ;;  %v3569_v11 = vld [vmem:[#allocation7 + $0xc8] sm:$0xff] }
 0xf1f   :  { %5718 = vmatpush3.msra.mxu0 %v3489_v48  ;;  %5985 = vmatprep.subr.mxu1 %v10294_v47  ;;  %v4007_v48 = vld [vmem:[%s9847_s15 + $0x1b0] sm:$0xff] }
 0xf20   :  { %3763 = vmatprep.mubr.f32.mxu1 %v3554_v31  ;;  %5719 = vmatprep.subr.mxu0 %v3516_v62  ;;  %v4004_v31 = vld [vmem:[%s9847_s15 + $0x198] sm:$0xff]  ;;  %v4003_v3 = vld [vmem:[%s9847_s15 + $0x190] sm:$0xff] }
 0xf21   :  { %5986 = vmatpush3.msra.mxu1 %v10294_v47  ;;  %5720 = vmatpush3.msra.mxu0 %v3488_v24  ;;  %v3533_v12 = vpop.permute.xlu1 %3532  ;;  %v3529_v46 = vpop.permute.xlu0 %3528  ;;  %v4000_v62 = vld [vmem:[%s9847_s15 + $0x178] sm:$0xff]  ;;  %v3999_v24 = vld [vmem:[%s9847_s15 + $0x170] sm:$0xff] }
 0xf22   :  { %3764 = vmatmul.mubr.f32.gmra.mxu1 %v3553_v63  ;;  %5987 = vmatprep.subr.mxu1 %v10295_v13  ;;  %v3542_v0 = vmul.f32 %v10298_v23, %v3533_v12  ;;  %v3540_v28 = vmul.f32 %v10298_v23, %v3529_v46  ;;  %v3996_v47 = vld [vmem:[%s9847_s15 + $0x158] sm:$0xff]  ;;  %v3995_v63 = vld [vmem:[%s9847_s15 + $0x150] sm:$0xff] }
 0xf23   :  { %5721 = vmatprep.subr.mxu0 %v3515_v32  ;;  %5988 = vmatpush3.msra.mxu1 %v10295_v13  ;;  %v10307_v32 = vmov 0.0   ;;  %v3992_v12 = vld [vmem:[%s9847_s15 + $0x138] sm:$0xff]  ;;  %v3991_v46 = vld [vmem:[%s9847_s15 + $0x130] sm:$0xff] }
 0xf24   :  { %5722 = vmatpush3.msra.mxu0 %v10296_v19  ;;  %5989 = vmatprep.subr.mxu1 %v10297_v8  ;;  %v3988_v13 = vld [vmem:[%s9847_s15 + $0x118] sm:$0xff]  ;;  %v3983_v19 = vld [vmem:[%s9847_s15 + $0xf0] sm:$0xff] }
 0xf25   :  { %3768 = vmatprep.mubr.f32.mxu1 %v3561_v45  ;;  %5723 = vmatprep.subr.mxu0 %v3514_v33  ;;  %v3527_v61 = vpop.permute.xlu0 %3526  ;;  %v3461_v7 = vpop.permute.xlu1 %3460  ;;  %v3987_v45 = vld [vmem:[%s9847_s15 + $0x110] sm:$0xff]  ;;  %v3984_v33 = vld [vmem:[%s9847_s15 + $0xf8] sm:$0xff] }
 0xf26   :  { %5990 = vmatpush3.msra.mxu1 %v10297_v8  ;;  %5724 = vmatpush3.msra.mxu0 %v10299_v20  ;;  %v3470_v37 = vmul.f32 %v10301_v5, %v3461_v7  ;;  %v3539_v16 = vmul.f32 %v10298_v23, %v3527_v61  ;;  %v3980_v8 = vld [vmem:[%s9847_s15 + $0xd8] sm:$0xff]  ;;  %v3967_v20 = vld [vmem:[%s9847_s15 + $0x70] sm:$0xff] }
 0xf27   :  { %3769 = vmatmul.mubr.f32.gmra.mxu1 %v3560_v9  ;;  %5991 = vmatprep.subr.mxu1 %v3543_v40  ;;  %v3979_v9 = vld [vmem:[%s9847_s15 + $0xd0] sm:$0xff]  ;;  %v3972_v61 = vld [vmem:[%s9847_s15 + $0x98] sm:$0xff] }
 0xf28   :  { %5725 = vmatprep.subr.mxu0 %v3513_v34  ;;  %5992 = vmatpush3.msra.mxu1 %v3543_v40  ;;  %v3975_v40 = vld [vmem:[%s9847_s15 + $0xb0] sm:$0xff] }
 0xf29   :  { %5726 = vmatpush3.msra.mxu0 %v10300_v1  ;;  %3773 = vmatprep.mubr.f32.mxu1 %v3568_v4  ;;  %v3525_v10 = vpop.permute.xlu0 %3524  ;;  %v3457_v43 = vpop.permute.xlu1 %3456  ;;  %v3971_v34 = vld [vmem:[%s9847_s15 + $0x90] sm:$0xff]  ;;  %v3964_v4 = vld [vmem:[%s9847_s15 + $0x58] sm:$0xff] }
 0xf2a   :  { %5727 = vmatprep.subr.mxu0 %v3512_v52  ;;  %5993 = vmatprep.subr.mxu1 %v3542_v0  ;;  %v3468_v25 = vmul.f32 %v10301_v5, %v3457_v43  ;;  %v3538_v42 = vmul.f32 %v10298_v23, %v3525_v10  ;;  %v3963_v7 = vld [vmem:[%s9847_s15 + $0x50] sm:$0xff]  ;;  %v3960_v52 = vld [vmem:[%s9847_s15 + $0x38] sm:$0xff]  ;;  %v10308_v5 = vld [vmem:[#allocation74_spill] sm:$0xff] }
 0xf2b   :  { %3774 = vmatmul.mubr.f32.gmra.mxu1 %v3567_v14  ;;  %5728 = vmatpush3.msra.mxu0 %v10302_v60  ;;  %v3959_v14 = vld [vmem:[%s9847_s15 + $0x30] sm:$0xff]  ;;  %v3956_v1 = vld [vmem:[%s9847_s15 + $0x18] sm:$0xff]  ;;  %v4009_v60 = vld [vmem:[%s9847_s15 + $0x1c0] sm:$0xff] }
 0xf2c   :  { %5994 = vmatpush3.msra.mxu1 %v3542_v0  ;;  %5729 = vmatprep.subr.mxu0 %v10303_v35  ;;  %v3968_v0 = vld [vmem:[%s9847_s15 + $0x78] sm:$0xff]  ;;  %v3955_v10 = vld [vmem:[%s9847_s15 + $0x10] sm:$0xff]  ;;  %v4006_v35 = vld [vmem:[%s9847_s15 + $0x1a8] sm:$0xff] }
 0xf2d   :  { %5995 = vmatprep.subr.mxu1 %v3541_v44  ;;  %5730 = vmatpush3.msra.mxu0 %v3471_v59  ;;  %v3523_v51 = vpop.permute.xlu0 %3522  ;;  %v3521_v38 = vpop.permute.xlu1 %3520  ;;  %v4014_v59 = vld [vmem:[%s9847_s15 + $0x1e8] sm:$0xff]  ;;  %v4005_v43 = vld [vmem:[%s9847_s15 + $0x1a0] sm:$0xff] }
 0xf2e   :  { %5996 = vmatpush3.msra.mxu1 %v3541_v44  ;;  %5731 = vmatprep.subr.mxu0 %v10304_v50  ;;  %v3537_v54 = vmul.f32 %v10298_v23, %v3523_v51  ;;  %v3536_v15 = vmul.f32 %v10298_v23, %v3521_v38  ;;  %v3976_v23 = vld [vmem:[%s9847_s15 + $0xb8] sm:$0xff]  ;;  %v4013_v44 = vld [vmem:[%s9847_s15 + $0x1e0] sm:$0xff]  ;;  %v3998_v50 = vld [vmem:[%s9847_s15 + $0x168] sm:$0xff] }
 0xf2f   :  { %5997 = vmatprep.subr.mxu1 %v3540_v28  ;;  %5732 = vmatpush3.msra.mxu0 %v3470_v37  ;;  %v4010_v37 = vld [vmem:[%s9847_s15 + $0x1c8] sm:$0xff]  ;;  %v3997_v51 = vld [vmem:[%s9847_s15 + $0x160] sm:$0xff] }
 0xf30   :  { %5998 = vmatpush3.msra.mxu1 %v3540_v28  ;;  %5733 = vmatprep.subr.mxu0 %v10305_v55  ;;  %v4002_v28 = vld [vmem:[%s9847_s15 + $0x188] sm:$0xff]  ;;  %v3989_v55 = vld [vmem:[%s9847_s15 + $0x120] sm:$0xff] }
 0xf31   :  { %5999 = vmatprep.subr.mxu1 %v3539_v16  ;;  %5734 = vmatpush3.msra.mxu0 %v3469_v17  ;;  %v4001_v17 = vld [vmem:[%s9847_s15 + $0x180] sm:$0xff] }
 0xf32   :  { %6000 = vmatpush3.msra.mxu1 %v3539_v16  ;;  %5735 = vmatprep.subr.mxu0 %v10306_v53  ;;  %v3994_v16 = vld [vmem:[%s9847_s15 + $0x148] sm:$0xff]  ;;  %v3981_v38 = vld [vmem:[%s9847_s15 + $0xe0] sm:$0xff] }
 0xf33   :  { %6001 = vmatprep.subr.mxu1 %v3538_v42  ;;  %5736 = vmatpush3.msra.mxu0 %v3468_v25  ;;  %v3993_v25 = vld [vmem:[%s9847_s15 + $0x140] sm:$0xff]  ;;  %v3982_v53 = vld [vmem:[%s9847_s15 + $0xe8] sm:$0xff] }
 0xf34   :  { %3843 = vmatprep.mubr.f32.mxu0 %v3549_v2  ;;  %6002 = vmatpush3.msra.mxu1 %v3538_v42  ;;  %v3990_v42 = vld [vmem:[%s9847_s15 + $0x128] sm:$0xff] }
 0xf35   :  { %3844 = vmatmul.mubr.f32.vlgmr.msra.gmra.mxu0 %v3548_v41  ;;  %6003 = vmatprep.subr.mxu1 %v3537_v54  ;;  %v3986_v2 = vld [vmem:[%s9847_s15 + $0x108] sm:$0xff] }
 0xf36   :  { %3848 = vmatprep.mubr.f32.mxu0 %v3556_v6  ;;  %6004 = vmatpush3.msra.mxu1 %v3537_v54  ;;  %v3985_v54 = vld [vmem:[%s9847_s15 + $0x100] sm:$0xff]  ;;  %v3978_v41 = vld [vmem:[%s9847_s15 + $0xc8] sm:$0xff] }
 0xf37   :  { %6005 = vmatprep.subr.mxu1 %v3536_v15  ;;  %6007 = vmatprep.mubr.msk.f32.mxu1 %vm3596_vm7, %v3550_v30  ;;  %v3977_v6 = vld [vmem:[%s9847_s15 + $0xc0] sm:$0xff]  ;;  %v3974_v30 = vld [vmem:[%s9847_s15 + $0xa8] sm:$0xff] }
 0xf38   :  { %6006 = vmatpush3.msra.mxu1 %v3536_v15  ;;  %4017 = vmatprep.subr.mxu0 %v4014_v59  ;;  %v3973_v15 = vld [vmem:[%s9847_s15 + $0xa0] sm:$0xff] }
 0xf39   :  { %3849 = vmatmul.mubr.f32.gmra.mxu0 %v3555_v27  ;;  %6008 = vmatmul.mubr.msk.f32.vlgmr.msra.gmra.mxu1 %vm3596_vm7, %v3557_v39  ;;  %v3970_v27 = vld [vmem:[%s9847_s15 + $0x88] sm:$0xff]  ;;  %v3969_v39 = vld [vmem:[%s9847_s15 + $0x80] sm:$0xff] }
 0xf3a   :  { %4106 = vmatprep.subr.mxu1 %v4016_v22  ;;  %3853 = vmatprep.mubr.f32.mxu0 %v3563_v49  ;;  %v3966_v22 = vld [vmem:[%s9847_s15 + $0x68] sm:$0xff]  ;;  %v3965_v49 = vld [vmem:[%s9847_s15 + $0x60] sm:$0xff] }
 0xf3b   :  { %4107 = vmatpush1.msra.mxu1 %v4015_v21  ;;  %6010 = vmatprep.mubr.msk.f32.mxu1 %vm3596_vm7, %v3564_v29  ;;  %v3962_v21 = vld [vmem:[%s9847_s15 + $0x48] sm:$0xff]  ;;  %v3961_v29 = vld [vmem:[%s9847_s15 + $0x40] sm:$0xff] }
 0xf3c   :  { %4108 = vmatprep.subr.mxu1 %v4012_v36  ;;  %4018 = vmatpush1.msra.mxu0 %v4013_v44  ;;  %v3958_v36 = vld [vmem:[%s9847_s15 + $0x28] sm:$0xff] }
 0xf3d   :  { %3854 = vmatmul.mubr.f32.gmra.mxu0 %v3562_v18  ;;  %4109 = vmatpush1.msra.mxu1 %v4011_v26  ;;  %v3957_v18 = vld [vmem:[%s9847_s15 + $0x20] sm:$0xff]  ;;  %v3954_v26 = vld [vmem:[%s9847_s15 + $0x8] sm:$0xff] }
 0xf3e   :  { %4110 = vmatprep.subr.mxu1 %v4008_v56  ;;  %3858 = vmatprep.mubr.f32.mxu0 %v3570_v57  ;;  %v3953_v56 = vld [vmem:[%s9847_s15] sm:$0xff] }
 0xf3f   :  { %4111 = vmatpush1.msra.mxu1 %v4007_v48  ;;  %4019 = vmatprep.subr.mxu0 %v4010_v37 }
 0xf40   :  { %6011 = vmatmul.mubr.msk.f32.gmra.mxu1 %vm3596_vm7, %v3571_v58  ;;  %4112 = vmatprep.subr.mxu1 %v4004_v31 }
 0xf41   :  { %3859 = vmatmul.mubr.f32.gmra.mxu0 %v3569_v11  ;;  %4113 = vmatpush1.msra.mxu1 %v4003_v3 }
 0xf42   :  { %4114 = vmatprep.subr.mxu1 %v4000_v62  ;;  %4081 = vmatprep.mubr.f32.mxu0 %v10307_v32 }
 0xf43   :  { %4115 = vmatpush1.msra.mxu1 %v3999_v24  ;;  %4170 = vmatprep.mubr.f32.mxu1 %v10307_v32 }
 0xf44   :  { %4116 = vmatprep.subr.mxu1 %v3996_v47  ;;  %4020 = vmatpush1.msra.mxu0 %v4009_v60 }
 0xf45   :  { %4117 = vmatpush1.msra.mxu1 %v3995_v63  ;;  %4021 = vmatprep.subr.mxu0 %v4006_v35 }
 0xf46   :  { %4118 = vmatprep.subr.mxu1 %v3992_v12  ;;  %4022 = vmatpush1.msra.mxu0 %v4005_v43 }
 0xf47   :  { %4119 = vmatpush1.msra.mxu1 %v3991_v46  ;;  %4023 = vmatprep.subr.mxu0 %v4002_v28 }
 0xf48   :  { %4120 = vmatprep.subr.mxu1 %v3988_v13  ;;  %4024 = vmatpush1.msra.mxu0 %v4001_v17 }
 0xf49   :  { %4121 = vmatpush1.msra.mxu1 %v3987_v45  ;;  %4025 = vmatprep.subr.mxu0 %v3998_v50 }
 0xf4a   :  { %4122 = vmatprep.subr.mxu1 %v3984_v33  ;;  %4026 = vmatpush1.msra.mxu0 %v3997_v51 }
 0xf4b   :  { %4123 = vmatpush1.msra.mxu1 %v3983_v19  ;;  %4027 = vmatprep.subr.mxu0 %v3994_v16 }
 0xf4c   :  { %4124 = vmatprep.subr.mxu1 %v3980_v8  ;;  %4028 = vmatpush1.msra.mxu0 %v3993_v25 }
 0xf4d   :  { %4125 = vmatpush1.msra.mxu1 %v3979_v9  ;;  %4029 = vmatprep.subr.mxu0 %v3990_v42  ;;  %v3579_v9 = vpop.permute.xlu0 %3578 }
 0xf4e   :  { %4126 = vmatprep.subr.mxu1 %v3976_v23  ;;  %4030 = vmatpush1.msra.mxu0 %v3989_v55 }
 0xf4f   :  { %4127 = vmatpush1.msra.mxu1 %v3975_v40  ;;  %4031 = vmatprep.subr.mxu0 %v3986_v2 }
 0xf50   :  { %4128 = vmatprep.subr.mxu1 %v3972_v61  ;;  %4032 = vmatpush1.msra.mxu0 %v3985_v54 }
 0xf51   :  { %4129 = vmatpush1.msra.mxu1 %v3971_v34  ;;  %4033 = vmatprep.subr.mxu0 %v3982_v53  ;;  %v3589_v35 = vpop.permute.xlu0 %3588 }
 0xf52   :  { %4130 = vmatprep.subr.mxu1 %v3968_v0  ;;  %4034 = vmatpush1.msra.mxu0 %v3981_v38 }
 0xf53   :  { %4131 = vmatpush1.msra.mxu1 %v3967_v20  ;;  %4035 = vmatprep.subr.mxu0 %v3978_v41  ;;  %v3584_v20 = vpop.permute.xlu1 %3583 }
 0xf54   :  { %4132 = vmatprep.subr.mxu1 %v3964_v4  ;;  %4036 = vmatpush1.msra.mxu0 %v3977_v6 }
 0xf55   :  { %4133 = vmatpush1.msra.mxu1 %v3963_v7  ;;  %4037 = vmatprep.subr.mxu0 %v3974_v30 }
 0xf56   :  { %4134 = vmatprep.subr.mxu1 %v3960_v52  ;;  %4038 = vmatpush1.msra.mxu0 %v3973_v15  ;;  %v10309_v15 = vld [vmem:[#allocation77_spill] sm:$0xff] }
 0xf57   :  { %4135 = vmatpush1.msra.mxu1 %v3959_v14  ;;  %4039 = vmatprep.subr.mxu0 %v3970_v27  ;;  %v3594_v6 = vpop.permute.xlu1 %3593 }
 0xf58   :  { %4136 = vmatprep.subr.mxu1 %v3956_v1  ;;  %4040 = vmatpush1.msra.mxu0 %v3969_v39 }
 0xf59   :  { %4137 = vmatpush1.msra.mxu1 %v3955_v10  ;;  %4041 = vmatprep.subr.mxu0 %v3966_v22 }
 0xf5a   :  { %4811 = vmatprep.subr.mxu1 %v10308_v5  ;;  %4042 = vmatpush1.msra.mxu0 %v3965_v49 }
 0xf5b   :  { %4043 = vmatprep.subr.mxu0 %v3962_v21  ;;  %v10310_v21 = vld [vmem:[#allocation75_spill] sm:$0xff] }
 0xf5c   :  { %4044 = vmatpush1.msra.mxu0 %v3961_v29 }
 0xf5d   :  { %4045 = vmatprep.subr.mxu0 %v3958_v36  ;;  %v10311_v36 = vld [vmem:[#allocation79_spill] sm:$0xff] }
 0xf5e   :  { %4046 = vmatpush1.msra.mxu0 %v3957_v18 }
 0xf5f   :  { %4047 = vmatprep.subr.mxu0 %v3954_v26 }
 0xf60   :  { %4048 = vmatpush1.msra.mxu0 %v3953_v56 }
 0xfce   :  { %v5649_v57 = vpop.f32.mrf.mxu0 }
 0xfd0   :  { %v5650_v48 = vpop.f32.mrf.mxu0 }
 0xfd1   :  { %v5651_v45 = vadd.f32 %v5650_v48, %v5649_v57 }
 0xfd3   :  { %v5652_v31 = vpop.f32.mrf.mxu0  ;;  %v3676_v40 = vadd.f32 %v5651_v45, %v3579_v9 }
 0xfd5   :  { %v5653_v3 = vpop.f32.mrf.mxu0 }
 0xfd6   :  { %v5654_v61 = vadd.f32 %v5653_v3, %v5652_v31 }
 0xfd8   :  { %v5655_v24 = vpop.f32.mrf.mxu0  ;;  %v3681_v5 = vadd.f32 %v5654_v61, %v3584_v20 }
 0xfda   :  { %v5656_v63 = vpop.f32.mrf.mxu0 }
 0xfdb   :  { %v5657_v14 = vadd.f32 %v5656_v63, %v5655_v24 }
 0xfdc   :  { %v5693_v58 = vpop.f32.mrf.mxu1 }
 0xfdd   :  { %v5658_v46 = vpop.f32.mrf.mxu0  ;;  %v3686_v50 = vadd.f32 %v5657_v14, %v3589_v35 }
 0xfde   :  { %v5694_v11 = vpop.f32.mrf.mxu1 }
 0xfdf   :  { %v5659_v33 = vpop.f32.mrf.mxu0  ;;  %v5695_v8 = vadd.f32 %v5694_v11, %v5693_v58 }
 0xfe0   :  { %v5660_v16 = vadd.f32 %v5659_v33, %v5658_v46 }
 0xfe1   :  { %v3761_v4 = vadd.f32 %v5695_v8, %v3676_v40 }
 0xfe2   :  { %v5696_v62 = vpop.f32.mrf.mxu1  ;;  %v3691_v27 = vadd.f32 %v5660_v16, %v3594_v6 }
 0xfe4   :  { %v5697_v47 = vpop.f32.mrf.mxu1 }
 0xfe5   :  { %v5698_v7 = vadd.f32 %v5697_v47, %v5696_v62 }
 0xfe7   :  { %v5699_v12 = vpop.f32.mrf.mxu1  ;;  %v3766_v43 = vadd.f32 %v5698_v7, %v3681_v5 }
 0xfe9   :  { %v5700_v13 = vpop.f32.mrf.mxu1 }
 0xfea   :  { %v5701_v44 = vadd.f32 %v5700_v13, %v5699_v12 }
 0xfeb   :  { %v5702_v19 = vpop.f32.mrf.mxu1 }
 0xfec   :  { %v3771_v55 = vadd.f32 %v5701_v44, %v3686_v50 }
 0xfed   :  { %v5703_v34 = vpop.f32.mrf.mxu1 }
 0xfee   :  { %v5704_v54 = vadd.f32 %v5703_v34, %v5702_v19 }
 0xff0   :  { %v3776_v18 = vadd.f32 %v5704_v54, %v3691_v27 }
 0xff5   :  { %v5737_v23 = vpop.f32.mrf.mxu0 }
 0xff7   :  { %v5738_v0 = vpop.f32.mrf.mxu0 }
 0xff8   :  { %v5739_v52 = vadd.f32 %v5738_v0, %v5737_v23 }
 0xff9   :  { %v5740_v1 = vpop.f32.mrf.mxu0  ;;  %v6009_v10 = vpop.f32.mrf.mxu1 }
 0xffa   :  { %v3846_v59 = vadd.f32 %v5739_v52, %v3761_v4 }
 0xffb   :  { %v5741_v37 = vpop.f32.mrf.mxu0  ;;  %v3930_v60 = vpop.f32.mrf.mxu1 }
 0xffc   :  { %v5742_v28 = vadd.f32 %v5741_v37, %v5740_v1  ;;  %v3931_v17 = vadd.f32 %v3930_v60, %v3846_v59 }
 0xffd   :  { %v5743_v51 = vpop.f32.mrf.mxu0 }
 0xffe   :  { %v3851_v25 = vadd.f32 %v5742_v28, %v3766_v43  ;;  %v3949_v42 = vmax.f32 %v3931_v17, 0.0 }
 0xfff   :  { %v5744_v2 = vpop.f32.mrf.mxu0 }
0x1000   :  { %v3936_v53 = vadd.f32 %v6009_v10, %v3851_v25  ;;  %v5745_v38 = vadd.f32 %v5744_v2, %v5743_v51  ;;  %v6012_v41 = vpop.f32.mrf.mxu1  ;;  %4082 = vmatmul.mubr.f32.vlgmr.msra.gmra.mxu0 %v3949_v42  ;;  %4171 = vmatmul.mubr.f32.vlgmr.msra.gmra.mxu1 %v3949_v42 }
0x1001   :  { %v5746_v30 = vpop.f32.mrf.mxu0  ;;  %4812 = vmatpush1.msra.mxu1 %v10309_v15  ;;  %4087 = vmatprep.mubr.f32.mxu0 %v10307_v32 }
0x1002   :  { %v3950_v39 = vmax.f32 %v3936_v53, 0.0  ;;  %v3856_v22 = vadd.f32 %v5745_v38, %v3771_v55  ;;  %v3940_v49 = vpop.f32.mrf.mxu1  ;;  %4813 = vmatprep.subr.mxu1 %v10310_v21  ;;  %4176 = vmatprep.mubr.f32.mxu1 %v10307_v32 }
0x1003   :  { %v5747_v29 = vpop.f32.mrf.mxu0  ;;  %4814 = vmatpush1.msra.mxu1 %v10311_v36 }
0x1004   :  { %v5748_v26 = vadd.f32 %v5747_v29, %v5746_v30  ;;  %v3941_v56 = vadd.f32 %v3940_v49, %v3856_v22  ;;  %4088 = vmatmul.mubr.f32.gmra.mxu0 %v3950_v39  ;;  %4177 = vmatmul.mubr.f32.gmra.mxu1 %v3950_v39  ;;  %v4710_v39 = vld [vmem:[#allocation9 + $0x18] sm:$0xff] }
0x1005   :  { %4093 = vmatprep.mubr.f32.mxu0 %v10307_v32  ;;  %4182 = vmatprep.mubr.f32.mxu1 %v10307_v32 }
0x1006   :  { %v3861_v57 = vadd.f32 %v5748_v26, %v3776_v18  ;;  %v3951_v48 = vmax.f32 %v3941_v56, 0.0 }
0x1008   :  { %4094 = vmatmul.mubr.f32.gmra.mxu0 %v3951_v48  ;;  %4183 = vmatmul.mubr.f32.gmra.mxu1 %v3951_v48  ;;  %v3946_v58 = vadd.f32 %v6012_v41, %v3861_v57 }
0x1009   :  { %4099 = vmatprep.mubr.f32.mxu0 %v10307_v32  ;;  %4188 = vmatprep.mubr.f32.mxu1 %v10307_v32 }
0x100a   :  { %v3952_v31 = vmax.f32 %v3946_v58, 0.0 }
0x100c   :  { %4100 = vmatmul.mubr.f32.gmra.mxu0 %v3952_v31  ;;  %4189 = vmatmul.mubr.f32.gmra.mxu1 %v3952_v31 }
0x100d   :  { %5343 = vmatprep.mubr.msk.f32.mxu1 %vm4727_vm6, %v4710_v39  ;;  %v4708_v39 = vld [vmem:[#allocation9 + $0x8] sm:$0xff] }
0x100e   :  { %4798 = vmatprep.mubr.f32.mxu0 %v4708_v39 }
0x10c0   :  { %v8651_v11 = vpop.f32.mrf.mxu0  ;;  %v8653_v3 = vpop.f32.mrf.mxu1 }
0x10c1   :  { %10312 = vst [vmem:[#allocation135_spill] sm:$0xff] %v8651_v11  ;;  %10313 = vst [vmem:[#allocation141_spill] sm:$0xff] %v8653_v3  ;;  %4595 = vrot.lane.b32.xlu1 %v8653_v3, %s6380_s21  ;;  %4323 = vrot.lane.b32.xlu0 %v8651_v11, %s6384_s23 }
0x10c2   :  { %v8667_v62 = vpop.f32.mrf.mxu1  ;;  %v8673_v24 = vpop.f32.mrf.mxu0 }
0x10c3   :  { %10314 = vst [vmem:[#allocation142_spill] sm:$0xff] %v8667_v62  ;;  %10315 = vst [vmem:[#allocation143_spill] sm:$0xff] %v8673_v24 }
0x10c4   :  { %v8687_v47 = vpop.f32.mrf.mxu0  ;;  %v8697_v63 = vpop.f32.mrf.mxu1 }
0x10c5   :  { %4579 = vrot.lane.b32.xlu1 %v8651_v11, %s6380_s21  ;;  %4531 = vrot.lane.b32.xlu0 %v8653_v3, %s6381_s1  ;;  %10316 = vst [vmem:[#allocation136_spill] sm:$0xff] %v8687_v47  ;;  %10317 = vst [vmem:[#allocation144_spill] sm:$0xff] %v8697_v63 }
0x10c6   :  { %v8711_v12 = vpop.f32.mrf.mxu1  ;;  %v8717_v46 = vpop.f32.mrf.mxu0 }
0x10c7   :  { %10318 = vst [vmem:[#allocation140_spill] sm:$0xff] %v8711_v12  ;;  %10319 = vst [vmem:[#allocation137_spill] sm:$0xff] %v8717_v46 }
0x10c8   :  { %v8739_v13 = vpop.f32.mrf.mxu1  ;;  %v8745_v45 = vpop.f32.mrf.mxu0 }
0x10c9   :  { %4259 = vrot.lane.b32.xlu1 %v8651_v11, %s6358_s2  ;;  %4467 = vrot.lane.b32.xlu0 %v8653_v3, %s6382_s8  ;;  %10320 = vst [vmem:[#allocation138_spill] sm:$0xff] %v8739_v13  ;;  %10321 = vst [vmem:[#allocation133_spill] sm:$0xff] %v8745_v45 }
0x10ca   :  { %v8763_v33 = vpop.f32.mrf.mxu0  ;;  %v8777_v19 = vpop.f32.mrf.mxu1 }
0x10cb   :  { %10322 = vst [vmem:[#allocation139_spill] sm:$0xff] %v8763_v33  ;;  %10323 = vst [vmem:[#allocation130_spill] sm:$0xff] %v8777_v19 }
0x10cc   :  { %v8783_v8 = vpop.f32.mrf.mxu0  ;;  %v8789_v9 = vpop.f32.mrf.mxu1 }
0x10cd   :  { %4515 = vrot.lane.b32.xlu1 %v8651_v11, %s6381_s1  ;;  %4347 = vrot.lane.b32.xlu0 %v8667_v62, %s6384_s23  ;;  %10324 = vst [vmem:[#allocation131_spill] sm:$0xff] %v8783_v8  ;;  %10325 = vst [vmem:[#allocation132_spill] sm:$0xff] %v8789_v9 }
0x10ce   :  { %v8831_v1 = vpop.f32.mrf.mxu0  ;;  %v8865_v28 = vpop.f32.mrf.mxu1 }
0x10cf   :  { %10331 = vst [vmem:[#allocation145_spill] sm:$0xff] %v8831_v1  ;;  %10333 = vst [vmem:[#allocation147_spill] sm:$0xff] %v8865_v28 }
0x10d1   :  { %4195 = vrot.lane.b32.xlu1 %v8651_v11, %s6385_s25  ;;  %4587 = vrot.lane.b32.xlu0 %v8673_v24, %s6380_s21 }
0x10d5   :  { %4451 = vrot.lane.b32.xlu1 %v8651_v11, %s6382_s8  ;;  %4267 = vrot.lane.b32.xlu0 %v8673_v24, %s6358_s2 }
0x10d9   :  { %4203 = vrot.lane.b32.xlu0 %v8673_v24, %s6385_s25  ;;  %4331 = vrot.lane.b32.xlu1 %v8673_v24, %s6384_s23 }
0x10dd   :  { %4283 = vrot.lane.b32.xlu1 %v8667_v62, %s6358_s2  ;;  %4325 = vrot.lane.b32.xlu0 %v8687_v47, %s6384_s23 }
0x10e1   :  { %4523 = vrot.lane.b32.xlu1 %v8673_v24, %s6381_s1  ;;  %4581 = vrot.lane.b32.xlu0 %v8687_v47, %s6380_s21 }
0x10e5   :  { %4219 = vrot.lane.b32.xlu1 %v8667_v62, %s6385_s25  ;;  %4533 = vrot.lane.b32.xlu0 %v8697_v63, %s6381_s1 }
0x10e9   :  { %4459 = vrot.lane.b32.xlu1 %v8673_v24, %s6382_s8  ;;  %4517 = vrot.lane.b32.xlu0 %v8687_v47, %s6381_s1 }
0x10ed   :  { %4597 = vrot.lane.b32.xlu1 %v8697_v63, %s6380_s21  ;;  %4453 = vrot.lane.b32.xlu0 %v8687_v47, %s6382_s8 }
0x10f1   :  { %4261 = vrot.lane.b32.xlu1 %v8687_v47, %s6358_s2  ;;  %4349 = vrot.lane.b32.xlu0 %v8711_v12, %s6384_s23 }
0x10f5   :  { %4197 = vrot.lane.b32.xlu1 %v8687_v47, %s6385_s25  ;;  %4589 = vrot.lane.b32.xlu0 %v8717_v46, %s6380_s21 }
0x10f9   :  { %4469 = vrot.lane.b32.xlu1 %v8697_v63, %s6382_s8  ;;  %4269 = vrot.lane.b32.xlu0 %v8717_v46, %s6358_s2 }
0x10fd   :  { %4661 = vrot.lane.b32.xlu1 %v8697_v63, %s6379_s4  ;;  %4205 = vrot.lane.b32.xlu0 %v8717_v46, %s6385_s25 }
0x1101   :  { %4461 = vrot.lane.b32.xlu0 %v8717_v46, %s6382_s8  ;;  %4333 = vrot.lane.b32.xlu1 %v8717_v46, %s6384_s23 }
0x1105   :  { %4653 = vrot.lane.b32.xlu0 %v8717_v46, %s6379_s4  ;;  %4285 = vrot.lane.b32.xlu1 %v8711_v12, %s6358_s2 }
0x1109   :  { %4525 = vrot.lane.b32.xlu1 %v8717_v46, %s6381_s1  ;;  %4535 = vrot.lane.b32.xlu0 %v8739_v13, %s6381_s1 }
0x110d   :  { %4221 = vrot.lane.b32.xlu1 %v8711_v12, %s6385_s25  ;;  %4519 = vrot.lane.b32.xlu0 %v8745_v45, %s6381_s1 }
0x1111   :  { %4471 = vrot.lane.b32.xlu0 %v8739_v13, %s6382_s8  ;;  %4327 = vrot.lane.b32.xlu1 %v8745_v45, %s6384_s23 }
0x1115   :  { %4455 = vrot.lane.b32.xlu0 %v8745_v45, %s6382_s8  ;;  %4599 = vrot.lane.b32.xlu1 %v8739_v13, %s6380_s21 }
0x1119   :  { %4663 = vrot.lane.b32.xlu0 %v8739_v13, %s6379_s4  ;;  %4583 = vrot.lane.b32.xlu1 %v8745_v45, %s6380_s21 }
0x111d   :  { %4263 = vrot.lane.b32.xlu1 %v8745_v45, %s6358_s2  ;;  %4335 = vrot.lane.b32.xlu0 %v8763_v33, %s6384_s23 }
0x1121   :  { %4199 = vrot.lane.b32.xlu1 %v8745_v45, %s6385_s25  ;;  %4591 = vrot.lane.b32.xlu0 %v8763_v33, %s6380_s21 }
0x1125   :  { %4647 = vrot.lane.b32.xlu1 %v8745_v45, %s6379_s4  ;;  %4271 = vrot.lane.b32.xlu0 %v8763_v33, %s6358_s2 }
0x1129   :  { %4351 = vrot.lane.b32.xlu1 %v8777_v19, %s6384_s23  ;;  %4207 = vrot.lane.b32.xlu0 %v8763_v33, %s6385_s25 }
0x112d   :  { %4287 = vrot.lane.b32.xlu1 %v8777_v19, %s6358_s2  ;;  %4329 = vrot.lane.b32.xlu0 %v8783_v8, %s6384_s23 }
0x1131   :  { %4527 = vrot.lane.b32.xlu1 %v8763_v33, %s6381_s1  ;;  %4601 = vrot.lane.b32.xlu0 %v8789_v9, %s6380_s21 }
0x1133   :  { %v8795_v23 = vpop.permute.xlu1 %4595  ;;  %v8797_v40 = vpop.permute.xlu0 %4323 }
0x1134   :  { %10326 = vst [vmem:[#allocation134_spill] sm:$0xff] %v8795_v23 }
0x1135   :  { %4223 = vrot.lane.b32.xlu1 %v8777_v19, %s6385_s25  ;;  %4265 = vrot.lane.b32.xlu0 %v8783_v8, %s6358_s2 }
0x1137   :  { %v8803_v61 = vpop.permute.xlu1 %4579  ;;  %v8805_v34 = vpop.permute.xlu0 %4531 }
0x1138   :  { %10327 = vst [vmem:[#allocation74_spill] sm:$0xff] %v8805_v34 }
0x1139   :  { %4463 = vrot.lane.b32.xlu1 %v8763_v33, %s6382_s8  ;;  %4537 = vrot.lane.b32.xlu0 %v8789_v9, %s6381_s1 }
0x113b   :  { %v8811_v0 = vpop.permute.xlu1 %4259  ;;  %v8813_v20 = vpop.permute.xlu0 %4467 }
0x113c   :  { %10328 = vst [vmem:[#allocation77_spill] sm:$0xff] %v8813_v20 }
0x113d   :  { %4655 = vrot.lane.b32.xlu1 %v8763_v33, %s6379_s4  ;;  %4521 = vrot.lane.b32.xlu0 %v8783_v8, %s6381_s1 }
0x113f   :  { %v8819_v4 = vpop.permute.xlu1 %4515  ;;  %v8821_v7 = vpop.permute.xlu0 %4347 }
0x1140   :  { %10329 = vst [vmem:[#allocation75_spill] sm:$0xff] %v8819_v4 }
0x1141   :  { %4585 = vrot.lane.b32.xlu1 %v8783_v8, %s6380_s21  ;;  %4201 = vrot.lane.b32.xlu0 %v8783_v8, %s6385_s25 }
0x1143   :  { %v8827_v52 = vpop.permute.xlu1 %4195  ;;  %v8829_v14 = vpop.permute.xlu0 %4587 }
0x1144   :  { %10330 = vst [vmem:[#allocation79_spill] sm:$0xff] %v8827_v52 }
0x1145   :  { %4473 = vrot.lane.b32.xlu0 %v8789_v9, %s6382_s8  ;;  %4337 = vrot.lane.b32.xlu1 %v8831_v1, %s6384_s23 }
0x1147   :  { %v8837_v10 = vpop.permute.xlu1 %4451  ;;  %v8839_v5 = vpop.permute.xlu0 %4267 }
0x1148   :  { %10332 = vst [vmem:[#allocation146_spill] sm:$0xff] %v8837_v10 }
0x1149   :  { %4457 = vrot.lane.b32.xlu0 %v8783_v8, %s6382_s8  ;;  %4651 = vrot.lane.b32.xlu1 %v8673_v24, %s6379_s4 }
0x114b   :  { %v8845_v59 = vpop.permute.xlu1 %4331  ;;  %v8847_v44 = vpop.permute.xlu0 %4203 }
0x114d   :  { %4665 = vrot.lane.b32.xlu0 %v8789_v9, %s6379_s4  ;;  %4643 = vrot.lane.b32.xlu1 %v8651_v11, %s6379_s4 }
0x114f   :  { %v8853_v37 = vpop.permute.xlu1 %4283  ;;  %v8855_v60 = vpop.permute.xlu0 %4325 }
0x1151   :  { %4649 = vrot.lane.b32.xlu0 %v8783_v8, %s6379_s4  ;;  %4593 = vrot.lane.b32.xlu1 %v8831_v1, %s6380_s21 }
0x1153   :  { %v8861_v35 = vpop.permute.xlu1 %4523  ;;  %v8863_v43 = vpop.permute.xlu0 %4581 }
0x1155   :  { %4353 = vrot.lane.b32.xlu0 %v8865_v28, %s6384_s23  ;;  %4273 = vrot.lane.b32.xlu1 %v8831_v1, %s6358_s2 }
0x1157   :  { %v8871_v17 = vpop.permute.xlu1 %4219  ;;  %v8873_v50 = vpop.permute.xlu0 %4533 }
0x1158   :  { %10334 = vst [vmem:[#allocation148_spill] sm:$0xff] %v8871_v17  ;;  %10335 = vst [vmem:[#allocation149_spill] sm:$0xff] %v8873_v50  ;;  %v10364_v17 = vld [vmem:[#allocation46_spill] sm:$0xff] }
0x1159   :  { %4645 = vrot.lane.b32.xlu0 %v8687_v47, %s6379_s4  ;;  %4343 = vrot.lane.b32.xlu1 %v8739_v13, %s6384_s23 }
0x115b   :  { %v8879_v51 = vpop.permute.xlu1 %4459  ;;  %v8881_v16 = vpop.permute.xlu0 %4517 }
0x115c   :  { %10336 = vst [vmem:[#allocation150_spill] sm:$0xff] %v8879_v51  ;;  %10337 = vst [vmem:[#allocation151_spill] sm:$0xff] %v8881_v16 }
0x115d   :  { %4659 = vrot.lane.b32.xlu0 %v8653_v3, %s6379_s4  ;;  %4339 = vrot.lane.b32.xlu1 %v8653_v3, %s6384_s23 }
0x115f   :  { %v8887_v25 = vpop.permute.xlu1 %4597  ;;  %v8889_v42 = vpop.permute.xlu0 %4453 }
0x1160   :  { %10338 = vst [vmem:[#allocation152_spill] sm:$0xff] %v8887_v25  ;;  %10339 = vst [vmem:[#allocation153_spill] sm:$0xff] %v8889_v42 }
0x1161   :  { %4289 = vrot.lane.b32.xlu0 %v8865_v28, %s6358_s2  ;;  %4529 = vrot.lane.b32.xlu1 %v8831_v1, %s6381_s1 }
0x1163   :  { %v8895_v55 = vpop.permute.xlu1 %4261  ;;  %v8897_v2 = vpop.permute.xlu0 %4349 }
0x1165   :  { %4345 = vrot.lane.b32.xlu0 %v8789_v9, %s6384_s23  ;;  %4209 = vrot.lane.b32.xlu1 %v8831_v1, %s6385_s25 }
0x1167   :  { %v8903_v54 = vpop.permute.xlu1 %4197  ;;  %v8905_v53 = vpop.permute.xlu0 %4589 }
0x1168   :  { %10340 = vst [vmem:[#allocation154_spill] sm:$0xff] %v8903_v54  ;;  %v4716_v54 = vld [vmem:[#allocation13 + $0x98] sm:$0xff] }
0x1169   :  { %4341 = vrot.lane.b32.xlu0 %v8697_v63, %s6384_s23  ;;  %4281 = vrot.lane.b32.xlu1 %v8789_v9, %s6358_s2 }
0x116b   :  { %v8911_v38 = vpop.permute.xlu1 %4469  ;;  %v8913_v41 = vpop.permute.xlu0 %4269 }
0x116c   :  { %10341 = vst [vmem:[#allocation155_spill] sm:$0xff] %v8911_v38 }
0x116d   :  { %4225 = vrot.lane.b32.xlu0 %v8865_v28, %s6385_s25  ;;  %4465 = vrot.lane.b32.xlu1 %v8831_v1, %s6382_s8 }
0x116f   :  { %v8919_v6 = vpop.permute.xlu1 %4661  ;;  %v8921_v30 = vpop.permute.xlu0 %4205 }
0x1170   :  { %10342 = vst [vmem:[#allocation156_spill] sm:$0xff] %v8919_v6  ;;  %10343 = vst [vmem:[#allocation157_spill] sm:$0xff] %v8921_v30 }
0x1171   :  { %4393 = vrot.lane.b32.xlu0 %v8783_v8, %s6383_s20  ;;  %4399 = vrot.lane.b32.xlu1 %v8763_v33, %s6383_s20 }
0x1173   :  { %v8927_v15 = vpop.permute.xlu1 %4333  ;;  %v8929_v27 = vpop.permute.xlu0 %4461 }
0x1174   :  { %10344 = vst [vmem:[#allocation158_spill] sm:$0xff] %v8927_v15  ;;  %10345 = vst [vmem:[#allocation159_spill] sm:$0xff] %v8929_v27 }
0x1175   :  { %4391 = vrot.lane.b32.xlu0 %v8745_v45, %s6383_s20  ;;  %4657 = vrot.lane.b32.xlu1 %v8831_v1, %s6379_s4 }
0x1177   :  { %v8936_v22 = vpop.permute.xlu1 %4285  ;;  %v8938_v49 = vpop.permute.xlu0 %4653 }
0x1178   :  { %10346 = vst [vmem:[#allocation160_spill] sm:$0xff] %v8938_v49 }
0x1179   :  { %4415 = vrot.lane.b32.xlu0 %v8777_v19, %s6383_s20  ;;  %4279 = vrot.lane.b32.xlu1 %v8739_v13, %s6358_s2 }
0x117b   :  { %v8944_v21 = vpop.permute.xlu1 %4525  ;;  %v8946_v29 = vpop.permute.xlu0 %4535 }
0x117c   :  { %10347 = vst [vmem:[#allocation161_spill] sm:$0xff] %v8946_v29 }
0x117d   :  { %4389 = vrot.lane.b32.xlu0 %v8687_v47, %s6383_s20  ;;  %4397 = vrot.lane.b32.xlu1 %v8717_v46, %s6383_s20 }
0x117f   :  { %v8952_v36 = vpop.permute.xlu1 %4221  ;;  %v8954_v18 = vpop.permute.xlu0 %4519 }
0x1180   :  { %10348 = vst [vmem:[#allocation162_spill] sm:$0xff] %v8952_v36  ;;  %10349 = vst [vmem:[#allocation163_spill] sm:$0xff] %v8954_v18  ;;  %v10363_v36 = vld [vmem:[#allocation28_spill] sm:$0xff] }
0x1181   :  { %4413 = vrot.lane.b32.xlu0 %v8711_v12, %s6383_s20  ;;  %4277 = vrot.lane.b32.xlu1 %v8697_v63, %s6358_s2  ;;  %vm10369_vm2 = vcmp.lt.s32.totalorder %v10363_v36, 112  ;;  %vm10384_vm15 = vcmp.lt.s32.totalorder %v10363_v36, 113 }
0x1182   :  { %vm10370_vm10 = vmmov %vm10369_vm2 }
0x1183   :  { %v8960_v26 = vpop.permute.xlu1 %4327  ;;  %v8962_v56 = vpop.permute.xlu0 %4471  ;;  %vm10372_vm1 = vmmov %vm10369_vm2 }
0x1184   :  { %10350 = vst [vmem:[#allocation164_spill] sm:$0xff] %v8962_v56  ;;  %vm10373_vm13 = vmmov %vm10372_vm1 }
0x1185   :  { %4395 = vrot.lane.b32.xlu1 %v8673_v24, %s6383_s20  ;;  %4387 = vrot.lane.b32.xlu0 %v8651_v11, %s6383_s20  ;;  %vm10374_vm5 = vmmov %vm10372_vm1 }
0x1186   :  { %vm10375_vm9 = vmmov %vm10372_vm1 }
0x1187   :  { %v8968_v57 = vpop.permute.xlu1 %4599  ;;  %v8970_v48 = vpop.permute.xlu0 %4455  ;;  %vm10377_vm3 = vmmov %vm10372_vm1 }
0x1188   :  { %10351 = vst [vmem:[#allocation165_spill] sm:$0xff] %v8968_v57  ;;  %10352 = vst [vmem:[#allocation166_spill] sm:$0xff] %v8970_v48 }
0x1189   :  { %4401 = vrot.lane.b32.xlu1 %v8831_v1, %s6383_s20  ;;  %4417 = vrot.lane.b32.xlu0 %v8865_v28, %s6383_s20  ;;  %vm10378_vm12 = vmmov %vm10372_vm1 }
0x118a   :  { %vm10387_vm7 = vmmov %vm10384_vm15 }
0x118b   :  { %v8976_v58 = vpop.permute.xlu1 %4583  ;;  %v8978_v31 = vpop.permute.xlu0 %4663 }
0x118c   :  { %10353 = vst [vmem:[#allocation167_spill] sm:$0xff] %v8978_v31 }
0x118d   :  { %4275 = vrot.lane.b32.xlu1 %v8653_v3, %s6358_s2  ;;  %4411 = vrot.lane.b32.xlu0 %v8667_v62, %s6383_s20 }
0x118f   :  { %v8984_v32 = vpop.permute.xlu1 %4263  ;;  %v8986_v11 = vpop.permute.xlu0 %4335 }
0x1190   :  { %10354 = vst [vmem:[#allocation168_spill] sm:$0xff] %v8986_v11 }
0x1191   :  { %4215 = vrot.lane.b32.xlu1 %v8739_v13, %s6385_s25  ;;  %4217 = vrot.lane.b32.xlu0 %v8789_v9, %s6385_s25 }
0x1193   :  { %v8992_v24 = vpop.permute.xlu1 %4199  ;;  %v8994_v47 = vpop.permute.xlu0 %4591 }
0x1195   :  { %4213 = vrot.lane.b32.xlu1 %v8697_v63, %s6385_s25  ;;  %4607 = vrot.lane.b32.xlu0 %v8777_v19, %s6380_s21 }
0x1197   :  { %v9000_v39 = vpop.permute.xlu1 %4647  ;;  %v9002_v46 = vpop.permute.xlu0 %4271 }
0x1198   :  { %10355 = vst [vmem:[#allocation169_spill] sm:$0xff] %v9000_v39 }
0x1199   :  { %4211 = vrot.lane.b32.xlu1 %v8653_v3, %s6385_s25  ;;  %4609 = vrot.lane.b32.xlu0 %v8865_v28, %s6380_s21 }
0x119b   :  { %v9008_v45 = vpop.permute.xlu1 %4351  ;;  %v9010_v33 = vpop.permute.xlu0 %4207 }
0x119d   :  { %4477 = vrot.lane.b32.xlu1 %v8711_v12, %s6382_s8  ;;  %4605 = vrot.lane.b32.xlu0 %v8711_v12, %s6380_s21 }
0x119f   :  { %v9016_v8 = vpop.permute.xlu1 %4287  ;;  %v4330_v1 = vpop.permute.xlu0 %4329 }
0x11a1   :  { %4475 = vrot.lane.b32.xlu1 %v8667_v62, %s6382_s8  ;;  %4603 = vrot.lane.b32.xlu0 %v8667_v62, %s6380_s21  ;;  %s10587_s21 = sld [smem:[#allocation184_spill]] }
0x11a3   :  { %v9022_v49 = vpop.permute.xlu1 %4527  ;;  %v9024_v6 = vpop.permute.xlu0 %4601 }
0x11a4   :  { %10356 = vst [vmem:[#allocation170_spill] sm:$0xff] %v9024_v6 }
0x11a5   :  { %4543 = vrot.lane.b32.xlu1 %v8777_v19, %s6381_s1  ;;  %4545 = vrot.lane.b32.xlu0 %v8865_v28, %s6381_s1 }
0x11a7   :  { %v9030_v39 = vpop.permute.xlu1 %4223  ;;  %v9032_v31 = vpop.permute.xlu0 %4265 }
0x11a9   :  { %4539 = vrot.lane.b32.xlu1 %v8667_v62, %s6381_s1  ;;  %4541 = vrot.lane.b32.xlu0 %v8711_v12, %s6381_s1 }
0x11ab   :  { %v9038_v42 = vpop.permute.xlu1 %4463  ;;  %v9040_v10 = vpop.permute.xlu0 %4537 }
0x11ac   :  { %10357 = vst [vmem:[#allocation171_spill] sm:$0xff] %v9040_v10 }
0x11ad   :  { %4409 = vrot.lane.b32.xlu1 %v8789_v9, %s6383_s20  ;;  %4479 = vrot.lane.b32.xlu0 %v8777_v19, %s6382_s8 }
0x11af   :  { %v9046_v51 = vpop.permute.xlu1 %4655  ;;  %v9048_v20 = vpop.permute.xlu0 %4521 }
0x11b0   :  { %10358 = vst [vmem:[#allocation172_spill] sm:$0xff] %v9046_v51  ;;  %10359 = vst [vmem:[#allocation173_spill] sm:$0xff] %v9048_v20 }
0x11b1   :  { %4407 = vrot.lane.b32.xlu1 %v8739_v13, %s6383_s20  ;;  %4481 = vrot.lane.b32.xlu0 %v8865_v28, %s6382_s8 }
0x11b3   :  { %v9054_v27 = vpop.permute.xlu1 %4585  ;;  %v9056_v38 = vpop.permute.xlu0 %4201 }
0x11b4   :  { %10360 = vst [vmem:[#allocation174_spill] sm:$0xff] %v9054_v27 }
0x11b5   :  { %4403 = vrot.lane.b32.xlu1 %v8653_v3, %s6383_s20  ;;  %4405 = vrot.lane.b32.xlu0 %v8697_v63, %s6383_s20 }
0x11b7   :  { %v9062_v9 = vpop.permute.xlu1 %4337  ;;  %v9064_v51 = vpop.permute.xlu0 %4473 }
0x11b8   :  { %10361 = vst [vmem:[#allocation175_spill] sm:$0xff] %v9062_v9  ;;  %10362 = vst [vmem:[#allocation176_spill] sm:$0xff] %v9064_v51  ;;  %v4366_v13 = vsel %vm450_vm0, %v4330_v1, %v9062_v9  ;;  %v4715_v9 = vld [vmem:[#allocation13 + $0x90] sm:$0xff] }
0x11b9   :  { %v4384_v48 = vmul.f32 %v10364_v17, %v4366_v13  ;;  %4671 = vrot.lane.b32.xlu1 %v8777_v19, %s6379_s4  ;;  %4673 = vrot.lane.b32.xlu0 %v8865_v28, %s6379_s4  ;;  %v5051_v19 = vld [vmem:[#allocation13 + $0x118] sm:$0xf] }
0x11bb   :  { %v9074_v3 = vpop.permute.xlu1 %4651  ;;  %4734 = vmatprep.subr.mxu0 %v4384_v48  ;;  %v9076_v63 = vpop.permute.xlu0 %4457  ;;  %v4617_v48 = vsel %vm10369_vm2, %v8994_v47, %v8968_v57  ;;  %v4365_v57 = vsel %vm450_vm0, %v8960_v26, %v8986_v11  ;;  %vm10388_vm2 = vmmov %vm10387_vm7 }
0x11bc   :  { %10365 = vst [vmem:[#allocation28_spill] sm:$0xff] %v9074_v3  ;;  %10366 = vst [vmem:[#allocation46_spill] sm:$0xff] %v9076_v63 }
0x11bd   :  { %4667 = vrot.lane.b32.xlu1 %v8667_v62, %s6379_s4  ;;  %4669 = vrot.lane.b32.xlu0 %v8711_v12, %s6379_s4  ;;  %v10371_v12 = vld [vmem:[#allocation33_spill] sm:$0xff] }
0x11bf   :  { %v9082_v13 = vpop.permute.xlu1 %4643  ;;  %v9084_v30 = vpop.permute.xlu0 %4665 }
0x11c0   :  { %10367 = vst [vmem:[#allocation177_spill] sm:$0xff] %v9084_v30 }
0x11c1   :  { %4719 = vperm.xlu1 %6051, %v4715_v9   ;;  %4724 = vperm.xlu0 %6050, %v4716_v54   ;;  %v4616_v9 = vsel %vm10372_vm1, %v8905_v53, %v8887_v25  ;;  %v4615_v54 = vsel %vm10373_vm13, %v8829_v14, %v8795_v23  ;;  %v4369_v23 = vsel %vm450_vm0, %v9008_v45, %v8960_v26  ;;  %vm10395_vm1 = vmmov %vm10388_vm2 }
0x11c2   :  { %v4632_v26 = vmul.f32 %v10371_v12, %v4616_v9  ;;  %vm10396_vm13 = vmmov %vm10395_vm1 }
0x11c3   :  { %v4594_v28 = vpop.permute.xlu1 %4593  ;;  %v9086_v3 = vpop.permute.xlu0 %4649 }
0x11c4   :  { %10368 = vst [vmem:[#allocation178_spill] sm:$0xff] %v9086_v3  ;;  %v4618_v62 = vsel %vm10370_vm10, %v4594_v28, %v9024_v6  ;;  %v4636_v6 = vmul.f32 %v10371_v12, %v4617_v48  ;;  %v10376_v48 = vld [vmem:[#allocation47_spill] sm:$0xff]  ;;  %vm10390_vm10 = vmmov %vm10388_vm2 }
0x11c5   :  { %v4640_v52 = vmul.f32 %v10371_v12, %v4618_v62  ;;  %5054 = vperm.xlu0 %6050, %v5051_v19   ;;  %v4622_v62 = vsel %vm10374_vm5, %v9054_v27, %v4594_v28  ;;  %v4364_v28 = vsel %vm450_vm0, %v8855_v60, %v8927_v15  ;;  %v4628_v15 = vmul.f32 %v10371_v12, %v4615_v54  ;;  %vm10397_vm5 = vmmov %vm10395_vm1 }
0x11c6   :  { %v4367_v12 = vsel %vm450_vm0, %v8821_v7, %v8797_v40 }
0x11c7   :  { %v9112_v19 = vpop.permute.xlu1 %4273  ;;  %4815 = vmatprep.subr.mxu1 %v4640_v52  ;;  %v9114_v25 = vpop.permute.xlu0 %4353  ;;  %v4621_v52 = vsel %vm10375_vm9, %v8976_v58, %v8994_v47  ;;  %v4363_v47 = vsel %vm450_vm0, %v8797_v40, %v8845_v59  ;;  %v4371_v54 = vmul.f32 %v10376_v48, %v4367_v12  ;;  %v10385_v12 = vld [vmem:[#allocation67_spill] sm:$0xff]  ;;  %vm10398_vm9 = vmmov %vm10395_vm1 }
0x11c8   :  { %v4370_v11 = vsel %vm450_vm0, %v9114_v25, %v4330_v1  ;;  %4816 = vmatpush1.msra.mxu1 %v4622_v62  ;;  %v4368_v1 = vsel %vm450_vm0, %v8897_v2, %v8855_v60  ;;  %v4380_v62 = vmul.f32 %v10364_v17, %v4365_v57  ;;  %v4620_v60 = vsel %vm10377_vm3, %v8863_v43, %v8905_v53 }
0x11c9   :  { %v4383_v27 = vmul.f32 %v10376_v48, %v4370_v11  ;;  %4817 = vmatprep.subr.mxu1 %v4636_v6  ;;  %v4379_v11 = vmul.f32 %v10376_v48, %v4369_v23  ;;  %v4376_v57 = vmul.f32 %v10364_v17, %v4364_v28  ;;  %v4375_v23 = vmul.f32 %v10376_v48, %v4368_v1  ;;  %v10379_v28 = vld [vmem:[#allocation82_spill] sm:$0xff]  ;;  %v10383_v48 = vld [vmem:[#allocation87_spill] sm:$0xff] }
0x11ca   :  { %4818 = vmatpush1.msra.mxu1 %v4621_v52  ;;  %v4372_v53 = vmul.f32 %v10364_v17, %v4363_v47  ;;  %v10382_v17 = vld [vmem:[#allocation114_spill] sm:$0xff]  ;;  %v4300_v1 = vsel %vm409_vm8, %v8895_v55, %v8913_v41  ;;  %v4305_v47 = vsel %vm409_vm8, %v9016_v8, %v8984_v32  ;;  %vm10399_vm3 = vcmp.lt.s32.totalorder %v10363_v36, 127 }
0x11cb   :  { %v9144_v6 = vpop.permute.xlu1 %4343  ;;  %4735 = vmatpush1.msra.mxu0 %v4383_v27  ;;  %4819 = vmatprep.subr.mxu1 %v4632_v26  ;;  %v9146_v9 = vpop.permute.xlu0 %4645  ;;  %v4619_v27 = vsel %vm10378_vm12, %v8803_v61, %v8829_v14  ;;  %v4302_v14 = vsel %vm409_vm8, %v9032_v31, %v9112_v19  ;;  %v10381_v26 = vld [vmem:[#allocation85_spill] sm:$0xff]  ;;  %vm10402_vm12 = vmmov %vm10399_vm3 }
0x11cc   :  { %4736 = vmatprep.subr.mxu0 %v4380_v62  ;;  %4820 = vmatpush1.msra.mxu1 %v4620_v60  ;;  %v4301_v62 = vsel %vm409_vm8, %v8984_v32, %v9002_v46 }
0x11cd   :  { %4737 = vmatpush1.msra.mxu0 %v4379_v11  ;;  %4821 = vmatprep.subr.mxu1 %v4628_v15  ;;  %v10380_v15 = vld [vmem:[#allocation83_spill] sm:$0xff]  ;;  %v4553_v11 = vsel %vm10384_vm15, %v9022_v49, %v8946_v29  ;;  %vm10403_vm15 = vmmov %vm10399_vm3 }
0x11ce   :  { %4738 = vmatprep.subr.mxu0 %v4376_v57  ;;  %4822 = vmatpush1.msra.mxu1 %v4619_v27 }
0x11cf   :  { %v9164_v40 = vpop.permute.xlu1 %4339  ;;  %4739 = vmatpush1.msra.mxu0 %v4375_v23  ;;  %4823 = vmatprep.subr.mxu1 %v10379_v28  ;;  %v9167_v52 = vpop.permute.xlu0 %4659  ;;  %v10386_v23 = vld [vmem:[#allocation50_spill] sm:$0xff]  ;;  %v10389_v28 = vld [vmem:[#allocation116_spill] sm:$0xff] }
0x11d0   :  { %4740 = vmatprep.subr.mxu0 %v4372_v53  ;;  %4824 = vmatpush1.msra.mxu1 %v10380_v15  ;;  %v4320_v27 = vmul.f32 %v10386_v23, %v4302_v14  ;;  %v4557_v15 = vsel %vm10390_vm10, %v8954_v18, %v9022_v49  ;;  %v10391_v14 = vld [vmem:[#allocation39_spill] sm:$0xff]  ;;  %v4552_v49 = vsel %vm10395_vm1, %v8944_v21, %v8873_v50  ;;  %v10427_v18 = vld [vmem:[#allocation146_spill] sm:$0xff] }
0x11d1   :  { %4741 = vmatpush1.msra.mxu0 %v4371_v54  ;;  %4825 = vmatprep.subr.mxu1 %v10381_v26  ;;  %v10422_v50 = vld [vmem:[#allocation159_spill] sm:$0xff] }
0x11d2   :  { %4742 = vmatprep.subr.mxu0 %v10382_v17  ;;  %4826 = vmatpush1.msra.mxu1 %v10383_v48  ;;  %v10392_v17 = vld [vmem:[#allocation36_spill] sm:$0xff] }
0x11d3   :  { %v4530_v60 = vpop.permute.xlu1 %4529  ;;  %4743 = vmatpush1.msra.mxu0 %v10385_v12  ;;  %v9194_v57 = vpop.permute.xlu0 %4289  ;;  %v10393_v12 = vld [vmem:[#allocation51_spill] sm:$0xff] }
0x11d4   :  { %v4554_v53 = vsel %vm10387_vm7, %v4530_v60, %v9040_v10  ;;  %v4558_v32 = vsel %vm10388_vm2, %v9048_v20, %v4530_v60  ;;  %v4306_v54 = vsel %vm409_vm8, %v9194_v57, %v9032_v31  ;;  %4744 = vmatprep.subr.mxu0 %v10389_v28  ;;  %v10394_v10 = vld [vmem:[#allocation117_spill] sm:$0xff]  ;;  %v4299_v31 = vsel %vm409_vm8, %v8811_v0, %v8839_v5  ;;  %vm10415_vm7 = vmmov %vm10399_vm3 }
0x11d5   :  { %v4575_v26 = vmul.f32 %v10391_v14, %v4558_v32  ;;  %v4576_v48 = vmul.f32 %v10392_v17, %v4554_v53  ;;  %v4319_v29 = vmul.f32 %v10393_v12, %v4306_v54  ;;  %4745 = vmatpush1.msra.mxu0 %v10394_v10  ;;  %v4304_v60 = vsel %vm409_vm8, %v8936_v22, %v8895_v55  ;;  %vm10423_vm2 = vmmov %vm10399_vm3 }
0x11d6   :  { %v4316_v53 = vmul.f32 %v10386_v23, %v4301_v62  ;;  %4746 = vmatprep.subr.mxu0 %v4320_v27  ;;  %v4303_v10 = vsel %vm409_vm8, %v8853_v37, %v8811_v0  ;;  %v4315_v32 = vmul.f32 %v10393_v12, %v4305_v47  ;;  %v4572_v54 = vmul.f32 %v10392_v17, %v4553_v11  ;;  %vm10426_vm10 = vmmov %vm10423_vm2 }
0x11d7   :  { %v9235_v28 = vpop.permute.xlu1 %4209  ;;  %4747 = vmatpush1.msra.mxu0 %v4319_v29  ;;  %4827 = vmatprep.subr.mxu1 %v4576_v48  ;;  %v9237_v55 = vpop.permute.xlu0 %4345  ;;  %v4556_v62 = vsel %vm10396_vm13, %v8881_v16, %v8944_v21  ;;  %v4571_v27 = vmul.f32 %v10391_v14, %v4557_v15  ;;  %v4312_v0 = vmul.f32 %v10386_v23, %v4300_v1  ;;  %vm10428_vm1 = vmmov %vm10423_vm2 }
0x11d8   :  { %4748 = vmatprep.subr.mxu0 %v4316_v53  ;;  %4828 = vmatpush1.msra.mxu1 %v4575_v26  ;;  %v4551_v47 = vsel %vm10397_vm5, %v8861_v35, %v8805_v34  ;;  %v4311_v29 = vmul.f32 %v10393_v12, %v4304_v60  ;;  %v4568_v11 = vmul.f32 %v10392_v17, %v4552_v49  ;;  %v10400_v53 = vld [vmem:[#allocation54_spill] sm:$0xff]  ;;  %vm10430_vm13 = vmmov %vm10428_vm1  ;;  %vm10431_vm5 = vcmp.lt.s32.totalorder %v10363_v36, 111 }
0x11d9   :  { %4749 = vmatpush1.msra.mxu0 %v4315_v32  ;;  %4829 = vmatprep.subr.mxu1 %v4572_v54  ;;  %v4555_v21 = vsel %vm10398_vm9, %v8819_v4, %v8861_v35  ;;  %v4308_v1 = vmul.f32 %v10386_v23, %v4299_v31  ;;  %v4567_v15 = vmul.f32 %v10391_v14, %v4556_v62  ;;  %v10401_v32 = vld [vmem:[#allocation120_spill] sm:$0xff]  ;;  %v10420_v4 = vld [vmem:[#allocation95_spill] sm:$0xff]  ;;  %vm10432_vm9 = vmmov %vm10431_vm5 }
0x11da   :  { %4750 = vmatprep.subr.mxu0 %v4312_v0  ;;  %4830 = vmatpush1.msra.mxu1 %v4571_v27  ;;  %v4307_v60 = vmul.f32 %v10393_v12, %v4303_v10  ;;  %v4238_v49 = vsel %vm348_vm14, %v9056_v38, %v9235_v28  ;;  %v4564_v35 = vmul.f32 %v10392_v17, %v4551_v47  ;;  %v10404_v0 = vld [vmem:[#allocation69_spill] sm:$0xff]  ;;  %v10405_v47 = vld [vmem:[#allocation90_spill] sm:$0xff] }
0x11db   :  { %v9257_v26 = vpop.permute.xlu1 %4281  ;;  %4751 = vmatpush1.msra.mxu0 %v4311_v29  ;;  %4831 = vmatprep.subr.mxu1 %v4568_v11  ;;  %v9259_v48 = vpop.permute.xlu0 %4341  ;;  %v4563_v23 = vmul.f32 %v10391_v14, %v4555_v21  ;;  %v4237_v31 = vsel %vm348_vm14, %v8992_v24, %v9010_v33  ;;  %v4241_v12 = vsel %vm348_vm14, %v9030_v39, %v8992_v24  ;;  %v10406_v11 = vld [vmem:[#allocation31_spill] sm:$0xff] }
0x11dc   :  { %4752 = vmatprep.subr.mxu0 %v4308_v1  ;;  %4832 = vmatpush1.msra.mxu1 %v4567_v15  ;;  %v4489_v17 = vsel %vm10399_vm3, %v9038_v42, %v8962_v56  ;;  %v4256_v10 = vmul.f32 %v10400_v53, %v4238_v49  ;;  %v10407_v1 = vld [vmem:[#allocation40_spill] sm:$0xff]  ;;  %v10419_v56 = vld [vmem:[#allocation162_spill] sm:$0xff]  ;;  %v4252_v34 = vmul.f32 %v10400_v53, %v4237_v31  ;;  %vm10436_vm3 = vmmov %vm10431_vm5 }
0x11dd   :  { %4753 = vmatpush1.msra.mxu0 %v4307_v60  ;;  %4833 = vmatprep.subr.mxu1 %v4564_v35  ;;  %v10408_v60 = vld [vmem:[#allocation55_spill] sm:$0xff]  ;;  %v10409_v35 = vld [vmem:[#allocation70_spill] sm:$0xff] }
0x11de   :  { %4754 = vmatprep.subr.mxu0 %v10401_v32  ;;  %4834 = vmatpush1.msra.mxu1 %v4563_v23  ;;  %v10410_v23 = vld [vmem:[#allocation91_spill] sm:$0xff] }
0x11df   :  { %v4466_v54 = vpop.permute.xlu1 %4465  ;;  %v9282_v62 = vpop.permute.xlu0 %4225  ;;  %4755 = vmatpush1.msra.mxu0 %v10404_v0  ;;  %4835 = vmatprep.subr.mxu1 %v10405_v47  ;;  %v10411_v32 = vld [vmem:[#allocation79_spill] sm:$0xff]  ;;  %v10412_v0 = vld [vmem:[#allocation157_spill] sm:$0xff]  ;;  %v10413_v47 = vld [vmem:[#allocation154_spill] sm:$0xff] }
0x11e0   :  { %v4490_v27 = vsel %vm10402_vm12, %v4466_v54, %v9064_v51  ;;  %v4494_v24 = vsel %vm10403_vm15, %v9076_v63, %v4466_v54  ;;  %v4242_v29 = vsel %vm348_vm14, %v9282_v62, %v9056_v38  ;;  %4756 = vmatprep.subr.mxu0 %v10409_v35  ;;  %4836 = vmatpush1.msra.mxu1 %v10410_v23  ;;  %v10417_v35 = vld [vmem:[#allocation93_spill] sm:$0xff]  ;;  %v10418_v23 = vld [vmem:[#allocation148_spill] sm:$0xff]  ;;  %vm10440_vm12 = vmmov %vm10436_vm3 }
0x11e1   :  { %v4511_v21 = vmul.f32 %v10406_v11, %v4494_v24  ;;  %v4512_v15 = vmul.f32 %v10407_v1, %v4490_v27  ;;  %v4255_v49 = vmul.f32 %v10408_v60, %v4242_v29  ;;  %v4235_v54 = vsel %vm348_vm14, %v10411_v32, %v8847_v44  ;;  %v10414_v24 = vld [vmem:[#allocation166_spill] sm:$0xff]  ;;  %v10416_v29 = vld [vmem:[#allocation121_spill] sm:$0xff]  ;;  %4837 = vmatprep.subr.mxu1 %v10417_v35  ;;  %vm10444_vm15 = vmmov %vm10436_vm3 }
0x11e2   :  { %v4236_v38 = vsel %vm348_vm14, %v10413_v47, %v10412_v0  ;;  %v4493_v27 = vsel %vm10415_vm7, %v10414_v24, %v9038_v42  ;;  %4757 = vmatpush1.msra.mxu0 %v10416_v29  ;;  %v4239_v51 = vsel %vm348_vm14, %v10418_v23, %v10411_v32  ;;  %v4240_v63 = vsel %vm348_vm14, %v10419_v56, %v10413_v47  ;;  %v10421_v32 = vld [vmem:[#allocation155_spill] sm:$0xff]  ;;  %vm10446_vm7 = vmmov %vm10436_vm3 }
0x11e3   :  { %4758 = vmatprep.subr.mxu0 %v4256_v10  ;;  %4838 = vmatpush1.msra.mxu1 %v10420_v4  ;;  %v9325_v42 = vpop.permute.xlu1 %4399  ;;  %v9327_v29 = vpop.permute.xlu0 %4393  ;;  %v4251_v35 = vmul.f32 %v10408_v60, %v4241_v12  ;;  %v4508_v24 = vmul.f32 %v10407_v1, %v4489_v17  ;;  %v4488_v47 = vsel %vm10423_vm2, %v10422_v50, %v10421_v32  ;;  %v10424_v17 = vld [vmem:[#allocation77_spill] sm:$0xff]  ;;  %vm10448_vm2 = vmmov %vm10436_vm3 }
0x11e4   :  { %4759 = vmatpush1.msra.mxu0 %v4255_v49  ;;  %4839 = vmatprep.subr.mxu1 %v4512_v15  ;;  %v4507_v31 = vmul.f32 %v10406_v11, %v4493_v27  ;;  %v4248_v4 = vmul.f32 %v10400_v53, %v4236_v38  ;;  %v4243_v10 = vmul.f32 %v10408_v60, %v4239_v51  ;;  %v10425_v15 = vld [vmem:[#allocation150_spill] sm:$0xff]  ;;  %v10433_v38 = vld [vmem:[#allocation124_spill] sm:$0xff]  ;;  %v10434_v27 = vld [vmem:[#allocation167_spill] sm:$0xff] }
0x11e5   :  { %4760 = vmatprep.subr.mxu0 %v4252_v34  ;;  %4840 = vmatpush1.msra.mxu1 %v4511_v21  ;;  %v4247_v16 = vmul.f32 %v10408_v60, %v4240_v63  ;;  %v4244_v12 = vmul.f32 %v10400_v53, %v4235_v54  ;;  %v4487_v49 = vsel %vm10426_vm10, %v10425_v15, %v10424_v17  ;;  %v10429_v21 = vld [vmem:[#allocation153_spill] sm:$0xff]  ;;  %vm10449_vm10 = vmmov %vm10448_vm2 }
0x11e6   :  { %4761 = vmatpush1.msra.mxu0 %v4251_v35  ;;  %4841 = vmatprep.subr.mxu1 %v4508_v24  ;;  %v4491_v34 = vsel %vm10428_vm1, %v10427_v18, %v10425_v15  ;;  %v4492_v51 = vsel %vm10430_vm13, %v10429_v21, %v10422_v50  ;;  %v4504_v24 = vmul.f32 %v10407_v1, %v4488_v47  ;;  %v10435_v50 = vld [vmem:[#allocation172_spill] sm:$0xff]  ;;  %v10441_v47 = vld [vmem:[#allocation126_spill] sm:$0xff] }
0x11e7   :  { %4762 = vmatprep.subr.mxu0 %v4248_v4  ;;  %4842 = vmatpush1.msra.mxu1 %v4507_v31  ;;  %v4658_v63 = vpop.permute.xlu1 %4657  ;;  %v9352_v60 = vpop.permute.xlu0 %4391  ;;  %v4681_v35 = vsel %vm10436_vm3, %v10435_v50, %v10434_v27  ;;  %v10437_v4 = vld [vmem:[#allocation29_spill] sm:$0xff]  ;;  %v4503_v20 = vmul.f32 %v10406_v11, %v4492_v51  ;;  %v4500_v51 = vmul.f32 %v10407_v1, %v4487_v49 }
0x11e8   :  { %v4682_v53 = vsel %vm10431_vm5, %v4658_v63, %v9084_v30  ;;  %v4686_v54 = vsel %vm10432_vm9, %v9086_v3, %v4658_v63  ;;  %4763 = vmatpush1.msra.mxu0 %v4247_v16  ;;  %4863 = vmatprep.subr.mxu1 %v10433_v38  ;;  %v10438_v30 = vld [vmem:[#allocation125_spill] sm:$0xff]  ;;  %v10442_v38 = vld [vmem:[#allocation156_spill] sm:$0xff]  ;;  %v4499_v27 = vmul.f32 %v10406_v11, %v4491_v34  ;;  %v10450_v34 = vld [vmem:[#allocation63_spill] sm:$0xff]  ;;  %vm10500_vm5 = vcmp.lt.s32.totalorder %v10363_v36, 127 }
0x11e9   :  { %v4703_v31 = vmul.f32 %v10406_v11, %v4686_v54  ;;  %v4704_v15 = vmul.f32 %v10437_v4, %v4682_v53  ;;  %4764 = vmatprep.subr.mxu0 %v4244_v12  ;;  %4864 = vmatpush2.msra.mxu1 %v10438_v30  ;;  %v10439_v16 = vld [vmem:[#allocation169_spill] sm:$0xff]  ;;  %v10443_v3 = vld [vmem:[#allocation160_spill] sm:$0xff]  ;;  %v10445_v53 = vld [vmem:[#allocation127_spill] sm:$0xff] }
0x11ea   :  { %v4685_v63 = vsel %vm10440_vm12, %v10439_v16, %v10435_v50  ;;  %4765 = vmatpush1.msra.mxu0 %v4243_v10  ;;  %4865 = vmatprep.subr.mxu1 %v10441_v47  ;;  %v4680_v54 = vsel %vm10444_vm15, %v10443_v3, %v10442_v38  ;;  %v4700_v10 = vmul.f32 %v10437_v4, %v4681_v35  ;;  %v10447_v47 = vld [vmem:[#allocation28_spill] sm:$0xff]  ;;  %vm10508_vm12 = vmmov %vm10500_vm5 }
0x11eb   :  { %4766 = vmatprep.subr.mxu0 %v4504_v24  ;;  %4866 = vmatpush2.msra.mxu1 %v10445_v53  ;;  %v9380_v12 = vpop.permute.xlu1 %4279  ;;  %v9382_v30 = vpop.permute.xlu0 %4415  ;;  %v4684_v50 = vsel %vm10446_vm7, %v9146_v9, %v10443_v3  ;;  %v4699_v24 = vmul.f32 %v10406_v11, %v4685_v63  ;;  %v4679_v53 = vsel %vm10448_vm2, %v10447_v47, %v9167_v52  ;;  %v10451_v63 = vld [vmem:[#allocation62_spill] sm:$0xff]  ;;  %vm10509_vm15 = vmmov %vm10500_vm5 }
0x11ec   :  { %4767 = vmatpush2.msra.mxu0 %v4503_v20  ;;  %4867 = vmatprep.subr.mxu1 %v4704_v15  ;;  %v4696_v1 = vmul.f32 %v10437_v4, %v4680_v54  ;;  %v4683_v49 = vsel %vm10449_vm10, %v9082_v13, %v10447_v47  ;;  %v4695_v3 = vmul.f32 %v10406_v11, %v4684_v50  ;;  %v10452_v54 = vld [vmem:[#allocation175_spill] sm:$0xff]  ;;  %v10454_v50 = vld [vmem:[#allocation48_spill] sm:$0xff]  ;;  %v9425_v47 = vld [vmem:[#allocation9 + $0x10] sm:$0xff]  ;;  %vm10514_vm10 = vcmp.lt.s32.totalorder %v10363_v36, 113 }
0x11ed   :  { %4768 = vmatprep.subr.mxu0 %v4500_v51  ;;  %4868 = vmatpush2.msra.mxu1 %v4703_v31  ;;  %v4358_v20 = vsel %vm450_vm0, %v9237_v55, %v9114_v25  ;;  %v4692_v15 = vmul.f32 %v10437_v4, %v4679_v53  ;;  %v4362_v51 = vsel %vm450_vm0, %v10452_v54, %v9237_v55  ;;  %v10453_v25 = vld [vmem:[#allocation59_spill] sm:$0xff]  ;;  %v10457_v53 = vld [vmem:[#allocation145_spill] sm:$0xff] }
0x11ee   :  { %4769 = vmatpush2.msra.mxu0 %v4499_v27  ;;  %4869 = vmatprep.subr.mxu1 %v4700_v10  ;;  %v4691_v27 = vmul.f32 %v10406_v11, %v4683_v49  ;;  %v4357_v10 = vsel %vm450_vm0, %v9144_v6, %v9008_v45  ;;  %v4386_v4 = vmul.f32 %v10454_v50, %v4358_v20  ;;  %v10456_v11 = vld [vmem:[#allocation168_spill] sm:$0xff]  ;;  %v10458_v45 = vld [vmem:[#allocation49_spill] sm:$0xff] }
0x11ef   :  { %4770 = vmatprep.subr.mxu0 %v10450_v34  ;;  %4870 = vmatpush2.msra.mxu1 %v4699_v24  ;;  %v9407_v35 = vpop.permute.xlu1 %4397  ;;  %v9409_v31 = vpop.permute.xlu0 %4389  ;;  %v10455_v24 = vld [vmem:[#allocation58_spill] sm:$0xff]  ;;  %v4361_v55 = vsel %vm450_vm0, %v10456_v11, %v9144_v6  ;;  %v4356_v20 = vsel %vm450_vm0, %v9259_v48, %v8897_v2  ;;  %v10459_v34 = vld [vmem:[#allocation131_spill] sm:$0xff]  ;;  %v4355_v2 = vsel %vm450_vm0, %v9164_v40, %v8821_v7  ;;  %v10464_v7 = vld [vmem:[#allocation136_spill] sm:$0xff] }
0x11f0   :  { %4771 = vmatpush2.msra.mxu0 %v10451_v63  ;;  %4871 = vmatprep.subr.mxu1 %v4696_v1  ;;  %v10460_v6 = vld [vmem:[#allocation158_spill] sm:$0xff]  ;;  %v4381_v54 = vmul.f32 %v10458_v45, %v4361_v55  ;;  %v4374_v55 = vmul.f32 %v10454_v50, %v4355_v2 }
0x11f1   :  { %4772 = vmatprep.subr.mxu0 %v10453_v25  ;;  %4872 = vmatpush2.msra.mxu1 %v4695_v3  ;;  %v4385_v3 = vmul.f32 %v10458_v45, %v4362_v51  ;;  %v4360_v63 = vsel %vm450_vm0, %v10460_v6, %v9259_v48  ;;  %v10462_v51 = vld [vmem:[#allocation133_spill] sm:$0xff]  ;;  %v4359_v25 = vsel %vm450_vm0, %v8845_v59, %v9164_v40  ;;  %v10466_v40 = vld [vmem:[#allocation135_spill] sm:$0xff]  ;;  %vm10489_vm0 = vcmp.lt.s32.totalorder %v10363_v36, 112 }
0x11f2   :  { %4773 = vmatpush2.msra.mxu0 %v10455_v24  ;;  %4873 = vmatprep.subr.mxu1 %v4692_v15  ;;  %v4382_v15 = vmul.f32 %v10454_v50, %v4357_v10  ;;  %v4378_v48 = vmul.f32 %v10454_v50, %v4356_v20  ;;  %v10463_v10 = vld [vmem:[#allocation137_spill] sm:$0xff]  ;;  %v4377_v11 = vmul.f32 %v10458_v45, %v4360_v63  ;;  %vm10493_vm1 = vmmov %vm10489_vm0 }
0x11f3   :  { %4774 = vmatprep.subr.mxu0 %v10457_v53  ;;  %4874 = vmatpush2.msra.mxu1 %v4691_v27  ;;  %v9432_v1 = vpop.permute.xlu1 %4277  ;;  %v9434_v49 = vpop.permute.xlu0 %4413  ;;  %v10461_v27 = vld [vmem:[#allocation139_spill] sm:$0xff]  ;;  %v4373_v59 = vmul.f32 %v10458_v45, %v4359_v25  ;;  %v4298_v20 = vsel %vm409_vm8, %v9112_v19, %v9257_v26  ;;  %v4429_v50 = vsel %vm495_vm11, %v9352_v60, %v9325_v42  ;;  %v10467_v45 = vld [vmem:[#allocation98_spill] sm:$0xff]  ;;  %v10472_v25 = vld [vmem:[#allocation53_spill] sm:$0xff] }
0x11f4   :  { %4775 = vmatpush2.msra.mxu0 %v10459_v34  ;;  %4888 = vmatprep.subr.mxu1 %v4386_v4  ;;  %v10465_v53 = vld [vmem:[#allocation143_spill] sm:$0xff]  ;;  %v4433_v63 = vsel %vm495_vm11, %v9382_v30, %v9352_v60  ;;  %v10475_v60 = vld [vmem:[#allocation52_spill] sm:$0xff]  ;;  %vm10494_vm13 = vmmov %vm10489_vm0 }
0x11f5   :  { %4776 = vmatprep.subr.mxu0 %v10461_v27  ;;  %4876 = vmatmul.mubr.f32.vlgmr.msra.gmra.mxu1 %v9425_v47  ;;  %v10469_v27 = vld [vmem:[#allocation43_spill] sm:$0xff]  ;;  %vm10503_vm9 = vmmov %vm10489_vm0 }
0x11f6   :  { %4889 = vmatpush1.msra.mxu1 %v4385_v3  ;;  %4777 = vmatpush2.msra.mxu0 %v10462_v51  ;;  %v4294_v3 = vsel %vm409_vm8, %v9257_v26, %v9194_v57  ;;  %v4293_v57 = vsel %vm409_vm8, %v9380_v12, %v9016_v8  ;;  %v10468_v26 = vld [vmem:[#allocation99_spill] sm:$0xff]  ;;  %v10471_v51 = vld [vmem:[#allocation102_spill] sm:$0xff]  ;;  %vm10505_vm3 = vmmov %vm10489_vm0 }
0x11f7   :  { %4890 = vmatprep.subr.mxu1 %v4382_v15  ;;  %4778 = vmatprep.subr.mxu0 %v10463_v10  ;;  %v9461_v4 = vpop.permute.xlu1 %4395  ;;  %v4388_v24 = vpop.permute.xlu0 %4387  ;;  %v10473_v10 = vld [vmem:[#allocation115_spill] sm:$0xff]  ;;  %vm10511_vm7 = vmmov %vm10489_vm0 }
0x11f8   :  { %4891 = vmatpush1.msra.mxu1 %v4381_v54  ;;  %4779 = vmatpush2.msra.mxu0 %v10464_v7  ;;  %v10470_v54 = vld [vmem:[#allocation66_spill] sm:$0xff]  ;;  %v4322_v7 = vmul.f32 %v10475_v60, %v4294_v3  ;;  %v4292_v3 = vsel %vm409_vm8, %v9432_v1, %v8936_v22  ;;  %v4427_v22 = vsel %vm495_vm11, %v4388_v24, %v9461_v4  ;;  %vm10512_vm2 = vmmov %vm10489_vm0 }
0x11f9   :  { %4892 = vmatprep.subr.mxu1 %v4378_v48  ;;  %4780 = vmatprep.subr.mxu0 %v10465_v53  ;;  %v4321_v48 = vmul.f32 %v10472_v25, %v4298_v20  ;;  %v4297_v53 = vsel %vm409_vm8, %v9002_v46, %v9380_v12  ;;  %v4296_v12 = vsel %vm409_vm8, %v8913_v41, %v9432_v1 }
0x11fa   :  { %4893 = vmatpush1.msra.mxu1 %v4377_v11  ;;  %4781 = vmatpush2.msra.mxu0 %v10466_v40  ;;  %v10474_v11 = vld [vmem:[#allocation103_spill] sm:$0xff]  ;;  %v4314_v41 = vmul.f32 %v10475_v60, %v4292_v3  ;;  %v10485_v3 = vld [vmem:[#allocation57_spill] sm:$0xff] }
0x11fb   :  { %4894 = vmatprep.subr.mxu1 %v4374_v55  ;;  %4782 = vmatprep.subr.mxu0 %v10467_v45  ;;  %v9482_v34 = vpop.permute.xlu1 %4401  ;;  %v9484_v15 = vpop.permute.xlu0 %4417  ;;  %v4444_v55 = vmul.f32 %v10469_v27, %v4429_v50  ;;  %v4318_v45 = vmul.f32 %v10475_v60, %v4293_v57  ;;  %v10477_v50 = vld [vmem:[#allocation119_spill] sm:$0xff]  ;;  %v4432_v57 = vsel %vm495_vm11, %v9434_v49, %v9409_v31 }
0x11fc   :  { %4895 = vmatpush1.msra.mxu1 %v4373_v59  ;;  %v4430_v19 = vsel %vm495_vm11, %v9327_v29, %v9482_v34  ;;  %4783 = vmatpush2.msra.mxu0 %v10468_v26  ;;  %v4434_v6 = vsel %vm495_vm11, %v9484_v15, %v9327_v29  ;;  %v4428_v29 = vsel %vm495_vm11, %v9409_v31, %v9407_v35  ;;  %v10476_v59 = vld [vmem:[#allocation118_spill] sm:$0xff] }
0x11fd   :  { %v4448_v8 = vmul.f32 %v10469_v27, %v4430_v19  ;;  %4896 = vmatprep.subr.mxu1 %v10470_v54  ;;  %v4447_v2 = vmul.f32 %v10391_v14, %v4434_v6  ;;  %4784 = vmatprep.subr.mxu0 %v10471_v51  ;;  %v4443_v19 = vmul.f32 %v10391_v14, %v4433_v63 }
0x11fe   :  { %4897 = vmatpush1.msra.mxu1 %v10473_v10  ;;  %4785 = vmatpush2.msra.mxu0 %v10474_v11  ;;  %v4440_v46 = vmul.f32 %v10469_v27, %v4428_v29  ;;  %v4317_v26 = vmul.f32 %v10472_v25, %v4297_v53  ;;  %v4313_v54 = vmul.f32 %v10472_v25, %v4296_v12  ;;  %v10478_v11 = vld [vmem:[#allocation106_spill] sm:$0xff]  ;;  %v10482_v53 = vld [vmem:[#allocation56_spill] sm:$0xff] }
0x11ff   :  { %4898 = vmatprep.subr.mxu1 %v10476_v59  ;;  %v4276_v40 = vpop.permute.xlu1 %4275  ;;  %4786 = vmatprep.subr.mxu0 %v4448_v8  ;;  %v9521_v20 = vpop.permute.xlu0 %4411  ;;  %v10483_v59 = vld [vmem:[#allocation110_spill] sm:$0xff] }
0x1200   :  { %4899 = vmatpush1.msra.mxu1 %v10477_v50  ;;  %4787 = vmatpush2.msra.mxu0 %v4447_v2  ;;  %v4291_v6 = vsel %vm409_vm8, %v4276_v40, %v8853_v37  ;;  %v4295_v31 = vsel %vm409_vm8, %v8839_v5, %v4276_v40  ;;  %v4431_v1 = vsel %vm495_vm11, %v9521_v20, %v4388_v24  ;;  %v10484_v40 = vld [vmem:[#allocation122_spill] sm:$0xff]  ;;  %vm10491_vm8 = vmmov %vm10489_vm0 }
0x1201   :  { %4900 = vmatprep.subr.mxu1 %v4322_v7  ;;  %4788 = vmatprep.subr.mxu0 %v4444_v55  ;;  %v4439_v37 = vmul.f32 %v10391_v14, %v4432_v57  ;;  %v4436_v2 = vmul.f32 %v10469_v27, %v4427_v22  ;;  %v4310_v51 = vmul.f32 %v10475_v60, %v4291_v6  ;;  %v10479_v60 = vld [vmem:[#allocation68_spill] sm:$0xff]  ;;  %v10480_v7 = vld [vmem:[#allocation107_spill] sm:$0xff]  ;;  %v10490_v22 = vld [vmem:[#allocation170_spill] sm:$0xff] }
0x1202   :  { %4901 = vmatpush1.msra.mxu1 %v4321_v48  ;;  %4789 = vmatpush2.msra.mxu0 %v4443_v19  ;;  %v4309_v5 = vmul.f32 %v10472_v25, %v4295_v31  ;;  %v4435_v48 = vmul.f32 %v10391_v14, %v4431_v1  ;;  %v9575_v55 = vld [vmem:[#allocation9] sm:$0xff]  ;;  %v9601_v1 = vld [vmem:[#allocation9 + $0x28] sm:$0xff] }
0x1203   :  { %4902 = vmatprep.subr.mxu1 %v4318_v45  ;;  %v4216_v63 = vpop.permute.xlu1 %4215  ;;  %4790 = vmatprep.subr.mxu0 %v4440_v46  ;;  %v4218_v8 = vpop.permute.xlu0 %4217  ;;  %v10486_v57 = vld [vmem:[#allocation111_spill] sm:$0xff] }
0x1204   :  { %4903 = vmatpush1.msra.mxu1 %v4317_v26  ;;  %4791 = vmatpush2.msra.mxu0 %v4439_v37  ;;  %v4230_v10 = vsel %vm348_vm14, %v4218_v8, %v9282_v62  ;;  %v4229_v27 = vsel %vm348_vm14, %v4216_v63, %v9030_v39  ;;  %v4233_v14 = vsel %vm348_vm14, %v9010_v33, %v4216_v63  ;;  %v10481_v62 = vld [vmem:[#allocation71_spill] sm:$0xff]  ;;  %v10495_v37 = vld [vmem:[#allocation78_spill] sm:$0xff] }
0x1205   :  { %4904 = vmatprep.subr.mxu1 %v4314_v41  ;;  %4792 = vmatprep.subr.mxu0 %v4436_v2  ;;  %v4234_v25 = vsel %vm348_vm14, %v9235_v28, %v4218_v8  ;;  %v4258_v39 = vmul.f32 %v10482_v53, %v4230_v10  ;;  %v4253_v50 = vmul.f32 %v10485_v3, %v4233_v14  ;;  %v10487_v26 = vld [vmem:[#allocation123_spill] sm:$0xff]  ;;  %v10492_v41 = vld [vmem:[#allocation174_spill] sm:$0xff] }
0x1206   :  { %4905 = vmatpush1.msra.mxu1 %v4313_v54  ;;  %4793 = vmatpush2.msra.mxu0 %v4435_v48  ;;  %v4254_v46 = vmul.f32 %v10482_v53, %v4229_v27  ;;  %v4257_v12 = vmul.f32 %v10485_v3, %v4234_v25  ;;  %v9617_v27 = vld [vmem:[#allocation9 + $0x20] sm:$0xff] }
0x1207   :  { %4906 = vmatprep.subr.mxu1 %v4310_v51  ;;  %v4214_v24 = vpop.permute.xlu1 %4213  ;;  %v4608_v29 = vpop.permute.xlu0 %4607  ;;  %4794 = vmatprep.subr.mxu0 %v10478_v11  ;;  %v10499_v25 = vld [vmem:[#allocation80_spill] sm:$0xff]  ;;  %v9628_v11 = vld [vmem:[#allocation9 + $0x38] sm:$0xff] }
0x1208   :  { %4907 = vmatpush1.msra.mxu1 %v4309_v5  ;;  %4795 = vmatpush2.msra.mxu0 %v10480_v7  ;;  %v4228_v33 = vsel %vm348_vm14, %v4214_v24, %v10419_v56  ;;  %v4232_v28 = vsel %vm348_vm14, %v10412_v0, %v4214_v24  ;;  %v10488_v56 = vld [vmem:[#allocation165_spill] sm:$0xff]  ;;  %v4625_v54 = vsel %vm10494_vm13, %v4608_v29, %v8976_v58  ;;  %v10496_v5 = vld [vmem:[#allocation34_spill] sm:$0xff]  ;;  %v10497_v24 = vld [vmem:[#allocation76_spill] sm:$0xff] }
0x1209   :  { %4908 = vmatprep.subr.mxu1 %v10479_v60  ;;  %4796 = vmatprep.subr.mxu0 %v10483_v59  ;;  %v4613_v0 = vsel %vm10489_vm0, %v10488_v56, %v4608_v29  ;;  %v4249_v63 = vmul.f32 %v10485_v3, %v4232_v28  ;;  %v4250_v8 = vmul.f32 %v10482_v53, %v4228_v33  ;;  %v10498_v29 = vld [vmem:[#allocation35_spill] sm:$0xff]  ;;  %v9642_v59 = vld [vmem:[#allocation9 + $0x30] sm:$0xff]  ;;  %vm10517_vm0 = vmmov %vm10514_vm10 }
0x120a   :  { %4909 = vmatpush1.msra.mxu1 %v10481_v62  ;;  %4797 = vmatpush2.msra.mxu0 %v10486_v57  ;;  %v4637_v60 = vmul.f32 %v10498_v29, %v4613_v0  ;;  %v4638_v7 = vmul.f32 %v10496_v5, %v4625_v54  ;;  %v10502_v62 = vld [vmem:[#allocation81_spill] sm:$0xff]  ;;  %v10510_v57 = vld [vmem:[#allocation134_spill] sm:$0xff]  ;;  %vm10531_vm13 = vmmov %vm10517_vm0 }
0x120b   :  { %4910 = vmatprep.subr.mxu1 %v10484_v40  ;;  %v4212_v45 = vpop.permute.xlu1 %4211  ;;  %v4610_v19 = vpop.permute.xlu0 %4609  ;;  %4799 = vmatmul.mubr.f32.vlgmr.msra.gmra.mxu0 %v9575_v55  ;;  %v10506_v40 = vld [vmem:[#allocation42_spill] sm:$0xff] }
0x120c   :  { %4911 = vmatpush1.msra.mxu1 %v10487_v26  ;;  %v4614_v6 = vsel %vm10491_vm8, %v10490_v22, %v4610_v19  ;;  %v4626_v31 = vsel %vm10493_vm1, %v4610_v19, %v10492_v41  ;;  %4965 = vmatprep.subr.mxu0 %v10495_v37  ;;  %v4227_v2 = vsel %vm348_vm14, %v4212_v45, %v10418_v23  ;;  %v10507_v19 = vld [vmem:[#allocation41_spill] sm:$0xff]  ;;  %vm10521_vm8 = vmmov %vm10517_vm0 }
0x120d   :  { %4912 = vmatprep.subr.mxu1 %v4258_v39  ;;  %v4231_v51 = vsel %vm348_vm14, %v8847_v44, %v4212_v45  ;;  %v4642_v48 = vmul.f32 %v10496_v5, %v4626_v31  ;;  %4966 = vmatpush1.msra.mxu0 %v10497_v24  ;;  %v4641_v14 = vmul.f32 %v10498_v29, %v4614_v6  ;;  %vm10501_vm14 = vmmov %vm10500_vm5  ;;  %v10520_v24 = vld [vmem:[#allocation163_spill] sm:$0xff] }
0x120e   :  { %4913 = vmatpush1.msra.mxu1 %v4257_v12  ;;  %4967 = vmatprep.subr.mxu0 %v10499_v25  ;;  %v4245_v33 = vmul.f32 %v10485_v3, %v4231_v51  ;;  %vm10525_vm1 = vmmov %vm10517_vm0 }
0x120f   :  { %4914 = vmatprep.subr.mxu1 %v4254_v46  ;;  %v4478_v10 = vpop.permute.xlu1 %4477  ;;  %v4606_v58 = vpop.permute.xlu0 %4605  ;;  %4804 = vmatprep.mubr.f32.mxu0 %v9601_v1 }
0x1210   :  { %v4484_v23 = vsel %vm10500_vm5, %v10421_v32, %v4478_v10  ;;  %v4496_v44 = vsel %vm10501_vm14, %v4478_v10, %v10429_v21  ;;  %4915 = vmatpush1.msra.mxu1 %v4253_v50  ;;  %4968 = vmatpush1.msra.mxu0 %v10502_v62  ;;  %v4624_v39 = vsel %vm10503_vm9, %v4606_v58, %v8863_v43  ;;  %v10504_v21 = vld [vmem:[#allocation152_spill] sm:$0xff]  ;;  %v10529_v62 = vld [vmem:[#allocation38_spill] sm:$0xff]  ;;  %vm10535_vm5 = vmmov %vm10517_vm0 }
0x1211   :  { %v4246_v32 = vmul.f32 %v10482_v53, %v4227_v2  ;;  %4805 = vmatmul.mubr.f32.gmra.mxu0 %v9617_v27  ;;  %4916 = vmatprep.subr.mxu1 %v4250_v8  ;;  %v4612_v28 = vsel %vm10505_vm3, %v10504_v21, %v4606_v58  ;;  %v4505_v45 = vmul.f32 %v10506_v40, %v4484_v23  ;;  %v10515_v8 = vld [vmem:[#allocation65_spill] sm:$0xff]  ;;  %v10516_v2 = vld [vmem:[#allocation171_spill] sm:$0xff]  ;;  %v10522_v58 = vld [vmem:[#allocation84_spill] sm:$0xff] }
0x1212   :  { %v4506_v50 = vmul.f32 %v10507_v19, %v4496_v44  ;;  %4969 = vmatprep.subr.mxu0 %v4642_v48  ;;  %v4634_v43 = vmul.f32 %v10496_v5, %v4624_v39  ;;  %5344 = vmatprep.mubr.msk.f32.mxu1 %vm4727_vm6, %v9628_v11  ;;  %v4633_v56 = vmul.f32 %v10498_v29, %v4612_v28  ;;  %v10519_v48 = vld [vmem:[#allocation64_spill] sm:$0xff]  ;;  %v10526_v23 = vld [vmem:[#allocation37_spill] sm:$0xff]  ;;  %v10533_v28 = vld [vmem:[#allocation147_spill] sm:$0xff] }
0x1213   :  { %v4476_v53 = vpop.permute.xlu1 %4475  ;;  %v4604_v3 = vpop.permute.xlu0 %4603  ;;  %4917 = vmatpush1.msra.mxu1 %v4249_v63  ;;  %4970 = vmatpush1.msra.mxu0 %v4641_v14  ;;  %v10513_v63 = vld [vmem:[#allocation173_spill] sm:$0xff]  ;;  %vm10538_vm14 = vmmov %vm10517_vm0 }
0x1214   :  { %v4483_v46 = vsel %vm10508_vm12, %v10424_v17, %v4476_v53  ;;  %v4495_v12 = vsel %vm10509_vm15, %v4476_v53, %v10427_v18  ;;  %v4611_v26 = vsel %vm10511_vm7, %v10510_v57, %v4604_v3  ;;  %4882 = vmatmul.mubr.f32.gmra.mxu1 %v9642_v59  ;;  %4918 = vmatprep.subr.mxu1 %v4246_v32  ;;  %v10524_v14 = vld [vmem:[#allocation161_spill] sm:$0xff]  ;;  %v10537_v57 = vld [vmem:[#allocation75_spill] sm:$0xff]  ;;  %vm10541_vm9 = vmmov %vm10517_vm0 }
0x1215   :  { %v4502_v0 = vmul.f32 %v10507_v19, %v4495_v12  ;;  %v4623_v22 = vsel %vm10512_vm2, %v4604_v3, %v8803_v61  ;;  %4971 = vmatprep.subr.mxu0 %v4638_v7  ;;  %4919 = vmatpush1.msra.mxu1 %v4245_v33  ;;  %v4501_v17 = vmul.f32 %v10506_v40, %v4483_v46  ;;  %v10528_v7 = vld [vmem:[#allocation60_spill] sm:$0xff]  ;;  %v10530_v33 = vld [vmem:[#allocation151_spill] sm:$0xff]  ;;  %v10532_v21 = vld [vmem:[#allocation89_spill] sm:$0xff]  ;;  %vm10566_vm2 = vcmp.lt.s32.totalorder %v10363_v36, 111 }
0x1216   :  { %v4630_v18 = vmul.f32 %v10496_v5, %v4623_v22  ;;  %4972 = vmatpush1.msra.mxu0 %v4637_v60  ;;  %4920 = vmatprep.subr.mxu1 %v4506_v50  ;;  %v4629_v6 = vmul.f32 %v10498_v29, %v4611_v26  ;;  %v10518_v5 = vld [vmem:[#allocation86_spill] sm:$0xff]  ;;  %v10523_v29 = vld [vmem:[#allocation61_spill] sm:$0xff]  ;;  %v10527_v60 = vld [vmem:[#allocation88_spill] sm:$0xff] }
0x1217   :  { %v4544_v41 = vpop.permute.xlu1 %4543  ;;  %v4546_v31 = vpop.permute.xlu0 %4545  ;;  %4973 = vmatprep.subr.mxu0 %v4634_v43  ;;  %4921 = vmatpush2.msra.mxu1 %v4505_v45  ;;  %v10534_v53 = vld [vmem:[#allocation149_spill] sm:$0xff]  ;;  %v10536_v46 = vld [vmem:[#allocation132_spill] sm:$0xff]  ;;  %vm10548_vm3 = vmmov %vm10508_vm12 }
0x1218   :  { %4974 = vmatpush1.msra.mxu0 %v4633_v56  ;;  %4922 = vmatprep.subr.mxu1 %v4502_v0  ;;  %v4562_v61 = vsel %vm10514_vm10, %v4546_v31, %v10513_v63  ;;  %v4550_v51 = vsel %vm10517_vm0, %v10516_v2, %v4546_v31  ;;  %v4561_v10 = vsel %vm10521_vm8, %v4544_v41, %v10520_v24  ;;  %v10539_v56 = vld [vmem:[#allocation130_spill] sm:$0xff]  ;;  %vm10551_vm12 = vmmov %vm10548_vm3 }
0x1219   :  { %4975 = vmatprep.subr.mxu0 %v4630_v18  ;;  %4923 = vmatpush2.msra.mxu1 %v4501_v17  ;;  %v4549_v25 = vsel %vm10525_vm1, %v10524_v14, %v4544_v41  ;;  %v4578_v44 = vmul.f32 %v10526_v23, %v4562_v61  ;;  %v4577_v39 = vmul.f32 %v10529_v62, %v4550_v51  ;;  %v10540_v0 = vld [vmem:[#allocation74_spill] sm:$0xff]  ;;  %v10543_v41 = vld [vmem:[#allocation140_spill] sm:$0xff]  ;;  %v10546_v51 = vld [vmem:[#allocation141_spill] sm:$0xff] }
0x121a   :  { %4976 = vmatpush1.msra.mxu0 %v4629_v6  ;;  %4924 = vmatprep.subr.mxu1 %v10515_v8  ;;  %v4574_v43 = vmul.f32 %v10526_v23, %v4561_v10  ;;  %v4573_v12 = vmul.f32 %v10529_v62, %v4549_v25  ;;  %v10542_v18 = vld [vmem:[#allocation138_spill] sm:$0xff]  ;;  %v10544_v8 = vld [vmem:[#allocation144_spill] sm:$0xff]  ;;  %vm10553_vm15 = vmmov %vm10548_vm3 }
0x121b   :  { %v4540_v54 = vpop.permute.xlu1 %4539  ;;  %v4542_v37 = vpop.permute.xlu0 %4541  ;;  %4977 = vmatprep.subr.mxu0 %v10518_v5  ;;  %4925 = vmatpush2.msra.mxu1 %v10519_v48  ;;  %v10547_v48 = vld [vmem:[#allocation46_spill] sm:$0xff]  ;;  %v10549_v10 = vld [vmem:[#allocation100_spill] sm:$0xff]  ;;  %vm10558_vm7 = vmmov %vm10548_vm3 }
0x121c   :  { %4978 = vmatpush1.msra.mxu0 %v10522_v58  ;;  %4926 = vmatprep.subr.mxu1 %v10523_v29  ;;  %v4560_v32 = vsel %vm10531_vm13, %v4542_v37, %v10530_v33  ;;  %v4548_v3 = vsel %vm10535_vm5, %v10534_v53, %v4542_v37  ;;  %v4559_v26 = vsel %vm10538_vm14, %v4540_v54, %v10537_v57  ;;  %v10550_v14 = vld [vmem:[#allocation164_spill] sm:$0xff]  ;;  %v10564_v57 = vld [vmem:[#allocation97_spill] sm:$0xff]  ;;  %vm10570_vm10 = vmmov %vm10566_vm2 }
0x121d   :  { %4979 = vmatprep.subr.mxu0 %v10527_v60  ;;  %4927 = vmatpush2.msra.mxu1 %v10528_v7  ;;  %v4547_v22 = vsel %vm10541_vm9, %v10540_v0, %v4540_v54  ;;  %v4570_v17 = vmul.f32 %v10526_v23, %v4560_v32  ;;  %v4569_v6 = vmul.f32 %v10529_v62, %v4548_v3  ;;  %v10545_v54 = vld [vmem:[#allocation142_spill] sm:$0xff]  ;;  %v10555_v60 = vld [vmem:[#allocation101_spill] sm:$0xff]  ;;  %v10556_v7 = vld [vmem:[#allocation44_spill] sm:$0xff] }
0x121e   :  { %4980 = vmatpush1.msra.mxu0 %v10532_v21  ;;  %4928 = vmatprep.subr.mxu1 %v10533_v28  ;;  %v4566_v61 = vmul.f32 %v10526_v23, %v4559_v26  ;;  %v4565_v37 = vmul.f32 %v10529_v62, %v4547_v22  ;;  %v10552_v23 = vld [vmem:[#allocation176_spill] sm:$0xff]  ;;  %v10561_v28 = vld [vmem:[#allocation45_spill] sm:$0xff]  ;;  %vm10573_vm0 = vmmov %vm10566_vm2 }
0x121f   :  { %v4410_v45 = vpop.permute.xlu1 %4409  ;;  %v4480_v50 = vpop.permute.xlu0 %4479  ;;  %4981 = vmatprep.subr.mxu0 %v4578_v44  ;;  %4929 = vmatpush2.msra.mxu1 %v10536_v46  ;;  %v10554_v44 = vld [vmem:[#allocation94_spill] sm:$0xff]  ;;  %v10559_v21 = vld [vmem:[#allocation92_spill] sm:$0xff]  ;;  %v10563_v46 = vld [vmem:[#allocation105_spill] sm:$0xff] }
0x1220   :  { %4982 = vmatpush1.msra.mxu0 %v4577_v39  ;;  %4930 = vmatprep.subr.mxu1 %v10539_v56  ;;  %v4422_v2 = vsel %vm495_vm11, %v4410_v45, %v9484_v15  ;;  %v4426_v5 = vsel %vm495_vm11, %v9482_v34, %v4410_v45  ;;  %v4485_v15 = vsel %vm10551_vm12, %v10550_v14, %v4480_v50  ;;  %v10557_v39 = vld [vmem:[#allocation166_spill] sm:$0xff]  ;;  %v10562_v53 = vld [vmem:[#allocation96_spill] sm:$0xff]  ;;  %vm10577_vm8 = vmmov %vm10573_vm0 }
0x1221   :  { %4983 = vmatprep.subr.mxu0 %v4574_v43  ;;  %4931 = vmatpush2.msra.mxu1 %v10542_v18  ;;  %v4450_v62 = vmul.f32 %v10556_v7, %v4422_v2  ;;  %v4497_v33 = vsel %vm10558_vm7, %v4480_v50, %v10557_v39  ;;  %v4449_v45 = vmul.f32 %v10561_v28, %v4426_v5  ;;  %v10579_v14 = vld [vmem:[#allocation108_spill] sm:$0xff]  ;;  %vm10580_vm1 = vmmov %vm10573_vm0  ;;  %v6101_v36 = vld [vmem:[#allocation9 + $0x18] sm:$0xff] }
0x1222   :  { %4984 = vmatpush1.msra.mxu0 %v4573_v12  ;;  %4932 = vmatprep.subr.mxu1 %v10543_v41  ;;  %v4510_v56 = vmul.f32 %v10507_v19, %v4497_v33  ;;  %vm10582_vm13 = vmmov %vm10573_vm0  ;;  %v6100_v39 = vld [vmem:[#allocation9 + $0x8] sm:$0xff] }
0x1223   :  { %v4408_v31 = vpop.permute.xlu1 %4407  ;;  %v4482_v63 = vpop.permute.xlu0 %4481  ;;  %4985 = vmatprep.subr.mxu0 %v4570_v17  ;;  %4933 = vmatpush2.msra.mxu1 %v10544_v8  ;;  %v4509_v17 = vmul.f32 %v10506_v40, %v4485_v15  ;;  %vm10584_vm5 = vmmov %vm10573_vm0 }
0x1224   :  { %4986 = vmatpush1.msra.mxu0 %v4569_v6  ;;  %4934 = vmatprep.subr.mxu1 %v10545_v54  ;;  %v4498_v24 = vsel %vm10548_vm3, %v4482_v63, %v10547_v48  ;;  %v4421_v25 = vsel %vm495_vm11, %v4408_v31, %v9382_v30  ;;  %v4486_v34 = vsel %vm10553_vm15, %v10552_v23, %v4482_v63  ;;  %v10560_v30 = vld [vmem:[#allocation104_spill] sm:$0xff]  ;;  %v10572_v54 = vld [vmem:[#allocation167_spill] sm:$0xff]  ;;  %v10581_v23 = vld [vmem:[#allocation109_spill] sm:$0xff] }
0x1225   :  { %4987 = vmatprep.subr.mxu0 %v4566_v61  ;;  %4935 = vmatpush2.msra.mxu1 %v10546_v51  ;;  %v4425_v32 = vsel %vm495_vm11, %v9325_v42, %v4408_v31  ;;  %v4514_v43 = vmul.f32 %v10507_v19, %v4498_v24  ;;  %v4446_v50 = vmul.f32 %v10556_v7, %v4421_v25  ;;  %v10567_v31 = vld [vmem:[#allocation177_spill] sm:$0xff]  ;;  %v10569_v63 = vld [vmem:[#allocation72_spill] sm:$0xff]  ;;  %v10574_v51 = vld [vmem:[#allocation30_spill] sm:$0xff] }
0x1226   :  { %4988 = vmatpush1.msra.mxu0 %v4565_v37  ;;  %4936 = vmatprep.subr.mxu1 %v10549_v10  ;;  %v4513_v42 = vmul.f32 %v10506_v40, %v4486_v34  ;;  %v4445_v0 = vmul.f32 %v10561_v28, %v4425_v32  ;;  %v10571_v37 = vld [vmem:[#allocation73_spill] sm:$0xff]  ;;  %v10576_v10 = vld [vmem:[#allocation32_spill] sm:$0xff] }
0x1227   :  { %v4404_v58 = vpop.permute.xlu1 %4403  ;;  %v4406_v29 = vpop.permute.xlu0 %4405  ;;  %4989 = vmatprep.subr.mxu0 %v10554_v44  ;;  %4937 = vmatpush2.msra.mxu1 %v10555_v60  ;;  %v10575_v24 = vld [vmem:[#allocation129_spill] sm:$0xff] }
0x1228   :  { %4990 = vmatpush1.msra.mxu0 %v10559_v21  ;;  %4938 = vmatprep.subr.mxu1 %v10560_v30  ;;  %v4420_v3 = vsel %vm495_vm11, %v4406_v29, %v9434_v49  ;;  %v4424_v12 = vsel %vm495_vm11, %v9407_v35, %v4406_v29  ;;  %v4419_v49 = vsel %vm495_vm11, %v4404_v58, %v9521_v20  ;;  %v10565_v20 = vld [vmem:[#allocation178_spill] sm:$0xff] }
0x1229   :  { %4991 = vmatprep.subr.mxu0 %v10562_v53  ;;  %4939 = vmatpush2.msra.mxu1 %v10563_v46  ;;  %v4423_v35 = vsel %vm495_vm11, %v9461_v4, %v4404_v58  ;;  %v4442_v18 = vmul.f32 %v10556_v7, %v4420_v3  ;;  %v4441_v19 = vmul.f32 %v10561_v28, %v4424_v12  ;;  %vm10568_vm11 = vmmov %vm10566_vm2 }
0x122a   :  { %4992 = vmatpush1.msra.mxu0 %v10564_v57  ;;  %4940 = vmatprep.subr.mxu1 %v4450_v62  ;;  %v4438_v6 = vmul.f32 %v10556_v7, %v4419_v49  ;;  %v4437_v40 = vmul.f32 %v10561_v28, %v4423_v35  ;;  %v5050_v49 = vld [vmem:[%s9838_s6] sm:$0xf] }
0x122b   :  { %v4674_v26 = vpop.permute.xlu0 %4673  ;;  %4993 = vmatprep.subr.mxu0 %v4514_v43  ;;  %4941 = vmatpush2.msra.mxu1 %v4449_v45  ;;  %v4672_v22 = vpop.permute.xlu1 %4671 }
0x122c   :  { %4994 = vmatpush1.msra.mxu0 %v4513_v42  ;;  %4942 = vmatprep.subr.mxu1 %v4446_v50  ;;  %v4690_v41 = vsel %vm10566_vm2, %v4674_v26, %v10565_v20  ;;  %v4678_v4 = vsel %vm10568_vm11, %v10567_v31, %v4674_v26  ;;  %v4689_v8 = vsel %vm10570_vm10, %v4672_v22, %v10439_v16  ;;  %v10578_v16 = vld [vmem:[#allocation128_spill] sm:$0xff] }
0x122d   :  { %4995 = vmatprep.subr.mxu0 %v4510_v56  ;;  %4943 = vmatpush2.msra.mxu1 %v4445_v0  ;;  %v4677_v2 = vsel %vm10573_vm0, %v10572_v54, %v4672_v22  ;;  %v4706_v5 = vmul.f32 %v10574_v51, %v4690_v41  ;;  %v4705_v58 = vmul.f32 %v10576_v10, %v4678_v4 }
0x122e   :  { %4996 = vmatpush1.msra.mxu0 %v4509_v17  ;;  %4944 = vmatprep.subr.mxu1 %v4442_v18  ;;  %v4702_v15 = vmul.f32 %v10574_v51, %v4689_v8  ;;  %v4701_v34 = vmul.f32 %v10576_v10, %v4677_v2 }
0x122f   :  { %5017 = vmatprep.subr.mxu0 %v10569_v63  ;;  %4945 = vmatpush2.msra.mxu1 %v4441_v19  ;;  %v4670_v61 = vpop.permute.xlu0 %4669  ;;  %v4668_v48 = vpop.permute.xlu1 %4667 }
0x1230   :  { %5018 = vmatpush2.msra.mxu0 %v10571_v37  ;;  %4946 = vmatprep.subr.mxu1 %v4438_v6  ;;  %v4688_v29 = vsel %vm10577_vm8, %v4670_v61, %v9146_v9  ;;  %v4676_v25 = vsel %vm10580_vm1, %v10442_v38, %v4670_v61  ;;  %v4687_v44 = vsel %vm10582_vm13, %v4668_v48, %v9082_v13  ;;  %v10583_v9 = vld [vmem:[#allocation112_spill] sm:$0xff]  ;;  %v10585_v38 = vld [vmem:[#allocation113_spill] sm:$0xff] }
0x1231   :  { %5019 = vmatprep.subr.mxu0 %v10575_v24  ;;  %4947 = vmatpush2.msra.mxu1 %v4437_v40  ;;  %v4675_v60 = vsel %vm10584_vm5, %v9167_v52, %v4668_v48  ;;  %v4698_v7 = vmul.f32 %v10574_v51, %v4688_v29  ;;  %v4697_v62 = vmul.f32 %v10576_v10, %v4676_v25  ;;  %v10586_v52 = vmov 0.0  }
0x1232   :  { %5020 = vmatpush2.msra.mxu0 %v10578_v16  ;;  %4948 = vmatprep.subr.mxu1 %v10579_v14  ;;  %v4694_v33 = vmul.f32 %v10574_v51, %v4687_v44  ;;  %v4693_v13 = vmul.f32 %v10576_v10, %v4675_v60 }
0x1233   :  { %5021 = vmatprep.subr.mxu0 %v4706_v5  ;;  %4949 = vmatpush2.msra.mxu1 %v10581_v23 }
0x1234   :  { %5022 = vmatpush2.msra.mxu0 %v4705_v58  ;;  %4950 = vmatprep.subr.mxu1 %v10583_v9 }
0x1235   :  { %5023 = vmatprep.subr.mxu0 %v4702_v15  ;;  %4951 = vmatpush2.msra.mxu1 %v10585_v38 }
0x1236   :  { %4952 = vmatprep.mubr.f32.mxu1 %v6100_v39  ;;  %5024 = vmatpush2.msra.mxu0 %v4701_v34 }
0x1237   :  { %4953 = vmatmul.mubr.f32.vlgmr.msra.gmra.mxu1 %v9575_v55  ;;  %5025 = vmatprep.subr.mxu0 %v4698_v7 }
0x1238   :  { %5026 = vmatpush2.msra.mxu0 %v4697_v62  ;;  %4958 = vmatprep.mubr.f32.mxu1 %v9601_v1 }
0x1239   :  { %5027 = vmatprep.subr.mxu0 %v4694_v33  ;;  %5345 = vmatprep.mubr.msk.f32.mxu0 %vm4727_vm6, %v6101_v36 }
0x123a   :  { %5028 = vmatpush2.msra.mxu0 %v4693_v13 }
0x123b   :  { %4959 = vmatmul.mubr.f32.gmra.mxu1 %v9617_v27  ;;  %5030 = vmatmul.mubr.f32.vlgmr.msra.gmra.mxu0 %v9425_v47 }
0x123c   :  { %5346 = vmatprep.mubr.msk.f32.mxu0 %vm4727_vm6, %v9628_v11  ;;  %5195 = vmatprep.mubr.f32.mxu1 %v10586_v52  ;;  %v4725_v21 = vpop.permute.xlu0 %4724  ;;  %v4720_v28 = vpop.permute.xlu1 %4719 }
0x123f   :  { %5036 = vmatmul.mubr.f32.gmra.mxu0 %v9642_v59 }
0x1240   :  { %5124 = vmatprep.mubr.f32.mxu0 %v10586_v52  ;;  %v5055_v10 = vpop.permute.xlu0 %5054 }
0x12b5   :  { %v4877_v1 = vpop.f32.mrf.mxu1 }
0x12b7   :  { %v4879_v45 = vpop.f32.mrf.mxu1 }
0x12cb   :  { %v4800_v55 = vpop.f32.mrf.mxu0 }
0x12cc   :  { %v4801_v47 = vadd.f32 %v4800_v55, %v4720_v28 }
0x12cd   :  { %v4802_v32 = vpop.f32.mrf.mxu0 }
0x12ce   :  { %v4803_v27 = vadd.f32 %v4802_v32, %v4720_v28  ;;  %v4878_v59 = vadd.f32 %v4877_v1, %v4801_v47 }
0x12d0   :  { %v4880_v42 = vadd.f32 %v4879_v45, %v4803_v27  ;;  %v5042_v0 = vmax.f32 %v4878_v59, 0.0 }
0x12d1   :  { %v4806_v30 = vpop.f32.mrf.mxu0 }
0x12d2   :  { %v4807_v43 = vadd.f32 %v4806_v30, %v4725_v21  ;;  %v5043_v56 = vmax.f32 %v4880_v42, 0.0 }
0x12d3   :  { %v4808_v53 = vpop.f32.mrf.mxu0 }
0x12d4   :  { %v4809_v3 = vadd.f32 %v4808_v53, %v4725_v21  ;;  %v4883_v46 = vpop.f32.mrf.mxu1 }
0x12d5   :  { %v4884_v11 = vadd.f32 %v4883_v46, %v4807_v43 }
0x12d6   :  { %v4885_v50 = vpop.f32.mrf.mxu1 }
0x12d7   :  { %v4886_v12 = vadd.f32 %v4885_v50, %v4809_v3  ;;  %v5046_v26 = vmax.f32 %v4884_v11, 0.0 }
0x12d9   :  { %v5047_v57 = vmax.f32 %v4886_v12, 0.0 }
0x12db   :  { %5088 = vmatprep.subr.mxu0 %v5047_v57 }
0x12dc   :  { %5089 = vmatpush1.msra.mxu0 %v5046_v26 }
0x12dd   :  { %5090 = vmatprep.subr.mxu0 %v5043_v56 }
0x12de   :  { %5091 = vmatpush1.msra.mxu0 %v5042_v0 }
0x12df   :  { %5347 = vmatmul.mubr.msk.f32.vlgmr.msra.gmra.mxu0 %vm1151_vm4, %v5050_v49 }
0x12f7   :  { %v4954_v22 = vpop.f32.mrf.mxu1 }
0x12f8   :  { %v4955_v4 = vadd.f32 %v4954_v22, %v4720_v28 }
0x12f9   :  { %v4956_v17 = vpop.f32.mrf.mxu1 }
0x12fa   :  { %v4957_v40 = vadd.f32 %v4956_v17, %v4720_v28 }
0x12fb   :  { %v4960_v35 = vpop.f32.mrf.mxu1  ;;  %v5031_v18 = vpop.f32.mrf.mxu0 }
0x12fc   :  { %v4961_v20 = vadd.f32 %v4960_v35, %v4725_v21  ;;  %v5032_v54 = vadd.f32 %v5031_v18, %v4955_v4 }
0x12fd   :  { %v4962_v19 = vpop.f32.mrf.mxu1  ;;  %v5033_v6 = vpop.f32.mrf.mxu0 }
0x12fe   :  { %v4963_v31 = vadd.f32 %v4962_v19, %v4725_v21  ;;  %v5034_v8 = vadd.f32 %v5033_v6, %v4957_v40  ;;  %v5044_v48 = vmax.f32 %v5032_v54, 0.0 }
0x12ff   :  { %v5037_v41 = vpop.f32.mrf.mxu0 }
0x1300   :  { %v5038_v63 = vadd.f32 %v5037_v41, %v4961_v20  ;;  %v5045_v5 = vmax.f32 %v5034_v8, 0.0 }
0x1301   :  { %v5039_v61 = vpop.f32.mrf.mxu0 }
0x1302   :  { %v5040_v37 = vadd.f32 %v5039_v61, %v4963_v31  ;;  %v5048_v51 = vmax.f32 %v5038_v63, 0.0 }
0x1304   :  { %v5049_v2 = vmax.f32 %v5040_v37, 0.0 }
0x1306   :  { %5159 = vmatprep.subr.mxu1 %v5049_v2 }
0x1307   :  { %5160 = vmatpush1.msra.mxu1 %v5048_v51 }
0x1308   :  { %5161 = vmatprep.subr.mxu1 %v5045_v5 }
0x1309   :  { %5162 = vmatpush1.msra.mxu1 %v5044_v48 }
0x130a   :  { %5348 = vmatmul.mubr.msk.f32.vlgmr.msra.gmra.mxu1 %vm1151_vm4, %v5050_v49 }
0x139f   :  { %v5126_v24 = vpop.f32.mrf.mxu0 }
0x13a0   :  { %v5127_v29 = vadd.f32 %v5126_v24, %v5055_v10 }
0x13a1   :  { %v5128_v58 = vpop.f32.mrf.mxu0 }
0x13a2   :  { %v5129_v16 = vadd.f32 %v5128_v58, %v5055_v10 }
0x13a4   :  { %v5206_v14 = vcombine.low %v5127_v29, %v5129_v16 }
0x13a6   :  { %5210 = vst [vmem:[%s10587_s21] sm:$0xff] %v5206_v14 }
0x13ca   :  { %v5197_v15 = vpop.f32.mrf.mxu1 }
0x13cb   :  { %v5198_v23 = vadd.f32 %v5197_v15, %v5055_v10 }
0x13cc   :  { %v5199_v25 = vpop.f32.mrf.mxu1 }
0x13cd   :  { %v5200_v34 = vadd.f32 %v5199_v25, %v5055_v10 }
0x13cf   :  { %v5207_v44 = vcombine.low %v5198_v23, %v5200_v34 }
0x13d1   :  { %5211 = vst [vmem:[%s10587_s21 + $0x8] sm:$0xff] %v5207_v44 }
0x13d2   :  { %5216 = vsyncpa [#allocation3], 1 }
0x13d3   :  { %5217 = vsyncpa [#allocation5], 1 }
0x13d4   :  { %5218 = vsyncpa [#allocation8], 1 }
0x13d5   :  { %5219 = vsyncpa [#allocation11], 1 }
0x13d6   :  { %5220 = vsyncpa [#allocation14], 1 }
0x13d7   :  { %5221 = vsyncpa [#allocation17], 1 }
0x13d8   :  { %5222 = vsyncpa [#allocation20], 1 }

</bundles_post_ra>
